<compile_context>
chip_gen: v6e
topology: v6e:2x2x1
jax: 0.10.0
libtpu: 0.0.40
codegen_flags: <defaults>
</compile_context>

<pallas_src>
import functools

import jax
import jax.numpy as jnp
import numpy as np
from jax.experimental import pallas as pl
from jax.experimental.pallas import tpu as pltpu


def _round_up(x, m):
    return ((x + m - 1) // m) * m


# ------------------------------ Pallas kernel ------------------------------ #

def _inception_kernel(x_ref, wf_ref, bf_ref, w3_ref, b3_ref, w5_ref, b5_ref,
                      wp_ref, bp_ref, o_ref, *, h, w, wg, c1, c3r, c5r, c_pad):
    # x_ref : (1, h+4, wpad, cin) bf16, zero-padded image (pad=2 top/left,
    #         >=2 right/bottom; wpad is a multiple of 8).
    # wf_ref: (cin, c1+c3r+c5r) bf16 fused 1x1 weights; bf_ref: (1, c1+c3r+c5r) f32
    # w3_ref: (9*c3r, c3) bf16;  w5_ref: (25*c5r, c5) bf16;  wp_ref: (cin, cp) bf16
    # o_ref : (1, h*wg, c_pad) f32  (lane-dense padded channel slab)
    hp, wpad, cin = x_ref.shape[1], x_ref.shape[2], x_ref.shape[3]
    xb = x_ref[0]                                             # (hp, wpad, cin) bf16

    # Mask of "real" (unpadded) pixels inside the padded spatial grid (hoisted,
    # reused by both reducer outputs and the pool branch).
    rows = jax.lax.broadcasted_iota(jnp.int32, (hp, wpad, 1), 0)
    cols = jax.lax.broadcasted_iota(jnp.int32, (hp, wpad, 1), 1)
    interior = (rows >= 2) & (rows < 2 + h) & (cols >= 2) & (cols < 2 + w)

    # ---- Fused 1x1 convolutions (branch a + 3x3 / 5x5 reducers): one MXU GEMM.
    x2 = xb.reshape(hp * wpad, cin)
    yf = jnp.dot(x2, wf_ref[...], preferred_element_type=jnp.float32)
    yf = jnp.maximum(yf + bf_ref[...], 0.0).reshape(hp, wpad, -1)

    a = yf[2:2 + h, 2:2 + wg, :c1].reshape(h * wg, c1)        # branch a (f32)
    # Reducer outputs: zero outside the real image (== zero-padding of the next conv).
    r3 = jnp.where(interior, yf[:, :, c1:c1 + c3r], 0.0).astype(jnp.bfloat16)
    r5 = jnp.where(interior, yf[:, :, c1 + c3r:c1 + c3r + c5r], 0.0).astype(jnp.bfloat16)

    def taps(src, k, off):
        # Flatten the k*k shifted taps into the lane dim -> (h*wg, k*k*c).
        parts = [src[off + kh:off + kh + h, off + kw:off + kw + wg, :]
                 for kh in range(k) for kw in range(k)]
        return jnp.concatenate(parts, axis=-1).reshape(h * wg, k * k * src.shape[-1])

    # ---- 3x3 branch: one (h*wg, 9*c3r) x (9*c3r, c3) GEMM.
    yb = jnp.dot(taps(r3, 3, 1), w3_ref[...], preferred_element_type=jnp.float32)
    yb = jnp.maximum(yb + b3_ref[...], 0.0)

    # ---- 5x5 branch: one (h*wg, 25*c5r) x (25*c5r, c5) GEMM.
    yc = jnp.dot(taps(r5, 5, 0), w5_ref[...], preferred_element_type=jnp.float32)
    yc = jnp.maximum(yc + b5_ref[...], 0.0)

    # ---- Pool branch: 3x3 max-pool (f32 compares, large-negative padding) + 1x1 conv.
    neg = jnp.float32(-1e30)
    xf = jnp.where(interior, xb.astype(jnp.float32), neg)
    m = None
    for kh in range(3):
        for kw in range(3):
            t = xf[1 + kh:1 + kh + h, 1 + kw:1 + kw + wg, :]
            m = t if m is None else jnp.maximum(m, t)
    yd = jnp.dot(m.reshape(h * wg, cin).astype(jnp.bfloat16), wp_ref[...],
                 preferred_element_type=jnp.float32)
    yd = jnp.maximum(yd + bp_ref[...], 0.0)

    # ---- Channel concat, pad to lane-dense width, single wide store.
    out = jnp.concatenate([a, yb, yc, yd], axis=-1)           # (h*wg, ctot) f32
    ctot = out.shape[-1]
    if c_pad > ctot:
        out = jnp.concatenate(
            [out, jnp.zeros((h * wg, c_pad - ctot), jnp.float32)], axis=-1)
    o_ref[0] = out.astype(o_ref.dtype)


# --------------------------- InceptionBlock forward ------------------------ #

def inception_forward(x_nchw, params):
    x = jnp.transpose(x_nchw, (0, 2, 3, 1)).astype(jnp.float32)   # NCHW -> NHWC
    n, h, w, cin = x.shape

    wg = _round_up(w, 8)          # sublane-aligned output-grid width
    wpad = _round_up(wg + 4, 8)   # padded width (>= w + 4 halo, multiple of 8)
    hp = h + 4
    # Cast to bf16 first so the host-side pad copies half the bytes.
    xp = jnp.pad(x.astype(jnp.bfloat16),
                 ((0, 0), (2, 2), (2, wpad - w - 2), (0, 0)))

    c1 = params['w1'].shape[-1]
    c3r, c3 = params['w3r'].shape[-1], params['w3'].shape[-1]
    c5r, c5 = params['w5r'].shape[-1], params['w5'].shape[-1]
    cp = params['wp'].shape[-1]
    ctot = c1 + c3 + c5 + cp
    c_pad = _round_up(ctot, 128)

    bf16 = jnp.bfloat16
    wf = jnp.concatenate([params['w1'][0], params['w3r'][0], params['w5r'][0]],
                         axis=-1).astype(bf16)                    # (cin, c1+c3r+c5r)
    bfused = jnp.concatenate([params['b1'], params['b3r'], params['b5r']],
                             axis=-1).astype(jnp.float32)         # (1, c1+c3r+c5r)
    w3 = params['w3'].reshape(9 * c3r, c3).astype(bf16)
    w5 = params['w5'].reshape(25 * c5r, c5).astype(bf16)
    wpool = params['wp'].astype(bf16)
    b3 = params['b3'].astype(jnp.float32)
    b5 = params['b5'].astype(jnp.float32)
    bp = params['bp'].astype(jnp.float32)

    mrows = n * h * wg
    flops = 2 * mrows * (cin * wf.shape[-1] + 9 * c3r * c3
                         + 25 * c5r * c5 + cin * cp)
    bytes_accessed = (xp.size * 2
                      + (wf.size + w3.size + w5.size + wpool.size) * 2
                      + (bfused.size + b3.size + b5.size + bp.size) * 4
                      + n * h * wg * c_pad * 4)

    kernel = functools.partial(_inception_kernel, h=h, w=w, wg=wg,
                               c1=c1, c3r=c3r, c5r=c5r, c_pad=c_pad)

    out = pl.pallas_call(
        kernel,
        out_shape=jax.ShapeDtypeStruct((n, h * wg, c_pad), jnp.float32),
        grid=(n,),
        in_specs=[
            pl.BlockSpec((1, hp, wpad, cin), lambda i: (i, 0, 0, 0)),
            pl.BlockSpec(wf.shape, lambda i: (0, 0)),
            pl.BlockSpec(bfused.shape, lambda i: (0, 0)),
            pl.BlockSpec(w3.shape, lambda i: (0, 0)),
            pl.BlockSpec(b3.shape, lambda i: (0, 0)),
            pl.BlockSpec(w5.shape, lambda i: (0, 0)),
            pl.BlockSpec(b5.shape, lambda i: (0, 0)),
            pl.BlockSpec(wpool.shape, lambda i: (0, 0)),
            pl.BlockSpec(bp.shape, lambda i: (0, 0)),
        ],
        out_specs=pl.BlockSpec((1, h * wg, c_pad), lambda i: (i, 0, 0)),
        compiler_params=pltpu.CompilerParams(
            dimension_semantics=("parallel",)),   # per-image VMEM use is tiny; default scoped VMEM is plenty
        cost_estimate=pl.CostEstimate(flops=flops, transcendentals=0,
                                      bytes_accessed=bytes_accessed),
    )(xp, wf, bfused, w3, b3, w5, b5, wpool, bp)

    out = out.reshape(n, h, wg, c_pad)[:, :, :w, :ctot]           # drop pad cols/chans
    return jnp.transpose(out, (0, 3, 1, 2))                       # NHWC -> NCHW


def init_params(key, cin, c1x1, cin3, cout3, cin5, cout5, cpool):
    keys = jax.random.split(key, 12)

    def wgt(k, shape, fan_in):
        return jax.random.normal(k, shape, jnp.float32) / jnp.sqrt(float(fan_in))

    return {
        'w1':  wgt(keys[0], (1, cin, c1x1), cin),
        'b1':  wgt(keys[1], (1, c1x1), cin),
        'w3r': wgt(keys[2], (1, cin, cin3), cin),
        'b3r': wgt(keys[3], (1, cin3), cin),
        'w3':  wgt(keys[4], (9, cin3, cout3), 9 * cin3),
        'b3':  wgt(keys[5], (1, cout3), 9 * cin3),
        'w5r': wgt(keys[6], (1, cin, cin5), cin),
        'b5r': wgt(keys[7], (1, cin5), cin),
        'w5':  wgt(keys[8], (25, cin5, cout5), 25 * cin5),
        'b5':  wgt(keys[9], (1, cout5), 25 * cin5),
        'wp':  wgt(keys[10], (cin, cpool), cin),
        'bp':  wgt(keys[11], (1, cpool), cin),
    }


# ------------------------------ pure-JAX reference ------------------------- #

def ref_forward(x_nchw, params):
    x = jnp.transpose(x_nchw, (0, 2, 3, 1)).astype(jnp.float32)

    def conv(x_in, wt, bt, k, pad):
        w_hwio = wt.reshape(k, k, wt.shape[1], wt.shape[2])
        y = jax.lax.conv_general_dilated(
            x_in, w_hwio, window_strides=(1, 1),
            padding=[(pad, pad), (pad, pad)],
            dimension_numbers=('NHWC', 'HWIO', 'NHWC'))
        return jax.nn.relu(y + bt.reshape(1, 1, 1, -1))

    a = conv(x, params['w1'], params['b1'], 1, 0)
    b = conv(conv(x, params['w3r'], params['b3r'], 1, 0),
             params['w3'], params['b3'], 3, 1)
    c = conv(conv(x, params['w5r'], params['b5r'], 1, 0),
             params['w5'], params['b5'], 5, 2)
    pooled = jax.lax.reduce_window(x, -jnp.inf, jax.lax.max,
                                   (1, 3, 3, 1), (1, 1, 1, 1),
                                   [(0, 0), (1, 1), (1, 1), (0, 0)])
    d = jax.nn.relu(jnp.einsum('nhwc,cd->nhwd', pooled, params['wp'])
                    + params['bp'].reshape(1, 1, 1, -1))
    out = jnp.concatenate([a, b, c, d], axis=-1)
    return jnp.transpose(out, (0, 3, 1, 2))


# ----------------------------------- main ----------------------------------- #

if __name__ == "__main__":
    key = jax.random.PRNGKey(0)
    kx, kp = jax.random.split(key)

    N, CIN, H, W = 2, 4, 16, 16
    C1, C3R, C3, C5R, C5, CP = 8, 4, 8, 4, 8, 8   # InceptionBlock(4, 8, 4, 8, 4, 8, 8)

    x = jax.random.normal(kx, (N, CIN, H, W), jnp.float32)
    params = init_params(kp, CIN, C1, C3R, C3, C5R, C5, CP)

    out = jax.jit(inception_forward)(x, params)
    out = jax.block_until_ready(out)
    assert out.shape == (N, C1 + C3 + C5 + CP, H, W), out.shape

    ref = ref_forward(x, params)
    # bf16 MXU operands with f32 accumulation -> slightly looser tolerance.
    np.testing.assert_allclose(np.asarray(out), np.asarray(ref),
                               atol=3e-2, rtol=3e-2)
    print("KERNEL_OK")
</pallas_src>

<mosaic_0001>
module attributes {stable_mosaic.version = 11 : i64} {
  func.func @_inception_kernel(%arg0: i32, %arg1: memref<1x20x24x4xbf16, #tpu.memory_space<vmem>>, %arg2: memref<4x16xbf16, #tpu.memory_space<vmem>>, %arg3: memref<1x16xf32, #tpu.memory_space<vmem>>, %arg4: memref<36x8xbf16, #tpu.memory_space<vmem>>, %arg5: memref<1x8xf32, #tpu.memory_space<vmem>>, %arg6: memref<100x8xbf16, #tpu.memory_space<vmem>>, %arg7: memref<1x8xf32, #tpu.memory_space<vmem>>, %arg8: memref<4x8xbf16, #tpu.memory_space<vmem>>, %arg9: memref<1x8xf32, #tpu.memory_space<vmem>>, %arg10: memref<1x256x128xf32, #tpu.memory_space<vmem>>) attributes {dimension_semantics = [#tpu.dimension_semantics<parallel>], iteration_bounds = array<i64: 2>, scalar_prefetch = 0 : i64, scratch_operands = 0 : i64, tpu.core_type = #tpu.core_type<tc>, window_params = [{transform_indices = @transform_0, window_bounds = array<i64: 1, 20, 24, 4>}, {pipeline_mode = #tpu.pipeline_mode<synchronous>, transform_indices = @transform_1, window_bounds = array<i64: 4, 16>}, {pipeline_mode = #tpu.pipeline_mode<synchronous>, transform_indices = @transform_2, window_bounds = array<i64: 1, 16>}, {pipeline_mode = #tpu.pipeline_mode<synchronous>, transform_indices = @transform_3, window_bounds = array<i64: 36, 8>}, {pipeline_mode = #tpu.pipeline_mode<synchronous>, transform_indices = @transform_4, window_bounds = array<i64: 1, 8>}, {pipeline_mode = #tpu.pipeline_mode<synchronous>, transform_indices = @transform_5, window_bounds = array<i64: 100, 8>}, {pipeline_mode = #tpu.pipeline_mode<synchronous>, transform_indices = @transform_6, window_bounds = array<i64: 1, 8>}, {pipeline_mode = #tpu.pipeline_mode<synchronous>, transform_indices = @transform_7, window_bounds = array<i64: 4, 8>}, {pipeline_mode = #tpu.pipeline_mode<synchronous>, transform_indices = @transform_8, window_bounds = array<i64: 1, 8>}, {transform_indices = @transform_9, window_bounds = array<i64: 1, 256, 128>}]} {
    %c0 = arith.constant 0 : index
    %c0_0 = arith.constant 0 : index
    %c0_1 = arith.constant 0 : index
    %c0_2 = arith.constant 0 : index
    %0 = vector.load %arg1[%c0, %c0_0, %c0_1, %c0_2] : memref<1x20x24x4xbf16, #tpu.memory_space<vmem>>, vector<1x20x24x4xbf16>
    %1 = vector.shape_cast %0 : vector<1x20x24x4xbf16> to vector<20x24x4xbf16>
    %2 = tpu.iota {dimensions = array<i32: 0>} : vector<20x24x1xi32>
    %3 = tpu.iota {dimensions = array<i32: 1>} : vector<20x24x1xi32>
    %c2_i32 = arith.constant 2 : i32
    %4 = vector.broadcast %c2_i32 : i32 to vector<20x24x1xi32>
    %5 = arith.cmpi sge, %2, %4 : vector<20x24x1xi32>
    %c18_i32 = arith.constant 18 : i32
    %6 = vector.broadcast %c18_i32 : i32 to vector<20x24x1xi32>
    %7 = arith.cmpi slt, %2, %6 : vector<20x24x1xi32>
    %8 = arith.andi %5, %7 : vector<20x24x1xi1>
    %c2_i32_3 = arith.constant 2 : i32
    %9 = vector.broadcast %c2_i32_3 : i32 to vector<20x24x1xi32>
    %10 = arith.cmpi sge, %3, %9 : vector<20x24x1xi32>
    %11 = arith.andi %8, %10 : vector<20x24x1xi1>
    %c18_i32_4 = arith.constant 18 : i32
    %12 = vector.broadcast %c18_i32_4 : i32 to vector<20x24x1xi32>
    %13 = arith.cmpi slt, %3, %12 : vector<20x24x1xi32>
    %14 = arith.andi %11, %13 : vector<20x24x1xi1>
    %15 = vector.shape_cast %1 : vector<20x24x4xbf16> to vector<480x4xbf16>
    %c0_5 = arith.constant 0 : index
    %c0_6 = arith.constant 0 : index
    %16 = vector.load %arg2[%c0_5, %c0_6] : memref<4x16xbf16, #tpu.memory_space<vmem>>, vector<4x16xbf16>
    %cst = arith.constant dense<0.000000e+00> : vector<480x16xf32>
    %17 = tpu.matmul %15, %16, %cst {dimension_numbers = #tpu.dot_dimension_numbers<[1], [0], [0], [1], [0, 0, 1, 1], [], []>} : vector<480x4xbf16>, vector<4x16xbf16>, vector<480x16xf32> -> vector<480x16xf32>
    %c0_7 = arith.constant 0 : index
    %c0_8 = arith.constant 0 : index
    %18 = vector.load %arg3[%c0_7, %c0_8] : memref<1x16xf32, #tpu.memory_space<vmem>>, vector<1x16xf32>
    %19 = vector.broadcast %18 : vector<1x16xf32> to vector<480x16xf32>
    %20 = arith.addf %17, %19 : vector<480x16xf32>
    %cst_9 = arith.constant 0.000000e+00 : f32
    %21 = vector.broadcast %cst_9 : f32 to vector<480x16xf32>
    %22 = arith.maximumf %20, %21 : vector<480x16xf32>
    %23 = vector.shape_cast %22 : vector<480x16xf32> to vector<20x24x16xf32>
    %24 = vector.extract_strided_slice %23 {offsets = [2, 2, 0], sizes = [16, 16, 8], strides = [1, 1, 1]} : vector<20x24x16xf32> to vector<16x16x8xf32>
    %25 = vector.shape_cast %24 : vector<16x16x8xf32> to vector<256x8xf32>
    %26 = vector.extract_strided_slice %23 {offsets = [0, 0, 8], sizes = [20, 24, 4], strides = [1, 1, 1]} : vector<20x24x16xf32> to vector<20x24x4xf32>
    %cst_10 = arith.constant 0.000000e+00 : f32
    %27 = vector.shape_cast %14 : vector<20x24x1xi1> to vector<20x24x1xi1>
    %28 = vector.broadcast %27 : vector<20x24x1xi1> to vector<20x24x4xi1>
    %29 = vector.broadcast %cst_10 : f32 to vector<20x24x4xf32>
    %30 = arith.select %28, %26, %29 : vector<20x24x4xi1>, vector<20x24x4xf32>
    %31 = arith.truncf %30 : vector<20x24x4xf32> to vector<20x24x4xbf16>
    %32 = vector.extract_strided_slice %23 {offsets = [0, 0, 12], sizes = [20, 24, 4], strides = [1, 1, 1]} : vector<20x24x16xf32> to vector<20x24x4xf32>
    %cst_11 = arith.constant 0.000000e+00 : f32
    %33 = vector.shape_cast %14 : vector<20x24x1xi1> to vector<20x24x1xi1>
    %34 = vector.broadcast %33 : vector<20x24x1xi1> to vector<20x24x4xi1>
    %35 = vector.broadcast %cst_11 : f32 to vector<20x24x4xf32>
    %36 = arith.select %34, %32, %35 : vector<20x24x4xi1>, vector<20x24x4xf32>
    %37 = arith.truncf %36 : vector<20x24x4xf32> to vector<20x24x4xbf16>
    %38 = vector.extract_strided_slice %31 {offsets = [1, 1, 0], sizes = [16, 16, 4], strides = [1, 1, 1]} : vector<20x24x4xbf16> to vector<16x16x4xbf16>
    %39 = vector.extract_strided_slice %31 {offsets = [1, 2, 0], sizes = [16, 16, 4], strides = [1, 1, 1]} : vector<20x24x4xbf16> to vector<16x16x4xbf16>
    %40 = vector.extract_strided_slice %31 {offsets = [1, 3, 0], sizes = [16, 16, 4], strides = [1, 1, 1]} : vector<20x24x4xbf16> to vector<16x16x4xbf16>
    %41 = vector.extract_strided_slice %31 {offsets = [2, 1, 0], sizes = [16, 16, 4], strides = [1, 1, 1]} : vector<20x24x4xbf16> to vector<16x16x4xbf16>
    %42 = vector.extract_strided_slice %31 {offsets = [2, 2, 0], sizes = [16, 16, 4], strides = [1, 1, 1]} : vector<20x24x4xbf16> to vector<16x16x4xbf16>
    %43 = vector.extract_strided_slice %31 {offsets = [2, 3, 0], sizes = [16, 16, 4], strides = [1, 1, 1]} : vector<20x24x4xbf16> to vector<16x16x4xbf16>
    %44 = vector.extract_strided_slice %31 {offsets = [3, 1, 0], sizes = [16, 16, 4], strides = [1, 1, 1]} : vector<20x24x4xbf16> to vector<16x16x4xbf16>
    %45 = vector.extract_strided_slice %31 {offsets = [3, 2, 0], sizes = [16, 16, 4], strides = [1, 1, 1]} : vector<20x24x4xbf16> to vector<16x16x4xbf16>
    %46 = vector.extract_strided_slice %31 {offsets = [3, 3, 0], sizes = [16, 16, 4], strides = [1, 1, 1]} : vector<20x24x4xbf16> to vector<16x16x4xbf16>
    %47 = tpu.concatenate %38, %39, %40, %41, %42, %43, %44, %45, %46 in 2 : vector<16x16x4xbf16>, vector<16x16x4xbf16>, vector<16x16x4xbf16>, vector<16x16x4xbf16>, vector<16x16x4xbf16>, vector<16x16x4xbf16>, vector<16x16x4xbf16>, vector<16x16x4xbf16>, vector<16x16x4xbf16> -> vector<16x16x36xbf16>
    %48 = vector.shape_cast %47 : vector<16x16x36xbf16> to vector<256x36xbf16>
    %c0_12 = arith.constant 0 : index
    %c0_13 = arith.constant 0 : index
    %49 = vector.load %arg4[%c0_12, %c0_13] : memref<36x8xbf16, #tpu.memory_space<vmem>>, vector<36x8xbf16>
    %cst_14 = arith.constant dense<0.000000e+00> : vector<256x8xf32>
    %50 = tpu.matmul %48, %49, %cst_14 {dimension_numbers = #tpu.dot_dimension_numbers<[1], [0], [0], [1], [0, 0, 1, 1], [], []>} : vector<256x36xbf16>, vector<36x8xbf16>, vector<256x8xf32> -> vector<256x8xf32>
    %c0_15 = arith.constant 0 : index
    %c0_16 = arith.constant 0 : index
    %51 = vector.load %arg5[%c0_15, %c0_16] : memref<1x8xf32, #tpu.memory_space<vmem>>, vector<1x8xf32>
    %52 = vector.broadcast %51 : vector<1x8xf32> to vector<256x8xf32>
    %53 = arith.addf %50, %52 : vector<256x8xf32>
    %cst_17 = arith.constant 0.000000e+00 : f32
    %54 = vector.broadcast %cst_17 : f32 to vector<256x8xf32>
    %55 = arith.maximumf %53, %54 : vector<256x8xf32>
    %56 = vector.extract_strided_slice %37 {offsets = [0, 0, 0], sizes = [16, 16, 4], strides = [1, 1, 1]} : vector<20x24x4xbf16> to vector<16x16x4xbf16>
    %57 = vector.extract_strided_slice %37 {offsets = [0, 1, 0], sizes = [16, 16, 4], strides = [1, 1, 1]} : vector<20x24x4xbf16> to vector<16x16x4xbf16>
    %58 = vector.extract_strided_slice %37 {offsets = [0, 2, 0], sizes = [16, 16, 4], strides = [1, 1, 1]} : vector<20x24x4xbf16> to vector<16x16x4xbf16>
    %59 = vector.extract_strided_slice %37 {offsets = [0, 3, 0], sizes = [16, 16, 4], strides = [1, 1, 1]} : vector<20x24x4xbf16> to vector<16x16x4xbf16>
    %60 = vector.extract_strided_slice %37 {offsets = [0, 4, 0], sizes = [16, 16, 4], strides = [1, 1, 1]} : vector<20x24x4xbf16> to vector<16x16x4xbf16>
    %61 = vector.extract_strided_slice %37 {offsets = [1, 0, 0], sizes = [16, 16, 4], strides = [1, 1, 1]} : vector<20x24x4xbf16> to vector<16x16x4xbf16>
    %62 = vector.extract_strided_slice %37 {offsets = [1, 1, 0], sizes = [16, 16, 4], strides = [1, 1, 1]} : vector<20x24x4xbf16> to vector<16x16x4xbf16>
    %63 = vector.extract_strided_slice %37 {offsets = [1, 2, 0], sizes = [16, 16, 4], strides = [1, 1, 1]} : vector<20x24x4xbf16> to vector<16x16x4xbf16>
    %64 = vector.extract_strided_slice %37 {offsets = [1, 3, 0], sizes = [16, 16, 4], strides = [1, 1, 1]} : vector<20x24x4xbf16> to vector<16x16x4xbf16>
    %65 = vector.extract_strided_slice %37 {offsets = [1, 4, 0], sizes = [16, 16, 4], strides = [1, 1, 1]} : vector<20x24x4xbf16> to vector<16x16x4xbf16>
    %66 = vector.extract_strided_slice %37 {offsets = [2, 0, 0], sizes = [16, 16, 4], strides = [1, 1, 1]} : vector<20x24x4xbf16> to vector<16x16x4xbf16>
    %67 = vector.extract_strided_slice %37 {offsets = [2, 1, 0], sizes = [16, 16, 4], strides = [1, 1, 1]} : vector<20x24x4xbf16> to vector<16x16x4xbf16>
    %68 = vector.extract_strided_slice %37 {offsets = [2, 2, 0], sizes = [16, 16, 4], strides = [1, 1, 1]} : vector<20x24x4xbf16> to vector<16x16x4xbf16>
    %69 = vector.extract_strided_slice %37 {offsets = [2, 3, 0], sizes = [16, 16, 4], strides = [1, 1, 1]} : vector<20x24x4xbf16> to vector<16x16x4xbf16>
    %70 = vector.extract_strided_slice %37 {offsets = [2, 4, 0], sizes = [16, 16, 4], strides = [1, 1, 1]} : vector<20x24x4xbf16> to vector<16x16x4xbf16>
    %71 = vector.extract_strided_slice %37 {offsets = [3, 0, 0], sizes = [16, 16, 4], strides = [1, 1, 1]} : vector<20x24x4xbf16> to vector<16x16x4xbf16>
    %72 = vector.extract_strided_slice %37 {offsets = [3, 1, 0], sizes = [16, 16, 4], strides = [1, 1, 1]} : vector<20x24x4xbf16> to vector<16x16x4xbf16>
    %73 = vector.extract_strided_slice %37 {offsets = [3, 2, 0], sizes = [16, 16, 4], strides = [1, 1, 1]} : vector<20x24x4xbf16> to vector<16x16x4xbf16>
    %74 = vector.extract_strided_slice %37 {offsets = [3, 3, 0], sizes = [16, 16, 4], strides = [1, 1, 1]} : vector<20x24x4xbf16> to vector<16x16x4xbf16>
    %75 = vector.extract_strided_slice %37 {offsets = [3, 4, 0], sizes = [16, 16, 4], strides = [1, 1, 1]} : vector<20x24x4xbf16> to vector<16x16x4xbf16>
    %76 = vector.extract_strided_slice %37 {offsets = [4, 0, 0], sizes = [16, 16, 4], strides = [1, 1, 1]} : vector<20x24x4xbf16> to vector<16x16x4xbf16>
    %77 = vector.extract_strided_slice %37 {offsets = [4, 1, 0], sizes = [16, 16, 4], strides = [1, 1, 1]} : vector<20x24x4xbf16> to vector<16x16x4xbf16>
    %78 = vector.extract_strided_slice %37 {offsets = [4, 2, 0], sizes = [16, 16, 4], strides = [1, 1, 1]} : vector<20x24x4xbf16> to vector<16x16x4xbf16>
    %79 = vector.extract_strided_slice %37 {offsets = [4, 3, 0], sizes = [16, 16, 4], strides = [1, 1, 1]} : vector<20x24x4xbf16> to vector<16x16x4xbf16>
    %80 = vector.extract_strided_slice %37 {offsets = [4, 4, 0], sizes = [16, 16, 4], strides = [1, 1, 1]} : vector<20x24x4xbf16> to vector<16x16x4xbf16>
    %81 = tpu.concatenate %56, %57, %58, %59, %60, %61, %62, %63, %64, %65, %66, %67, %68, %69, %70, %71 in 2 : vector<16x16x4xbf16>, vector<16x16x4xbf16>, vector<16x16x4xbf16>, vector<16x16x4xbf16>, vector<16x16x4xbf16>, vector<16x16x4xbf16>, vector<16x16x4xbf16>, vector<16x16x4xbf16>, vector<16x16x4xbf16>, vector<16x16x4xbf16>, vector<16x16x4xbf16>, vector<16x16x4xbf16>, vector<16x16x4xbf16>, vector<16x16x4xbf16>, vector<16x16x4xbf16>, vector<16x16x4xbf16> -> vector<16x16x64xbf16>
    %82 = tpu.concatenate %72, %73, %74, %75, %76, %77, %78, %79, %80 in 2 : vector<16x16x4xbf16>, vector<16x16x4xbf16>, vector<16x16x4xbf16>, vector<16x16x4xbf16>, vector<16x16x4xbf16>, vector<16x16x4xbf16>, vector<16x16x4xbf16>, vector<16x16x4xbf16>, vector<16x16x4xbf16> -> vector<16x16x36xbf16>
    %83 = tpu.concatenate %81, %82 in 2 : vector<16x16x64xbf16>, vector<16x16x36xbf16> -> vector<16x16x100xbf16>
    %84 = vector.shape_cast %83 : vector<16x16x100xbf16> to vector<256x100xbf16>
    %c0_18 = arith.constant 0 : index
    %c0_19 = arith.constant 0 : index
    %85 = vector.load %arg6[%c0_18, %c0_19] : memref<100x8xbf16, #tpu.memory_space<vmem>>, vector<100x8xbf16>
    %cst_20 = arith.constant dense<0.000000e+00> : vector<256x8xf32>
    %86 = tpu.matmul %84, %85, %cst_20 {dimension_numbers = #tpu.dot_dimension_numbers<[1], [0], [0], [1], [0, 0, 1, 1], [], []>} : vector<256x100xbf16>, vector<100x8xbf16>, vector<256x8xf32> -> vector<256x8xf32>
    %c0_21 = arith.constant 0 : index
    %c0_22 = arith.constant 0 : index
    %87 = vector.load %arg7[%c0_21, %c0_22] : memref<1x8xf32, #tpu.memory_space<vmem>>, vector<1x8xf32>
    %88 = vector.broadcast %87 : vector<1x8xf32> to vector<256x8xf32>
    %89 = arith.addf %86, %88 : vector<256x8xf32>
    %cst_23 = arith.constant 0.000000e+00 : f32
    %90 = vector.broadcast %cst_23 : f32 to vector<256x8xf32>
    %91 = arith.maximumf %89, %90 : vector<256x8xf32>
    %92 = arith.extf %1 : vector<20x24x4xbf16> to vector<20x24x4xf32>
    %cst_24 = arith.constant -1.000000e+30 : f32
    %93 = vector.shape_cast %14 : vector<20x24x1xi1> to vector<20x24x1xi1>
    %94 = vector.broadcast %93 : vector<20x24x1xi1> to vector<20x24x4xi1>
    %95 = vector.broadcast %cst_24 : f32 to vector<20x24x4xf32>
    %96 = arith.select %94, %92, %95 : vector<20x24x4xi1>, vector<20x24x4xf32>
    %97 = vector.extract_strided_slice %96 {offsets = [1, 1, 0], sizes = [16, 16, 4], strides = [1, 1, 1]} : vector<20x24x4xf32> to vector<16x16x4xf32>
    %98 = vector.extract_strided_slice %96 {offsets = [1, 2, 0], sizes = [16, 16, 4], strides = [1, 1, 1]} : vector<20x24x4xf32> to vector<16x16x4xf32>
    %99 = arith.maximumf %97, %98 : vector<16x16x4xf32>
    %100 = vector.extract_strided_slice %96 {offsets = [1, 3, 0], sizes = [16, 16, 4], strides = [1, 1, 1]} : vector<20x24x4xf32> to vector<16x16x4xf32>
    %101 = arith.maximumf %99, %100 : vector<16x16x4xf32>
    %102 = vector.extract_strided_slice %96 {offsets = [2, 1, 0], sizes = [16, 16, 4], strides = [1, 1, 1]} : vector<20x24x4xf32> to vector<16x16x4xf32>
    %103 = arith.maximumf %101, %102 : vector<16x16x4xf32>
    %104 = vector.extract_strided_slice %96 {offsets = [2, 2, 0], sizes = [16, 16, 4], strides = [1, 1, 1]} : vector<20x24x4xf32> to vector<16x16x4xf32>
    %105 = arith.maximumf %103, %104 : vector<16x16x4xf32>
    %106 = vector.extract_strided_slice %96 {offsets = [2, 3, 0], sizes = [16, 16, 4], strides = [1, 1, 1]} : vector<20x24x4xf32> to vector<16x16x4xf32>
    %107 = arith.maximumf %105, %106 : vector<16x16x4xf32>
    %108 = vector.extract_strided_slice %96 {offsets = [3, 1, 0], sizes = [16, 16, 4], strides = [1, 1, 1]} : vector<20x24x4xf32> to vector<16x16x4xf32>
    %109 = arith.maximumf %107, %108 : vector<16x16x4xf32>
    %110 = vector.extract_strided_slice %96 {offsets = [3, 2, 0], sizes = [16, 16, 4], strides = [1, 1, 1]} : vector<20x24x4xf32> to vector<16x16x4xf32>
    %111 = arith.maximumf %109, %110 : vector<16x16x4xf32>
    %112 = vector.extract_strided_slice %96 {offsets = [3, 3, 0], sizes = [16, 16, 4], strides = [1, 1, 1]} : vector<20x24x4xf32> to vector<16x16x4xf32>
    %113 = arith.maximumf %111, %112 : vector<16x16x4xf32>
    %114 = vector.shape_cast %113 : vector<16x16x4xf32> to vector<256x4xf32>
    %115 = arith.truncf %114 : vector<256x4xf32> to vector<256x4xbf16>
    %c0_25 = arith.constant 0 : index
    %c0_26 = arith.constant 0 : index
    %116 = vector.load %arg8[%c0_25, %c0_26] : memref<4x8xbf16, #tpu.memory_space<vmem>>, vector<4x8xbf16>
    %cst_27 = arith.constant dense<0.000000e+00> : vector<256x8xf32>
    %117 = tpu.matmul %115, %116, %cst_27 {dimension_numbers = #tpu.dot_dimension_numbers<[1], [0], [0], [1], [0, 0, 1, 1], [], []>} : vector<256x4xbf16>, vector<4x8xbf16>, vector<256x8xf32> -> vector<256x8xf32>
    %c0_28 = arith.constant 0 : index
    %c0_29 = arith.constant 0 : index
    %118 = vector.load %arg9[%c0_28, %c0_29] : memref<1x8xf32, #tpu.memory_space<vmem>>, vector<1x8xf32>
    %119 = vector.broadcast %118 : vector<1x8xf32> to vector<256x8xf32>
    %120 = arith.addf %117, %119 : vector<256x8xf32>
    %cst_30 = arith.constant 0.000000e+00 : f32
    %121 = vector.broadcast %cst_30 : f32 to vector<256x8xf32>
    %122 = arith.maximumf %120, %121 : vector<256x8xf32>
    %123 = tpu.concatenate %25, %55, %91, %122 in 1 : vector<256x8xf32>, vector<256x8xf32>, vector<256x8xf32>, vector<256x8xf32> -> vector<256x32xf32>
    %cst_31 = arith.constant 0.000000e+00 : f32
    %124 = vector.broadcast %cst_31 : f32 to vector<256x96xf32>
    %125 = tpu.concatenate %123, %124 in 1 : vector<256x32xf32>, vector<256x96xf32> -> vector<256x128xf32>
    %c0_32 = arith.constant 0 : index
    %c0_33 = arith.constant 0 : index
    %c0_34 = arith.constant 0 : index
    %126 = vector.load %arg10[%c0_32, %c0_33, %c0_34] : memref<1x256x128xf32, #tpu.memory_space<vmem>>, vector<1x256x128xf32>
    %127 = vector.shape_cast %126 : vector<1x256x128xf32> to vector<256x128xf32>
    %128 = vector.shape_cast %125 : vector<256x128xf32> to vector<1x256x128xf32>
    tpu.vector_store %arg10[%c0_32, %c0_33, %c0_34], %128 {strides = array<i32>} : memref<1x256x128xf32, #tpu.memory_space<vmem>>, vector<1x256x128xf32>,
    return
  }
  func.func @transform_0(%arg0: i32) -> (i32, i32, i32, i32) {
    %c0_i32 = arith.constant 0 : i32
    %c0_i32_0 = arith.constant 0 : i32
    %c0_i32_1 = arith.constant 0 : i32
    %c0_i32_2 = arith.constant 0 : i32
    return %arg0, %c0_i32, %c0_i32_0, %c0_i32_1 : i32, i32, i32, i32
  }
  func.func @transform_1(%arg0: i32) -> (i32, i32) {
    %c0_i32 = arith.constant 0 : i32
    %c0_i32_0 = arith.constant 0 : i32
    %c0_i32_1 = arith.constant 0 : i32
    return %c0_i32, %c0_i32_0 : i32, i32
  }
  func.func @transform_2(%arg0: i32) -> (i32, i32) {
    %c0_i32 = arith.constant 0 : i32
    %c0_i32_0 = arith.constant 0 : i32
    %c0_i32_1 = arith.constant 0 : i32
    return %c0_i32, %c0_i32_0 : i32, i32
  }
  func.func @transform_3(%arg0: i32) -> (i32, i32) {
    %c0_i32 = arith.constant 0 : i32
    %c0_i32_0 = arith.constant 0 : i32
    %c0_i32_1 = arith.constant 0 : i32
    return %c0_i32, %c0_i32_0 : i32, i32
  }
  func.func @transform_4(%arg0: i32) -> (i32, i32) {
    %c0_i32 = arith.constant 0 : i32
    %c0_i32_0 = arith.constant 0 : i32
    %c0_i32_1 = arith.constant 0 : i32
    return %c0_i32, %c0_i32_0 : i32, i32
  }
  func.func @transform_5(%arg0: i32) -> (i32, i32) {
    %c0_i32 = arith.constant 0 : i32
    %c0_i32_0 = arith.constant 0 : i32
    %c0_i32_1 = arith.constant 0 : i32
    return %c0_i32, %c0_i32_0 : i32, i32
  }
  func.func @transform_6(%arg0: i32) -> (i32, i32) {
    %c0_i32 = arith.constant 0 : i32
    %c0_i32_0 = arith.constant 0 : i32
    %c0_i32_1 = arith.constant 0 : i32
    return %c0_i32, %c0_i32_0 : i32, i32
  }
  func.func @transform_7(%arg0: i32) -> (i32, i32) {
    %c0_i32 = arith.constant 0 : i32
    %c0_i32_0 = arith.constant 0 : i32
    %c0_i32_1 = arith.constant 0 : i32
    return %c0_i32, %c0_i32_0 : i32, i32
  }
  func.func @transform_8(%arg0: i32) -> (i32, i32) {
    %c0_i32 = arith.constant 0 : i32
    %c0_i32_0 = arith.constant 0 : i32
    %c0_i32_1 = arith.constant 0 : i32
    return %c0_i32, %c0_i32_0 : i32, i32
  }
  func.func @transform_9(%arg0: i32) -> (i32, i32, i32) {
    %c0_i32 = arith.constant 0 : i32
    %c0_i32_0 = arith.constant 0 : i32
    %c0_i32_1 = arith.constant 0 : i32
    return %arg0, %c0_i32, %c0_i32_0 : i32, i32, i32
  }
}

</mosaic_0001>

<bundles_post_ra>
// kernel: inception_forward.1
= control target key start
LH: loop header
LB: loop body
LE: loop exit
PB: predicated region body
PF: predicated region fallthrough
CT: control target
= control target key end

     0   :  { %s8111_s30 = smov 0   ;;  %s15805_s0 = inlined_call_operand.vmem [shape: bf16[2,20,24,4], index: 0, kind: input, shape index: {}]   ;;  %s15806_s1 = inlined_call_operand.vmem [shape: bf16[4,16], index: 1, kind: input, shape index: {}]   ;;  %s15807_s2 = inlined_call_operand.vmem [shape: f32[1,16], index: 2, kind: input, shape index: {}]   ;;  %s15808_s3 = inlined_call_operand.vmem [shape: bf16[36,8], index: 3, kind: input, shape index: {}]   ;;  %s15809_s4 = inlined_call_operand.vmem [shape: f32[1,8], index: 4, kind: input, shape index: {}]   ;;  %s15810_s5 = inlined_call_operand.vmem [shape: bf16[100,8], index: 5, kind: input, shape index: {}]   ;;  %s15811_s6 = inlined_call_operand.vmem [shape: f32[1,8], index: 6, kind: input, shape index: {}]   ;;  %s15812_s7 = inlined_call_operand.vmem [shape: bf16[4,8], index: 7, kind: input, shape index: {}]   ;;  %s15813_s8 = inlined_call_operand.vmem [shape: f32[1,8], index: 8, kind: input, shape index: {}]   ;;  %s15814_s9 = inlined_call_operand.vmem [shape: f32[2,256,128], index: 9, kind: output, shape index: {}]  }
   0x1 LB: > { %s7468_s10 = sadd.s32 4294967295, %s8040_s30   ;;  %p7472_p0 = scmp.ge.s32.totalorder %s8040_s30, 1  ;;  %s8040_s30 = sphi %s8111_s30, %s19_s30  }
   0x2   : > { %p287_p1 = scmp.lt.s32.totalorder %s8040_s30, 3 }
   0x4   : > { %p288_p2 = pnand %p7472_p0, %p287_p1 }
   0x6   : > { %291 = sbr.rel (%p288_p2) target bundleno = 2183 (0x887), region = 56 }
   0xb   : > { %v416_v0 = vld [vmem:[%s15806_s1] sm:$0x3]  ;;  %vm665_vm0 = vcmask 1041408   ;;  %p323_p3 = scmp.lt.s32.totalorder %s7468_s10, 1  ;;  %v394_v1 = vlaneseq  ;;  %v15819_v4 = vmov 0.0|0.0   ;;  %s8043_s13 = smov 120  }
   0xc   : > { %7873 = vmatprep.subr.msk.bf16.mxu0 %vm665_vm0, %v416_v0  ;;  %7874 = vmatprep.subr.msk.bf16.mxu1 %vm665_vm0, %v416_v0  ;;  %v667_v2 = vsel %vm665_vm0, %v416_v0, 0  ;;  %vm574_vm1 = vcmask 31744   ;;  %vm16348_vm2 = vcmask 1045504   ;;  %v8044_v12 = vmov -1e+30   ;;  %s8046_s18 = smov 124  }
   0xd   : > { %7692 = vmatpush3.bf16.msra.mxu0 %v667_v2  ;;  %7872 = vmatpush3.bf16.msra.mxu1 %v667_v2  ;;  %s18641_s10 = smov (!%p323_p3, %s7468_s10), 1  ;;  %v8127_v3 = vshrl.u32 %v394_v1, 7  ;;  %v8149_v13 = vrot.slane %v8044_v12, 1  ;;  %vm16453_vm5 = vcmask 1046528   ;;  %v8179_v27 = vrot.slane %v8044_v12, 2  ;;  %s8047_s21 = smov 4  }
   0xe   : > { %1307 = vrot.lane.b32.xlu0 %v15819_v4, %s8043_s13  ;;  %s7878_s14 = smul.u32 240, %s18641_s10  ;;  %s8048_s22 = smov 8   ;;  %vm16452_vm6 = vsmask.f32 7424  ;;  %vm3227_vm7 = vsmask.f32 6400 }
   0xf   : > { %16460 = vst [vmem:[#allocation2_spill] sm:$0xff] %v8127_v3  ;;  %v8138_v5 = vadd.s32 16, %v8127_v3  ;;  %16463 = vst [vmem:[#allocation5_spill] sm:$0xff] %v8149_v13  ;;  %vm398_vm3 = vcmp.ge.s32.totalorder %v8127_v3, 2  ;;  %v5891_v31 = vmax.f32 %v8149_v13, -1e+30 }
  0x10   : > { %s8135_s17 = scalar_lea.vmem %s15805_s0, %s7878_s14  ;;  %16468 = vst [vmem:[#allocation10_spill] sm:$0xff] %v8179_v27  ;;  %s8049_s23 = smov 12   ;;  %vm2227_vm8 = vcmask 64512   ;;  %vm2292_vm9 = vcmask 97280   ;;  %vm2357_vm10 = vcmask 130048   ;;  %vm2422_vm11 = vcmask 162816  }
  0x11   : > { %16461 = vst [vmem:[#allocation3_spill] sm:$0xff] %v8138_v5  ;;  %v7951_v6 = vld [vmem:[%s8135_s17] sm:$0xff]   ;;  %v7953_v10 = vld [vmem:[%s8135_s17 + $0x8] sm:$0xff]   ;;  %vm409_vm4 = vcmp.lt.s32.totalorder %v8138_v5, 18  ;;  %v7955_v15 = vld [vmem:[%s8135_s17 + $0x10] sm:$0xff]   ;;  %v8218_v46 = vmax.f32 %v5891_v31, %v8179_v27  ;;  %s8050_s26 = smov 16  }
  0x12   : > { %1309 = vrot.lane.b32.xlu0 %v15819_v4, %s8043_s13  ;;  %v382_v7 = vld [vmem:[%s8135_s17 + $0xc0] sm:$0xff]   ;;  %7693 = vmatprep.mubr.msk.bf16.mxu0 %vm574_vm1, %v7951_v6  ;;  %v384_v11 = vld [vmem:[%s8135_s17 + $0xc8] sm:$0xff]   ;;  %v386_v16 = vld [vmem:[%s8135_s17 + $0xd0] sm:$0xff]   ;;  %s8051_s27 = smov 20   ;;  %s8052_s28 = smov 24   ;;  %vm2487_vm12 = vcmask 195584  }
  0x13   : > { %v5651_v8 = vunpack.c.l.bf16 %v382_v7  ;;  %v8145_v9 = vunpack.c.h.bf16 %v382_v7  ;;  %v5653_v14 = vunpack.c.l.bf16 %v384_v11  ;;  %7741 = vmatprep.mubr.msk.bf16.mxu1 %vm574_vm1, %v382_v7  ;;  %7694 = vmatmul.mubr.msk.bf16.vlgmr.msra.gmra.mxu0 %vm574_vm1, %v7953_v10  ;;  %v5654_v22 = vunpack.c.h.bf16 %v384_v11  ;;  %v340_v24 = vld [vmem:[%s8135_s17 + $0x18] sm:$0xff]   ;;  %v342_v42 = vld [vmem:[%s8135_s17 + $0x20] sm:$0xff]   ;;  %16476 = vst [vmem:[#allocation18_spill] sm:$0xff] %v8218_v46  ;;  %v344_v51 = vld [vmem:[%s8135_s17 + $0x28] sm:$0xff]   ;;  %s8053_s19 = smov 116   ;;  %s8054_s20 = smov 28  }
  0x14   : > { %7742 = vmatmul.mubr.msk.bf16.vlgmr.msra.gmra.mxu1 %vm574_vm1, %v384_v11  ;;  %7697 = vmatprep.mubr.msk.bf16.mxu0 %vm574_vm1, %v7955_v15  ;;  %v5656_v30 = vunpack.c.h.bf16 %v386_v16  ;;  %v5609_v34 = vunpack.c.l.bf16 %v340_v24  ;;  %v5610_v37 = vunpack.c.h.bf16 %v340_v24  ;;  %v7958_v38 = vld [vmem:[%s8135_s17 + $0xd8] sm:$0xff]   ;;  %v5611_v52 = vunpack.c.l.bf16 %v342_v42  ;;  %v346_v60 = vld [vmem:[%s8135_s17 + $0x30] sm:$0xff]   ;;  %v358_v47 = vld [vmem:[%s8135_s17 + $0x60] sm:$0xff]   ;;  %s8055_s24 = smov 32   ;;  %s8056_s25 = smov 36  }
  0x15   : > { %16462 = vst [vmem:[#allocation4_spill] sm:$0xff] %v8145_v9  ;;  %v8158_v17 = vsel %vm398_vm3, %v5651_v8, -1e+30  ;;  %v15816_v18 = vrot.slane %v8145_v9, 1  ;;  %v15815_v19 = vrot.slane %v8145_v9, 2  ;;  %7745 = vmatprep.mubr.msk.bf16.mxu1 %vm574_vm1, %v386_v16  ;;  %v5612_v53 = vunpack.c.h.bf16 %v342_v42  ;;  %v348_v12 = vld [vmem:[%s8135_s17 + $0x38] sm:$0xff]  }
  0x16   : > { %16464 = vst [vmem:[#allocation6_spill] sm:$0xff] %v8158_v17  ;;  %v5838_v20 = vrot.slane %v8158_v17, 1  ;;  %v6014_v21 = vrot.slane %v8158_v17, 2  ;;  %v8168_v23 = vsel %vm409_vm4, %v5653_v14, -1e+30  ;;  %v5769_v44 = vrot.slane %v5610_v37, 1 }
  0x17   : > { %16465 = vst [vmem:[#allocation7_spill] sm:$0xff] %v8168_v23  ;;  %v8173_v25 = vrot.slane %v8168_v23, 1  ;;  %v8176_v26 = vrot.slane %v8168_v23, 2  ;;  %v8198_v35 = vsel %vm398_vm3, %v5654_v22, -1e+30  ;;  %v5945_v45 = vrot.slane %v5610_v37, 2 }
  0x18   : > { %v8184_v28 = vsel %vm16453_vm5, %v5838_v20, %v15816_v18  ;;  %v8189_v29 = vsel %vm16348_vm2, %v6014_v21, %v15815_v19  ;;  %16471 = vst [vmem:[#allocation13_spill] sm:$0xff] %v8198_v35  ;;  %v8202_v36 = vsel %vm409_vm4, %v5656_v30, -1e+30  ;;  %v8215_v43 = vsel %vm398_vm3, %v5609_v34, -1e+30  ;;  %v360_v18 = vld [vmem:[%s8135_s17 + $0x68] sm:$0xff]  }
  0x19   : > { %16466 = vst [vmem:[#allocation8_spill] sm:$0xff] %v8173_v25  ;;  %16467 = vst [vmem:[#allocation9_spill] sm:$0xff] %v8176_v26  ;;  %v5936_v32 = vmax.f32 %v8158_v17, %v8184_v28  ;;  %v5938_v33 = vmax.f32 %v8168_v23, %v8173_v25  ;;  %v8210_v41 = vrot.slane %v8202_v36, 1  ;;  %v5768_v49 = vrot.slane %v8215_v43, 1  ;;  %v366_v13 = vld [vmem:[%s8135_s17 + $0x80] sm:$0xff]   ;;  %s8057_s29 = smov 40  }
  0x1a   : > { %16469 = vst [vmem:[#allocation11_spill] sm:$0xff] %v8184_v28  ;;  %16470 = vst [vmem:[#allocation12_spill] sm:$0xff] %v8189_v29  ;;  %v5944_v50 = vrot.slane %v8215_v43, 2  ;;  %v6116_v58 = vmax.f32 %v8218_v46, %v5610_v37  ;;  %v8243_v59 = vsel %vm409_vm4, %v5611_v52, -1e+30  ;;  %v5614_v1 = vunpack.c.h.bf16 %v344_v51  ;;  %v350_v52 = vld [vmem:[%s8135_s17 + $0x40] sm:$0xff]  }
  0x1b   : > { %16472 = vst [vmem:[#allocation14_spill] sm:$0xff] %v8202_v36  ;;  %v8206_v39 = vmax.f32 %v5936_v32, %v8189_v29  ;;  %v6114_v40 = vmax.f32 %v5938_v33, %v8176_v26  ;;  %16474 = vst [vmem:[#allocation16_spill] sm:$0xff] %v8210_v41  ;;  %7698 = vmatmul.mubr.msk.bf16.gmra.mxu0 %vm574_vm1, %v340_v24  ;;  %v8232_v55 = vsel %vm16453_vm5, %v5768_v49, %v5769_v44  ;;  %v364_v28 = vld [vmem:[%s8135_s17 + $0x78] sm:$0xff]   ;;  %v368_v26 = vld [vmem:[%s8135_s17 + $0x88] sm:$0xff]   ;;  %vm2617_vm13 = vcmask 261120   ;;  %s8058_s11 = smov 44  }
  0x1c   : > { %16475 = vst [vmem:[#allocation17_spill] sm:$0xff] %v8215_v43  ;;  %7746 = vmatmul.mubr.msk.bf16.gmra.mxu1 %vm574_vm1, %v7958_v38  ;;  %16478 = vst [vmem:[#allocation20_spill] sm:$0xff] %v8232_v55  ;;  %v8235_v56 = vsel %vm16348_vm2, %v5944_v50, %v5945_v45  ;;  %v5894_v57 = vmax.f32 %v8215_v43, %v8232_v55  ;;  %7701 = vmatprep.mubr.msk.bf16.mxu0 %vm574_vm1, %v342_v42  ;;  %v8248_v61 = vsel %vm398_vm3, %v5612_v53, -1e+30  ;;  %vm2552_vm14 = vcmask 228352   ;;  %s8059_s12 = smov 48  }
  0x1d   : > { %16473 = vst [vmem:[#allocation15_spill] sm:$0xff] %v8206_v39  ;;  %v6162_v48 = vmax.f32 %v6114_v40, %v8202_v36  ;;  %16479 = vst [vmem:[#allocation21_spill] sm:$0xff] %v8235_v56  ;;  %v8251_v62 = vrot.slane %v8243_v59, 1  ;;  %v8254_v63 = vrot.slane %v8243_v59, 2  ;;  %v8276_v15 = vsel %vm409_vm4, %v5614_v1, -1e+30 }
  0x1e   : > { %16480 = vst [vmem:[#allocation22_spill] sm:$0xff] %v8243_v59  ;;  %16481 = vst [vmem:[#allocation23_spill] sm:$0xff] %v8248_v61  ;;  %v8257_v0 = vmax.f32 %v5894_v57, %v8235_v56  ;;  %v5615_v16 = vunpack.c.l.bf16 %v346_v60  ;;  %v8282_v21 = vrot.slane %v8276_v15, 1  ;;  %v8285_v22 = vrot.slane %v8276_v15, 2  ;;  %s8060_s14 = smov 64  }
  0x1f   : > { %v8229_v54 = vmax.f32 %v6162_v48, %v8210_v41  ;;  %16482 = vst [vmem:[#allocation24_spill] sm:$0xff] %v8251_v62  ;;  %16483 = vst [vmem:[#allocation25_spill] sm:$0xff] %v8254_v63  ;;  %v5772_v2 = vsel %vm16453_vm5, %v5769_v44, %v8251_v62  ;;  %v5896_v6 = vmax.f32 %v8243_v59, %v8251_v62  ;;  %v8288_v24 = vunpack.c.h.bf16 %v346_v60 }
  0x20   : > { %16484 = vst [vmem:[#allocation26_spill] sm:$0xff] %v8257_v0  ;;  %v8265_v7 = vsel %vm16348_vm2, %v5945_v45, %v8254_v63  ;;  %v5895_v8 = vmax.f32 %v5610_v37, %v5772_v2  ;;  %v8269_v11 = vmax.f32 %v6116_v58, %v5772_v2  ;;  %16487 = vst [vmem:[#allocation29_spill] sm:$0xff] %v8276_v15  ;;  %v8293_v31 = vsel %vm398_vm3, %v5615_v16, -1e+30 }
  0x21   : > { %16477 = vst [vmem:[#allocation19_spill] sm:$0xff] %v8229_v54  ;;  %16485 = vst [vmem:[#allocation27_spill] sm:$0xff] %v8265_v7  ;;  %v6072_v14 = vmax.f32 %v5896_v6, %v8254_v63  ;;  %v5617_v32 = vunpack.c.l.bf16 %v348_v12  ;;  %v5899_v33 = vmax.f32 %v8276_v15, %v8282_v21  ;;  %v5778_v34 = vrot.slane %v8293_v31, 1 }
  0x22   : > { %16486 = vst [vmem:[#allocation28_spill] sm:$0xff] %v8269_v11  ;;  %v8279_v20 = vmax.f32 %v5895_v8, %v8265_v7  ;;  %16489 = vst [vmem:[#allocation31_spill] sm:$0xff] %v8282_v21  ;;  %v15818_v37 = vrot.slane %v8288_v24, 1  ;;  %v5954_v38 = vrot.slane %v8293_v31, 2  ;;  %v15817_v42 = vrot.slane %v8288_v24, 2 }
  0x23   : > { %7702 = vmatmul.mubr.msk.bf16.gmra.mxu0 %vm574_vm1, %v344_v51  ;;  %16490 = vst [vmem:[#allocation32_spill] sm:$0xff] %v8285_v22  ;;  %16491 = vst [vmem:[#allocation33_spill] sm:$0xff] %v8288_v24  ;;  %v6120_v30 = vmax.f32 %v6072_v14, %v8276_v15  ;;  %v5618_v44 = vunpack.c.h.bf16 %v348_v12  ;;  %v5671_v45 = vsel %vm409_vm4, %v5617_v32, -1e+30  ;;  %v6075_v51 = vmax.f32 %v5899_v33, %v8285_v22  ;;  %v352_v32 = vld [vmem:[%s8135_s17 + $0x48] sm:$0xff]  }
  0x24   : > { %16488 = vst [vmem:[#allocation30_spill] sm:$0xff] %v8279_v20  ;;  %7705 = vmatprep.mubr.msk.bf16.mxu0 %vm574_vm1, %v346_v60  ;;  %16492 = vst [vmem:[#allocation34_spill] sm:$0xff] %v8293_v31  ;;  %v8307_v48 = vsel %vm16453_vm5, %v5778_v34, %v15818_v37  ;;  %v8309_v49 = vrot.slane %v5671_v45, 1  ;;  %v8311_v50 = vrot.slane %v5671_v45, 2  ;;  %v8320_v57 = vsel %vm16348_vm2, %v5954_v38, %v15817_v42  ;;  %v354_v38 = vld [vmem:[%s8135_s17 + $0x50] sm:$0xff]  }
  0x25   : > { %v6179_v40 = vmax.f32 %v6120_v30, %v8282_v21  ;;  %16493 = vst [vmem:[#allocation35_spill] sm:$0xff] %v8307_v48  ;;  %v5900_v53 = vmax.f32 %v8293_v31, %v8307_v48  ;;  %16496 = vst [vmem:[#allocation38_spill] sm:$0xff] %v8320_v57  ;;  %v8325_v60 = vsel %vm398_vm3, %v5618_v44, -1e+30  ;;  %v6123_v2 = vmax.f32 %v6075_v51, %v5671_v45  ;;  %v362_v37 = vld [vmem:[%s8135_s17 + $0x70] sm:$0xff]  }
  0x26   : > { %16494 = vst [vmem:[#allocation36_spill] sm:$0xff] %v8309_v49  ;;  %16495 = vst [vmem:[#allocation37_spill] sm:$0xff] %v8311_v50  ;;  %v5902_v1 = vmax.f32 %v5671_v45, %v8309_v49  ;;  %v5620_v16 = vunpack.c.h.bf16 %v350_v52  ;;  %v5632_v4 = vunpack.c.h.bf16 %v362_v37  ;;  %v5635_v39 = vunpack.c.l.bf16 %v366_v13 }
  0x27   : > { %v6235_v58 = vmax.f32 %v6179_v40, %v8285_v22  ;;  %16497 = vst [vmem:[#allocation39_spill] sm:$0xff] %v8325_v60  ;;  %v8330_v6 = vmax.f32 %v5900_v53, %v8320_v57  ;;  %v8333_v14 = vmax.f32 %v6123_v2, %v8309_v49  ;;  %v5623_v40 = vunpack.c.l.bf16 %v354_v38 }
  0x28   : > { %v6078_v30 = vmax.f32 %v5902_v1, %v8311_v50  ;;  %v5638_v25 = vunpack.c.h.bf16 %v368_v26  ;;  %vm2869_vm15 = vcmask 293888  }
  0x29   : > { %16498 = vst [vmem:[#allocation40_spill] sm:$0xff] %v8330_v6  ;;  %v6283_v8 = vmax.f32 %v6235_v58, %v5671_v45  ;;  %16499 = vst [vmem:[#allocation41_spill] sm:$0xff] %v8333_v14 }
  0x2b   : > { %7706 = vmatmul.mubr.msk.bf16.gmra.mxu0 %vm574_vm1, %v348_v12  ;;  %v6342_v34 = vmax.f32 %v6283_v8, %v8309_v49  ;;  %v8344_v12 = vsel %vm409_vm4, %v5620_v16, -1e+30 }
  0x2c   : > { %7709 = vmatprep.mubr.msk.bf16.mxu0 %vm574_vm1, %v350_v52  ;;  %16500 = vst [vmem:[#allocation42_spill] sm:$0xff] %v8344_v12  ;;  %v8350_v45 = vrot.slane %v8344_v12, 1  ;;  %v6126_v51 = vmax.f32 %v6078_v30, %v8344_v12  ;;  %v8355_v52 = vsel %vm409_vm4, %v5623_v40, -1e+30  ;;  %v8360_v58 = vrot.slane %v8344_v12, 2 }
  0x2d   : > { %v8347_v44 = vmax.f32 %v6342_v34, %v8311_v50  ;;  %16503 = vst [vmem:[#allocation45_spill] sm:$0xff] %v8355_v52  ;;  %v8366_v2 = vrot.slane %v8355_v52, 1  ;;  %v8369_v8 = vrot.slane %v8355_v52, 2  ;;  %v356_v34 = vld [vmem:[%s8135_s17 + $0x58] sm:$0xff]  }
  0x2e   : > { %16502 = vst [vmem:[#allocation44_spill] sm:$0xff] %v8350_v45  ;;  %v5905_v53 = vmax.f32 %v8344_v12, %v8350_v45  ;;  %16504 = vst [vmem:[#allocation46_spill] sm:$0xff] %v8360_v58  ;;  %v8363_v1 = vmax.f32 %v6126_v51, %v8350_v45  ;;  %v5626_v51 = vunpack.c.h.bf16 %v356_v34 }
  0x2f   : > { %16501 = vst [vmem:[#allocation43_spill] sm:$0xff] %v8347_v44  ;;  %16506 = vst [vmem:[#allocation48_spill] sm:$0xff] %v8366_v2  ;;  %v5908_v30 = vmax.f32 %v8355_v52, %v8366_v2 }
  0x30   : > { %16505 = vst [vmem:[#allocation47_spill] sm:$0xff] %v8363_v1  ;;  %16507 = vst [vmem:[#allocation49_spill] sm:$0xff] %v8369_v8  ;;  %v6081_v16 = vmax.f32 %v5905_v53, %v8360_v58 }
  0x31   : > { %v6084_v19 = vmax.f32 %v5908_v30, %v8369_v8 }
  0x32   : > { %v6129_v40 = vmax.f32 %v6081_v16, %v8355_v52 }
  0x33   : > { %7710 = vmatmul.mubr.msk.bf16.gmra.mxu0 %vm574_vm1, %v352_v32  ;;  %v8386_v32 = vsel %vm409_vm4, %v5626_v51, -1e+30 }
  0x34   : > { %7713 = vmatprep.mubr.msk.bf16.mxu0 %vm574_vm1, %v354_v38  ;;  %v8382_v33 = vmax.f32 %v6129_v40, %v8366_v2  ;;  %16509 = vst [vmem:[#allocation51_spill] sm:$0xff] %v8386_v32  ;;  %v5629_v38 = vunpack.c.l.bf16 %v360_v18  ;;  %v8389_v53 = vrot.slane %v8386_v32, 1  ;;  %v6132_v16 = vmax.f32 %v6084_v19, %v8386_v32 }
  0x35   : > { %v8409_v19 = vrot.slane %v8386_v32, 2 }
  0x36   : > { %16508 = vst [vmem:[#allocation50_spill] sm:$0xff] %v8382_v33  ;;  %16510 = vst [vmem:[#allocation52_spill] sm:$0xff] %v8389_v53  ;;  %v8394_v42 = vsel %vm409_vm4, %v5629_v38, -1e+30  ;;  %v5911_v30 = vmax.f32 %v8386_v32, %v8389_v53  ;;  %v8399_v40 = vmax.f32 %v6132_v16, %v8389_v53 }
  0x37   : > { %16511 = vst [vmem:[#allocation53_spill] sm:$0xff] %v8394_v42  ;;  %v8402_v51 = vrot.slane %v8394_v42, 1  ;;  %v8405_v10 = vrot.slane %v8394_v42, 2  ;;  %16515 = vst [vmem:[#allocation57_spill] sm:$0xff] %v8409_v19 }
  0x38   : > { %16512 = vst [vmem:[#allocation54_spill] sm:$0xff] %v8399_v40  ;;  %v6087_v16 = vmax.f32 %v5911_v30, %v8409_v19 }
  0x39   : > { %16513 = vst [vmem:[#allocation55_spill] sm:$0xff] %v8402_v51  ;;  %16514 = vst [vmem:[#allocation56_spill] sm:$0xff] %v8405_v10  ;;  %v5914_v38 = vmax.f32 %v8394_v42, %v8402_v51 }
  0x3a   : > { %v6135_v54 = vmax.f32 %v6087_v16, %v8394_v42 }
  0x3b   : > { %7714 = vmatmul.mubr.msk.bf16.gmra.mxu0 %vm574_vm1, %v356_v34  ;;  %v6090_v27 = vmax.f32 %v5914_v38, %v8405_v10  ;;  %v8421_v34 = vsel %vm409_vm4, %v5632_v4, -1e+30  ;;  %v8440_v4 = vsel %vm409_vm4, %v5635_v39, -1e+30 }
  0x3c   : > { %7717 = vmatprep.mubr.msk.bf16.mxu0 %vm574_vm1, %v358_v47  ;;  %16516 = vst [vmem:[#allocation58_spill] sm:$0xff] %v8421_v34  ;;  %v8424_v47 = vrot.slane %v8421_v34, 1  ;;  %v8428_v30 = vmax.f32 %v6135_v54, %v8402_v51  ;;  %v8433_v29 = vrot.slane %v8421_v34, 2  ;;  %16521 = vst [vmem:[#allocation63_spill] sm:$0xff] %v8440_v4  ;;  %v8447_v54 = vrot.slane %v8440_v4, 2 }
  0x3d   : > { %v6138_v41 = vmax.f32 %v6090_v27, %v8421_v34  ;;  %v8444_v27 = vrot.slane %v8440_v4, 1 }
  0x3e   : > { %16517 = vst [vmem:[#allocation59_spill] sm:$0xff] %v8424_v47  ;;  %16518 = vst [vmem:[#allocation60_spill] sm:$0xff] %v8428_v30  ;;  %v5917_v38 = vmax.f32 %v8421_v34, %v8424_v47 }
  0x3f   : > { %16519 = vst [vmem:[#allocation61_spill] sm:$0xff] %v8433_v29  ;;  %v8436_v16 = vmax.f32 %v6138_v41, %v8424_v47  ;;  %16522 = vst [vmem:[#allocation64_spill] sm:$0xff] %v8444_v27  ;;  %v5920_v41 = vmax.f32 %v8440_v4, %v8444_v27 }
  0x40   : > { %16523 = vst [vmem:[#allocation65_spill] sm:$0xff] %v8447_v54  ;;  %v6093_v17 = vmax.f32 %v5917_v38, %v8433_v29 }
  0x41   : > { %16520 = vst [vmem:[#allocation62_spill] sm:$0xff] %v8436_v16  ;;  %v6096_v9 = vmax.f32 %v5920_v41, %v8447_v54 }
  0x42   : > { %v6141_v39 = vmax.f32 %v6093_v17, %v8440_v4 }
  0x43   : > { %7718 = vmatmul.mubr.msk.bf16.gmra.mxu0 %vm574_vm1, %v360_v18  ;;  %v8458_v18 = vsel %vm409_vm4, %v5638_v25, -1e+30  ;;  %v15840_v25 = vmov 0  }
  0x44   : > { %7721 = vmatprep.mubr.msk.bf16.mxu0 %vm574_vm1, %v362_v37  ;;  %16524 = vst [vmem:[#allocation66_spill] sm:$0xff] %v8458_v18  ;;  %v8462_v37 = vmax.f32 %v6141_v39, %v8444_v27  ;;  %v8465_v38 = vrot.slane %v8458_v18, 1  ;;  %v6144_v16 = vmax.f32 %v6096_v9, %v8458_v18  ;;  %v8475_v41 = vrot.slane %v15840_v25, 1  ;;  %v370_v9 = vld [vmem:[%s8135_s17 + $0x90] sm:$0xff]  }
  0x46   : > { %16525 = vst [vmem:[#allocation67_spill] sm:$0xff] %v8462_v37  ;;  %16526 = vst [vmem:[#allocation68_spill] sm:$0xff] %v8465_v38  ;;  %v8470_v17 = vmax.f32 %v6144_v16, %v8465_v38  ;;  %v8479_v39 = vpack.i.bf16 %v15840_v25, %v8475_v41  ;;  %v376_v37 = vld [vmem:[%s8135_s17 + $0xa8] sm:$0xff]  }
  0x47   : > { %16528 = vst [vmem:[#allocation70_spill] sm:$0xff] %v8475_v41 }
  0x48   : > { %16527 = vst [vmem:[#allocation69_spill] sm:$0xff] %v8470_v17  ;;  %16529 = vst [vmem:[#allocation71_spill] sm:$0xff] %v8479_v39  ;;  %7907 = vrot.lane.b32.xlu0 %v8479_v39, %s8046_s18  ;;  %v374_v17 = vld [vmem:[%s8135_s17 + $0xa0] sm:$0xff]  }
  0x4b   : > { %7722 = vmatmul.mubr.msk.bf16.gmra.mxu0 %vm574_vm1, %v364_v28  ;;  %v372_v28 = vld [vmem:[%s8135_s17 + $0x98] sm:$0xff]  }
  0x4c   : > { %7725 = vmatprep.mubr.msk.bf16.mxu0 %vm574_vm1, %v366_v13  ;;  %v5923_v13 = vmax.f32 %v8458_v18, %v8465_v38  ;;  %v5641_v16 = vunpack.c.l.bf16 %v372_v28 }
  0x4e   : > { %v8497_v4 = vsel %vm409_vm4, %v5641_v16, -1e+30 }
  0x4f   : > { %16531 = vst [vmem:[#allocation73_spill] sm:$0xff] %v8497_v4  ;;  %v8504_v38 = vrot.slane %v8497_v4, 2 }
  0x51   : > { %16533 = vst [vmem:[#allocation75_spill] sm:$0xff] %v8504_v38 }
  0x53   : > { %7726 = vmatmul.mubr.msk.bf16.gmra.mxu0 %vm574_vm1, %v368_v26  ;;  %v8490_v26 = vrot.slane %v8458_v18, 2  ;;  %v5644_v18 = vunpack.c.h.bf16 %v374_v17 }
  0x54   : > { %7729 = vmatprep.mubr.msk.bf16.mxu0 %vm574_vm1, %v370_v9  ;;  %v8500_v9 = vrot.slane %v8497_v4, 1 }
  0x55   : > { %16530 = vst [vmem:[#allocation72_spill] sm:$0xff] %v8490_v26  ;;  %v6099_v25 = vmax.f32 %v5923_v13, %v8490_v26  ;;  %v8516_v54 = vsel %vm409_vm4, %v5644_v18, -1e+30  ;;  %v380_v18 = vld [vmem:[%s8135_s17 + $0xb8] sm:$0xff]  }
  0x56   : > { %16532 = vst [vmem:[#allocation74_spill] sm:$0xff] %v8500_v9  ;;  %v5926_v13 = vmax.f32 %v8497_v4, %v8500_v9  ;;  %16535 = vst [vmem:[#allocation77_spill] sm:$0xff] %v8516_v54  ;;  %v8519_v27 = vrot.slane %v8516_v54, 1 }
  0x58   : > { %v6102_v26 = vmax.f32 %v5926_v13, %v8504_v38  ;;  %16536 = vst [vmem:[#allocation78_spill] sm:$0xff] %v8519_v27 }
  0x5b   : > { %7730 = vmatmul.mubr.msk.bf16.gmra.mxu0 %vm574_vm1, %v372_v28  ;;  %v6147_v28 = vmax.f32 %v6099_v25, %v8497_v4  ;;  %v6150_v25 = vmax.f32 %v6102_v26, %v8516_v54  ;;  %v5929_v4 = vmax.f32 %v8516_v54, %v8519_v27 }
  0x5c   : > { %7733 = vmatprep.mubr.msk.bf16.mxu0 %vm574_vm1, %v374_v17  ;;  %v378_v17 = vld [vmem:[%s8135_s17 + $0xb0] sm:$0xff]  }
  0x5d   : > { %v8511_v16 = vmax.f32 %v6147_v28, %v8500_v9  ;;  %v8528_v28 = vrot.slane %v8516_v54, 2  ;;  %v5647_v13 = vunpack.c.l.bf16 %v378_v17  ;;  %v5650_v54 = vunpack.c.h.bf16 %v380_v18 }
  0x5f   : > { %16534 = vst [vmem:[#allocation76_spill] sm:$0xff] %v8511_v16  ;;  %16538 = vst [vmem:[#allocation80_spill] sm:$0xff] %v8528_v28  ;;  %v6105_v16 = vmax.f32 %v5929_v4, %v8528_v28  ;;  %v8536_v38 = vsel %vm409_vm4, %v5647_v13, -1e+30  ;;  %v8553_v13 = vsel %vm409_vm4, %v5650_v54, -1e+30 }
  0x60   : > { %16539 = vst [vmem:[#allocation81_spill] sm:$0xff] %v8536_v38  ;;  %v8539_v26 = vrot.slane %v8536_v38, 1  ;;  %16543 = vst [vmem:[#allocation85_spill] sm:$0xff] %v8553_v13  ;;  %v8556_v28 = vrot.slane %v8553_v13, 1 }
  0x62   : > { %16540 = vst [vmem:[#allocation82_spill] sm:$0xff] %v8539_v26  ;;  %v5932_v4 = vmax.f32 %v8536_v38, %v8539_v26  ;;  %16544 = vst [vmem:[#allocation86_spill] sm:$0xff] %v8556_v28 }
  0x63   : > { %7734 = vmatmul.mubr.msk.bf16.gmra.mxu0 %vm574_vm1, %v376_v37  ;;  %v8523_v37 = vmax.f32 %v6150_v25, %v8519_v27  ;;  %v8542_v25 = vrot.slane %v8536_v38, 2 }
  0x64   : > { %7737 = vmatprep.mubr.msk.bf16.mxu0 %vm574_vm1, %v378_v17 }
  0x65   : > { %16537 = vst [vmem:[#allocation79_spill] sm:$0xff] %v8523_v37  ;;  %16541 = vst [vmem:[#allocation83_spill] sm:$0xff] %v8542_v25  ;;  %v6153_v37 = vmax.f32 %v6105_v16, %v8536_v38  ;;  %v6108_v27 = vmax.f32 %v5932_v4, %v8542_v25  ;;  %v5935_v16 = vmax.f32 %v8553_v13, %v8556_v28  ;;  %v8576_v4 = vld [vmem:[%s15807_s2] ss:$0 sm:$0xff] }
  0x67   : > { %v8549_v17 = vmax.f32 %v6153_v37, %v8539_v26  ;;  %v6156_v38 = vmax.f32 %v6108_v27, %v8553_v13 }
  0x69   : > { %16542 = vst [vmem:[#allocation84_spill] sm:$0xff] %v8549_v17  ;;  %v8569_v17 = vmax.f32 %v6156_v38, %v8556_v28 }
  0x6b   : > { %7738 = vmatmul.mubr.msk.bf16.gmra.mxu0 %vm574_vm1, %v380_v18  ;;  %v8562_v18 = vrot.slane %v8553_v13, 2  ;;  %16547 = vst [vmem:[#allocation89_spill] sm:$0xff] %v8569_v17 }
  0x6d   : > { %16545 = vst [vmem:[#allocation87_spill] sm:$0xff] %v8562_v18  ;;  %v8566_v37 = vmax.f32 %v5935_v16, %v8562_v18 }
  0x6f   : > { %16546 = vst [vmem:[#allocation88_spill] sm:$0xff] %v8566_v37 }
  0xd3   : > { %v7695_v25 = vpop.f32.mrf.mxu0 }
  0xd4   : > { %v7743_v26 = vpop.f32.mrf.mxu1 }
  0xd5   : > { %v8579_v9 = vadd.f32 %v7743_v26, %v8576_v4  ;;  %v703_v27 = vpop.f32.mrf.mxu0 }
  0xd6   : > { %v895_v13 = vpop.f32.mrf.mxu1 }
  0xd7   : > { %v15875_v16 = vmax.f32 %v8579_v9, 0.0  ;;  %v8583_v38 = vadd.f32 %v8576_v4, %v895_v13  ;;  %v7696_v17 = vpop.f32.mrf.mxu0 }
  0xd8   : > { %v7744_v18 = vpop.f32.mrf.mxu1 }
  0xd9   : > { %v1222_v54 = vsel %vm409_vm4, %v15875_v16, 0.0  ;;  %v706_v37 = vpop.f32.mrf.mxu0  ;;  %v15879_v26 = vmax.f32 %v8583_v38, 0.0  ;;  %v8593_v27 = vadd.f32 %v7744_v18, %v8576_v4 }
  0xda   : > { %v8589_v25 = vpack.c.bf16 %v1222_v54, %v1222_v54  ;;  %v898_v23 = vpop.f32.mrf.mxu1 }
  0xdb   : > { %v8596_v28 = vadd.f32 %v8576_v4, %v898_v23  ;;  %v7699_v13 = vpop.f32.mrf.mxu0  ;;  %v1220_v23 = vsel %vm398_vm3, %v15879_v26, 0.0 }
  0xdc   : > { %16548 = vst [vmem:[#allocation90_spill] sm:$0xff] %v8589_v25  ;;  %1769 = vrot.lane.b32.xlu0 %v8589_v25, %s8047_s21  ;;  %1369 = vrot.lane.b32.xlu1 %v8589_v25, %s8043_s13  ;;  %v8603_v17 = vadd.f32 %v7699_v13, %v8576_v4  ;;  %v7747_v37 = vpop.f32.mrf.mxu1  ;;  %v8612_v30 = vshrl.u32 %v8589_v25, 16 }
  0xdd   : > { %v15882_v54 = vmax.f32 %v8596_v28, 0.0  ;;  %v719_v18 = vpop.f32.mrf.mxu0 }
  0xde   : > { %v911_v34 = vpop.f32.mrf.mxu1  ;;  %16549 = vst [vmem:[#allocation91_spill] sm:$0xff] %v8612_v30  ;;  %v16553_v10 = vmax.f32 %v8603_v17, 0.0 }
  0xdf   : > { %v8616_v29 = vpack.c.bf16 %v15882_v54, %v1220_v23  ;;  %v8619_v13 = vadd.f32 %v8576_v4, %v911_v34  ;;  %v7700_v37 = vpop.f32.mrf.mxu0  ;;  %v16551_v54 = vmax.f32 %v8593_v27, 0.0 }
  0xe0   : > { %1658 = vrot.lane.b32.xlu0 %v8612_v30, %s8046_s18  ;;  %v8625_v26 = vadd.f32 %v7700_v37, %v8576_v4  ;;  %v7748_v16 = vpop.f32.mrf.mxu1 }
  0xe1   : > { %16550 = vst [vmem:[#allocation92_spill] sm:$0xff] %v8616_v29  ;;  %v15886_v47 = vmax.f32 %v8619_v13, 0.0  ;;  %1767 = vrot.lane.b32.xlu1 %v8616_v29, %s8047_s21  ;;  %v722_v23 = vpop.f32.mrf.mxu0  ;;  %v1223_v34 = vsel %vm398_vm3, %v16551_v54, 0.0  ;;  %v8651_v54 = vshll.u32 %v8616_v29, 16 }
  0xe2   : > { %v914_v42 = vpop.f32.mrf.mxu1  ;;  %v15895_v37 = vmax.f32 %v8625_v26, 0.0  ;;  %v1178_v23 = vsel %vm398_vm3, %v16553_v10, 0.0 }
  0xe3   : > { %v8636_v18 = vpack.c.bf16 %v15886_v47, %v1223_v34  ;;  %v8640_v16 = vadd.f32 %v8576_v4, %v914_v42  ;;  %v8642_v40 = vpop.f32.mrf.mxu0  ;;  %16554 = vst [vmem:[#allocation94_spill] sm:$0xff] %v8651_v54  ;;  %v1587_v19 = vrot.slane %v8651_v54, 1 }
  0xe4   : > { %1847 = vrot.lane.b32.xlu0 %v8612_v30, %s8048_s22  ;;  %v8661_v51 = vpack.c.bf16 %v15895_v37, %v1178_v23 }
  0xe5   : > { %16552 = vst [vmem:[#allocation93_spill] sm:$0xff] %v8636_v18  ;;  %v15894_v34 = vmax.f32 %v8640_v16, 0.0  ;;  %1771 = vrot.lane.b32.xlu1 %v8636_v18, %s8047_s21  ;;  %v735_v42 = vpop.f32.mrf.mxu0  ;;  %v8737_v63 = vshrl.u32 %v8636_v18, 16 }
  0xe6   : > { %v8657_v47 = vadd.f32 %v8576_v4, %v735_v42  ;;  %16555 = vst [vmem:[#allocation95_spill] sm:$0xff] %v8661_v51 }
  0xe7   : > { %v1225_v10 = vsel %vm409_vm4, %v15894_v34, 0.0  ;;  %v7704_v32 = vpop.f32.mrf.mxu0  ;;  %v8680_v34 = vshrl.u32 %v8616_v29, 16  ;;  %16564 = vst [vmem:[#allocation103_spill] sm:$0xff] %v8737_v63 }
  0xe8   : > { %v15899_v33 = vmax.f32 %v8657_v47, 0.0  ;;  %1367 = vrot.lane.b32.xlu0 %v8616_v29, %s8043_s13  ;;  %v8673_v53 = vpack.c.bf16 %v1225_v10, %v1225_v10  ;;  %v8700_v14 = vadd.f32 %v7704_v32, %v8576_v4  ;;  %v8716_v32 = vshll.u32 %v8636_v18, 16 }
  0xe9   : > { %1311 = vrot.lane.b32.xlu1 %v8661_v51, %s8043_s13  ;;  %v738_v42 = vpop.f32.mrf.mxu0  ;;  %16557 = vst [vmem:[#allocation97_spill] sm:$0xff] %v8680_v34  ;;  %v1588_v8 = vor.u32 %v1587_v19, %v8680_v34 }
  0xea   : > { %16556 = vst [vmem:[#allocation96_spill] sm:$0xff] %v8673_v53  ;;  %v1180_v23 = vsel %vm409_vm4, %v15899_v33, 0.0  ;;  %v8695_v37 = vshrl.u32 %v8673_v53, 16  ;;  %16563 = vst [vmem:[#allocation102_spill] sm:$0xff] %v8716_v32 }
  0xeb   : > { %v8683_v52 = vpack.c.bf16 %v1180_v23, %v1180_v23  ;;  %v7707_v1 = vpop.f32.mrf.mxu0  ;;  %v16560_v23 = vshll.u32 %v8589_v25, 16 }
  0xec   : > { %1773 = vrot.lane.b32.xlu0 %v8673_v53, %s8047_s21  ;;  %16559 = vst [vmem:[#allocation99_spill] sm:$0xff] %v8695_v37  ;;  %v8795_v21 = vadd.f32 %v7707_v1, %v8576_v4 }
  0xed   : > { %16558 = vst [vmem:[#allocation98_spill] sm:$0xff] %v8683_v52  ;;  %1711 = vrot.lane.b32.xlu1 %v8661_v51, %s8047_s21  ;;  %v1398_v10 = vshrl.u32 %v8683_v52, 16  ;;  %v1394_v33 = vshll.u32 %v8683_v52, 16  ;;  %v8692_v12 = vpop.f32.mrf.mxu0  ;;  %v1592_v2 = vrot.slane %v16560_v23, 1  ;;  %v15920_v23 = vmax.f32 %v8700_v14, 0.0 }
  0xee   : > { %v8839_v36 = vadd.f32 %v8576_v4, %v8692_v12 }
  0xef   : > { %v3247_v19 = vrot.slane %v1398_v10, 1  ;;  %v3248_v6 = vrot.slane %v1394_v33, 2  ;;  %v8702_v58 = vpop.f32.mrf.mxu0  ;;  %v8707_v57 = vsel %vm16452_vm6, %v1588_v8, %v1592_v2  ;;  %v15924_v2 = vshll.u32 %v8673_v53, 16 }
  0xf0   : > { %1851 = vrot.lane.b32.xlu0 %v8695_v37, %s8048_s22  ;;  %16561 = vst [vmem:[#allocation100_spill] sm:$0xff] %v8707_v57  ;;  %v1396_v62 = vrot.slane %v1394_v33, 1  ;;  %v16579_v34 = vmax.f32 %v8839_v36, 0.0 }
  0xf1   : > { %1656 = vrot.lane.b32.xlu1 %v8707_v57, %s8046_s18  ;;  %v8711_v45 = vor.u32 %v3248_v6, %v3247_v19  ;;  %v8713_v48 = vpop.f32.mrf.mxu0  ;;  %v1780_v6 = vrot.slane %v8716_v32, 1  ;;  %v1183_v19 = vsel %vm409_vm4, %v15920_v23, 0.0  ;;  %v1785_v31 = vrot.slane %v15924_v2, 1 }
  0xf2   : > { %v8745_v7 = vpack.c.bf16 %v1183_v19, %v1183_v19  ;;  %v8749_v23 = vadd.f32 %v8576_v4, %v738_v42  ;;  %v8762_v19 = vadd.f32 %v8642_v40, %v8576_v4  ;;  %v8854_v12 = vadd.f32 %v8576_v4, %v8713_v48 }
  0xf3   : > { %16562 = vst [vmem:[#allocation101_spill] sm:$0xff] %v8711_v45  ;;  %v8719_v50 = vpop.f32.mrf.mxu0  ;;  %v1781_v56 = vor.u32 %v1780_v6, %v8737_v63  ;;  %v8769_v6 = vrot.slane %v8683_v52, 1 }
  0xf4   : > { %1713 = vrot.lane.b32.xlu0 %v8683_v52, %s8047_s21  ;;  %16565 = vst [vmem:[#allocation104_spill] sm:$0xff] %v8745_v7  ;;  %v15930_v42 = vmax.f32 %v8749_v23, 0.0  ;;  %v16577_v32 = vshll.u32 %v8745_v7, 16  ;;  %v15958_v54 = vmax.f32 %v8854_v12, 0.0 }
  0xf5   : > { %1845 = vrot.lane.b32.xlu1 %v8707_v57, %s8048_s22  ;;  %v8726_v8 = vpop.f32.mrf.mxu0  ;;  %v8756_v0 = vsel %vm16452_vm6, %v1781_v56, %v1785_v31  ;;  %16567 = vst [vmem:[#allocation106_spill] sm:$0xff] %v8769_v6  ;;  %v15935_v56 = vmax.f32 %v8762_v19, 0.0  ;;  %v1664_v31 = vrot.slane %v8661_v51, 1 }
  0xf6   : > { %16566 = vst [vmem:[#allocation105_spill] sm:$0xff] %v8756_v0  ;;  %v1181_v24 = vsel %vm398_vm3, %v15930_v42, 0.0  ;;  %v16570_v42 = vshll.u32 %v8661_v51, 16  ;;  %v1410_v63 = vrot.slane %v16577_v32, 1 }
  0xf7   : > { %v8733_v15 = vpop.f32.mrf.mxu0  ;;  %v8792_v40 = vpack.c.bf16 %v15935_v56, %v1181_v24  ;;  %v15942_v24 = vmax.f32 %v8795_v21, 0.0  ;;  %v8808_v56 = vshrl.u32 %v8745_v7, 16 }
  0xf8   : > { %1602 = vrot.lane.b32.xlu0 %v1398_v10, %s8046_s18  ;;  %v1391_v44 = vrot.slane %v16570_v42, 1  ;;  %v8938_v41 = vadd.f32 %v8733_v15, %v8576_v4 }
  0xf9   : > { %1313 = vrot.lane.b32.xlu1 %v8683_v52, %s8043_s13  ;;  %v8743_v11 = vpop.f32.mrf.mxu0  ;;  %16569 = vst [vmem:[#allocation108_spill] sm:$0xff] %v8792_v40  ;;  %16571 = vst [vmem:[#allocation109_spill] sm:$0xff] %v8808_v56  ;;  %v1186_v33 = vsel %vm409_vm4, %v15942_v24, 0.0  ;;  %v1667_v24 = vrot.slane %v8792_v40, 1 }
  0xfb   : > { %v8751_v22 = vpop.f32.mrf.mxu0 }
  0xfc   : > { %1717 = vrot.lane.b32.xlu0 %v8745_v7, %s8047_s21 }
  0xfd   : > { %1849 = vrot.lane.b32.xlu1 %v8756_v0, %s8048_s22  ;;  %v8764_v2 = vpop.f32.mrf.mxu0  ;;  %v16597_v0 = vmax.f32 %v8938_v41, 0.0 }
  0xff   : > { %v8771_v20 = vpop.f32.mrf.mxu0 }
 0x100   : > { %1791 = vrot.lane.b32.xlu0 %v1398_v10, %s8048_s22  ;;  %v8786_v10 = vsel %vm16453_vm5, %v1664_v31, %v8769_v6  ;;  %v15939_v31 = vshrl.u32 %v8661_v51, 16 }
 0x101   : > { %1317 = vrot.lane.b32.xlu1 %v8745_v7, %s8043_s13  ;;  %16568 = vst [vmem:[#allocation107_spill] sm:$0xff] %v8786_v10  ;;  %v786_v49 = vpop.f32.mrf.mxu0 }
 0x102   : > { %v1392_v1 = vor.u32 %v1391_v44, %v15939_v31  ;;  %v15949_v44 = vshll.u32 %v8792_v40, 16  ;;  %v8828_v31 = vpack.c.bf16 %v1186_v33, %v1186_v33 }
 0x103   : > { %v8799_v60 = vpop.f32.mrf.mxu0 }
 0x104   : > { %1858 = vrot.lane.b32.xlu0 %v8769_v6, %s8049_s23  ;;  %v8817_v61 = vsel %vm16452_vm6, %v1392_v1, %v1396_v62  ;;  %16573 = vst [vmem:[#allocation111_spill] sm:$0xff] %v8828_v31  ;;  %v8833_v62 = vrot.slane %v8745_v7, 1  ;;  %v1405_v59 = vrot.slane %v15949_v44, 1  ;;  %v16576_v44 = vshrl.u32 %v8792_v40, 16 }
 0x105   : > { %1856 = vrot.lane.b32.xlu1 %v8786_v10, %s8049_s23  ;;  %v8812_v42 = vpop.f32.mrf.mxu0  ;;  %16572 = vst [vmem:[#allocation110_spill] sm:$0xff] %v8817_v61  ;;  %v8870_v48 = vshrl.u32 %v8828_v31, 16  ;;  %v8921_v10 = vadd.f32 %v8576_v4, %v786_v49 }
 0x106   : > { %16574 = vst [vmem:[#allocation112_spill] sm:$0xff] %v8833_v62  ;;  %v8861_v33 = vsel %vm16453_vm5, %v1667_v24, %v8833_v62  ;;  %v1406_v35 = vor.u32 %v1405_v59, %v16576_v44  ;;  %v1184_v24 = vsel %vm398_vm3, %v16579_v34, 0.0  ;;  %v8888_v44 = vadd.f32 %v8702_v58, %v8576_v4 }
 0x107   : > { %v7720_v55 = vpop.f32.mrf.mxu0  ;;  %16575 = vst [vmem:[#allocation113_spill] sm:$0xff] %v8861_v33  ;;  %16578 = vst [vmem:[#allocation114_spill] sm:$0xff] %v8870_v48  ;;  %v8892_v45 = vpack.c.bf16 %v15958_v54, %v1184_v24  ;;  %v8907_v58 = vadd.f32 %v8771_v20, %v8576_v4  ;;  %v8912_v54 = vadd.f32 %v8719_v50, %v8576_v4  ;;  %v16592_v39 = vmax.f32 %v8921_v10, 0.0 }
 0x108   : > { %1315 = vrot.lane.b32.xlu0 %v8792_v40, %s8043_s13  ;;  %v8880_v59 = vsel %vm16452_vm6, %v1406_v35, %v1410_v63  ;;  %v8900_v35 = vadd.f32 %v8576_v4, %v8726_v8  ;;  %v8903_v63 = vrot.slane %v8828_v31, 1  ;;  %v8925_v20 = vadd.f32 %v8576_v4, %v8743_v11 }
 0x109   : > { %1715 = vrot.lane.b32.xlu1 %v8792_v40, %s8047_s21  ;;  %v8835_v1 = vpop.f32.mrf.mxu0  ;;  %16580 = vst [vmem:[#allocation115_spill] sm:$0xff] %v8880_v59  ;;  %16581 = vst [vmem:[#allocation116_spill] sm:$0xff] %v8892_v45  ;;  %v8918_v8 = vshll.u32 %v8892_v45, 16  ;;  %v8930_v50 = vadd.f32 %v7720_v55, %v8576_v4  ;;  %v16584_v11 = vmax.f32 %v8888_v44, 0.0  ;;  %v8948_v55 = vadd.f32 %v8751_v22, %v8576_v4 }
 0x10a   : > { %16582 = vst [vmem:[#allocation117_spill] sm:$0xff] %v8903_v63  ;;  %v8973_v6 = vshrl.u32 %v8892_v45, 16 }
 0x10b   : > { %v8850_v46 = vpop.f32.mrf.mxu0  ;;  %16583 = vst [vmem:[#allocation118_spill] sm:$0xff] %v8918_v8  ;;  %v1187_v52 = vsel %vm398_vm3, %v16584_v11, 0.0  ;;  %v1419_v15 = vrot.slane %v8918_v8, 1  ;;  %v16590_v8 = vmax.f32 %v8912_v54, 0.0 }
 0x10c   : > { %1606 = vrot.lane.b32.xlu0 %v8808_v56, %s8046_s18  ;;  %16588 = vst [vmem:[#allocation121_spill] sm:$0xff] %v8973_v6 }
 0x10d   : > { %1600 = vrot.lane.b32.xlu1 %v8817_v61, %s8046_s18  ;;  %v815_v43 = vpop.f32.mrf.mxu0 }
 0x10e   : > { %v8960_v11 = vadd.f32 %v8576_v4, %v815_v43  ;;  %v16589_v43 = vmax.f32 %v8907_v58, 0.0 }
 0x10f   : > { %v8884_v32 = vpop.f32.mrf.mxu0 }
 0x110   : > { %1795 = vrot.lane.b32.xlu0 %v8808_v56, %s8048_s22  ;;  %v1195_v51 = vsel %vm409_vm4, %v16589_v43, 0.0  ;;  %v1193_v43 = vsel %vm398_vm3, %v16592_v39, 0.0 }
 0x111   : > { %1789 = vrot.lane.b32.xlu1 %v8817_v61, %s8048_s22  ;;  %v818_v34 = vpop.f32.mrf.mxu0  ;;  %v1670_v61 = vrot.slane %v8892_v45, 1  ;;  %v9000_v22 = vpack.c.bf16 %v1195_v51, %v1195_v51  ;;  %v16599_v51 = vmax.f32 %v8948_v55, 0.0 }
 0x112   : > { %v8933_v24 = vadd.f32 %v8576_v4, %v818_v34 }
 0x113   : > { %v8952_v34 = vsel %vm16453_vm5, %v1670_v61, %v8903_v63  ;;  %v1190_v61 = vsel %vm398_vm3, %v16590_v8, 0.0  ;;  %16594 = vst [vmem:[#allocation122_spill] sm:$0xff] %v9000_v22 }
 0x114   : > { %1862 = vrot.lane.b32.xlu0 %v8833_v62, %s8049_s23  ;;  %16585 = vst [vmem:[#allocation119_spill] sm:$0xff] %v8952_v34  ;;  %v9012_v57 = vpack.c.bf16 %v16597_v0, %v1190_v61  ;;  %v16603_v0 = vmax.f32 %v8960_v11, 0.0 }
 0x115   : > { %1321 = vrot.lane.b32.xlu1 %v8828_v31, %s8043_s13 }
 0x116   : > { %16598 = vst [vmem:[#allocation123_spill] sm:$0xff] %v9012_v57 }
 0x118   : > { %1721 = vrot.lane.b32.xlu0 %v8828_v31, %s8047_s21 }
 0x119   : > { %1860 = vrot.lane.b32.xlu1 %v8861_v33, %s8049_s23  ;;  %v9020_v33 = vpack.c.bf16 %v16599_v51, %v1193_v43  ;;  %v9055_v43 = vadd.f32 %v8576_v4, %v8835_v1  ;;  %v16613_v1 = vrot.slane %v8808_v56, 1  ;;  %v9095_v56 = vadd.f32 %v8576_v4, %v8764_v2 }
 0x11b   : > { %16600 = vst [vmem:[#allocation124_spill] sm:$0xff] %v9020_v33 }
 0x11c   : > { %1610 = vrot.lane.b32.xlu0 %v8870_v48, %s8046_s18 }
 0x11d   : > { %1604 = vrot.lane.b32.xlu1 %v8880_v59, %s8046_s18 }
 0x120   : > { %1799 = vrot.lane.b32.xlu0 %v8870_v48, %s8048_s22 }
 0x121   : > { %1719 = vrot.lane.b32.xlu1 %v8892_v45, %s8047_s21 }
 0x124   : > { %1866 = vrot.lane.b32.xlu0 %v8903_v63, %s8049_s23  ;;  %v16586_v63 = vmax.f32 %v8900_v35, 0.0 }
 0x125   : > { %1793 = vrot.lane.b32.xlu1 %v8880_v59, %s8048_s22 }
 0x126   : > { %v8969_v62 = vpack.c.bf16 %v16586_v63, %v1187_v52  ;;  %v1420_v52 = vor.u32 %v1419_v15, %v8973_v6  ;;  %v16591_v63 = vshll.u32 %v8828_v31, 16  ;;  %v16595_v15 = vmax.f32 %v8930_v50, 0.0 }
 0x127   : > { %v16596_v6 = vmax.f32 %v8933_v24, 0.0 }
 0x128   : > { %1319 = vrot.lane.b32.xlu0 %v8892_v45, %s8043_s13  ;;  %16587 = vst [vmem:[#allocation120_spill] sm:$0xff] %v8969_v62  ;;  %v1424_v49 = vrot.slane %v16591_v63, 1  ;;  %v1199_v63 = vsel %vm398_vm3, %v16595_v15, 0.0 }
 0x129   : > { %1864 = vrot.lane.b32.xlu1 %v8952_v34, %s8049_s23  ;;  %v16593_v34 = vmax.f32 %v8925_v20, 0.0  ;;  %v1201_v39 = vsel %vm409_vm4, %v16596_v6, 0.0  ;;  %v9031_v61 = vpack.c.bf16 %v16603_v0, %v1199_v63  ;;  %v9048_v63 = vadd.f32 %v8576_v4, %v8812_v42 }
 0x12a   : > { %v9027_v6 = vsel %vm16452_vm6, %v1420_v52, %v1424_v49  ;;  %v9033_v15 = vpack.c.bf16 %v1201_v39, %v1201_v39  ;;  %v16608_v49 = vshll.u32 %v8792_v40, 16  ;;  %v16609_v0 = vshll.u32 %v8745_v7, 16 }
 0x12b   : > { %v1189_v8 = vsel %vm409_vm4, %v16593_v34, 0.0  ;;  %v9016_v34 = vadd.f32 %v8799_v60, %v8576_v4  ;;  %16602 = vst [vmem:[#allocation126_spill] sm:$0xff] %v9027_v6  ;;  %16604 = vst [vmem:[#allocation127_spill] sm:$0xff] %v9031_v61  ;;  %v9038_v60 = vshrl.u32 %v9000_v22, 16  ;;  %v9069_v39 = vshrl.u32 %v9031_v61, 16 }
 0x12c   : > { %1323 = vrot.lane.b32.xlu0 %v8969_v62, %s8043_s13  ;;  %v9022_v37 = vpack.c.bf16 %v1189_v8, %v1189_v8  ;;  %16605 = vst [vmem:[#allocation128_spill] sm:$0xff] %v9033_v15  ;;  %v16607_v8 = vshrl.u32 %v8792_v40, 16  ;;  %v3252_v52 = vrot.slane %v16608_v49, 2  ;;  %v3255_v59 = vrot.slane %v16609_v0, 2 }
 0x12d   : > { %1723 = vrot.lane.b32.xlu1 %v8969_v62, %s8047_s21  ;;  %16606 = vst [vmem:[#allocation129_spill] sm:$0xff] %v9038_v60  ;;  %v9061_v49 = vshll.u32 %v9020_v33, 16  ;;  %v9066_v42 = vshrl.u32 %v9033_v15, 16  ;;  %16612 = vst [vmem:[#allocation132_spill] sm:$0xff] %v9069_v39  ;;  %v16615_v40 = vshll.u32 %v9000_v22, 16 }
 0x12e   : > { %16601 = vst [vmem:[#allocation125_spill] sm:$0xff] %v9022_v37  ;;  %v3251_v51 = vrot.slane %v16607_v8, 1  ;;  %v9058_v8 = vshrl.u32 %v9020_v33, 16  ;;  %v3256_v48 = vor.u32 %v3255_v59, %v16613_v1  ;;  %v9084_v7 = vshrl.u32 %v9022_v37, 16 }
 0x12f   : > { %16611 = vst [vmem:[#allocation131_spill] sm:$0xff] %v9066_v42  ;;  %v3283_v31 = vrot.slane %v16615_v40, 2  ;;  %v9088_v59 = vshll.u32 %v9031_v61, 16  ;;  %v3293_v40 = vrot.slane %v9069_v39, 1  ;;  %v9103_v25 = vrot.slane %v9066_v42, 1 }
 0x130   : > { %1327 = vrot.lane.b32.xlu0 %v9012_v57, %s8043_s13  ;;  %16610 = vst [vmem:[#allocation130_spill] sm:$0xff] %v9058_v8  ;;  %v3253_v30 = vor.u32 %v3252_v52, %v3251_v51  ;;  %v3279_v45 = vrot.slane %v9058_v8, 1  ;;  %v3280_v51 = vrot.slane %v9061_v49, 2  ;;  %v9079_v52 = vrot.slane %v9038_v60, 1  ;;  %16616 = vst [vmem:[#allocation134_spill] sm:$0xff] %v9084_v7 }
 0x131   : > { %1727 = vrot.lane.b32.xlu1 %v9012_v57, %s8047_s21  ;;  %v3294_v0 = vrot.slane %v9088_v59, 2  ;;  %16618 = vst [vmem:[#allocation136_spill] sm:$0xff] %v9103_v25  ;;  %v1673_v42 = vrot.slane %v8969_v62, 1 }
 0x132   : > { %16614 = vst [vmem:[#allocation133_spill] sm:$0xff] %v9079_v52  ;;  %v9091_v1 = vsel %vm3227_vm7, %v3253_v30, %v3256_v48  ;;  %v3281_v18 = vor.u32 %v3280_v51, %v3279_v45  ;;  %v3284_v53 = vor.u32 %v3283_v31, %v9079_v52  ;;  %v16619_v30 = vshll.u32 %v9033_v15, 16 }
 0x133   : > { %16617 = vst [vmem:[#allocation135_spill] sm:$0xff] %v9091_v1  ;;  %v16620_v45 = vmax.f32 %v9016_v34, 0.0  ;;  %v16622_v52 = vmax.f32 %v9048_v63, 0.0  ;;  %v3295_v29 = vor.u32 %v3294_v0, %v3293_v40  ;;  %v16666_v15 = vmax.f32 %v9095_v56, 0.0 }
 0x134   : > { %1725 = vrot.lane.b32.xlu0 %v9022_v37, %s8047_s21  ;;  %v3297_v48 = vrot.slane %v16619_v30, 2  ;;  %v9115_v51 = vsel %vm3227_vm7, %v3281_v18, %v3284_v53  ;;  %v9129_v53 = vpop.permute.xlu0 %1307  ;;  %v9132_v18 = vshll.u32 %v8969_v62, 16 }
 0x135   : > { %1608 = vrot.lane.b32.xlu1 %v9027_v6, %s8046_s18  ;;  %v1198_v2 = vsel %vm409_vm4, %v16620_v45, 0.0  ;;  %16621 = vst [vmem:[#allocation137_spill] sm:$0xff] %v9115_v51  ;;  %v1196_v1 = vsel %vm398_vm3, %v16622_v52, 0.0  ;;  %v9127_v45 = vrot.slane %v9022_v37, 1  ;;  %16624 = vst [vmem:[#allocation139_spill] sm:$0xff] %v9129_v53  ;;  %v16628_v52 = vmax.f32 %v9055_v43, 0.0 }
 0x136   : > { %v3298_v30 = vor.u32 %v3297_v48, %v9103_v25  ;;  %16625 = vst [vmem:[#allocation140_spill] sm:$0xff] %v9132_v18  ;;  %v9134_v31 = vpack.c.bf16 %v1198_v2, %v1198_v2  ;;  %v16636_v53 = vshll.u32 %v9022_v37, 16  ;;  %v1074_v61 = vrot.slane %v16666_v15, 2 }
 0x137   : > { %16623 = vst [vmem:[#allocation138_spill] sm:$0xff] %v9127_v45  ;;  %v9143_v40 = vpack.c.bf16 %v16628_v52, %v1196_v1  ;;  %v9153_v2 = vsel %vm16453_vm5, %v1673_v42, %v9127_v45  ;;  %v9171_v42 = vshrl.u32 %v8969_v62, 16  ;;  %v16672_v15 = vmax.f32 %v9016_v34, 0.0 }
 0x138   : > { %1614 = vrot.lane.b32.xlu0 %v9084_v7, %s8046_s18  ;;  %16626 = vst [vmem:[#allocation141_spill] sm:$0xff] %v9134_v31  ;;  %v9137_v0 = vsel %vm3227_vm7, %v3295_v29, %v3298_v30  ;;  %16630 = vst [vmem:[#allocation144_spill] sm:$0xff] %v9153_v2  ;;  %v1433_v29 = vrot.slane %v9132_v18, 1  ;;  %v9158_v25 = vshrl.u32 %v9134_v31, 16  ;;  %v1438_v52 = vrot.slane %v16636_v53, 1 }
 0x139   : > { %1797 = vrot.lane.b32.xlu1 %v9027_v6, %s8048_s22  ;;  %v16022_v6 = vmax.f32 %v9095_v56, 0.0  ;;  %16627 = vst [vmem:[#allocation142_spill] sm:$0xff] %v9137_v0  ;;  %16629 = vst [vmem:[#allocation143_spill] sm:$0xff] %v9143_v40  ;;  %v9163_v1 = vshrl.u32 %v9143_v40, 16  ;;  %v9168_v0 = vpop.permute.xlu0 %1309  ;;  %v9174_v30 = vshll.u32 %v9143_v40, 16 }
 0x13a   : > { %16631 = vst [vmem:[#allocation145_spill] sm:$0xff] %v9158_v25  ;;  %16634 = vst [vmem:[#allocation148_spill] sm:$0xff] %v9168_v0  ;;  %v1434_v18 = vor.u32 %v1433_v29, %v9171_v42  ;;  %v9184_v0 = vrot.slane %v9158_v25, 1 }
 0x13b   : > { %v1192_v48 = vsel %vm409_vm4, %v16022_v6, 0.0  ;;  %16632 = vst [vmem:[#allocation146_spill] sm:$0xff] %v9163_v1  ;;  %16635 = vst [vmem:[#allocation149_spill] sm:$0xff] %v9171_v42  ;;  %v3286_v51 = vrot.slane %v9163_v1, 1 }
 0x13c   : > { %1803 = vrot.lane.b32.xlu0 %v9084_v7, %s8048_s22  ;;  %v9166_v6 = vpack.c.bf16 %v1192_v48, %v1192_v48  ;;  %v3287_v48 = vrot.slane %v9174_v30, 2  ;;  %16637 = vst [vmem:[#allocation150_spill] sm:$0xff] %v9184_v0  ;;  %v9197_v53 = vsel %vm16452_vm6, %v1434_v18, %v1438_v52  ;;  %v16646_v52 = vmax.f32 %v8596_v28, 0.0 }
 0x13d   : > { %1325 = vrot.lane.b32.xlu1 %v9022_v37, %s8043_s13  ;;  %16640 = vst [vmem:[#allocation152_spill] sm:$0xff] %v9197_v53  ;;  %v9199_v42 = vpop.permute.xlu0 %7907  ;;  %v16652_v28 = vmax.f32 %v8700_v14, 0.0  ;;  %v16657_v14 = vmax.f32 %v8854_v12, 0.0  ;;  %v16663_v12 = vmax.f32 %v8938_v41, 0.0  ;;  %v16669_v41 = vmax.f32 %v8921_v10, 0.0 }
 0x13e   : > { %16633 = vst [vmem:[#allocation147_spill] sm:$0xff] %v9166_v6  ;;  %v9191_v7 = vshrl.u32 %v9166_v6, 16  ;;  %v3288_v62 = vor.u32 %v3287_v48, %v3286_v51  ;;  %16641 = vst [vmem:[#allocation153_spill] sm:$0xff] %v9199_v42  ;;  %v16644_v51 = vmax.f32 %v8583_v38, 0.0  ;;  %v16645_v48 = vmax.f32 %v8593_v27, 0.0 }
 0x13f   : > { %v16647_v42 = vmax.f32 %v8603_v17, 0.0  ;;  %v16650_v38 = vmax.f32 %v8762_v19, 0.0  ;;  %v16651_v27 = vmax.f32 %v8657_v47, 0.0  ;;  %v16653_v17 = vmax.f32 %v8749_v23, 0.0 }
 0x140   : > { %1870 = vrot.lane.b32.xlu0 %v9127_v45, %s8049_s23  ;;  %v16638_v45 = vshll.u32 %v9134_v31, 16  ;;  %16639 = vst [vmem:[#allocation151_spill] sm:$0xff] %v9191_v7  ;;  %v9216_v18 = vrot.slane %v16645_v48, 2  ;;  %v16656_v19 = vmax.f32 %v8888_v44, 0.0  ;;  %v1062_v47 = vrot.slane %v16657_v14, 2 }
 0x141   : > { %1868 = vrot.lane.b32.xlu1 %v9153_v2, %s8049_s23  ;;  %v1054_v48 = vrot.slane %v16651_v27, 2  ;;  %v9255_v23 = vrot.slane %v9166_v6, 1  ;;  %v16661_v44 = vmax.f32 %v8912_v54, 0.0  ;;  %v16664_v14 = vmax.f32 %v8925_v20, 0.0 }
 0x142   : > { %v3290_v2 = vrot.slane %v16638_v45, 2  ;;  %v16643_v45 = vmax.f32 %v8579_v9, 0.0  ;;  %v9276_v54 = vshll.u32 %v9012_v57, 16  ;;  %v16670_v20 = vrot.slane %v9058_v8, 7 }
 0x143   : > { %16660 = vst [vmem:[#allocation157_spill] sm:$0xff] %v9255_v23 }
 0x144   : > { %1729 = vrot.lane.b32.xlu0 %v9166_v6, %s8047_s21  ;;  %v3291_v29 = vor.u32 %v3290_v2, %v9184_v0  ;;  %v9208_v5 = vrot.slane %v16643_v45, 2  ;;  %v9212_v2 = vrot.slane %v16644_v51, 2  ;;  %v9220_v0 = vrot.slane %v16646_v52, 2  ;;  %16668 = vst [vmem:[#allocation158_spill] sm:$0xff] %v9276_v54 }
 0x145   : > { %1329 = vrot.lane.b32.xlu1 %v9166_v6, %s8043_s13  ;;  %v16649_v45 = vmax.f32 %v8640_v16, 0.0  ;;  %v1057_v51 = vrot.slane %v16650_v38, 2  ;;  %v1059_v52 = vrot.slane %v16652_v28, 2  ;;  %v1066_v38 = vrot.slane %v16656_v19, 2 }
 0x146   : > { %v9204_v37 = vsel %vm3227_vm7, %v3288_v62, %v3291_v29  ;;  %v1051_v62 = vrot.slane %v16647_v42, 2  ;;  %v16648_v29 = vmax.f32 %v8625_v26, 0.0  ;;  %v1056_v26 = vrot.slane %v16653_v17, 2 }
 0x147   : > { %16642 = vst [vmem:[#allocation154_spill] sm:$0xff] %v9204_v37  ;;  %v9228_v37 = vrot.slane %v16649_v45, 2  ;;  %v16654_v42 = vmax.f32 %v8795_v21, 0.0  ;;  %v1676_v21 = vrot.slane %v9012_v57, 1  ;;  %v1071_v17 = vrot.slane %v16661_v44, 2 }
 0x148   : > { %1618 = vrot.lane.b32.xlu0 %v9191_v7, %s8046_s18  ;;  %v1052_v9 = vrot.slane %v16648_v29, 2  ;;  %v16655_v29 = vmax.f32 %v8839_v36, 0.0  ;;  %v1072_v19 = vrot.slane %v16663_v12, 2  ;;  %v16667_v36 = vmax.f32 %v8907_v58, 0.0 }
 0x149   : > { %1612 = vrot.lane.b32.xlu1 %v9197_v53, %s8046_s18  ;;  %v1064_v16 = vrot.slane %v16654_v42, 2  ;;  %v16662_v42 = vmax.f32 %v8900_v35, 0.0  ;;  %v1076_v35 = vrot.slane %v16669_v41, 2  ;;  %v9285_v56 = vor.u32 %v16670_v20, %v9061_v49 }
 0x14a   : > { %v1061_v45 = vrot.slane %v16655_v29, 2  ;;  %v1079_v3 = vrot.slane %v16667_v36, 2  ;;  %v16053_v58 = vrot.slane %v9163_v1, 7  ;;  %v9295_v10 = vsel %vm16453_vm5, %v1676_v21, %v9255_v23 }
 0x14b   : > { %v1067_v29 = vrot.slane %v16662_v42, 2  ;;  %16671 = vst [vmem:[#allocation159_spill] sm:$0xff] %v9285_v56  ;;  %16674 = vst [vmem:[#allocation161_spill] sm:$0xff] %v9295_v10  ;;  %v9298_v44 = vsel %vm16348_vm2, %v1052_v9, %v1054_v48  ;;  %v9301_v42 = vsel %vm16348_vm2, %v1051_v62, %v1052_v9  ;;  %v9317_v48 = vsel %vm16348_vm2, %v1057_v51, %v1059_v52 }
 0x14c   : > { %1733 = vrot.lane.b32.xlu0 %v9000_v22, %s8047_s21  ;;  %16675 = vst [vmem:[#allocation162_spill] sm:$0xff] %v9298_v44  ;;  %16676 = vst [vmem:[#allocation163_spill] sm:$0xff] %v9301_v42  ;;  %v9309_v34 = vor.u32 %v16053_v58, %v9174_v30  ;;  %v16681_v62 = vmax.f32 %v9048_v63, 0.0  ;;  %v16682_v41 = vmax.f32 %v8930_v50, 0.0  ;;  %v9328_v42 = vpop.f32.mrf.mxu0  ;;  %v16684_v52 = vmax.f32 %v8960_v11, 0.0 }
 0x14d   : > { %1801 = vrot.lane.b32.xlu1 %v9197_v53, %s8048_s22  ;;  %16680 = vst [vmem:[#allocation167_spill] sm:$0xff] %v9317_v48  ;;  %v9338_v50 = vsel %vm16348_vm2, %v1062_v47, %v1064_v16  ;;  %v9348_v48 = vshrl.u32 %v9012_v57, 16  ;;  %v9359_v16 = vsel %vm16348_vm2, %v1072_v19, %v1074_v61 }
 0x14e   : > { %v9250_v27 = vpop.permute.xlu0 %1769  ;;  %v9252_v28 = vpop.permute.xlu1 %1369  ;;  %16678 = vst [vmem:[#allocation165_spill] sm:$0xff] %v9309_v34  ;;  %v1081_v9 = vrot.slane %v16681_v62, 2  ;;  %v1086_v20 = vrot.slane %v16682_v41, 2  ;;  %v1087_v63 = vrot.slane %v16684_v52, 2  ;;  %v9335_v62 = vsel %vm16348_vm2, %v1056_v26, %v1057_v51  ;;  %16686 = vst [vmem:[#allocation169_spill] sm:$0xff] %v9338_v50 }
 0x14f   : > { %16658 = vst [vmem:[#allocation155_spill] sm:$0xff] %v9250_v27  ;;  %16659 = vst [vmem:[#allocation156_spill] sm:$0xff] %v9252_v28  ;;  %v1069_v27 = vrot.slane %v16664_v14, 2  ;;  %v16665_v28 = vmax.f32 %v8948_v55, 0.0  ;;  %v16054_v55 = vrot.slane %v9069_v39, 7  ;;  %v1447_v14 = vrot.slane %v9276_v54, 1  ;;  %v831_v52 = vpop.f32.mrf.mxu0 }
 0x150   : > { %1807 = vrot.lane.b32.xlu0 %v9191_v7, %s8048_s22  ;;  %16685 = vst [vmem:[#allocation168_spill] sm:$0xff] %v9335_v62  ;;  %v9341_v41 = vsel %vm16348_vm2, %v1061_v45, %v1062_v47  ;;  %16690 = vst [vmem:[#allocation172_spill] sm:$0xff] %v9348_v48  ;;  %v9354_v51 = vsel %vm16348_vm2, %v1066_v38, %v1067_v29  ;;  %v9362_v45 = vsel %vm16348_vm2, %v1071_v17, %v1072_v19 }
 0x151   : > { %v1077_v53 = vrot.slane %v16665_v28, 2  ;;  %1333 = vrot.lane.b32.xlu1 %v9000_v22, %s8043_s13  ;;  %v1084_v28 = vrot.slane %v16672_v15, 2  ;;  %v9314_v21 = vor.u32 %v16054_v55, %v9088_v59  ;;  %v16683_v15 = vmax.f32 %v9055_v43, 0.0  ;;  %16687 = vst [vmem:[#allocation170_spill] sm:$0xff] %v9341_v41  ;;  %16692 = vst [vmem:[#allocation174_spill] sm:$0xff] %v9354_v51 }
 0x152   : > { %v9291_v36 = vpop.permute.xlu0 %1658  ;;  %v16688_v43 = vmax.f32 %v8619_v13, 0.0  ;;  %v9351_v11 = vsel %vm16348_vm2, %v1067_v29, %v1069_v27  ;;  %16694 = vst [vmem:[#allocation176_spill] sm:$0xff] %v9359_v16  ;;  %16695 = vst [vmem:[#allocation177_spill] sm:$0xff] %v9362_v45  ;;  %v1448_v38 = vor.u32 %v1447_v14, %v9348_v48  ;;  %v16698_v27 = vshll.u32 %v9166_v6, 16 }
 0x153   : > { %16673 = vst [vmem:[#allocation160_spill] sm:$0xff] %v9291_v36  ;;  %v9303_v12 = vpop.permute.xlu1 %1767  ;;  %16679 = vst [vmem:[#allocation166_spill] sm:$0xff] %v9314_v21  ;;  %v1082_v58 = vrot.slane %v16683_v15, 2  ;;  %v9365_v13 = vsel %vm16348_vm2, %v1077_v53, %v1079_v3  ;;  %v9368_v47 = vsel %vm16348_vm2, %v1076_v35, %v1077_v53  ;;  %v9384_v3 = vsel %vm16348_vm2, %v1086_v20, %v1087_v63 }
 0x154   : > { %16677 = vst [vmem:[#allocation164_spill] sm:$0xff] %v9303_v12  ;;  %1874 = vrot.lane.b32.xlu0 %v9255_v23, %s8049_s23  ;;  %v1127_v15 = vrot.slane %v16688_v43, 2  ;;  %16691 = vst [vmem:[#allocation173_spill] sm:$0xff] %v9351_v11  ;;  %v1452_v29 = vrot.slane %v16698_v27, 1  ;;  %v9389_v53 = vsel %vm16348_vm2, %v9220_v0, %v9208_v5  ;;  %v9394_v19 = vsel %vm16348_vm2, %v9212_v2, %v9220_v0 }
 0x155   : > { %1872 = vrot.lane.b32.xlu1 %v9295_v10, %s8049_s23  ;;  %16696 = vst [vmem:[#allocation178_spill] sm:$0xff] %v9365_v13  ;;  %16697 = vst [vmem:[#allocation179_spill] sm:$0xff] %v9368_v47  ;;  %v9376_v61 = vsel %vm16348_vm2, %v1082_v58, %v1084_v28  ;;  %v9379_v17 = vsel %vm16348_vm2, %v1081_v9, %v1082_v58  ;;  %v9409_v5 = vadd.f32 %v8576_v4, %v831_v52  ;;  %v7728_v9 = vpop.f32.mrf.mxu0 }
 0x156   : > { %v9345_v55 = vpop.permute.xlu0 %1847  ;;  %16699 = vst [vmem:[#allocation180_spill] sm:$0xff] %v9376_v61  ;;  %16700 = vst [vmem:[#allocation181_spill] sm:$0xff] %v9379_v17  ;;  %v9398_v35 = vsel %vm16348_vm2, %v1127_v15, %v9228_v37  ;;  %v9404_v28 = vsel %vm16348_vm2, %v9216_v18, %v1127_v15  ;;  %v9414_v0 = vsel %vm16452_vm6, %v1448_v38, %v1452_v29  ;;  %v16713_v52 = vmax.f32 %v8933_v24, 0.0 }
 0x157   : > { %16689 = vst [vmem:[#allocation171_spill] sm:$0xff] %v9345_v55  ;;  %v9356_v26 = vpop.permute.xlu1 %1771  ;;  %16701 = vst [vmem:[#allocation182_spill] sm:$0xff] %v9384_v3  ;;  %v9418_v37 = vadd.f32 %v8884_v32, %v8576_v4  ;;  %v9424_v2 = vadd.f32 %v8850_v46, %v8576_v4  ;;  %v9440_v46 = vrot.slane %v9000_v22, 1  ;;  %v834_v27 = vpop.f32.mrf.mxu0  ;;  %v1461_v3 = vrot.slane %v9061_v49, 1 }
 0x158   : > { %16693 = vst [vmem:[#allocation175_spill] sm:$0xff] %v9356_v26  ;;  %1331 = vrot.lane.b32.xlu0 %v9020_v33, %s8043_s13  ;;  %16702 = vst [vmem:[#allocation183_spill] sm:$0xff] %v9389_v53  ;;  %v1089_v43 = vrot.slane %v16713_v52, 2  ;;  %v16721_v47 = vshll.u32 %v9000_v22, 16  ;;  %v1682_v16 = vrot.slane %v9143_v40, 1  ;;  %v9525_v51 = vadd.f32 %v8576_v4, %v834_v27 }
 0x159   : > { %1731 = vrot.lane.b32.xlu1 %v9020_v33, %s8047_s21  ;;  %16703 = vst [vmem:[#allocation184_spill] sm:$0xff] %v9394_v19  ;;  %16704 = vst [vmem:[#allocation185_spill] sm:$0xff] %v9398_v35  ;;  %v16055_v32 = vmax.f32 %v9418_v37, 0.0  ;;  %v972_v15 = vmax.f32 %v9424_v2, 0.0  ;;  %v1679_v2 = vrot.slane %v9020_v33, 1  ;;  %v9454_v17 = vpop.f32.mrf.mxu0  ;;  %v1462_v61 = vor.u32 %v1461_v3, %v9058_v8 }
 0x15a   : > { %v9400_v58 = vpop.permute.xlu0 %1367  ;;  %16706 = vst [vmem:[#allocation187_spill] sm:$0xff] %v9404_v28  ;;  %16708 = vst [vmem:[#allocation189_spill] sm:$0xff] %v9414_v0  ;;  %v16715_v28 = vmax.f32 %v9409_v5, 0.0  ;;  %v1466_v13 = vrot.slane %v16721_v47, 1  ;;  %v16062_v27 = vmax.f32 %v9525_v51, 0.0  ;;  %v1475_v55 = vrot.slane %v9174_v30, 1 }
 0x15b   : > { %16705 = vst [vmem:[#allocation186_spill] sm:$0xff] %v9400_v58  ;;  %v9406_v14 = vpop.permute.xlu1 %1311  ;;  %16712 = vst [vmem:[#allocation193_spill] sm:$0xff] %v9440_v46  ;;  %v1092_v29 = vrot.slane %v16055_v32, 2  ;;  %v1091_v53 = vrot.slane %v972_v15, 2  ;;  %v9463_v32 = vsel %vm16348_vm2, %v1087_v63, %v1089_v43  ;;  %v9472_v49 = vsel %vm16453_vm5, %v1679_v2, %v9440_v46  ;;  %v9477_v45 = vpop.f32.mrf.mxu0 }
 0x15c   : > { %16707 = vst [vmem:[#allocation188_spill] sm:$0xff] %v9406_v14  ;;  %1622 = vrot.lane.b32.xlu0 %v9038_v60, %s8046_s18  ;;  %v1094_v19 = vrot.slane %v16715_v28, 2  ;;  %16718 = vst [vmem:[#allocation197_spill] sm:$0xff] %v9463_v32  ;;  %v9491_v3 = vsel %vm16452_vm6, %v1462_v61, %v1466_v13  ;;  %v9510_v13 = vrot.slane %v9134_v31, 1  ;;  %v9513_v61 = vadd.f32 %v7728_v9, %v8576_v4 }
 0x15d   : > { %1616 = vrot.lane.b32.xlu1 %v9414_v0, %s8046_s18  ;;  %16720 = vst [vmem:[#allocation199_spill] sm:$0xff] %v9472_v49  ;;  %v9480_v63 = vsel %vm16348_vm2, %v1091_v53, %v1092_v29  ;;  %16725 = vst [vmem:[#allocation203_spill] sm:$0xff] %v9491_v3  ;;  %v9493_v2 = vpop.f32.mrf.mxu0  ;;  %v9519_v32 = vadd.f32 %v9328_v42, %v8576_v4  ;;  %v1096_v56 = vrot.slane %v16062_v27, 2  ;;  %v1202_v54 = vsel %vm398_vm3, %v972_v15, 0.0 }
 0x15e   : > { %v9426_v18 = vpop.permute.xlu0 %1773  ;;  %v9466_v28 = vsel %vm16348_vm2, %v1092_v29, %v1094_v19  ;;  %16722 = vst [vmem:[#allocation200_spill] sm:$0xff] %v9480_v63  ;;  %16729 = vst [vmem:[#allocation207_spill] sm:$0xff] %v9510_v13  ;;  %v9539_v62 = vsel %vm16453_vm5, %v1682_v16, %v9510_v13  ;;  %v16735_v34 = vmax.f32 %v9513_v61, 0.0  ;;  %v1476_v30 = vor.u32 %v1475_v55, %v9163_v1  ;;  %v16752_v1 = vld [vmem:[#allocation131_spill] sm:$0xff] }
 0x15f   : > { %16709 = vst [vmem:[#allocation190_spill] sm:$0xff] %v9426_v18  ;;  %v9428_v20 = vpop.permute.xlu1 %1711  ;;  %16719 = vst [vmem:[#allocation198_spill] sm:$0xff] %v9466_v28  ;;  %v9503_v29 = vpop.f32.mrf.mxu0  ;;  %v16061_v42 = vmax.f32 %v9519_v32, 0.0  ;;  %v16768_v26 = vmax.f32 %v9513_v61, 0.0 }
 0x160   : > { %16710 = vst [vmem:[#allocation191_spill] sm:$0xff] %v9428_v20  ;;  %1811 = vrot.lane.b32.xlu0 %v9038_v60, %s8048_s22  ;;  %16733 = vst [vmem:[#allocation211_spill] sm:$0xff] %v9539_v62  ;;  %v1099_v8 = vrot.slane %v16735_v34, 2 }
 0x161   : > { %1805 = vrot.lane.b32.xlu1 %v9414_v0, %s8048_s22  ;;  %v7735_v11 = vpop.f32.mrf.mxu0  ;;  %v1097_v41 = vrot.slane %v16061_v42, 2  ;;  %v16739_v42 = vmax.f32 %v9418_v37, 0.0 }
 0x162   : > { %v9437_v38 = vpop.permute.xlu0 %1851 }
 0x163   : > { %16711 = vst [vmem:[#allocation192_spill] sm:$0xff] %v9437_v38  ;;  %v9446_v35 = vpop.permute.xlu1 %1656  ;;  %v9542_v44 = vpop.f32.mrf.mxu0  ;;  %v16738_v38 = vld [vmem:[#allocation127_spill] sm:$0xff]  ;;  %v9565_v34 = vpack.c.bf16 %v16739_v42, %v1202_v54  ;;  %v9570_v27 = vsel %vm16348_vm2, %v1097_v41, %v1099_v8  ;;  %v9573_v15 = vsel %vm16348_vm2, %v1096_v56, %v1097_v41  ;;  %v16748_v41 = vld [vmem:[#allocation128_spill] sm:$0xff] }
 0x164   : > { %16714 = vst [vmem:[#allocation194_spill] sm:$0xff] %v9446_v35  ;;  %1878 = vrot.lane.b32.xlu0 %v9440_v46, %s8049_s23  ;;  %16742 = vst [vmem:[#allocation216_spill] sm:$0xff] %v9570_v27 }
 0x165   : > { %1337 = vrot.lane.b32.xlu1 %v9134_v31, %s8043_s13  ;;  %v7736_v18 = vpop.f32.mrf.mxu0  ;;  %16740 = vst [vmem:[#allocation214_spill] sm:$0xff] %v9565_v34  ;;  %16743 = vst [vmem:[#allocation217_spill] sm:$0xff] %v9573_v15  ;;  %v1688_v46 = vrot.slane %v9565_v34, 1 }
 0x166   : > { %v9458_v24 = vpop.permute.xlu0 %1713 }
 0x167   : > { %16716 = vst [vmem:[#allocation195_spill] sm:$0xff] %v9458_v24  ;;  %v9460_v52 = vpop.permute.xlu1 %1845  ;;  %v9582_v54 = vpop.f32.mrf.mxu0 }
 0x168   : > { %16717 = vst [vmem:[#allocation196_spill] sm:$0xff] %v9460_v52  ;;  %1737 = vrot.lane.b32.xlu0 %v9134_v31, %s8047_s21 }
 0x169   : > { %1876 = vrot.lane.b32.xlu1 %v9472_v49, %s8049_s23  ;;  %v9588_v42 = vpop.f32.mrf.mxu0 }
 0x16a   : > { %v9484_v19 = vpop.permute.xlu0 %1602 }
 0x16b   : > { %16723 = vst [vmem:[#allocation201_spill] sm:$0xff] %v9484_v19  ;;  %v9486_v43 = vpop.permute.xlu1 %1313 }
 0x16c   : > { %16724 = vst [vmem:[#allocation202_spill] sm:$0xff] %v9486_v43  ;;  %1626 = vrot.lane.b32.xlu0 %v9158_v25, %s8046_s18 }
 0x16d   : > { %1620 = vrot.lane.b32.xlu1 %v9491_v3, %s8046_s18 }
 0x16e   : > { %v9497_v47 = vpop.permute.xlu0 %1717 }
 0x16f   : > { %16726 = vst [vmem:[#allocation204_spill] sm:$0xff] %v9497_v47  ;;  %v9499_v53 = vpop.permute.xlu1 %1849 }
 0x170   : > { %16727 = vst [vmem:[#allocation205_spill] sm:$0xff] %v9499_v53  ;;  %1815 = vrot.lane.b32.xlu0 %v9158_v25, %s8048_s22  ;;  %v16766_v53 = vshll.u32 %v16748_v41, 16 }
 0x171   : > { %1735 = vrot.lane.b32.xlu1 %v9143_v40, %s8047_s21 }
 0x172   : > { %v9507_v63 = vpop.permute.xlu0 %1791 }
 0x173   : > { %16728 = vst [vmem:[#allocation206_spill] sm:$0xff] %v9507_v63  ;;  %v9515_v28 = vpop.permute.xlu1 %1317 }
 0x174   : > { %16730 = vst [vmem:[#allocation208_spill] sm:$0xff] %v9515_v28  ;;  %1882 = vrot.lane.b32.xlu0 %v9510_v13, %s8049_s23 }
 0x175   : > { %1809 = vrot.lane.b32.xlu1 %v9491_v3, %s8048_s22 }
 0x176   : > { %v9529_v9 = vpop.permute.xlu0 %1858 }
 0x177   : > { %16731 = vst [vmem:[#allocation209_spill] sm:$0xff] %v9529_v9  ;;  %v9532_v50 = vpop.permute.xlu1 %1856 }
 0x178   : > { %16732 = vst [vmem:[#allocation210_spill] sm:$0xff] %v9532_v50  ;;  %1335 = vrot.lane.b32.xlu0 %v9143_v40, %s8043_s13  ;;  %v16745_v50 = vshll.u32 %v9134_v31, 16 }
 0x179   : > { %1880 = vrot.lane.b32.xlu1 %v9539_v62, %s8049_s23 }
 0x17a   : > { %v9548_v21 = vpop.permute.xlu0 %1315  ;;  %v1480_v37 = vrot.slane %v16745_v50, 1  ;;  %v879_v50 = vpop.f32.mrf.mxu0 }
 0x17b   : > { %16734 = vst [vmem:[#allocation212_spill] sm:$0xff] %v9548_v21  ;;  %v9556_v48 = vpop.permute.xlu1 %1715 }
 0x17c   : > { %16737 = vst [vmem:[#allocation213_spill] sm:$0xff] %v9556_v48  ;;  %1339 = vrot.lane.b32.xlu0 %v16738_v38, %s8043_s13  ;;  %v9595_v15 = vsel %vm16452_vm6, %v1476_v30, %v1480_v37  ;;  %v9615_v37 = vadd.f32 %v7735_v11, %v8576_v4  ;;  %v16757_v11 = vmax.f32 %v9409_v5, 0.0 }
 0x17d   : > { %1739 = vrot.lane.b32.xlu1 %v16738_v38, %s8047_s21  ;;  %16749 = vst [vmem:[#allocation221_spill] sm:$0xff] %v9595_v15 }
 0x17e   : > { %v9567_v52 = vpop.permute.xlu0 %1606  ;;  %v1204_v9 = vsel %vm409_vm4, %v16757_v11, 0.0 }
 0x17f   : > { %16741 = vst [vmem:[#allocation215_spill] sm:$0xff] %v9567_v52  ;;  %v9575_v12 = vpop.permute.xlu1 %1600 }
 0x180   : > { %16744 = vst [vmem:[#allocation218_spill] sm:$0xff] %v9575_v12  ;;  %1343 = vrot.lane.b32.xlu0 %v9565_v34, %s8043_s13 }
 0x181   : > { %1743 = vrot.lane.b32.xlu1 %v9565_v34, %s8047_s21 }
 0x182   : > { %v9586_v8 = vpop.permute.xlu0 %1795 }
 0x183   : > { %16746 = vst [vmem:[#allocation219_spill] sm:$0xff] %v9586_v8  ;;  %v9590_v56 = vpop.permute.xlu1 %1789 }
 0x184   : > { %16747 = vst [vmem:[#allocation220_spill] sm:$0xff] %v9590_v56  ;;  %1741 = vrot.lane.b32.xlu0 %v16748_v41, %s8047_s21  ;;  %v9608_v56 = vadd.f32 %v8576_v4, %v879_v50 }
 0x185   : > { %1624 = vrot.lane.b32.xlu1 %v9595_v15, %s8046_s18 }
 0x186   : > { %v9599_v55 = vpop.permute.xlu0 %1862 }
 0x187   : > { %16750 = vst [vmem:[#allocation222_spill] sm:$0xff] %v9599_v55  ;;  %v9601_v27 = vpop.permute.xlu1 %1321  ;;  %v9620_v55 = vrot.slane %v16748_v41, 1 }
 0x188   : > { %16751 = vst [vmem:[#allocation223_spill] sm:$0xff] %v9601_v27  ;;  %1630 = vrot.lane.b32.xlu0 %v16752_v1, %s8046_s18  ;;  %v1685_v27 = vrot.slane %v16738_v38, 1 }
 0x189   : > { %1813 = vrot.lane.b32.xlu1 %v9595_v15, %s8048_s22  ;;  %16755 = vst [vmem:[#allocation226_spill] sm:$0xff] %v9620_v55 }
 0x18a   : > { %v9610_v8 = vpop.permute.xlu0 %1721  ;;  %v9642_v50 = vsel %vm16453_vm5, %v1685_v27, %v9620_v55 }
 0x18b   : > { %16753 = vst [vmem:[#allocation224_spill] sm:$0xff] %v9610_v8  ;;  %v9612_v30 = vpop.permute.xlu1 %1860  ;;  %16760 = vst [vmem:[#allocation228_spill] sm:$0xff] %v9642_v50 }
 0x18c   : > { %16754 = vst [vmem:[#allocation225_spill] sm:$0xff] %v9612_v30  ;;  %1819 = vrot.lane.b32.xlu0 %v16752_v1, %s8048_s22  ;;  %v9629_v30 = vadd.f32 %v7736_v18, %v8576_v4  ;;  %v16761_v4 = vmax.f32 %v9608_v56, 0.0  ;;  %v9651_v18 = vpack.c.bf16 %v1204_v9, %v1204_v9 }
 0x18d   : > { %1341 = vrot.lane.b32.xlu1 %v16748_v41, %s8043_s13 }
 0x18e   : > { %v9626_v48 = vpop.permute.xlu0 %1610  ;;  %v1216_v5 = vsel %vm409_vm4, %v16761_v4, 0.0  ;;  %16762 = vst [vmem:[#allocation229_spill] sm:$0xff] %v9651_v18 }
 0x18f   : > { %16756 = vst [vmem:[#allocation227_spill] sm:$0xff] %v9626_v48  ;;  %v9635_v63 = vpop.permute.xlu1 %1604  ;;  %v1489_v48 = vrot.slane %v9088_v59, 1  ;;  %v9661_v59 = vld [vmem:[%s15807_s2] ss:$0 sm:$0xff] }
 0x190   : > { %16759 = vst [vmem:[#allocation3_spill] sm:$0xff] %v9635_v63  ;;  %1886 = vrot.lane.b32.xlu0 %v9620_v55, %s8049_s23  ;;  %v9665_v27 = vadd.f32 %v9661_v59, %v9454_v17  ;;  %v16765_v63 = vmax.f32 %v9615_v37, 0.0  ;;  %v9682_v17 = vadd.f32 %v9661_v59, %v9542_v44  ;;  %v9702_v44 = vadd.f32 %v9661_v59, %v9477_v45 }
 0x191   : > { %1884 = vrot.lane.b32.xlu1 %v9642_v50, %s8049_s23  ;;  %v1490_v4 = vor.u32 %v1489_v48, %v9069_v39  ;;  %v9691_v48 = vshrl.u32 %v9651_v18, 16  ;;  %v9710_v61 = vadd.f32 %v9661_v59, %v9503_v29 }
 0x192   : > { %v9653_v11 = vpop.permute.xlu0 %1799  ;;  %v1214_v9 = vsel %vm398_vm3, %v16765_v63, 0.0  ;;  %v1207_v63 = vsel %vm409_vm4, %v16768_v26, 0.0  ;;  %v9706_v26 = vadd.f32 %v9661_v59, %v9493_v2  ;;  %v16071_v28 = vmax.f32 %v9702_v44, 0.0  ;;  %v7740_v2 = vpop.f32.mrf.mxu0 }
 0x193   : > { %16763 = vst [vmem:[#allocation230_spill] sm:$0xff] %v9653_v11  ;;  %v9656_v21 = vpop.permute.xlu1 %1719  ;;  %v1494_v11 = vrot.slane %v16766_v53, 1  ;;  %16770 = vst [vmem:[#allocation234_spill] sm:$0xff] %v9691_v48  ;;  %v16771_v53 = vmax.f32 %v9629_v30, 0.0  ;;  %v9724_v24 = vpack.c.bf16 %v1207_v63, %v1207_v63  ;;  %v16783_v36 = vmax.f32 %v9710_v61, 0.0 }
 0x194   : > { %16764 = vst [vmem:[#allocation231_spill] sm:$0xff] %v9656_v21  ;;  %1745 = vrot.lane.b32.xlu0 %v9651_v18, %s8047_s21  ;;  %v9676_v21 = vpack.c.bf16 %v1216_v5, %v1216_v5  ;;  %v16072_v52 = vmax.f32 %v9706_v26, 0.0  ;;  %v1101_v63 = vrot.slane %v16071_v28, 2  ;;  %v16784_v19 = vmax.f32 %v9682_v17, 0.0  ;;  %v882_v28 = vpop.f32.mrf.mxu0 }
 0x195   : > { %1345 = vrot.lane.b32.xlu1 %v9651_v18, %s8043_s13  ;;  %v9695_v5 = vpack.c.bf16 %v16771_v53, %v1214_v9  ;;  %v9715_v9 = vsel %vm16452_vm6, %v1490_v4, %v1494_v11  ;;  %16776 = vst [vmem:[#allocation239_spill] sm:$0xff] %v9724_v24  ;;  %v1102_v43 = vrot.slane %v16783_v36, 2  ;;  %v9774_v36 = vshll.u32 %v9565_v34, 16 }
 0x196   : > { %16767 = vst [vmem:[#allocation232_spill] sm:$0xff] %v9676_v21  ;;  %v9688_v47 = vpop.permute.xlu0 %1866  ;;  %16774 = vst [vmem:[#allocation237_spill] sm:$0xff] %v9715_v9  ;;  %v9718_v53 = vshrl.u32 %v9676_v21, 16  ;;  %v1106_v12 = vrot.slane %v16072_v52, 2  ;;  %v9760_v58 = vrot.slane %v16784_v19, 2  ;;  %v9771_v52 = vrot.slane %v9651_v18, 1 }
 0x197   : > { %16769 = vst [vmem:[#allocation233_spill] sm:$0xff] %v9688_v47  ;;  %16772 = vst [vmem:[#allocation235_spill] sm:$0xff] %v9695_v5  ;;  %v9697_v39 = vpop.permute.xlu1 %1793  ;;  %v9729_v47 = vshrl.u32 %v9695_v5, 16  ;;  %v9732_v11 = vshll.u32 %v9695_v5, 16  ;;  %v9777_v19 = vadd.f32 %v9661_v59, %v7740_v2  ;;  %v9797_v2 = vadd.f32 %v9661_v59, %v882_v28 }
 0x198   : > { %16773 = vst [vmem:[#allocation236_spill] sm:$0xff] %v9697_v39  ;;  %1634 = vrot.lane.b32.xlu0 %v9691_v48, %s8046_s18  ;;  %16775 = vst [vmem:[#allocation238_spill] sm:$0xff] %v9718_v53  ;;  %v16780_v39 = vmax.f32 %v9665_v27, 0.0  ;;  %v9746_v14 = vrot.slane %v9718_v53, 1 }
 0x199   : > { %1628 = vrot.lane.b32.xlu1 %v9715_v9, %s8046_s18  ;;  %16778 = vst [vmem:[#allocation241_spill] sm:$0xff] %v9729_v47  ;;  %v3329_v20 = vrot.slane %v9732_v11, 2  ;;  %16787 = vst [vmem:[#allocation246_spill] sm:$0xff] %v9771_v52 }
 0x19a   : > { %v9726_v29 = vpop.permute.xlu0 %1319  ;;  %v1104_v45 = vrot.slane %v16780_v39, 2  ;;  %16781 = vst [vmem:[#allocation243_spill] sm:$0xff] %v9746_v14  ;;  %16788 = vst [vmem:[#allocation247_spill] sm:$0xff] %v9774_v36 }
 0x19b   : > { %16777 = vst [vmem:[#allocation240_spill] sm:$0xff] %v9726_v29  ;;  %v9734_v4 = vpop.permute.xlu1 %1864  ;;  %v3328_v29 = vrot.slane %v9729_v47, 1 }
 0x19c   : > { %16779 = vst [vmem:[#allocation242_spill] sm:$0xff] %v9734_v4  ;;  %1749 = vrot.lane.b32.xlu0 %v9724_v24, %s8047_s21  ;;  %v16782_v4 = vshll.u32 %v9676_v21, 16 }
 0x19d   : > { %1817 = vrot.lane.b32.xlu1 %v9715_v9, %s8048_s22  ;;  %v3330_v55 = vor.u32 %v3329_v20, %v3328_v29  ;;  %v9785_v29 = vsel %vm16348_vm2, %v1102_v43, %v1104_v45 }
 0x19e   : > { %v3332_v39 = vrot.slane %v16782_v4, 2  ;;  %v9762_v35 = vpop.permute.xlu0 %1323  ;;  %16790 = vst [vmem:[#allocation249_spill] sm:$0xff] %v9785_v29 }
 0x19f   : > { %16785 = vst [vmem:[#allocation244_spill] sm:$0xff] %v9762_v35  ;;  %v9765_v13 = vpop.permute.xlu1 %1723 }
 0x1a0   : > { %v3333_v4 = vor.u32 %v3332_v39, %v9746_v14  ;;  %16786 = vst [vmem:[#allocation245_spill] sm:$0xff] %v9765_v13  ;;  %1823 = vrot.lane.b32.xlu0 %v9691_v48, %s8048_s22  ;;  %v9788_v39 = vsel %vm16348_vm2, %v1101_v63, %v1102_v43  ;;  %v9792_v14 = vsel %vm16348_vm2, %v1106_v12, %v9760_v58  ;;  %v1503_v12 = vrot.slane %v9774_v36, 1 }
 0x1a1   : > { %1349 = vrot.lane.b32.xlu1 %v9724_v24, %s8043_s13  ;;  %16791 = vst [vmem:[#allocation250_spill] sm:$0xff] %v9788_v39  ;;  %16792 = vst [vmem:[#allocation251_spill] sm:$0xff] %v9792_v14  ;;  %v9809_v43 = vsel %vm16453_vm5, %v1688_v46, %v9771_v52  ;;  %v16797_v63 = vmax.f32 %v9519_v32, 0.0  ;;  %v9827_v46 = vshrl.u32 %v9565_v34, 16  ;;  %v16803_v32 = vmax.f32 %v9777_v19, 0.0 }
 0x1a2   : > { %v9780_v20 = vsel %vm3227_vm7, %v3330_v55, %v3333_v4  ;;  %v9794_v13 = vpop.permute.xlu0 %1327  ;;  %v16794_v55 = vmax.f32 %v9525_v51, 0.0  ;;  %16796 = vst [vmem:[#allocation254_spill] sm:$0xff] %v9809_v43  ;;  %v9818_v51 = vadd.f32 %v9661_v59, %v9588_v42  ;;  %v16802_v42 = vshll.u32 %v9651_v18, 16 }
 0x1a3   : > { %16789 = vst [vmem:[#allocation248_spill] sm:$0xff] %v9780_v20  ;;  %16793 = vst [vmem:[#allocation252_spill] sm:$0xff] %v9794_v13  ;;  %v9803_v20 = vpop.permute.xlu1 %1727  ;;  %v1504_v28 = vor.u32 %v1503_v12, %v9827_v46  ;;  %v9847_v36 = vshrl.u32 %v9724_v24, 16  ;;  %v16806_v12 = vmax.f32 %v9797_v2, 0.0 }
 0x1a4   : > { %v1205_v4 = vsel %vm398_vm3, %v16794_v55, 0.0  ;;  %16795 = vst [vmem:[#allocation253_spill] sm:$0xff] %v9803_v20  ;;  %1890 = vrot.lane.b32.xlu0 %v9771_v52, %s8049_s23  ;;  %16800 = vst [vmem:[#allocation257_spill] sm:$0xff] %v9827_v46  ;;  %v1508_v29 = vrot.slane %v16802_v42, 1  ;;  %v16824_v52 = vmax.f32 %v9608_v56, 0.0 }
 0x1a5   : > { %1888 = vrot.lane.b32.xlu1 %v9809_v43, %s8049_s23  ;;  %v9822_v55 = vpack.c.bf16 %v16797_v63, %v1205_v4  ;;  %v1219_v4 = vsel %vm409_vm4, %v16803_v32, 0.0  ;;  %16805 = vst [vmem:[#allocation260_spill] sm:$0xff] %v9847_v36  ;;  %v1217_v42 = vsel %vm398_vm3, %v16806_v12, 0.0  ;;  %v9861_v32 = vadd.f32 %v9661_v59, %v9582_v54 }
 0x1a6   : > { %v9824_v14 = vpop.permute.xlu0 %1725  ;;  %v9855_v20 = vpack.c.bf16 %v1219_v4, %v1219_v4  ;;  %v9864_v63 = vsel %vm16452_vm6, %v1504_v28, %v1508_v29  ;;  %v16812_v4 = vmax.f32 %v9665_v27, 0.0  ;;  %v1114_v43 = vrot.slane %v16824_v52, 2 }
 0x1a7   : > { %16798 = vst [vmem:[#allocation255_spill] sm:$0xff] %v9822_v55  ;;  %16799 = vst [vmem:[#allocation256_spill] sm:$0xff] %v9824_v14  ;;  %v9830_v39 = vpop.permute.xlu1 %1608  ;;  %v16810_v14 = vmax.f32 %v9818_v51, 0.0  ;;  %v1691_v27 = vrot.slane %v9822_v55, 1  ;;  %v9932_v10 = vshrl.u32 %v9822_v55, 16 }
 0x1a8   : > { %16801 = vst [vmem:[#allocation258_spill] sm:$0xff] %v9830_v39  ;;  %1347 = vrot.lane.b32.xlu0 %v9822_v55, %s8043_s13  ;;  %16808 = vst [vmem:[#allocation262_spill] sm:$0xff] %v9855_v20  ;;  %v1210_v13 = vsel %vm409_vm4, %v16812_v4, 0.0  ;;  %v9881_v54 = vshrl.u32 %v9855_v20, 16  ;;  %v16819_v4 = vmax.f32 %v9629_v30, 0.0  ;;  %v16827_v56 = vshll.u32 %v9855_v20, 16 }
 0x1a9   : > { %1747 = vrot.lane.b32.xlu1 %v9822_v55, %s8047_s21  ;;  %16809 = vst [vmem:[#allocation263_spill] sm:$0xff] %v9864_v63  ;;  %v9870_v12 = vpack.c.bf16 %v16810_v14, %v1217_v42  ;;  %v9887_v14 = vshll.u32 %v9822_v55, 16  ;;  %v9890_v29 = vpack.c.bf16 %v1210_v13, %v1210_v13  ;;  %v9907_v13 = vrot.slane %v9724_v24, 1  ;;  %16829 = vst [vmem:[#allocation276_spill] sm:$0xff] %v9932_v10 }
 0x1aa   : > { %v9844_v45 = vpop.permute.xlu0 %1614  ;;  %16815 = vst [vmem:[#allocation267_spill] sm:$0xff] %v9881_v54  ;;  %v1112_v59 = vrot.slane %v16819_v4, 2  ;;  %v9917_v4 = vrot.slane %v9881_v54, 1  ;;  %v3339_v52 = vrot.slane %v16827_v56, 2 }
 0x1ab   : > { %16804 = vst [vmem:[#allocation259_spill] sm:$0xff] %v9844_v45  ;;  %v9853_v46 = vpop.permute.xlu1 %1797  ;;  %16811 = vst [vmem:[#allocation264_spill] sm:$0xff] %v9870_v12  ;;  %v9895_v28 = vshrl.u32 %v9870_v12, 16  ;;  %v9898_v42 = vshll.u32 %v9870_v12, 16  ;;  %v1517_v50 = vrot.slane %v9887_v14, 1 }
 0x1ac   : > { %16807 = vst [vmem:[#allocation261_spill] sm:$0xff] %v9853_v46  ;;  %1638 = vrot.lane.b32.xlu0 %v9847_v36, %s8046_s18  ;;  %16816 = vst [vmem:[#allocation268_spill] sm:$0xff] %v9887_v14  ;;  %v9939_v14 = vsel %vm16453_vm5, %v1691_v27, %v9907_v13 }
 0x1ad   : > { %1632 = vrot.lane.b32.xlu1 %v9864_v63, %s8046_s18  ;;  %16817 = vst [vmem:[#allocation269_spill] sm:$0xff] %v9890_v29  ;;  %16818 = vst [vmem:[#allocation270_spill] sm:$0xff] %v9895_v28  ;;  %v3335_v23 = vrot.slane %v9895_v28, 1  ;;  %v3336_v30 = vrot.slane %v9898_v42, 2 }
 0x1ae   : > { %v9876_v45 = vpop.permute.xlu0 %1803  ;;  %16822 = vst [vmem:[#allocation272_spill] sm:$0xff] %v9907_v13  ;;  %16825 = vst [vmem:[#allocation274_spill] sm:$0xff] %v9917_v4 }
 0x1af   : > { %16813 = vst [vmem:[#allocation265_spill] sm:$0xff] %v9876_v45  ;;  %v9878_v46 = vpop.permute.xlu1 %1325  ;;  %v16820_v45 = vmax.f32 %v9861_v32, 0.0  ;;  %v3337_v62 = vor.u32 %v3336_v30, %v3335_v23  ;;  %16831 = vst [vmem:[#allocation278_spill] sm:$0xff] %v9939_v14  ;;  %v9947_v23 = vsel %vm16348_vm2, %v1112_v59, %v1114_v43  ;;  %v1518_v30 = vor.u32 %v1517_v50, %v9932_v10 }
 0x1b0   : > { %16814 = vst [vmem:[#allocation266_spill] sm:$0xff] %v9878_v46  ;;  %1827 = vrot.lane.b32.xlu0 %v9847_v36, %s8048_s22  ;;  %16833 = vst [vmem:[#allocation280_spill] sm:$0xff] %v9947_v23  ;;  %v9970_v50 = vshrl.u32 %v9890_v29, 16 }
 0x1b1   : > { %1821 = vrot.lane.b32.xlu1 %v9864_v63, %s8048_s22  ;;  %v1109_v46 = vrot.slane %v16820_v45, 2  ;;  %v16826_v45 = vmax.f32 %v9615_v37, 0.0  ;;  %v3340_v37 = vor.u32 %v3339_v52, %v9917_v4  ;;  %v16834_v52 = vshll.u32 %v9724_v24, 16 }
 0x1b2   : > { %v9904_v35 = vpop.permute.xlu0 %1870  ;;  %16840 = vst [vmem:[#allocation285_spill] sm:$0xff] %v9970_v50 }
 0x1b3   : > { %16821 = vst [vmem:[#allocation271_spill] sm:$0xff] %v9904_v35  ;;  %v9910_v39 = vpop.permute.xlu1 %1868  ;;  %v1111_v35 = vrot.slane %v16826_v45, 2  ;;  %v9944_v56 = vsel %vm16348_vm2, %v9760_v58, %v1109_v46  ;;  %v1522_v4 = vrot.slane %v16834_v52, 1  ;;  %v9955_v27 = vsel %vm3227_vm7, %v3337_v62, %v3340_v37 }
 0x1b4   : > { %16823 = vst [vmem:[#allocation273_spill] sm:$0xff] %v9910_v39  ;;  %1894 = vrot.lane.b32.xlu0 %v9907_v13, %s8049_s23  ;;  %16832 = vst [vmem:[#allocation279_spill] sm:$0xff] %v9944_v56  ;;  %v16837_v58 = vrot.slane %v9729_v47, 7  ;;  %v16842_v62 = vmax.f32 %v9702_v44, 0.0 }
 0x1b5   : > { %1353 = vrot.lane.b32.xlu1 %v9890_v29, %s8043_s13  ;;  %16835 = vst [vmem:[#allocation281_spill] sm:$0xff] %v9955_v27  ;;  %v9958_v39 = vsel %vm16348_vm2, %v1111_v35, %v1112_v59  ;;  %v9981_v59 = vsel %vm16452_vm6, %v1518_v30, %v1522_v4  ;;  %v10000_v4 = vrot.slane %v9890_v29, 1 }
 0x1b6   : > { %v9929_v49 = vpop.permute.xlu0 %1729  ;;  %16836 = vst [vmem:[#allocation282_spill] sm:$0xff] %v9958_v39  ;;  %v9965_v43 = vor.u32 %v16837_v58, %v9732_v11  ;;  %v1208_v35 = vsel %vm398_vm3, %v16842_v62, 0.0  ;;  %16843 = vst [vmem:[#allocation287_spill] sm:$0xff] %v9981_v59  ;;  %v16845_v58 = vmax.f32 %v9710_v61, 0.0 }
 0x1b7   : > { %16828 = vst [vmem:[#allocation275_spill] sm:$0xff] %v9929_v49  ;;  %v9935_v45 = vpop.permute.xlu1 %1329  ;;  %16849 = vst [vmem:[#allocation292_spill] sm:$0xff] %v10000_v4  ;;  %v1559_v49 = vrot.slane %v9732_v11, 1  ;;  %v16914_v11 = vshll.u32 %v9676_v21, 16 }
 0x1b8   : > { %16830 = vst [vmem:[#allocation277_spill] sm:$0xff] %v9935_v45  ;;  %1753 = vrot.lane.b32.xlu0 %v9890_v29, %s8047_s21  ;;  %16838 = vst [vmem:[#allocation283_spill] sm:$0xff] %v9965_v43  ;;  %v9989_v39 = vpack.c.bf16 %v16845_v58, %v1208_v35  ;;  %v16852_v35 = vmax.f32 %v9706_v26, 0.0  ;;  %v16856_v26 = vmax.f32 %v9682_v17, 0.0 }
 0x1b9   : > { %1892 = vrot.lane.b32.xlu1 %v9939_v14, %s8049_s23 }
 0x1ba   : > { %v9967_v46 = vpop.permute.xlu0 %1618  ;;  %16846 = vst [vmem:[#allocation289_spill] sm:$0xff] %v9989_v39  ;;  %v1694_v61 = vrot.slane %v9989_v39, 1  ;;  %v1211_v58 = vsel %vm398_vm3, %v16852_v35, 0.0  ;;  %v10024_v27 = vshll.u32 %v9989_v39, 16  ;;  %v16858_v35 = vmax.f32 %v9818_v51, 0.0 }
 0x1bb   : > { %16839 = vst [vmem:[#allocation284_spill] sm:$0xff] %v9967_v46  ;;  %v9972_v52 = vpop.permute.xlu1 %1612  ;;  %v10030_v10 = vpack.c.bf16 %v16856_v26, %v1211_v58  ;;  %v1560_v46 = vor.u32 %v1559_v49, %v9729_v47  ;;  %v1703_v47 = vrot.slane %v9870_v12, 1 }
 0x1bc   : > { %16841 = vst [vmem:[#allocation286_spill] sm:$0xff] %v9972_v52  ;;  %1642 = vrot.lane.b32.xlu0 %v9970_v50, %s8046_s18  ;;  %v10021_v43 = vsel %vm16453_vm5, %v1694_v61, %v10000_v4  ;;  %16855 = vst [vmem:[#allocation297_spill] sm:$0xff] %v10024_v27  ;;  %v1117_v16 = vrot.slane %v16858_v35, 2  ;;  %v16861_v61 = vmax.f32 %v9797_v2, 0.0  ;;  %v1531_v17 = vrot.slane %v10024_v27, 1 }
 0x1bd   : > { %1636 = vrot.lane.b32.xlu1 %v9981_v59, %s8046_s18  ;;  %16854 = vst [vmem:[#allocation296_spill] sm:$0xff] %v10021_v43  ;;  %16857 = vst [vmem:[#allocation298_spill] sm:$0xff] %v10030_v10  ;;  %v16867_v35 = vmax.f32 %v9861_v32, 0.0  ;;  %v16869_v2 = vshll.u32 %v9890_v29, 16  ;;  %v1564_v52 = vrot.slane %v16914_v11, 1 }
 0x1be   : > { %v9985_v37 = vpop.permute.xlu0 %1733 }
 0x1bf   : > { %16844 = vst [vmem:[#allocation288_spill] sm:$0xff] %v9985_v37  ;;  %v9991_v23 = vpop.permute.xlu1 %1801  ;;  %v1116_v37 = vrot.slane %v16861_v61, 2  ;;  %v1213_v61 = vsel %vm409_vm4, %v16867_v35, 0.0  ;;  %vm4099_vm4 = vcmask 326656  }
 0x1c0   : > { %16847 = vst [vmem:[#allocation290_spill] sm:$0xff] %v9991_v23  ;;  %1831 = vrot.lane.b32.xlu0 %v9970_v50, %s8048_s22  ;;  %v10078_v8 = vpack.c.bf16 %v1213_v61, %v1213_v61 }
 0x1c1   : > { %1751 = vrot.lane.b32.xlu1 %v9989_v39, %s8047_s21  ;;  %v10058_v26 = vsel %vm16348_vm2, %v1116_v37, %v1117_v16 }
 0x1c2   : > { %v9997_v44 = vpop.permute.xlu0 %1807  ;;  %16866 = vst [vmem:[#allocation304_spill] sm:$0xff] %v10058_v26  ;;  %16872 = vst [vmem:[#allocation307_spill] sm:$0xff] %v10078_v8  ;;  %v10094_v35 = vshrl.u32 %v10078_v8, 16  ;;  %v1697_v26 = vrot.slane %v10030_v10, 1 }
 0x1c3   : > { %16848 = vst [vmem:[#allocation291_spill] sm:$0xff] %v9997_v44  ;;  %v10002_v30 = vpop.permute.xlu1 %1333 }
 0x1c4   : > { %16850 = vst [vmem:[#allocation293_spill] sm:$0xff] %v10002_v30  ;;  %1898 = vrot.lane.b32.xlu0 %v10000_v4, %s8049_s23  ;;  %16877 = vst [vmem:[#allocation312_spill] sm:$0xff] %v10094_v35 }
 0x1c5   : > { %1825 = vrot.lane.b32.xlu1 %v9981_v59, %s8048_s22 }
 0x1c6   : > { %v10009_v62 = vpop.permute.xlu0 %1874 }
 0x1c7   : > { %16851 = vst [vmem:[#allocation294_spill] sm:$0xff] %v10009_v62  ;;  %v10015_v56 = vpop.permute.xlu1 %1872  ;;  %v16860_v62 = vmax.f32 %v9777_v19, 0.0  ;;  %v10051_v19 = vshrl.u32 %v9989_v39, 16 }
 0x1c8   : > { %16853 = vst [vmem:[#allocation295_spill] sm:$0xff] %v10015_v56  ;;  %1351 = vrot.lane.b32.xlu0 %v9989_v39, %s8043_s13 }
 0x1c9   : > { %1896 = vrot.lane.b32.xlu1 %v10021_v43, %s8049_s23  ;;  %v1119_v44 = vrot.slane %v16860_v62, 2  ;;  %16864 = vst [vmem:[#allocation302_spill] sm:$0xff] %v10051_v19  ;;  %v1532_v27 = vor.u32 %v1531_v17, %v10051_v19 }
 0x1ca   : > { %v10034_v56 = vpop.permute.xlu0 %1331 }
 0x1cb   : > { %16859 = vst [vmem:[#allocation299_spill] sm:$0xff] %v10034_v56  ;;  %v10040_v30 = vpop.permute.xlu1 %1731  ;;  %v10055_v62 = vsel %vm16348_vm2, %v1117_v16, %v1119_v44  ;;  %v16870_v44 = vrot.slane %v9895_v28, 7 }
 0x1cc   : > { %16862 = vst [vmem:[#allocation300_spill] sm:$0xff] %v10040_v30  ;;  %1355 = vrot.lane.b32.xlu0 %v10030_v10, %s8043_s13  ;;  %16865 = vst [vmem:[#allocation303_spill] sm:$0xff] %v10055_v62  ;;  %v1536_v30 = vrot.slane %v16869_v2, 1  ;;  %v10113_v62 = vshll.u32 %v10030_v10, 16 }
 0x1cd   : > { %1755 = vrot.lane.b32.xlu1 %v10030_v10, %s8047_s21  ;;  %v10074_v16 = vor.u32 %v16870_v44, %v9898_v42 }
 0x1ce   : > { %v10048_v51 = vpop.permute.xlu0 %1622  ;;  %v10087_v17 = vsel %vm16452_vm6, %v1532_v27, %v1536_v30  ;;  %v10109_v30 = vrot.slane %v10078_v8, 1  ;;  %16882 = vst [vmem:[#allocation317_spill] sm:$0xff] %v10113_v62 }
 0x1cf   : > { %16863 = vst [vmem:[#allocation301_spill] sm:$0xff] %v10048_v51  ;;  %v10064_v58 = vpop.permute.xlu1 %1616  ;;  %16871 = vst [vmem:[#allocation306_spill] sm:$0xff] %v10074_v16 }
 0x1d0   : > { %16868 = vst [vmem:[#allocation305_spill] sm:$0xff] %v10064_v58  ;;  %1359 = vrot.lane.b32.xlu0 %v9695_v5, %s8043_s13  ;;  %16875 = vst [vmem:[#allocation310_spill] sm:$0xff] %v10087_v17 }
 0x1d1   : > { %1759 = vrot.lane.b32.xlu1 %v9695_v5, %s8047_s21  ;;  %16881 = vst [vmem:[#allocation316_spill] sm:$0xff] %v10109_v30 }
 0x1d2   : > { %v10080_v32 = vpop.permute.xlu0 %1811 }
 0x1d3   : > { %16873 = vst [vmem:[#allocation308_spill] sm:$0xff] %v10080_v32  ;;  %v10082_v37 = vpop.permute.xlu1 %1805 }
 0x1d4   : > { %16874 = vst [vmem:[#allocation309_spill] sm:$0xff] %v10082_v37  ;;  %1757 = vrot.lane.b32.xlu0 %v10078_v8, %s8047_s21 }
 0x1d5   : > { %1640 = vrot.lane.b32.xlu1 %v10087_v17, %s8046_s18 }
 0x1d6   : > { %v10091_v2 = vpop.permute.xlu0 %1878 }
 0x1d7   : > { %16876 = vst [vmem:[#allocation311_spill] sm:$0xff] %v10091_v2  ;;  %v10096_v61 = vpop.permute.xlu1 %1337  ;;  %v1545_v2 = vrot.slane %v10113_v62, 1 }
 0x1d8   : > { %16878 = vst [vmem:[#allocation313_spill] sm:$0xff] %v10096_v61  ;;  %1646 = vrot.lane.b32.xlu0 %v10094_v35, %s8046_s18 }
 0x1d9   : > { %1829 = vrot.lane.b32.xlu1 %v10087_v17, %s8048_s22 }
 0x1da   : > { %v10102_v44 = vpop.permute.xlu0 %1737 }
 0x1db   : > { %16879 = vst [vmem:[#allocation314_spill] sm:$0xff] %v10102_v44  ;;  %v10104_v27 = vpop.permute.xlu1 %1876  ;;  %v16110_v44 = vshll.u32 %v10078_v8, 16 }
 0x1dc   : > { %16880 = vst [vmem:[#allocation315_spill] sm:$0xff] %v10104_v27  ;;  %1835 = vrot.lane.b32.xlu0 %v10094_v35, %s8048_s22  ;;  %v10125_v27 = vsel %vm16453_vm5, %v1697_v26, %v10109_v30 }
 0x1dd   : > { %1357 = vrot.lane.b32.xlu1 %v10078_v8, %s8043_s13  ;;  %16885 = vst [vmem:[#allocation320_spill] sm:$0xff] %v10125_v27  ;;  %v1550_v62 = vrot.slane %v16110_v44, 1 }
 0x1de   : > { %v10117_v16 = vpop.permute.xlu0 %1626 }
 0x1df   : > { %16883 = vst [vmem:[#allocation318_spill] sm:$0xff] %v10117_v16  ;;  %v10119_v19 = vpop.permute.xlu1 %1620  ;;  %v10134_v16 = vshrl.u32 %v10030_v10, 16 }
 0x1e0   : > { %16884 = vst [vmem:[#allocation319_spill] sm:$0xff] %v10119_v19  ;;  %1902 = vrot.lane.b32.xlu0 %v10109_v30, %s8049_s23 }
 0x1e1   : > { %1900 = vrot.lane.b32.xlu1 %v10125_v27, %s8049_s23  ;;  %16887 = vst [vmem:[#allocation322_spill] sm:$0xff] %v10134_v16  ;;  %v1546_v26 = vor.u32 %v1545_v2, %v10134_v16 }
 0x1e2   : > { %v10131_v61 = vpop.permute.xlu0 %1815 }
 0x1e3   : > { %16886 = vst [vmem:[#allocation321_spill] sm:$0xff] %v10131_v61  ;;  %v10136_v32 = vpop.permute.xlu1 %1735  ;;  %v10152_v61 = vsel %vm16452_vm6, %v1546_v26, %v1550_v62  ;;  %v10171_v62 = vrot.slane %v9676_v21, 1  ;;  %v1700_v26 = vrot.slane %v9695_v5, 1 }
 0x1e4   : > { %16888 = vst [vmem:[#allocation323_spill] sm:$0xff] %v10136_v32  ;;  %1761 = vrot.lane.b32.xlu0 %v9676_v21, %s8047_s21  ;;  %16891 = vst [vmem:[#allocation326_spill] sm:$0xff] %v10152_v61 }
 0x1e5   : > { %1361 = vrot.lane.b32.xlu1 %v9676_v21, %s8043_s13  ;;  %16896 = vst [vmem:[#allocation331_spill] sm:$0xff] %v10171_v62 }
 0x1e6   : > { %v10145_v37 = vpop.permute.xlu0 %1882 }
 0x1e7   : > { %16889 = vst [vmem:[#allocation324_spill] sm:$0xff] %v10145_v37  ;;  %v10147_v56 = vpop.permute.xlu1 %1809 }
 0x1e8   : > { %16890 = vst [vmem:[#allocation325_spill] sm:$0xff] %v10147_v56  ;;  %1650 = vrot.lane.b32.xlu0 %v9718_v53, %s8046_s18 }
 0x1e9   : > { %1644 = vrot.lane.b32.xlu1 %v10152_v61, %s8046_s18 }
 0x1ea   : > { %v10156_v2 = vpop.permute.xlu0 %1335 }
 0x1eb   : > { %16892 = vst [vmem:[#allocation327_spill] sm:$0xff] %v10156_v2  ;;  %v10158_v16 = vpop.permute.xlu1 %1880  ;;  %v16902_v2 = vld [vmem:[#allocation92_spill] sm:$0xff] }
 0x1ec   : > { %16893 = vst [vmem:[#allocation328_spill] sm:$0xff] %v10158_v16  ;;  %1765 = vrot.lane.b32.xlu0 %v9855_v20, %s8047_s21  ;;  %v1706_v19 = vrot.slane %v16902_v2, 1 }
 0x1ed   : > { %1833 = vrot.lane.b32.xlu1 %v10152_v61, %s8048_s22 }
 0x1ee   : > { %v10164_v44 = vpop.permute.xlu0 %1339 }
 0x1ef   : > { %16894 = vst [vmem:[#allocation329_spill] sm:$0xff] %v10164_v44  ;;  %v10166_v37 = vpop.permute.xlu1 %1739 }
 0x1f0   : > { %16895 = vst [vmem:[#allocation330_spill] sm:$0xff] %v10166_v37  ;;  %1839 = vrot.lane.b32.xlu0 %v9718_v53, %s8048_s22  ;;  %v10184_v37 = vsel %vm16453_vm5, %v1700_v26, %v10171_v62 }
 0x1f1   : > { %1365 = vrot.lane.b32.xlu1 %v9855_v20, %s8043_s13  ;;  %16899 = vst [vmem:[#allocation334_spill] sm:$0xff] %v10184_v37 }
 0x1f2   : > { %v10176_v16 = vpop.permute.xlu0 %1343 }
 0x1f3   : > { %16897 = vst [vmem:[#allocation332_spill] sm:$0xff] %v10176_v16  ;;  %v10178_v56 = vpop.permute.xlu1 %1743 }
 0x1f4   : > { %16898 = vst [vmem:[#allocation333_spill] sm:$0xff] %v10178_v56  ;;  %1906 = vrot.lane.b32.xlu0 %v10171_v62, %s8049_s23  ;;  %v16903_v56 = vld [vmem:[#allocation90_spill] sm:$0xff]  ;;  %v10235_v62 = vrot.slane %v9855_v20, 1 }
 0x1f5   : > { %1904 = vrot.lane.b32.xlu1 %v10184_v37, %s8049_s23  ;;  %v10198_v16 = vrot.slane %v16903_v56, 1 }
 0x1f6   : > { %v10188_v44 = vpop.permute.xlu0 %1741  ;;  %16916 = vst [vmem:[#allocation346_spill] sm:$0xff] %v10235_v62 }
 0x1f7   : > { %16900 = vst [vmem:[#allocation335_spill] sm:$0xff] %v10188_v44  ;;  %v10190_v32 = vpop.permute.xlu1 %1624  ;;  %16904 = vst [vmem:[#allocation337_spill] sm:$0xff] %v10198_v16  ;;  %v10206_v44 = vsel %vm16453_vm5, %v1706_v19, %v10198_v16 }
 0x1f8   : > { %16901 = vst [vmem:[#allocation336_spill] sm:$0xff] %v10190_v32  ;;  %1363 = vrot.lane.b32.xlu0 %v9870_v12, %s8043_s13  ;;  %16907 = vst [vmem:[#allocation340_spill] sm:$0xff] %v10206_v44  ;;  %v16908_v32 = vld [vmem:[#allocation96_spill] sm:$0xff] }
 0x1f9   : > { %1763 = vrot.lane.b32.xlu1 %v9870_v12, %s8047_s21  ;;  %v10211_v23 = vrot.slane %v16908_v32, 1 }
 0x1fa   : > { %v10200_v26 = vpop.permute.xlu0 %1630 }
 0x1fb   : > { %16905 = vst [vmem:[#allocation338_spill] sm:$0xff] %v10200_v26  ;;  %v10202_v51 = vpop.permute.xlu1 %1813  ;;  %16909 = vst [vmem:[#allocation341_spill] sm:$0xff] %v10211_v23  ;;  %v16911_v26 = vld [vmem:[#allocation93_spill] sm:$0xff] }
 0x1fc   : > { %16906 = vst [vmem:[#allocation339_spill] sm:$0xff] %v10202_v51  ;;  %1654 = vrot.lane.b32.xlu0 %v9881_v54, %s8046_s18  ;;  %v1853_v45 = vrot.slane %v16911_v26, 1 }
 0x1fd   : > { %1912 = vrot.lane.b32.xlu1 %v10206_v44, %s8049_s23 }
 0x1fe   : > { %v10216_v58 = vpop.permute.xlu0 %1819  ;;  %v10225_v19 = vsel %vm16453_vm5, %v1853_v45, %v10211_v23  ;;  %v10242_v45 = vsel %vm16452_vm6, %v1560_v46, %v1564_v52  ;;  %v10264_v52 = vsel %vm16453_vm5, %v1703_v47, %v10235_v62 }
 0x1ff   : > { %16910 = vst [vmem:[#allocation342_spill] sm:$0xff] %v10216_v58  ;;  %v10219_v51 = vpop.permute.xlu1 %1341  ;;  %16913 = vst [vmem:[#allocation344_spill] sm:$0xff] %v10225_v19 }
 0x200   : > { %16912 = vst [vmem:[#allocation343_spill] sm:$0xff] %v10219_v51  ;;  %1843 = vrot.lane.b32.xlu0 %v9881_v54, %s8048_s22  ;;  %16918 = vst [vmem:[#allocation348_spill] sm:$0xff] %v10242_v45 }
 0x201   : > { %1916 = vrot.lane.b32.xlu1 %v10225_v19, %s8049_s23  ;;  %16923 = vst [vmem:[#allocation353_spill] sm:$0xff] %v10264_v52 }
 0x202   : > { %v10232_v58 = vpop.permute.xlu0 %1886 }
 0x203   : > { %16915 = vst [vmem:[#allocation345_spill] sm:$0xff] %v10232_v58  ;;  %v10237_v51 = vpop.permute.xlu1 %1884 }
 0x204   : > { %16917 = vst [vmem:[#allocation347_spill] sm:$0xff] %v10237_v51  ;;  %1910 = vrot.lane.b32.xlu0 %v10235_v62, %s8049_s23  ;;  %v1573_v51 = vrot.slane %v9898_v42, 1 }
 0x205   : > { %1648 = vrot.lane.b32.xlu1 %v10242_v45, %s8046_s18 }
 0x206   : > { %v10246_v49 = vpop.permute.xlu0 %1745 }
 0x207   : > { %16919 = vst [vmem:[#allocation349_spill] sm:$0xff] %v10246_v49  ;;  %v10248_v11 = vpop.permute.xlu1 %1345  ;;  %v1574_v49 = vor.u32 %v1573_v51, %v9895_v28 }
 0x208   : > { %16920 = vst [vmem:[#allocation350_spill] sm:$0xff] %v10248_v11  ;;  %1914 = vrot.lane.b32.xlu0 %v10198_v16, %s8049_s23  ;;  %v16924_v11 = vshll.u32 %v9855_v20, 16 }
 0x209   : > { %1837 = vrot.lane.b32.xlu1 %v10242_v45, %s8048_s22 }
 0x20a   : > { %v10256_v58 = vpop.permute.xlu0 %1634  ;;  %v1578_v16 = vrot.slane %v16924_v11, 1  ;;  %v16931_v11 = vld [vmem:[#allocation111_spill] sm:$0xff] }
 0x20b   : > { %16921 = vst [vmem:[#allocation351_spill] sm:$0xff] %v10256_v58  ;;  %v10258_v46 = vpop.permute.xlu1 %1628 }
 0x20c   : > { %16922 = vst [vmem:[#allocation352_spill] sm:$0xff] %v10258_v46  ;;  %1918 = vrot.lane.b32.xlu0 %v10211_v23, %s8049_s23  ;;  %v16927_v46 = vld [vmem:[#allocation104_spill] sm:$0xff]  ;;  %v10278_v23 = vsel %vm16452_vm6, %v1574_v49, %v1578_v16  ;;  %v16934_v16 = vld [vmem:[#allocation125_spill] sm:$0xff] }
 0x20d   : > { %1908 = vrot.lane.b32.xlu1 %v10264_v52, %s8049_s23  ;;  %16928 = vst [vmem:[#allocation356_spill] sm:$0xff] %v10278_v23  ;;  %v16935_v49 = vld [vmem:[#allocation108_spill] sm:$0xff] }
 0x20e   : > { %v10271_v42 = vpop.permute.xlu0 %1749 }
 0x20f   : > { %16925 = vst [vmem:[#allocation354_spill] sm:$0xff] %v10271_v42  ;;  %v10273_v58 = vpop.permute.xlu1 %1817 }
 0x210   : > { %16926 = vst [vmem:[#allocation355_spill] sm:$0xff] %v10273_v58  ;;  %1924 = vrot.lane.b32.xlu0 %v16927_v46, %s8050_s26 }
 0x211   : > { %1652 = vrot.lane.b32.xlu1 %v10278_v23, %s8046_s18 }
 0x212   : > { %v10282_v47 = vpop.permute.xlu0 %1823 }
 0x213   : > { %16929 = vst [vmem:[#allocation357_spill] sm:$0xff] %v10282_v47  ;;  %v10284_v51 = vpop.permute.xlu1 %1349 }
 0x214   : > { %16930 = vst [vmem:[#allocation358_spill] sm:$0xff] %v10284_v51  ;;  %1928 = vrot.lane.b32.xlu0 %v16931_v11, %s8050_s26  ;;  %v16938_v51 = vld [vmem:[#allocation116_spill] sm:$0xff] }
 0x215   : > { %1841 = vrot.lane.b32.xlu1 %v10278_v23, %s8048_s22 }
 0x216   : > { %v10290_v28 = vpop.permute.xlu0 %1890 }
 0x217   : > { %16932 = vst [vmem:[#allocation359_spill] sm:$0xff] %v10290_v28  ;;  %v10292_v42 = vpop.permute.xlu1 %1888 }
 0x218   : > { %16933 = vst [vmem:[#allocation360_spill] sm:$0xff] %v10292_v42  ;;  %1932 = vrot.lane.b32.xlu0 %v16934_v16, %s8050_s26  ;;  %v16941_v42 = vld [vmem:[#allocation120_spill] sm:$0xff] }
 0x219   : > { %1922 = vrot.lane.b32.xlu1 %v16935_v49, %s8050_s26 }
 0x21a   : > { %v10298_v58 = vpop.permute.xlu0 %1347 }
 0x21b   : > { %16936 = vst [vmem:[#allocation361_spill] sm:$0xff] %v10298_v58  ;;  %v10300_v47 = vpop.permute.xlu1 %1747 }
 0x21c   : > { %16937 = vst [vmem:[#allocation362_spill] sm:$0xff] %v10300_v47  ;;  %1936 = vrot.lane.b32.xlu0 %v9166_v6, %s8050_s26 }
 0x21d   : > { %1926 = vrot.lane.b32.xlu1 %v16938_v51, %s8050_s26 }
 0x21e   : > { %v10306_v11 = vpop.permute.xlu0 %1638 }
 0x21f   : > { %16939 = vst [vmem:[#allocation363_spill] sm:$0xff] %v10306_v11  ;;  %v10308_v28 = vpop.permute.xlu1 %1632 }
 0x220   : > { %16940 = vst [vmem:[#allocation364_spill] sm:$0xff] %v10308_v28  ;;  %1940 = vrot.lane.b32.xlu0 %v9000_v22, %s8050_s26 }
 0x221   : > { %1930 = vrot.lane.b32.xlu1 %v16941_v42, %s8050_s26 }
 0x222   : > { %v10314_v16 = vpop.permute.xlu0 %1827 }
 0x223   : > { %16942 = vst [vmem:[#allocation365_spill] sm:$0xff] %v10314_v16  ;;  %v10316_v58 = vpop.permute.xlu1 %1821 }
 0x224   : > { %16943 = vst [vmem:[#allocation366_spill] sm:$0xff] %v10316_v58  ;;  %1944 = vrot.lane.b32.xlu0 %v9134_v31, %s8050_s26 }
 0x225   : > { %1934 = vrot.lane.b32.xlu1 %v9012_v57, %s8050_s26 }
 0x226   : > { %v10322_v47 = vpop.permute.xlu0 %1894 }
 0x227   : > { %16944 = vst [vmem:[#allocation367_spill] sm:$0xff] %v10322_v47  ;;  %v10324_v11 = vpop.permute.xlu1 %1353 }
 0x228   : > { %16945 = vst [vmem:[#allocation368_spill] sm:$0xff] %v10324_v11  ;;  %1948 = vrot.lane.b32.xlu0 %v16748_v41, %s8050_s26 }
 0x229   : > { %1938 = vrot.lane.b32.xlu1 %v9020_v33, %s8050_s26 }
 0x22a   : > { %v10330_v28 = vpop.permute.xlu0 %1753 }
 0x22b   : > { %16946 = vst [vmem:[#allocation369_spill] sm:$0xff] %v10330_v28  ;;  %v10332_v16 = vpop.permute.xlu1 %1892 }
 0x22c   : > { %16947 = vst [vmem:[#allocation370_spill] sm:$0xff] %v10332_v16  ;;  %1952 = vrot.lane.b32.xlu0 %v9651_v18, %s8050_s26 }
 0x22d   : > { %1942 = vrot.lane.b32.xlu1 %v9143_v40, %s8050_s26 }
 0x22e   : > { %v10338_v58 = vpop.permute.xlu0 %1642 }
 0x22f   : > { %16948 = vst [vmem:[#allocation371_spill] sm:$0xff] %v10338_v58  ;;  %v10340_v47 = vpop.permute.xlu1 %1636 }
 0x230   : > { %16949 = vst [vmem:[#allocation372_spill] sm:$0xff] %v10340_v47  ;;  %1956 = vrot.lane.b32.xlu0 %v9724_v24, %s8050_s26  ;;  %v17081_v47 = vld [vmem:[#allocation201_spill] sm:$0xff] }
 0x231   : > { %1946 = vrot.lane.b32.xlu1 %v16738_v38, %s8050_s26 }
 0x232   : > { %v10346_v11 = vpop.permute.xlu0 %1831 }
 0x233   : > { %16950 = vst [vmem:[#allocation373_spill] sm:$0xff] %v10346_v11  ;;  %v10348_v28 = vpop.permute.xlu1 %1751 }
 0x234   : > { %16951 = vst [vmem:[#allocation374_spill] sm:$0xff] %v10348_v28  ;;  %1960 = vrot.lane.b32.xlu0 %v9890_v29, %s8050_s26 }
 0x235   : > { %1950 = vrot.lane.b32.xlu1 %v9565_v34, %s8050_s26 }
 0x236   : > { %v10354_v18 = vpop.permute.xlu0 %1898 }
 0x237   : > { %16952 = vst [vmem:[#allocation375_spill] sm:$0xff] %v10354_v18  ;;  %v10356_v16 = vpop.permute.xlu1 %1825 }
 0x238   : > { %16953 = vst [vmem:[#allocation376_spill] sm:$0xff] %v10356_v16  ;;  %1964 = vrot.lane.b32.xlu0 %v10078_v8, %s8050_s26  ;;  %v17167_v8 = vld [vmem:[#allocation295_spill] sm:$0xff] }
 0x239   : > { %1954 = vrot.lane.b32.xlu1 %v9822_v55, %s8050_s26 }
 0x23a   : > { %v10362_v58 = vpop.permute.xlu0 %1351 }
 0x23b   : > { %16954 = vst [vmem:[#allocation377_spill] sm:$0xff] %v10362_v58  ;;  %v10364_v11 = vpop.permute.xlu1 %1896 }
 0x23c   : > { %16955 = vst [vmem:[#allocation378_spill] sm:$0xff] %v10364_v11  ;;  %1968 = vrot.lane.b32.xlu0 %v9676_v21, %s8050_s26 }
 0x23d   : > { %1958 = vrot.lane.b32.xlu1 %v9989_v39, %s8050_s26 }
 0x23e   : > { %v10370_v29 = vpop.permute.xlu0 %1355 }
 0x23f   : > { %16956 = vst [vmem:[#allocation379_spill] sm:$0xff] %v10370_v29  ;;  %v10372_v18 = vpop.permute.xlu1 %1755 }
 0x240   : > { %16957 = vst [vmem:[#allocation380_spill] sm:$0xff] %v10372_v18  ;;  %1972 = vrot.lane.b32.xlu0 %v9855_v20, %s8050_s26 }
 0x241   : > { %1962 = vrot.lane.b32.xlu1 %v10030_v10, %s8050_s26 }
 0x242   : > { %v10378_v28 = vpop.permute.xlu0 %1359 }
 0x243   : > { %16958 = vst [vmem:[#allocation381_spill] sm:$0xff] %v10378_v28  ;;  %v10380_v16 = vpop.permute.xlu1 %1759 }
 0x244   : > { %16959 = vst [vmem:[#allocation382_spill] sm:$0xff] %v10380_v16  ;;  %1976 = vrot.lane.b32.xlu0 %v16903_v56, %s8050_s26  ;;  %v16964_v16 = vmov 0.0|0.0  }
 0x245   : > { %1966 = vrot.lane.b32.xlu1 %v9695_v5, %s8050_s26 }
 0x246   : > { %v10386_v21 = vpop.permute.xlu0 %1757 }
 0x247   : > { %16960 = vst [vmem:[#allocation383_spill] sm:$0xff] %v10386_v21  ;;  %v10388_v29 = vpop.permute.xlu1 %1640  ;;  %v16970_v21 = vld [vmem:[#allocation114_spill] sm:$0xff] }
 0x248   : > { %16961 = vst [vmem:[#allocation384_spill] sm:$0xff] %v10388_v29  ;;  %1980 = vrot.lane.b32.xlu0 %v16908_v32, %s8050_s26  ;;  %v16967_v32 = vld [vmem:[#allocation109_spill] sm:$0xff]  ;;  %v17076_v29 = vld [vmem:[#allocation98_spill] sm:$0xff] }
 0x249   : > { %1970 = vrot.lane.b32.xlu1 %v9870_v12, %s8050_s26 }
 0x24a   : > { %v10394_v20 = vpop.permute.xlu0 %1646 }
 0x24b   : > { %16962 = vst [vmem:[#allocation385_spill] sm:$0xff] %v10394_v20  ;;  %v10396_v28 = vpop.permute.xlu1 %1829 }
 0x24c   : > { %16963 = vst [vmem:[#allocation386_spill] sm:$0xff] %v10396_v28  ;;  %1984 = vrot.lane.b32.xlu0 %v16964_v16, %s8050_s26  ;;  %v17033_v28 = vld [vmem:[#allocation193_spill] sm:$0xff] }
 0x24d   : > { %1974 = vrot.lane.b32.xlu1 %v16902_v2, %s8050_s26 }
 0x24e   : > { %v10402_v56 = vpop.permute.xlu0 %1835 }
 0x24f   : > { %16965 = vst [vmem:[#allocation387_spill] sm:$0xff] %v10402_v56  ;;  %v10404_v11 = vpop.permute.xlu1 %1357 }
 0x250   : > { %16966 = vst [vmem:[#allocation388_spill] sm:$0xff] %v10404_v11  ;;  %2002 = vrot.lane.b32.xlu0 %v16967_v32, %s8051_s27  ;;  %v16973_v11 = vld [vmem:[#allocation134_spill] sm:$0xff]  ;;  %v16974_v32 = vld [vmem:[#allocation115_spill] sm:$0xff] }
 0x251   : > { %1978 = vrot.lane.b32.xlu1 %v16911_v26, %s8050_s26 }
 0x252   : > { %v10410_v20 = vpop.permute.xlu0 %1902 }
 0x253   : > { %16968 = vst [vmem:[#allocation389_spill] sm:$0xff] %v10410_v20  ;;  %v10412_v18 = vpop.permute.xlu1 %1900 }
 0x254   : > { %16969 = vst [vmem:[#allocation390_spill] sm:$0xff] %v10412_v18  ;;  %2006 = vrot.lane.b32.xlu0 %v16970_v21, %s8051_s27  ;;  %v16977_v21 = vld [vmem:[#allocation126_spill] sm:$0xff] }
 0x255   : > { %1982 = vrot.lane.b32.xlu1 %v16964_v16, %s8050_s26 }
 0x256   : > { %v10418_v2 = vpop.permute.xlu0 %1761 }
 0x257   : > { %16971 = vst [vmem:[#allocation391_spill] sm:$0xff] %v10418_v2  ;;  %v10420_v56 = vpop.permute.xlu1 %1361 }
 0x258   : > { %16972 = vst [vmem:[#allocation392_spill] sm:$0xff] %v10420_v56  ;;  %2010 = vrot.lane.b32.xlu0 %v16973_v11, %s8051_s27  ;;  %v16980_v11 = vld [vmem:[#allocation152_spill] sm:$0xff] }
 0x259   : > { %2000 = vrot.lane.b32.xlu1 %v16974_v32, %s8051_s27 }
 0x25a   : > { %v10426_v26 = vpop.permute.xlu0 %1650 }
 0x25b   : > { %16975 = vst [vmem:[#allocation393_spill] sm:$0xff] %v10426_v26  ;;  %v10428_v20 = vpop.permute.xlu1 %1644 }
 0x25c   : > { %16976 = vst [vmem:[#allocation394_spill] sm:$0xff] %v10428_v20  ;;  %2014 = vrot.lane.b32.xlu0 %v9191_v7, %s8051_s27  ;;  %v17009_v20 = vld [vmem:[#allocation105_spill] sm:$0xff] }
 0x25d   : > { %2004 = vrot.lane.b32.xlu1 %v16977_v21, %s8051_s27 }
 0x25e   : > { %v10434_v18 = vpop.permute.xlu0 %1765 }
 0x25f   : > { %16978 = vst [vmem:[#allocation395_spill] sm:$0xff] %v10434_v18  ;;  %v10436_v2 = vpop.permute.xlu1 %1833 }
 0x260   : > { %16979 = vst [vmem:[#allocation396_spill] sm:$0xff] %v10436_v2  ;;  %2018 = vrot.lane.b32.xlu0 %v9038_v60, %s8051_s27  ;;  %v7982_v2 = vld [vmem:[%s15808_s3 + $0x8] sm:$0xff]  }
 0x261   : > { %2008 = vrot.lane.b32.xlu1 %v16980_v11, %s8051_s27 }
 0x262   : > { %v10442_v56 = vpop.permute.xlu0 %1839 }
 0x263   : > { %16981 = vst [vmem:[#allocation397_spill] sm:$0xff] %v10442_v56  ;;  %v10444_v26 = vpop.permute.xlu1 %1365 }
 0x264   : > { %16982 = vst [vmem:[#allocation398_spill] sm:$0xff] %v10444_v26  ;;  %2022 = vrot.lane.b32.xlu0 %v9158_v25, %s8051_s27 }
 0x265   : > { %2012 = vrot.lane.b32.xlu1 %v9414_v0, %s8051_s27 }
 0x266   : > { %v10450_v7 = vpop.permute.xlu0 %1906 }
 0x267   : > { %16983 = vst [vmem:[#allocation399_spill] sm:$0xff] %v10450_v7  ;;  %v10452_v18 = vpop.permute.xlu1 %1904  ;;  %v7981_v7 = vld [vmem:[%s8135_s17 + $0xe8] sm:$0xff]  }
 0x268   : > { %16984 = vst [vmem:[#allocation400_spill] sm:$0xff] %v10452_v18  ;;  %2026 = vrot.lane.b32.xlu0 %v16752_v1, %s8051_s27 }
 0x269   : > { %2016 = vrot.lane.b32.xlu1 %v9491_v3, %s8051_s27 }
 0x26a   : > { %v10458_v60 = vpop.permute.xlu0 %1363 }
 0x26b   : > { %16985 = vst [vmem:[#allocation401_spill] sm:$0xff] %v10458_v60  ;;  %v10460_v56 = vpop.permute.xlu1 %1763 }
 0x26c   : > { %16986 = vst [vmem:[#allocation402_spill] sm:$0xff] %v10460_v56  ;;  %2030 = vrot.lane.b32.xlu0 %v9691_v48, %s8051_s27 }
 0x26d   : > { %2020 = vrot.lane.b32.xlu1 %v9595_v15, %s8051_s27  ;;  %v3350_v15 = vrot.slane %v17076_v29, 2  ;;  %v3367_v29 = vrot.slane %v9143_v40, 2 }
 0x26e   : > { %v10466_v25 = vpop.permute.xlu0 %1654 }
 0x26f   : > { %16987 = vst [vmem:[#allocation403_spill] sm:$0xff] %v10466_v25  ;;  %v10468_v26 = vpop.permute.xlu1 %1912 }
 0x270   : > { %16988 = vst [vmem:[#allocation404_spill] sm:$0xff] %v10468_v26  ;;  %2034 = vrot.lane.b32.xlu0 %v9847_v36, %s8051_s27 }
 0x271   : > { %2024 = vrot.lane.b32.xlu1 %v9715_v9, %s8051_s27 }
 0x272   : > { %v10474_v1 = vpop.permute.xlu0 %1843 }
 0x273   : > { %16989 = vst [vmem:[#allocation405_spill] sm:$0xff] %v10474_v1  ;;  %v10476_v18 = vpop.permute.xlu1 %1916 }
 0x274   : > { %16990 = vst [vmem:[#allocation406_spill] sm:$0xff] %v10476_v18  ;;  %2038 = vrot.lane.b32.xlu0 %v9970_v50, %s8051_s27 }
 0x275   : > { %2028 = vrot.lane.b32.xlu1 %v9864_v63, %s8051_s27 }
 0x276   : > { %v10482_v48 = vpop.permute.xlu0 %1910 }
 0x277   : > { %16991 = vst [vmem:[#allocation407_spill] sm:$0xff] %v10482_v48  ;;  %v10484_v56 = vpop.permute.xlu1 %1648  ;;  %v16999_v48 = vld [vmem:[#allocation91_spill] sm:$0xff] }
 0x278   : > { %16992 = vst [vmem:[#allocation408_spill] sm:$0xff] %v10484_v56  ;;  %2042 = vrot.lane.b32.xlu0 %v10094_v35, %s8051_s27  ;;  %v7980_v56 = vld [vmem:[%s8135_s17 + $0xe0] sm:$0xff]  }
 0x279   : > { %2032 = vrot.lane.b32.xlu1 %v9981_v59, %s8051_s27  ;;  %7749 = vmatprep.mubr.msk.bf16.mxu1 %vm574_vm1, %v7980_v56  ;;  %v17016_v56 = vld [vmem:[#allocation161_spill] sm:$0xff] }
 0x27a   : > { %v10490_v36 = vpop.permute.xlu0 %1914  ;;  %7750 = vmatmul.mubr.msk.bf16.gmra.mxu1 %vm574_vm1, %v7981_v7  ;;  %v17017_v7 = vld [vmem:[#allocation112_spill] sm:$0xff] }
 0x27b   : > { %16993 = vst [vmem:[#allocation409_spill] sm:$0xff] %v10490_v36  ;;  %v10492_v26 = vpop.permute.xlu1 %1837 }
 0x27c   : > { %16994 = vst [vmem:[#allocation410_spill] sm:$0xff] %v10492_v26  ;;  %2046 = vrot.lane.b32.xlu0 %v9718_v53, %s8051_s27  ;;  %v7979_v26 = vld [vmem:[%s15808_s3 + $0x10] ss:$0 sps:$4 sm:$0x33]  }
 0x27d   : > { %2036 = vrot.lane.b32.xlu1 %v10087_v17, %s8051_s27  ;;  %7875 = vmatprep.subr.msk.bf16.mxu1 %vm665_vm0, %v7979_v26  ;;  %v2919_v25 = vsel %vm665_vm0, %v7979_v26, 0  ;;  %v17012_v26 = vld [vmem:[#allocation144_spill] sm:$0xff]  ;;  %v17021_v17 = vld [vmem:[#allocation117_spill] sm:$0xff] }
 0x27e   : > { %v10498_v50 = vpop.permute.xlu0 %1918  ;;  %7754 = vmatpush3.bf16.msra.mxu1 %v2919_v25  ;;  %v7983_v25 = vld [vmem:[%s15808_s3] sm:$0xff]  }
 0x27f   : > { %16995 = vst [vmem:[#allocation411_spill] sm:$0xff] %v10498_v50  ;;  %v10500_v18 = vpop.permute.xlu1 %1908  ;;  %7755 = vmatprep.subr.bf16.mxu1 %v7982_v2 }
 0x280   : > { %16996 = vst [vmem:[#allocation412_spill] sm:$0xff] %v10500_v18  ;;  %2050 = vrot.lane.b32.xlu0 %v9881_v54, %s8051_s27  ;;  %v17002_v54 = vld [vmem:[#allocation99_spill] sm:$0xff] }
 0x281   : > { %2040 = vrot.lane.b32.xlu1 %v10152_v61, %s8051_s27 }
 0x282   : > { %v10506_v35 = vpop.permute.xlu0 %1924  ;;  %7756 = vmatpush3.bf16.msra.mxu1 %v7982_v2  ;;  %v17020_v2 = vld [vmem:[#allocation199_spill] sm:$0xff] }
 0x283   : > { %16997 = vst [vmem:[#allocation413_spill] sm:$0xff] %v10506_v35  ;;  %v10508_v36 = vpop.permute.xlu1 %1652  ;;  %7757 = vmatprep.subr.bf16.mxu1 %v7983_v25  ;;  %v17029_v35 = vld [vmem:[#allocation157_spill] sm:$0xff] }
 0x284   : > { %16998 = vst [vmem:[#allocation414_spill] sm:$0xff] %v10508_v36  ;;  %2054 = vrot.lane.b32.xlu0 %v16999_v48, %s8051_s27  ;;  %v17004_v48 = vld [vmem:[#allocation113_spill] sm:$0xff]  ;;  %v17008_v36 = vld [vmem:[#allocation119_spill] sm:$0xff] }
 0x285   : > { %2044 = vrot.lane.b32.xlu1 %v10242_v45, %s8051_s27  ;;  %v17013_v45 = vld [vmem:[#allocation71_spill] sm:$0xff] }
 0x286   : > { %v10514_v53 = vpop.permute.xlu0 %1928  ;;  %7758 = vmatpush3.bf16.msra.mxu1 %v7983_v25 }
 0x287   : > { %17000 = vst [vmem:[#allocation415_spill] sm:$0xff] %v10514_v53  ;;  %v10516_v50 = vpop.permute.xlu1 %1841  ;;  %v17024_v53 = vld [vmem:[#allocation211_spill] sm:$0xff] }
 0x288   : > { %17001 = vst [vmem:[#allocation416_spill] sm:$0xff] %v10516_v50  ;;  %2058 = vrot.lane.b32.xlu0 %v17002_v54, %s8051_s27  ;;  %v17005_v50 = vld [vmem:[#allocation100_spill] sm:$0xff] }
 0x289   : > { %2048 = vrot.lane.b32.xlu1 %v10278_v23, %s8051_s27 }
 0x28a   : > { %v10522_v1 = vpop.permute.xlu0 %1932 }
 0x28b   : > { %17003 = vst [vmem:[#allocation417_spill] sm:$0xff] %v10522_v1  ;;  %v10524_v18 = vpop.permute.xlu1 %1922 }
 0x28c   : > { %2067 = vrot.lane.b32.xlu0 %v17004_v48, %s8052_s28 }
 0x28d   : > { %2052 = vrot.lane.b32.xlu1 %v17005_v50, %s8051_s27 }
 0x28e   : > { %v10533_v60 = vpop.permute.xlu0 %1936 }
 0x28f   : > { %17006 = vst [vmem:[#allocation418_spill] sm:$0xff] %v10533_v60  ;;  %v10536_v54 = vpop.permute.xlu1 %1926 }
 0x290   : > { %17007 = vst [vmem:[#allocation419_spill] sm:$0xff] %v10536_v54  ;;  %2071 = vrot.lane.b32.xlu0 %v17008_v36, %s8052_s28 }
 0x291   : > { %2056 = vrot.lane.b32.xlu1 %v17009_v20, %s8051_s27 }
 0x292   : > { %v10548_v50 = vpop.permute.xlu0 %1940 }
 0x293   : > { %17010 = vst [vmem:[#allocation420_spill] sm:$0xff] %v10548_v50  ;;  %v10551_v60 = vpop.permute.xlu1 %1930 }
 0x294   : > { %17011 = vst [vmem:[#allocation421_spill] sm:$0xff] %v10551_v60  ;;  %2075 = vrot.lane.b32.xlu0 %v17012_v26, %s8052_s28  ;;  %v17025_v60 = vld [vmem:[#allocation138_spill] sm:$0xff] }
 0x295   : > { %7912 = vrot.lane.b32.xlu1 %v17013_v45, %s8051_s27 }
 0x296   : > { %v10561_v20 = vpop.permute.xlu0 %1944 }
 0x297   : > { %17014 = vst [vmem:[#allocation422_spill] sm:$0xff] %v10561_v20  ;;  %v10563_v50 = vpop.permute.xlu1 %1934 }
 0x298   : > { %17015 = vst [vmem:[#allocation423_spill] sm:$0xff] %v10563_v50  ;;  %2079 = vrot.lane.b32.xlu0 %v17016_v56, %s8052_s28 }
 0x299   : > { %2069 = vrot.lane.b32.xlu1 %v17017_v7, %s8052_s28 }
 0x29a   : > { %v10569_v1 = vpop.permute.xlu0 %1948 }
 0x29b   : > { %17018 = vst [vmem:[#allocation424_spill] sm:$0xff] %v10569_v1  ;;  %v10571_v45 = vpop.permute.xlu1 %1938 }
 0x29c   : > { %17019 = vst [vmem:[#allocation425_spill] sm:$0xff] %v10571_v45  ;;  %2083 = vrot.lane.b32.xlu0 %v17020_v2, %s8052_s28  ;;  %v17028_v45 = vld [vmem:[#allocation228_spill] sm:$0xff] }
 0x29d   : > { %2073 = vrot.lane.b32.xlu1 %v17021_v17, %s8052_s28 }
 0x29e   : > { %v10577_v20 = vpop.permute.xlu0 %1952 }
 0x29f   : > { %17022 = vst [vmem:[#allocation426_spill] sm:$0xff] %v10577_v20  ;;  %v10579_v50 = vpop.permute.xlu1 %1942 }
 0x2a0   : > { %17023 = vst [vmem:[#allocation427_spill] sm:$0xff] %v10579_v50  ;;  %2087 = vrot.lane.b32.xlu0 %v17024_v53, %s8052_s28  ;;  %v17032_v50 = vld [vmem:[#allocation254_spill] sm:$0xff] }
 0x2a1   : > { %2077 = vrot.lane.b32.xlu1 %v17025_v60, %s8052_s28 }
 0x2a2   : > { %v10585_v25 = vpop.permute.xlu0 %1956 }
 0x2a3   : > { %17026 = vst [vmem:[#allocation428_spill] sm:$0xff] %v10585_v25  ;;  %v10587_v1 = vpop.permute.xlu1 %1946 }
 0x2a4   : > { %17027 = vst [vmem:[#allocation429_spill] sm:$0xff] %v10587_v1  ;;  %2091 = vrot.lane.b32.xlu0 %v17028_v45, %s8052_s28  ;;  %v17036_v1 = vld [vmem:[#allocation207_spill] sm:$0xff] }
 0x2a5   : > { %2081 = vrot.lane.b32.xlu1 %v17029_v35, %s8052_s28 }
 0x2a6   : > { %v10593_v63 = vpop.permute.xlu0 %1960 }
 0x2a7   : > { %17030 = vst [vmem:[#allocation430_spill] sm:$0xff] %v10593_v63  ;;  %v10595_v20 = vpop.permute.xlu1 %1950 }
 0x2a8   : > { %17031 = vst [vmem:[#allocation431_spill] sm:$0xff] %v10595_v20  ;;  %2095 = vrot.lane.b32.xlu0 %v17032_v50, %s8052_s28  ;;  %v17039_v20 = vld [vmem:[#allocation226_spill] sm:$0xff] }
 0x2a9   : > { %2085 = vrot.lane.b32.xlu1 %v17033_v28, %s8052_s28 }
 0x2aa   : > { %v10601_v23 = vpop.permute.xlu0 %1964 }
 0x2ab   : > { %17034 = vst [vmem:[#allocation432_spill] sm:$0xff] %v10601_v23  ;;  %v10603_v25 = vpop.permute.xlu1 %1954 }
 0x2ac   : > { %17035 = vst [vmem:[#allocation433_spill] sm:$0xff] %v10603_v25  ;;  %2099 = vrot.lane.b32.xlu0 %v9939_v14, %s8052_s28  ;;  %v17042_v25 = vld [vmem:[#allocation246_spill] sm:$0xff] }
 0x2ad   : > { %2089 = vrot.lane.b32.xlu1 %v17036_v1, %s8052_s28 }
 0x2ae   : > { %v10609_v54 = vpop.permute.xlu0 %1968 }
 0x2af   : > { %17037 = vst [vmem:[#allocation434_spill] sm:$0xff] %v10609_v54  ;;  %v10611_v63 = vpop.permute.xlu1 %1958 }
 0x2b0   : > { %17038 = vst [vmem:[#allocation435_spill] sm:$0xff] %v10611_v63  ;;  %2103 = vrot.lane.b32.xlu0 %v10021_v43, %s8052_s28 }
 0x2b1   : > { %2093 = vrot.lane.b32.xlu1 %v17039_v20, %s8052_s28 }
 0x2b2   : > { %v10617_v58 = vpop.permute.xlu0 %1972 }
 0x2b3   : > { %17040 = vst [vmem:[#allocation436_spill] sm:$0xff] %v10617_v58  ;;  %v10619_v23 = vpop.permute.xlu1 %1962 }
 0x2b4   : > { %17041 = vst [vmem:[#allocation437_spill] sm:$0xff] %v10619_v23  ;;  %2107 = vrot.lane.b32.xlu0 %v10125_v27, %s8052_s28  ;;  %v17060_v27 = vld [vmem:[#allocation95_spill] sm:$0xff] }
 0x2b5   : > { %2097 = vrot.lane.b32.xlu1 %v17042_v25, %s8052_s28 }
 0x2b6   : > { %v10625_v14 = vpop.permute.xlu0 %1976 }
 0x2b7   : > { %17043 = vst [vmem:[#allocation438_spill] sm:$0xff] %v10625_v14  ;;  %v10627_v54 = vpop.permute.xlu1 %1966 }
 0x2b8   : > { %17044 = vst [vmem:[#allocation439_spill] sm:$0xff] %v10627_v54  ;;  %2111 = vrot.lane.b32.xlu0 %v10184_v37, %s8052_s28 }
 0x2b9   : > { %2101 = vrot.lane.b32.xlu1 %v9907_v13, %s8052_s28  ;;  %v17079_v13 = vld [vmem:[#allocation194_spill] sm:$0xff] }
 0x2ba   : > { %v10633_v63 = vpop.permute.xlu0 %1980 }
 0x2bb   : > { %17045 = vst [vmem:[#allocation440_spill] sm:$0xff] %v10633_v63  ;;  %v10635_v58 = vpop.permute.xlu1 %1970 }
 0x2bc   : > { %17046 = vst [vmem:[#allocation441_spill] sm:$0xff] %v10635_v58  ;;  %2115 = vrot.lane.b32.xlu0 %v10264_v52, %s8052_s28  ;;  %v17051_v58 = vld [vmem:[#allocation331_spill] sm:$0xff] }
 0x2bd   : > { %2105 = vrot.lane.b32.xlu1 %v10000_v4, %s8052_s28 }
 0x2be   : > { %v10641_v23 = vpop.permute.xlu0 %1984 }
 0x2bf   : > { %17047 = vst [vmem:[#allocation442_spill] sm:$0xff] %v10641_v23  ;;  %v10643_v14 = vpop.permute.xlu1 %1974  ;;  %v10658_v23 = vrot.slane %v16964_v16, 1 }
 0x2c0   : > { %17048 = vst [vmem:[#allocation443_spill] sm:$0xff] %v10643_v14  ;;  %2119 = vrot.lane.b32.xlu0 %v10206_v44, %s8052_s28 }
 0x2c1   : > { %2109 = vrot.lane.b32.xlu1 %v10109_v30, %s8052_s28  ;;  %17052 = vst [vmem:[#allocation446_spill] sm:$0xff] %v10658_v23 }
 0x2c2   : > { %v10649_v54 = vpop.permute.xlu0 %2002 }
 0x2c3   : > { %17049 = vst [vmem:[#allocation444_spill] sm:$0xff] %v10649_v54  ;;  %v10651_v63 = vpop.permute.xlu1 %1978 }
 0x2c4   : > { %17050 = vst [vmem:[#allocation445_spill] sm:$0xff] %v10651_v63  ;;  %2123 = vrot.lane.b32.xlu0 %v10225_v19, %s8052_s28  ;;  %v17057_v19 = vld [vmem:[#allocation337_spill] sm:$0xff] }
 0x2c5   : > { %2113 = vrot.lane.b32.xlu1 %v17051_v58, %s8052_s28 }
 0x2c6   : > { %v10660_v14 = vpop.permute.xlu0 %2006 }
 0x2c7   : > { %17053 = vst [vmem:[#allocation447_spill] sm:$0xff] %v10660_v14  ;;  %v10662_v52 = vpop.permute.xlu1 %1982 }
 0x2c8   : > { %17054 = vst [vmem:[#allocation448_spill] sm:$0xff] %v10662_v52  ;;  %2127 = vrot.lane.b32.xlu0 %v10658_v23, %s8052_s28 }
 0x2c9   : > { %2117 = vrot.lane.b32.xlu1 %v10235_v62, %s8052_s28  ;;  %v17061_v62 = vld [vmem:[#allocation341_spill] sm:$0xff] }
 0x2ca   : > { %v10668_v63 = vpop.permute.xlu0 %2010 }
 0x2cb   : > { %17055 = vst [vmem:[#allocation449_spill] sm:$0xff] %v10668_v63  ;;  %v10670_v37 = vpop.permute.xlu1 %2000 }
 0x2cc   : > { %17056 = vst [vmem:[#allocation450_spill] sm:$0xff] %v10670_v37  ;;  %3115 = vrot.lane.b32.xlu0 %v16964_v16, %s8053_s19 }
 0x2cd   : > { %2121 = vrot.lane.b32.xlu1 %v17057_v19, %s8052_s28 }
 0x2ce   : > { %v10676_v58 = vpop.permute.xlu0 %2014 }
 0x2cf   : > { %17058 = vst [vmem:[#allocation451_spill] sm:$0xff] %v10676_v58  ;;  %v10678_v52 = vpop.permute.xlu1 %2004 }
 0x2d0   : > { %17059 = vst [vmem:[#allocation452_spill] sm:$0xff] %v10678_v52  ;;  %3119 = vrot.lane.b32.xlu0 %v17060_v27, %s8053_s19 }
 0x2d1   : > { %2125 = vrot.lane.b32.xlu1 %v17061_v62, %s8052_s28 }
 0x2d2   : > { %v10684_v63 = vpop.permute.xlu0 %2018 }
 0x2d3   : > { %17062 = vst [vmem:[#allocation453_spill] sm:$0xff] %v10684_v63  ;;  %v10686_v30 = vpop.permute.xlu1 %2008  ;;  %v17067_v63 = vld [vmem:[#allocation153_spill] sm:$0xff] }
 0x2d4   : > { %17063 = vst [vmem:[#allocation454_spill] sm:$0xff] %v10686_v30  ;;  %3123 = vrot.lane.b32.xlu0 %v16938_v51, %s8053_s19  ;;  %v7909_v30 = vunpack.i.l.bf16 %v17067_v63  ;;  %v7910_v43 = vunpack.i.h.bf16 %v17067_v63 }
 0x2d5   : > { %2129 = vrot.lane.b32.xlu1 %v10658_v23, %s8052_s28 }
 0x2d6   : > { %v10692_v14 = vpop.permute.xlu0 %2022 }
 0x2d7   : > { %17064 = vst [vmem:[#allocation455_spill] sm:$0xff] %v10692_v14  ;;  %v10694_v58 = vpop.permute.xlu1 %2012 }
 0x2d8   : > { %17065 = vst [vmem:[#allocation456_spill] sm:$0xff] %v10694_v58  ;;  %3127 = vrot.lane.b32.xlu0 %v9012_v57, %s8053_s19  ;;  %v17070_v58 = vld [vmem:[#allocation139_spill] sm:$0xff] }
 0x2d9   : > { %3117 = vrot.lane.b32.xlu1 %v16964_v16, %s8053_s19  ;;  %v2133_v16 = vsel %vm574_vm1, %v17070_v58, %v7909_v30 }
 0x2da   : > { %v10700_v62 = vpop.permute.xlu0 %2026  ;;  %v2229_v63 = vsel %vm2227_vm8, %v2133_v16, %v10658_v23  ;;  %v3364_v16 = vrot.slane %v9020_v33, 2 }
 0x2db   : > { %17066 = vst [vmem:[#allocation457_spill] sm:$0xff] %v10700_v62  ;;  %v10703_v54 = vpop.permute.xlu1 %2016  ;;  %v17072_v62 = vld [vmem:[#allocation148_spill] sm:$0xff] }
 0x2dc   : > { %17068 = vst [vmem:[#allocation153_spill] sm:$0xff] %v10703_v54  ;;  %3131 = vrot.lane.b32.xlu0 %v9143_v40, %s8053_s19  ;;  %v2136_v52 = vsel %vm574_vm1, %v17072_v62, %v7910_v43  ;;  %v3353_v43 = vrot.slane %v16927_v46, 2  ;;  %v3358_v62 = vrot.slane %v16941_v42, 2  ;;  %v3371_v46 = vrot.slane %v16748_v41, 2  ;;  %v17082_v41 = vld [vmem:[#allocation202_spill] sm:$0xff] }
 0x2dd   : > { %3121 = vrot.lane.b32.xlu1 %v16935_v49, %s8053_s19  ;;  %v2231_v58 = vsel %vm2227_vm8, %v2136_v52, %v10658_v23  ;;  %v3370_v52 = vrot.slane %v16738_v38, 2  ;;  %v3368_v23 = vrot.slane %v9134_v31, 2 }
 0x2de   : > { %v10710_v14 = vpop.permute.xlu0 %2030 }
 0x2df   : > { %17069 = vst [vmem:[#allocation458_spill] sm:$0xff] %v10710_v14  ;;  %v10714_v4 = vpop.permute.xlu1 %2020 }
 0x2e0   : > { %17071 = vst [vmem:[#allocation139_spill] sm:$0xff] %v10714_v4  ;;  %3135 = vrot.lane.b32.xlu0 %v9565_v34, %s8053_s19  ;;  %v3352_v4 = vrot.slane %v16935_v49, 2  ;;  %v17075_v34 = vld [vmem:[#allocation125_spill] sm:$0xff]  ;;  %v17077_v49 = vld [vmem:[#allocation111_spill] sm:$0xff] }
 0x2e1   : > { %3125 = vrot.lane.b32.xlu1 %v16941_v42, %s8053_s19  ;;  %v3359_v54 = vrot.slane %v17075_v34, 2  ;;  %v3355_v42 = vrot.slane %v16938_v51, 2  ;;  %v3361_v34 = vrot.slane %v9012_v57, 2  ;;  %v2142_v51 = vsel %vm574_vm1, %v17082_v41, %v17081_v47  ;;  %v17086_v41 = vld [vmem:[#allocation160_spill] sm:$0xff] }
 0x2e2   : > { %v10724_v14 = vpop.permute.xlu0 %2034  ;;  %v3377_v57 = vrot.slane %v9724_v24, 2  ;;  %v17087_v47 = vld [vmem:[#allocation156_spill] sm:$0xff] }
 0x2e3   : > { %17073 = vst [vmem:[#allocation148_spill] sm:$0xff] %v10724_v14  ;;  %v10728_v30 = vpop.permute.xlu1 %2024  ;;  %v3365_v14 = vrot.slane %v9000_v22, 2  ;;  %v3362_v22 = vrot.slane %v9166_v6, 2  ;;  %v17084_v6 = vld [vmem:[#allocation70_spill] sm:$0xff]  ;;  %v2226_v40 = vsel %vm574_vm1, %v17087_v47, %v17086_v41 }
 0x2e4   : > { %17074 = vst [vmem:[#allocation459_spill] sm:$0xff] %v10728_v30  ;;  %3139 = vrot.lane.b32.xlu0 %v9989_v39, %s8053_s19  ;;  %v3356_v39 = vrot.slane %v17077_v49, 2  ;;  %v3376_v49 = vrot.slane %v9822_v55, 2  ;;  %v10765_v31 = vpack.i.bf16 %v17084_v6, %v17084_v6 }
 0x2e5   : > { %3129 = vrot.lane.b32.xlu1 %v9020_v33, %s8053_s19  ;;  %v17080_v33 = vld [vmem:[#allocation186_spill] sm:$0xff]  ;;  %v10783_v6 = vsel %vm16348_vm2, %v3364_v16, %v3365_v14  ;;  %v17100_v16 = vld [vmem:[#allocation215_spill] sm:$0xff] }
 0x2e6   : > { %v10745_v30 = vpop.permute.xlu0 %2038  ;;  %v2223_v61 = vsel %vm574_vm1, %v17080_v33, %v17079_v13  ;;  %17085 = vst [vmem:[#allocation186_spill] sm:$0xff] %v10765_v31  ;;  %v10768_v33 = vsel %vm16348_vm2, %v3352_v4, %v3353_v43  ;;  %v3349_v13 = vrot.slane %v17060_v27, 2  ;;  %17090 = vst [vmem:[#allocation201_spill] sm:$0xff] %v10783_v6  ;;  %v17091_v43 = vld [vmem:[#allocation106_spill] sm:$0xff]  ;;  %v10803_v14 = vsel %vm16348_vm2, %v3376_v49, %v3377_v57  ;;  %v17105_v49 = vld [vmem:[#allocation175_spill] sm:$0xff] }
 0x2e7   : > { %17078 = vst [vmem:[#allocation98_spill] sm:$0xff] %v10745_v30  ;;  %v10757_v37 = vpop.permute.xlu1 %2028  ;;  %v17088_v30 = vld [vmem:[#allocation218_spill] sm:$0xff]  ;;  %v2289_v4 = vsel %vm2227_vm8, %v2223_v61, %v10206_v44  ;;  %v2235_v27 = vsel %vm2227_vm8, %v2142_v51, %v17091_v43  ;;  %v10806_v61 = vsel %vm16348_vm2, %v3361_v34, %v3362_v22  ;;  %v10809_v51 = vsel %vm16348_vm2, %v3367_v29, %v3368_v23  ;;  %v17103_v22 = vld [vmem:[#allocation195_spill] sm:$0xff]  ;;  %v17104_v23 = vld [vmem:[#allocation204_spill] sm:$0xff] }
 0x2e8   : > { %17083 = vst [vmem:[#allocation194_spill] sm:$0xff] %v10757_v37  ;;  %3143 = vrot.lane.b32.xlu0 %v9695_v5, %s8053_s19  ;;  %v17089_v37 = vld [vmem:[#allocation188_spill] sm:$0xff]  ;;  %v10780_v5 = vsel %vm16348_vm2, %v3358_v62, %v3359_v54  ;;  %v10792_v47 = vsel %vm16348_vm2, %v3349_v13, %v3350_v15  ;;  %v10800_v54 = vsel %vm16348_vm2, %v3355_v42, %v3356_v39  ;;  %17095 = vst [vmem:[#allocation218_spill] sm:$0xff] %v10803_v14  ;;  %v17102_v42 = vld [vmem:[#allocation107_spill] sm:$0xff] }
 0x2e9   : > { %v2139_v24 = vsel %vm574_vm1, %v17089_v37, %v17088_v30  ;;  %3133 = vrot.lane.b32.xlu1 %v16738_v38, %s8053_s19  ;;  %17092 = vst [vmem:[#allocation202_spill] sm:$0xff] %v10792_v47  ;;  %v10795_v37 = vsel %vm16348_vm2, %v3370_v52, %v3371_v46  ;;  %17094 = vst [vmem:[#allocation156_spill] sm:$0xff] %v10800_v54  ;;  %v10813_v15 = vsel %vm2227_vm8, %v2226_v40, %v17057_v19  ;;  %v17099_v46 = vld [vmem:[#allocation191_spill] sm:$0xff]  ;;  %v17101_v52 = vld [vmem:[#allocation208_spill] sm:$0xff] }
 0x2ea   : > { %v10789_v41 = vpop.permute.xlu0 %2042  ;;  %17093 = vst [vmem:[#allocation160_spill] sm:$0xff] %v10795_v37  ;;  %17096 = vst [vmem:[#allocation188_spill] sm:$0xff] %v10806_v61  ;;  %v2294_v62 = vsel %vm2292_vm9, %v2229_v63, %v17099_v46  ;;  %v2148_v39 = vsel %vm574_vm1, %v17101_v52, %v17100_v16  ;;  %v2233_v57 = vsel %vm2227_vm8, %v2139_v24, %v17102_v42  ;;  %v17106_v63 = vld [vmem:[#allocation3_spill] sm:$0xff]  ;;  %v17107_v13 = vld [vmem:[#allocation212_spill] sm:$0xff] }
 0x2eb   : > { %v10797_v30 = vpop.permute.xlu1 %2032  ;;  %17097 = vst [vmem:[#allocation106_spill] sm:$0xff] %v10809_v51  ;;  %17098 = vst [vmem:[#allocation460_spill] sm:$0xff] %v10813_v15  ;;  %v2296_v34 = vsel %vm2292_vm9, %v2231_v58, %v17103_v22  ;;  %v2300_v40 = vsel %vm2292_vm9, %v2235_v27, %v17104_v23  ;;  %v2354_v29 = vsel %vm2292_vm9, %v2289_v4, %v17105_v49  ;;  %v17108_v24 = vld [vmem:[#allocation205_spill] sm:$0xff]  ;;  %v17110_v16 = vld [vmem:[#allocation206_spill] sm:$0xff] }
 0x2ec   : > { %7917 = vrot.lane.b32.xlu0 %v10765_v31, %s8043_s13  ;;  %v2145_v43 = vsel %vm574_vm1, %v17107_v13, %v17106_v63  ;;  %v10837_v46 = vsel %vm2357_vm10, %v2354_v29, %v17108_v24  ;;  %v2361_v58 = vsel %vm2357_vm10, %v2296_v34, %v17110_v16  ;;  %v17111_v22 = vld [vmem:[#allocation209_spill] sm:$0xff]  ;;  %v2239_v49 = vsel %vm2227_vm8, %v2148_v39, %v17017_v7  ;;  %v17113_v13 = vld [vmem:[#allocation258_spill] sm:$0xff]  ;;  %v17114_v24 = vld [vmem:[#allocation240_spill] sm:$0xff] }
 0x2ed   : > { %3137 = vrot.lane.b32.xlu1 %v9822_v55, %s8053_s19  ;;  %17109 = vst [vmem:[#allocation191_spill] sm:$0xff] %v10837_v46  ;;  %v10847_v23 = vsel %vm2422_vm11, %v2361_v58, %v17111_v22  ;;  %v17112_v63 = vld [vmem:[#allocation213_spill] sm:$0xff]  ;;  %v2151_v34 = vsel %vm574_vm1, %v17114_v24, %v17113_v13  ;;  %v17115_v19 = vld [vmem:[#allocation219_spill] sm:$0xff]  ;;  %v17116_v4 = vld [vmem:[#allocation220_spill] sm:$0xff]  ;;  %v2237_v39 = vsel %vm2227_vm8, %v2145_v43, %v17004_v48 }
 0x2ee   : > { %v10841_v52 = vpop.permute.xlu0 %2046  ;;  %v2298_v29 = vsel %vm2292_vm9, %v2233_v57, %v17112_v63  ;;  %v2365_v27 = vsel %vm2357_vm10, %v2300_v40, %v17115_v19  ;;  %v2359_v44 = vsel %vm2357_vm10, %v2294_v62, %v17116_v4  ;;  %v17117_v58 = vld [vmem:[#allocation227_spill] sm:$0xff]  ;;  %v17119_v57 = vld [vmem:[#allocation224_spill] sm:$0xff]  ;;  %v17122_v62 = vld [vmem:[#allocation286_spill] sm:$0xff] }
 0x2ef   : > { %v10856_v16 = vpop.permute.xlu1 %2036  ;;  %v17118_v22 = vld [vmem:[#allocation223_spill] sm:$0xff]  ;;  %v2304_v63 = vsel %vm2292_vm9, %v2239_v49, %v17119_v57  ;;  %v17121_v19 = vld [vmem:[#allocation236_spill] sm:$0xff]  ;;  %v17124_v43 = vld [vmem:[#allocation230_spill] sm:$0xff] }
 0x2f0   : > { %v2154_v31 = vsel %vm574_vm1, %v17118_v22, %v17117_v58  ;;  %3165 = vrot.lane.b32.xlu0 %v16974_v32, %s8043_s13  ;;  %v17120_v13 = vld [vmem:[#allocation231_spill] sm:$0xff]  ;;  %v2363_v40 = vsel %vm2357_vm10, %v2298_v29, %v17121_v19  ;;  %v17123_v4 = vld [vmem:[#allocation244_spill] sm:$0xff]  ;;  %v2369_v58 = vsel %vm2357_vm10, %v2304_v63, %v17124_v43  ;;  %v2241_v22 = vsel %vm2227_vm8, %v2151_v34, %v17008_v36  ;;  %v17125_v49 = vld [vmem:[#allocation261_spill] sm:$0xff] }
 0x2f1   : > { %v2302_v24 = vsel %vm2292_vm9, %v2237_v39, %v17120_v13  ;;  %v2157_v7 = vsel %vm574_vm1, %v17123_v4, %v17122_v62  ;;  %3141 = vrot.lane.b32.xlu1 %v10030_v10, %s8053_s19  ;;  %v17126_v39 = vld [vmem:[#allocation259_spill] sm:$0xff]  ;;  %v17127_v13 = vld [vmem:[#allocation266_spill] sm:$0xff]  ;;  %v17130_v4 = vld [vmem:[#allocation233_spill] sm:$0xff]  ;;  %v2243_v34 = vsel %vm2227_vm8, %v2154_v31, %v17021_v17 }
 0x2f2   : > { %v2367_v57 = vsel %vm2357_vm10, %v2302_v24, %v17125_v49  ;;  %v2160_v29 = vsel %vm574_vm1, %v17127_v13, %v17126_v39  ;;  %v10889_v19 = vpop.permute.xlu0 %2050  ;;  %v17129_v32 = vld [vmem:[#allocation222_spill] sm:$0xff]  ;;  %v10897_v55 = vsel %vm2422_vm11, %v2369_v58, %v17130_v4  ;;  %v17132_v49 = vld [vmem:[#allocation284_spill] sm:$0xff]  ;;  %v17133_v39 = vld [vmem:[#allocation277_spill] sm:$0xff] }
 0x2f3   : > { %17128 = vst [vmem:[#allocation215_spill] sm:$0xff] %v10889_v19  ;;  %v10893_v62 = vsel %vm2422_vm11, %v2365_v27, %v17129_v32  ;;  %v17131_v63 = vld [vmem:[#allocation210_spill] sm:$0xff]  ;;  %v10905_v43 = vpop.permute.xlu1 %2040  ;;  %v2166_v13 = vsel %vm574_vm1, %v17133_v39, %v17132_v49  ;;  %v2245_v32 = vsel %vm2227_vm8, %v2157_v7, %v17012_v26  ;;  %v17134_v27 = vld [vmem:[#allocation305_spill] sm:$0xff]  ;;  %v17135_v38 = vld [vmem:[#allocation252_spill] sm:$0xff]  ;;  %v2247_v49 = vsel %vm2227_vm8, %v2160_v29, %v17025_v60 }
 0x2f4   : > { %v10903_v24 = vsel %vm2422_vm11, %v2359_v44, %v17131_v63  ;;  %v2163_v58 = vsel %vm574_vm1, %v17135_v38, %v17134_v27  ;;  %v17136_v4 = vld [vmem:[#allocation225_spill] sm:$0xff]  ;;  %3169 = vrot.lane.b32.xlu0 %v16980_v11, %s8043_s13  ;;  %v17137_v44 = vld [vmem:[#allocation256_spill] sm:$0xff]  ;;  %v17139_v17 = vld [vmem:[#allocation242_spill] sm:$0xff] }
 0x2f5   : > { %v10917_v31 = vsel %vm2422_vm11, %v2363_v40, %v17136_v4  ;;  %v2308_v63 = vsel %vm2292_vm9, %v2243_v34, %v17137_v44  ;;  %v17138_v39 = vld [vmem:[#allocation245_spill] sm:$0xff]  ;;  %v10929_v51 = vsel %vm2422_vm11, %v2367_v57, %v17139_v17  ;;  %3145 = vrot.lane.b32.xlu1 %v9870_v12, %s8053_s19  ;;  %v17141_v27 = vld [vmem:[#allocation275_spill] sm:$0xff]  ;;  %v17142_v34 = vld [vmem:[#allocation290_spill] sm:$0xff]  ;;  %v2251_v17 = vsel %vm2227_vm8, %v2166_v13, %v17029_v35 }
 0x2f6   : > { %v2306_v7 = vsel %vm2292_vm9, %v2241_v22, %v17138_v39  ;;  %v17140_v38 = vld [vmem:[#allocation265_spill] sm:$0xff]  ;;  %v2312_v4 = vsel %vm2292_vm9, %v2247_v49, %v17141_v27  ;;  %v10942_v39 = vpop.permute.xlu0 %2054  ;;  %v2249_v57 = vsel %vm2227_vm8, %v2163_v58, %v17016_v56  ;;  %v17148_v49 = vld [vmem:[#allocation299_spill] sm:$0xff]  ;;  %v17165_v10 = vld [vmem:[#allocation352_spill] sm:$0xff] }
 0x2f7   : > { %v2373_v40 = vsel %vm2357_vm10, %v2308_v63, %v17140_v38  ;;  %v2371_v44 = vsel %vm2357_vm10, %v2306_v7, %v17142_v34  ;;  %v17143_v29 = vld [vmem:[#allocation301_spill] sm:$0xff]  ;;  %17145 = vst [vmem:[#allocation208_spill] sm:$0xff] %v10942_v39  ;;  %v17147_v38 = vld [vmem:[#allocation319_spill] sm:$0xff]  ;;  %v10953_v7 = vpop.permute.xlu1 %2044  ;;  %v17204_v39 = vld [vmem:[#allocation360_spill] sm:$0xff] }
 0x2f8   : > { %v17144_v60 = vld [vmem:[#allocation293_spill] sm:$0xff]  ;;  %v2169_v27 = vsel %vm574_vm1, %v17148_v49, %v17147_v38  ;;  %v17149_v34 = vld [vmem:[#allocation271_spill] sm:$0xff]  ;;  %3173 = vrot.lane.b32.xlu0 %v9491_v3, %s8043_s13  ;;  %v17154_v38 = vld [vmem:[#allocation336_spill] sm:$0xff] }
 0x2f9   : > { %v2172_v22 = vsel %vm574_vm1, %v17144_v60, %v17143_v29  ;;  %v17146_v11 = vld [vmem:[#allocation253_spill] sm:$0xff]  ;;  %v10957_v60 = vsel %vm2422_vm11, %v2373_v40, %v17149_v34  ;;  %v17150_v29 = vld [vmem:[#allocation288_spill] sm:$0xff]  ;;  %v17151_v13 = vld [vmem:[#allocation291_spill] sm:$0xff] }
 0x2fa   : > { %v2310_v63 = vsel %vm2292_vm9, %v2245_v32, %v17146_v11  ;;  %v2316_v12 = vsel %vm2292_vm9, %v2251_v17, %v17150_v29  ;;  %v2377_v35 = vsel %vm2357_vm10, %v2312_v4, %v17151_v13  ;;  %v17152_v58 = vld [vmem:[#allocation309_spill] sm:$0xff]  ;;  %v17153_v11 = vld [vmem:[#allocation294_spill] sm:$0xff]  ;;  %v2255_v40 = vsel %vm2227_vm8, %v2172_v22, %v17033_v28  ;;  %v17155_v49 = vld [vmem:[#allocation327_spill] sm:$0xff] }
 0x2fb   : > { %v2375_v61 = vsel %vm2357_vm10, %v2310_v63, %v17152_v58  ;;  %v10969_v32 = vsel %vm2422_vm11, %v2377_v35, %v17153_v11  ;;  %v2175_v17 = vsel %vm574_vm1, %v17155_v49, %v17154_v38  ;;  %v17156_v34 = vld [vmem:[#allocation273_spill] sm:$0xff]  ;;  %v17157_v63 = vld [vmem:[#allocation110_spill] sm:$0xff]  ;;  %v17158_v29 = vld [vmem:[#allocation308_spill] sm:$0xff]  ;;  %v2253_v22 = vsel %vm2227_vm8, %v2169_v27, %v17020_v2  ;;  %v10991_v49 = vpop.permute.xlu0 %2058  ;;  %v11004_v27 = vpop.permute.xlu1 %2048 }
 0x2fc   : > { %v10978_v4 = vsel %vm2422_vm11, %v2371_v44, %v17156_v34  ;;  %3163 = vrot.lane.b32.xlu1 %v17157_v63, %s8043_s13  ;;  %v2381_v13 = vsel %vm2357_vm10, %v2316_v12, %v17158_v29  ;;  %v17159_v58 = vld [vmem:[#allocation318_spill] sm:$0xff]  ;;  %v17160_v35 = vld [vmem:[#allocation313_spill] sm:$0xff]  ;;  %v17161_v28 = vld [vmem:[#allocation300_spill] sm:$0xff]  ;;  %17162 = vst [vmem:[#allocation195_spill] sm:$0xff] %v10991_v49  ;;  %3177 = vrot.lane.b32.xlu0 %v9715_v9, %s8043_s13 }
 0x2fd   : > { %v2178_v11 = vsel %vm574_vm1, %v17160_v35, %v17159_v58  ;;  %v2314_v38 = vsel %vm2292_vm9, %v2249_v57, %v17161_v28  ;;  %v17163_v44 = vld [vmem:[#allocation323_spill] sm:$0xff]  ;;  %v17164_v3 = vld [vmem:[#allocation325_spill] sm:$0xff]  ;;  %v11002_v58 = vsel %vm2422_vm11, %v2375_v61, %v17167_v8  ;;  %v17168_v35 = vld [vmem:[#allocation314_spill] sm:$0xff]  ;;  %v2257_v57 = vsel %vm2227_vm8, %v2175_v17, %v17024_v53 }
 0x2fe   : > { %v2318_v34 = vsel %vm2292_vm9, %v2253_v22, %v17163_v44  ;;  %v2379_v63 = vsel %vm2357_vm10, %v2314_v38, %v17164_v3  ;;  %v17166_v12 = vld [vmem:[#allocation329_spill] sm:$0xff]  ;;  %v2320_v28 = vsel %vm2292_vm9, %v2255_v40, %v17168_v35  ;;  %v17169_v22 = vld [vmem:[#allocation339_spill] sm:$0xff]  ;;  %v17170_v3 = vld [vmem:[#allocation338_spill] sm:$0xff]  ;;  %v2259_v17 = vsel %vm2227_vm8, %v2178_v11, %v17036_v1 }
 0x2ff   : > { %v2181_v29 = vsel %vm574_vm1, %v17166_v12, %v17165_v10  ;;  %v2383_v44 = vsel %vm2357_vm10, %v2318_v34, %v17169_v22  ;;  %v17171_v38 = vld [vmem:[#allocation343_spill] sm:$0xff]  ;;  %v17173_v61 = vld [vmem:[#allocation321_spill] sm:$0xff]  ;;  %v17175_v35 = vld [vmem:[#allocation350_spill] sm:$0xff] }
 0x300   : > { %v2184_v49 = vsel %vm574_vm1, %v17171_v38, %v17170_v3  ;;  %v17172_v10 = vld [vmem:[#allocation311_spill] sm:$0xff]  ;;  %v2385_v40 = vsel %vm2357_vm10, %v2320_v28, %v17173_v61  ;;  %3167 = vrot.lane.b32.xlu1 %v16977_v21, %s8043_s13  ;;  %v17176_v22 = vld [vmem:[#allocation324_spill] sm:$0xff]  ;;  %v2261_v28 = vsel %vm2227_vm8, %v2181_v29, %v17028_v45  ;;  %v2068_v61 = vpop.permute.xlu0 %2067  ;;  %v11053_v29 = vpop.permute.xlu1 %2052  ;;  %3181 = vrot.lane.b32.xlu0 %v9981_v59, %s8043_s13  ;;  %v17198_v59 = vld [vmem:[#allocation361_spill] sm:$0xff] }
 0x301   : > { %v11019_v8 = vsel %vm2422_vm11, %v2381_v13, %v17172_v10  ;;  %v17174_v12 = vld [vmem:[#allocation351_spill] sm:$0xff]  ;;  %v11032_v3 = vsel %vm2422_vm11, %v2385_v40, %v17176_v22  ;;  %v17180_v9 = vld [vmem:[#allocation364_spill] sm:$0xff]  ;;  %17183 = vst [vmem:[#allocation204_spill] sm:$0xff] %v11053_v29  ;;  %v17242_v29 = vld [vmem:[#allocation417_spill] sm:$0xff] }
 0x302   : > { %v2190_v34 = vsel %vm574_vm1, %v17175_v35, %v17174_v12  ;;  %v17177_v38 = vld [vmem:[#allocation335_spill] sm:$0xff]  ;;  %v2263_v12 = vsel %vm2227_vm8, %v2184_v49, %v17039_v20  ;;  %v17179_v35 = vld [vmem:[#allocation330_spill] sm:$0xff]  ;;  %v17181_v40 = vld [vmem:[#allocation332_spill] sm:$0xff] }
 0x303   : > { %v2324_v13 = vsel %vm2292_vm9, %v2259_v17, %v17177_v38  ;;  %v17178_v10 = vld [vmem:[#allocation315_spill] sm:$0xff]  ;;  %v2322_v1 = vsel %vm2292_vm9, %v2257_v57, %v17179_v35  ;;  %v2187_v22 = vsel %vm574_vm1, %v17181_v40, %v17180_v9  ;;  %v17182_v21 = vld [vmem:[#allocation328_spill] sm:$0xff]  ;;  %v17184_v38 = vld [vmem:[#allocation342_spill] sm:$0xff]  ;;  %v2267_v49 = vsel %vm2227_vm8, %v2190_v34, %v17042_v25 }
 0x304   : > { %v11040_v11 = vsel %vm2422_vm11, %v2379_v63, %v17178_v10  ;;  %v11051_v17 = vsel %vm2422_vm11, %v2383_v44, %v17182_v21  ;;  %v2389_v63 = vsel %vm2357_vm10, %v2324_v13, %v17184_v38  ;;  %v17185_v10 = vld [vmem:[#allocation349_spill] sm:$0xff]  ;;  %v17186_v9 = vld [vmem:[#allocation355_spill] sm:$0xff]  ;;  %v17188_v44 = vld [vmem:[#allocation358_spill] sm:$0xff]  ;;  %3171 = vrot.lane.b32.xlu1 %v9414_v0, %s8043_s13  ;;  %v2265_v34 = vsel %vm2227_vm8, %v2187_v22, %v17032_v50 }
 0x305   : > { %v2328_v14 = vsel %vm2292_vm9, %v2263_v12, %v17185_v10  ;;  %v2387_v57 = vsel %vm2357_vm10, %v2322_v1, %v17186_v9  ;;  %v17187_v21 = vld [vmem:[#allocation363_spill] sm:$0xff]  ;;  %v17189_v40 = vld [vmem:[#allocation333_spill] sm:$0xff]  ;;  %v17190_v12 = vld [vmem:[#allocation366_spill] sm:$0xff]  ;;  %v2489_v1 = vsel %vm2487_vm12, %v10903_v24, %v10524_v18  ;;  %v2072_v10 = vpop.permute.xlu0 %2071 }
 0x306   : > { %v2196_v35 = vsel %vm574_vm1, %v17188_v44, %v17187_v21  ;;  %v2326_v13 = vsel %vm2292_vm9, %v2261_v28, %v17189_v40  ;;  %v17191_v9 = vld [vmem:[#allocation345_spill] sm:$0xff]  ;;  %v17192_v28 = vld [vmem:[#allocation354_spill] sm:$0xff]  ;;  %v17197_v24 = vld [vmem:[#allocation372_spill] sm:$0xff] }
 0x307   : > { %v2391_v38 = vsel %vm2357_vm10, %v2326_v13, %v17190_v12  ;;  %v11081_v21 = vsel %vm2422_vm11, %v2389_v63, %v17191_v9  ;;  %v2332_v44 = vsel %vm2292_vm9, %v2267_v49, %v17192_v28  ;;  %v17193_v40 = vld [vmem:[#allocation357_spill] sm:$0xff]  ;;  %v17194_v22 = vld [vmem:[#allocation450_spill] sm:$0xff]  ;;  %v11089_v13 = vpop.permute.xlu1 %2056  ;;  %v17196_v12 = vld [vmem:[#allocation359_spill] sm:$0xff]  ;;  %v2193_v63 = vsel %vm574_vm1, %v17198_v59, %v17197_v24 }
 0x308   : > { %v2393_v25 = vsel %vm2357_vm10, %v2328_v14, %v17193_v40  ;;  %v2554_v20 = vsel %vm2552_vm14, %v2489_v1, %v17194_v22  ;;  %17195 = vst [vmem:[#allocation175_spill] sm:$0xff] %v11089_v13  ;;  %v17199_v9 = vld [vmem:[#allocation347_spill] sm:$0xff]  ;;  %v17200_v14 = vld [vmem:[#allocation326_spill] sm:$0xff]  ;;  %v17201_v1 = vld [vmem:[#allocation365_spill] sm:$0xff]  ;;  %v11113_v59 = vsel %vm2422_vm11, %v2391_v38, %v17204_v39 }
 0x309   : > { %v11093_v18 = vsel %vm2422_vm11, %v2393_v25, %v17196_v12  ;;  %v11100_v0 = vsel %vm2422_vm11, %v2387_v57, %v17199_v9  ;;  %v2619_v49 = vsel %vm2617_vm13, %v2554_v20, %v2068_v61  ;;  %3185 = vrot.lane.b32.xlu0 %v17200_v14, %s8043_s13  ;;  %v2397_v28 = vsel %vm2357_vm10, %v2332_v44, %v17201_v1  ;;  %v17202_v40 = vld [vmem:[#allocation272_spill] sm:$0xff]  ;;  %v17203_v22 = vld [vmem:[#allocation362_spill] sm:$0xff]  ;;  %v17205_v57 = vld [vmem:[#allocation221_spill] sm:$0xff]  ;;  %v2076_v39 = vpop.permute.xlu0 %2075 }
 0x30a   : > { %v2271_v25 = vsel %vm2227_vm8, %v2196_v35, %v17202_v40  ;;  %v2330_v12 = vsel %vm2292_vm9, %v2265_v34, %v17203_v22  ;;  %3175 = vrot.lane.b32.xlu1 %v17205_v57, %s8043_s13  ;;  %v17206_v20 = vld [vmem:[#allocation369_spill] sm:$0xff]  ;;  %v17207_v24 = vld [vmem:[#allocation371_spill] sm:$0xff]  ;;  %v17208_v9 = vld [vmem:[#allocation368_spill] sm:$0xff]  ;;  %v2684_v54 = vshll.u32 %v2619_v49, 16 }
 0x30b   : > { %v2336_v61 = vsel %vm2292_vm9, %v2271_v25, %v17206_v20  ;;  %v2202_v44 = vsel %vm574_vm1, %v17208_v9, %v17207_v24  ;;  %v17209_v1 = vld [vmem:[#allocation384_spill] sm:$0xff]  ;;  %v17210_v14 = vld [vmem:[#allocation377_spill] sm:$0xff]  ;;  %v17211_v40 = vld [vmem:[#allocation419_spill] sm:$0xff]  ;;  %v11134_v24 = vpop.permute.xlu1 %7912 }
 0x30c   : > { %v2199_v35 = vsel %vm574_vm1, %v17210_v14, %v17209_v1  ;;  %v2493_v34 = vsel %vm2487_vm12, %v10917_v31, %v17211_v40  ;;  %v17212_v38 = vld [vmem:[#allocation278_spill] sm:$0xff]  ;;  %v17213_v57 = vld [vmem:[#allocation376_spill] sm:$0xff]  ;;  %17215 = vst [vmem:[#allocation3_spill] sm:$0xff] %v11134_v24  ;;  %v17216_v9 = vld [vmem:[#allocation367_spill] sm:$0xff] }
 0x30d   : > { %v2269_v22 = vsel %vm2227_vm8, %v2193_v63, %v17212_v38  ;;  %v2395_v15 = vsel %vm2357_vm10, %v2330_v12, %v17213_v57  ;;  %v17214_v25 = vld [vmem:[#allocation452_spill] sm:$0xff]  ;;  %v11138_v14 = vsel %vm2422_vm11, %v2397_v28, %v17216_v9  ;;  %v17217_v1 = vld [vmem:[#allocation373_spill] sm:$0xff]  ;;  %v17218_v40 = vld [vmem:[#allocation374_spill] sm:$0xff] }
 0x30e   : > { %v2558_v20 = vsel %vm2552_vm14, %v2493_v34, %v17214_v25  ;;  %v2401_v31 = vsel %vm2357_vm10, %v2336_v61, %v17217_v1  ;;  %v2334_v37 = vsel %vm2292_vm9, %v2269_v22, %v17218_v40  ;;  %v17219_v12 = vld [vmem:[#allocation356_spill] sm:$0xff]  ;;  %v17220_v57 = vld [vmem:[#allocation375_spill] sm:$0xff]  ;;  %v17223_v24 = vld [vmem:[#allocation386_spill] sm:$0xff] }
 0x30f   : > { %v2623_v63 = vsel %vm2617_vm13, %v2558_v20, %v2072_v10  ;;  %3189 = vrot.lane.b32.xlu0 %v17219_v12, %s8043_s13  ;;  %v11149_v34 = vsel %vm2422_vm11, %v2401_v31, %v17220_v57  ;;  %v17221_v25 = vld [vmem:[#allocation292_spill] sm:$0xff]  ;;  %v2399_v61 = vsel %vm2357_vm10, %v2334_v37, %v17223_v24  ;;  %v17224_v22 = vld [vmem:[#allocation263_spill] sm:$0xff]  ;;  %v17226_v1 = vld [vmem:[#allocation413_spill] sm:$0xff]  ;;  %v2070_v13 = vpop.permute.xlu1 %2069 }
 0x310   : > { %v2275_v46 = vsel %vm2227_vm8, %v2202_v44, %v17221_v25  ;;  %v17222_v28 = vld [vmem:[#allocation296_spill] sm:$0xff]  ;;  %3179 = vrot.lane.b32.xlu1 %v17224_v22, %s8043_s13  ;;  %v17225_v10 = vld [vmem:[#allocation383_spill] sm:$0xff]  ;;  %v2491_v31 = vsel %vm2487_vm12, %v10847_v23, %v17226_v1  ;;  %v17227_v40 = vld [vmem:[#allocation421_spill] sm:$0xff]  ;;  %v2080_v25 = vpop.permute.xlu0 %2079 }
 0x311   : > { %v2273_v9 = vsel %vm2227_vm8, %v2199_v35, %v17222_v28  ;;  %v2340_v20 = vsel %vm2292_vm9, %v2275_v46, %v17225_v10  ;;  %v2497_v44 = vsel %vm2487_vm12, %v10929_v51, %v17227_v40  ;;  %v17228_v57 = vld [vmem:[#allocation370_spill] sm:$0xff]  ;;  %v17229_v37 = vld [vmem:[#allocation444_spill] sm:$0xff]  ;;  %v2686_v46 = vrot.slane %v2684_v54, 1 }
 0x312   : > { %v11169_v35 = vsel %vm2422_vm11, %v2395_v15, %v17228_v57  ;;  %v2556_v24 = vsel %vm2552_vm14, %v2491_v31, %v17229_v37  ;;  %v17230_v12 = vld [vmem:[#allocation454_spill] sm:$0xff]  ;;  %v2694_v10 = vshll.u32 %v2623_v63, 16  ;;  %v17231_v19 = vld [vmem:[#allocation380_spill] sm:$0xff]  ;;  %v17234_v57 = vld [vmem:[#allocation415_spill] sm:$0xff] }
 0x313   : > { %v2562_v22 = vsel %vm2552_vm14, %v2497_v44, %v17230_v12  ;;  %v11177_v23 = vsel %vm2292_vm9, %v2273_v9, %v17231_v19  ;;  %v17232_v1 = vld [vmem:[#allocation378_spill] sm:$0xff]  ;;  %v2621_v40 = vsel %vm2617_vm13, %v2556_v24, %v2070_v13  ;;  %v2495_v54 = vsel %vm2487_vm12, %v10893_v62, %v17234_v57  ;;  %v17235_v12 = vld [vmem:[#allocation423_spill] sm:$0xff]  ;;  %v17237_v37 = vld [vmem:[#allocation385_spill] sm:$0xff] }
 0x314   : > { %v11181_v51 = vsel %vm2422_vm11, %v2399_v61, %v17232_v1  ;;  %v2627_v15 = vsel %vm2617_vm13, %v2562_v22, %v2076_v39  ;;  %v17233_v31 = vld [vmem:[#allocation446_spill] sm:$0xff]  ;;  %v2501_v19 = vsel %vm2487_vm12, %v10978_v4, %v17235_v12  ;;  %v2682_v9 = vshrl.u32 %v2619_v49, 16  ;;  %v17238_v39 = vld [vmem:[#allocation388_spill] sm:$0xff]  ;;  %v17239_v22 = vld [vmem:[#allocation447_spill] sm:$0xff]  ;;  %v2084_v62 = vpop.permute.xlu0 %2083 }
 0x315   : > { %3197 = vrot.lane.b32.xlu0 %v17233_v31, %s8046_s18  ;;  %v2688_v44 = vshll.u32 %v2621_v40, 16  ;;  %v17236_v61 = vld [vmem:[#allocation310_spill] sm:$0xff]  ;;  %v2208_v13 = vsel %vm574_vm1, %v17238_v39, %v17237_v37  ;;  %v2560_v24 = vsel %vm2552_vm14, %v2495_v54, %v17239_v22  ;;  %v17240_v1 = vld [vmem:[#allocation456_spill] sm:$0xff]  ;;  %v2696_v6 = vrot.slane %v2694_v10, 1  ;;  %v2074_v40 = vpop.permute.xlu1 %2073  ;;  %v17241_v12 = vld [vmem:[#allocation387_spill] sm:$0xff] }
 0x316   : > { %3183 = vrot.lane.b32.xlu1 %v17236_v61, %s8043_s13  ;;  %v2566_v47 = vsel %vm2552_vm14, %v2501_v19, %v17240_v1  ;;  %v2687_v57 = vor.u32 %v2686_v46, %v2682_v9  ;;  %v2704_v4 = vshll.u32 %v2627_v15, 16  ;;  %v2405_v61 = vsel %vm2357_vm10, %v2340_v20, %v17241_v12  ;;  %v17243_v19 = vld [vmem:[#allocation425_spill] sm:$0xff] }
 0x317   : > { %v2690_v49 = vrot.slane %v2688_v44, 1  ;;  %v2499_v37 = vsel %vm2487_vm12, %v10897_v55, %v17242_v29  ;;  %v2631_v39 = vsel %vm2617_vm13, %v2566_v47, %v2080_v25  ;;  %v2625_v54 = vsel %vm2617_vm13, %v2560_v24, %v2074_v40  ;;  %v17244_v44 = vld [vmem:[#allocation348_spill] sm:$0xff]  ;;  %v17245_v22 = vld [vmem:[#allocation389_spill] sm:$0xff] }
 0x318   : > { %v2505_v46 = vsel %vm2487_vm12, %v11002_v58, %v17243_v19  ;;  %v2692_v10 = vshrl.u32 %v2623_v63, 16  ;;  %v2698_v9 = vshll.u32 %v2625_v54, 16  ;;  %v11219_v55 = vsel %vm2422_vm11, %v2405_v61, %v17245_v22  ;;  %v17246_v47 = vld [vmem:[#allocation316_spill] sm:$0xff]  ;;  %v17247_v25 = vld [vmem:[#allocation449_spill] sm:$0xff]  ;;  %v2088_v63 = vpop.permute.xlu0 %2087  ;;  %v17249_v19 = vld [vmem:[#allocation394_spill] sm:$0xff] }
 0x319   : > { %3201 = vrot.lane.b32.xlu0 %v17004_v48, %s8046_s18  ;;  %v2691_v20 = vsel %vm16452_vm6, %v2687_v57, %v2690_v49  ;;  %v2279_v29 = vsel %vm2227_vm8, %v2208_v13, %v17246_v47  ;;  %v2564_v24 = vsel %vm2552_vm14, %v2499_v37, %v17247_v25  ;;  %v17248_v1 = vld [vmem:[#allocation153_spill] sm:$0xff]  ;;  %v2706_v12 = vrot.slane %v2704_v4, 1  ;;  %v2078_v49 = vpop.permute.xlu1 %2077  ;;  %v17250_v61 = vld [vmem:[#allocation379_spill] sm:$0xff]  ;;  %v17251_v48 = vld [vmem:[#allocation418_spill] sm:$0xff] }
 0x31a   : > { %3187 = vrot.lane.b32.xlu1 %v17244_v44, %s8043_s13  ;;  %v2570_v58 = vsel %vm2552_vm14, %v2505_v46, %v17248_v1  ;;  %7759 = vmatprep.mubr.msk.bf16.mxu1 %vm2869_vm15, %v2691_v20  ;;  %v2697_v40 = vor.u32 %v2696_v6, %v2692_v10  ;;  %v2714_v54 = vshll.u32 %v2631_v39, 16  ;;  %v2700_v57 = vrot.slane %v2698_v9, 1  ;;  %v17252_v6 = vld [vmem:[#allocation427_spill] sm:$0xff] }
 0x31b   : > { %v2205_v22 = vsel %vm574_vm1, %v17250_v61, %v17249_v19  ;;  %v2503_v13 = vsel %vm2487_vm12, %v10957_v60, %v17251_v48  ;;  %v2635_v37 = vsel %vm2617_vm13, %v2570_v58, %v2084_v62  ;;  %v2629_v46 = vsel %vm2617_vm13, %v2564_v24, %v2078_v49  ;;  %v17253_v25 = vld [vmem:[#allocation391_spill] sm:$0xff]  ;;  %v17254_v60 = vld [vmem:[#allocation393_spill] sm:$0xff]  ;;  %v17255_v62 = vld [vmem:[#allocation392_spill] sm:$0xff] }
 0x31c   : > { %v2509_v4 = vsel %vm2487_vm12, %v11040_v11, %v17252_v6  ;;  %v2702_v10 = vshrl.u32 %v2627_v15, 16  ;;  %v2701_v9 = vsel %vm16452_vm6, %v2697_v40, %v2700_v57  ;;  %v2708_v20 = vshll.u32 %v2629_v46, 16  ;;  %v17256_v1 = vld [vmem:[#allocation451_spill] sm:$0xff]  ;;  %v2092_v15 = vpop.permute.xlu0 %2091  ;;  %v17258_v6 = vld [vmem:[#allocation320_spill] sm:$0xff] }
 0x31d   : > { %3205 = vrot.lane.b32.xlu0 %v17012_v26, %s8046_s18  ;;  %v2344_v48 = vsel %vm2292_vm9, %v2279_v29, %v17253_v25  ;;  %v2214_v24 = vsel %vm574_vm1, %v17255_v62, %v17254_v60  ;;  %v2568_v58 = vsel %vm2552_vm14, %v2503_v13, %v17256_v1  ;;  %v17257_v49 = vld [vmem:[#allocation139_spill] sm:$0xff]  ;;  %7760 = vmatmul.mubr.msk.bf16.vlgmr.msra.gmra.mxu1 %vm2869_vm15, %v2701_v9  ;;  %v2716_v57 = vrot.slane %v2714_v54, 1  ;;  %v2082_v46 = vpop.permute.xlu1 %2081  ;;  %v17259_v25 = vld [vmem:[#allocation420_spill] sm:$0xff]  ;;  %v17263_v1 = vld [vmem:[#allocation453_spill] sm:$0xff] }
 0x31e   : > { %3195 = vrot.lane.b32.xlu1 %v17233_v31, %s8046_s18  ;;  %v2574_v11 = vsel %vm2552_vm14, %v2509_v4, %v17257_v49  ;;  %v2707_v40 = vor.u32 %v2706_v12, %v2702_v10  ;;  %v2724_v19 = vshll.u32 %v2635_v37, 16  ;;  %v2710_v61 = vrot.slane %v2708_v20, 1  ;;  %v17260_v4 = vld [vmem:[#allocation429_spill] sm:$0xff]  ;;  %v17261_v9 = vld [vmem:[#allocation331_spill] sm:$0xff] }
 0x31f   : > { %v2277_v29 = vsel %vm2227_vm8, %v2205_v22, %v17258_v6  ;;  %v2507_v60 = vsel %vm2487_vm12, %v10969_v32, %v17259_v25  ;;  %v2639_v13 = vsel %vm2617_vm13, %v2574_v11, %v2088_v63  ;;  %v2633_v62 = vsel %vm2617_vm13, %v2568_v58, %v2082_v46  ;;  %v17262_v63 = vld [vmem:[#allocation396_spill] sm:$0xff]  ;;  %v17264_v49 = vld [vmem:[#allocation459_spill] sm:$0xff] }
 0x320   : > { %v2513_v12 = vsel %vm2487_vm12, %v11051_v17, %v17260_v4  ;;  %v2712_v54 = vshrl.u32 %v2631_v39, 16  ;;  %v2718_v10 = vshll.u32 %v2633_v62, 16  ;;  %v2711_v22 = vsel %vm16452_vm6, %v2707_v40, %v2710_v61  ;;  %v2096_v39 = vpop.permute.xlu0 %2095  ;;  %v17265_v62 = vld [vmem:[#allocation382_spill] sm:$0xff] }
 0x321   : > { %3209 = vrot.lane.b32.xlu0 %v17020_v2, %s8046_s18  ;;  %v2283_v32 = vsel %vm2227_vm8, %v2214_v24, %v17261_v9  ;;  %v2403_v20 = vsel %vm2357_vm10, %v11177_v23, %v17262_v63  ;;  %v2572_v58 = vsel %vm2552_vm14, %v2507_v60, %v17263_v1  ;;  %v2578_v17 = vsel %vm2552_vm14, %v2513_v12, %v17264_v49  ;;  %v2086_v61 = vpop.permute.xlu1 %2085  ;;  %v17266_v4 = vld [vmem:[#allocation422_spill] sm:$0xff]  ;;  %v17270_v1 = vld [vmem:[#allocation455_spill] sm:$0xff] }
 0x322   : > { %3199 = vrot.lane.b32.xlu1 %v17102_v42, %s8046_s18  ;;  %7763 = vmatprep.mubr.msk.bf16.mxu1 %vm2869_vm15, %v2711_v22  ;;  %v2717_v11 = vor.u32 %v2716_v57, %v2712_v54  ;;  %v2726_v46 = vrot.slane %v2724_v19, 1  ;;  %v2734_v25 = vshll.u32 %v2639_v13, 16  ;;  %v2720_v40 = vrot.slane %v2718_v10, 1  ;;  %v17267_v57 = vld [vmem:[#allocation431_spill] sm:$0xff]  ;;  %v17271_v49 = vld [vmem:[#allocation194_spill] sm:$0xff] }
 0x323   : > { %v11281_v24 = vsel %vm2292_vm9, %v2277_v29, %v17265_v62  ;;  %v2511_v23 = vsel %vm2487_vm12, %v11019_v8, %v17266_v4  ;;  %v2643_v60 = vsel %vm2617_vm13, %v2578_v17, %v2092_v15  ;;  %v2637_v12 = vsel %vm2617_vm13, %v2572_v58, %v2086_v61  ;;  %v17268_v22 = vld [vmem:[#allocation395_spill] sm:$0xff]  ;;  %v17269_v15 = vld [vmem:[#allocation390_spill] sm:$0xff] }
 0x324   : > { %v2517_v19 = vsel %vm2487_vm12, %v11100_v0, %v17267_v57  ;;  %v2722_v54 = vshrl.u32 %v2635_v37, 16  ;;  %v2728_v10 = vshll.u32 %v2637_v12, 16  ;;  %v2721_v29 = vsel %vm16452_vm6, %v2717_v11, %v2720_v40  ;;  %v2100_v37 = vpop.permute.xlu0 %2099  ;;  %v17273_v12 = vld [vmem:[#allocation424_spill] sm:$0xff] }
 0x325   : > { %3213 = vrot.lane.b32.xlu0 %v17028_v45, %s8046_s18  ;;  %v11298_v8 = vsel %vm2292_vm9, %v2283_v32, %v17268_v22  ;;  %v11302_v63 = vsel %vm2422_vm11, %v2403_v20, %v17269_v15  ;;  %v2576_v58 = vsel %vm2552_vm14, %v2511_v23, %v17270_v1  ;;  %v2582_v0 = vsel %vm2552_vm14, %v2517_v19, %v17271_v49  ;;  %v2090_v62 = vpop.permute.xlu1 %2089  ;;  %v17272_v32 = vld [vmem:[#allocation397_spill] sm:$0xff] }
 0x326   : > { %3203 = vrot.lane.b32.xlu1 %v17008_v36, %s8046_s18  ;;  %7764 = vmatmul.mubr.msk.bf16.gmra.mxu1 %vm2869_vm15, %v2721_v29  ;;  %v2727_v17 = vor.u32 %v2726_v46, %v2722_v54  ;;  %v2736_v61 = vrot.slane %v2734_v25, 1  ;;  %v2744_v11 = vshll.u32 %v2643_v60, 16  ;;  %v2730_v40 = vrot.slane %v2728_v10, 1  ;;  %v17274_v19 = vld [vmem:[#allocation433_spill] sm:$0xff]  ;;  %v17275_v10 = vld [vmem:[#allocation399_spill] sm:$0xff] }
 0x327   : > { %v2409_v4 = vsel %vm2357_vm10, %v2344_v48, %v17272_v32  ;;  %v2515_v20 = vsel %vm2487_vm12, %v11032_v3, %v17273_v12  ;;  %v2647_v23 = vsel %vm2617_vm13, %v2582_v0, %v2096_v39  ;;  %v2641_v57 = vsel %vm2617_vm13, %v2576_v58, %v2090_v62  ;;  %v17276_v39 = vld [vmem:[#allocation408_spill] sm:$0xff]  ;;  %v17277_v29 = vld [vmem:[#allocation381_spill] sm:$0xff]  ;;  %v17279_v62 = vld [vmem:[#allocation403_spill] sm:$0xff] }
 0x328   : > { %v2521_v46 = vsel %vm2487_vm12, %v11113_v59, %v17274_v19  ;;  %v2732_v25 = vshrl.u32 %v2639_v13, 16  ;;  %v2738_v54 = vshll.u32 %v2641_v57, 16  ;;  %v2731_v48 = vsel %vm16452_vm6, %v2727_v17, %v2730_v40  ;;  %v17278_v15 = vld [vmem:[#allocation457_spill] sm:$0xff]  ;;  %v2104_v13 = vpop.permute.xlu0 %2103  ;;  %v17280_v32 = vld [vmem:[#allocation398_spill] sm:$0xff] }
 0x329   : > { %3217 = vrot.lane.b32.xlu0 %v17212_v38, %s8046_s18  ;;  %v11326_v3 = vsel %vm2422_vm11, %v2409_v4, %v17275_v10  ;;  %v2211_v22 = vsel %vm574_vm1, %v17277_v29, %v17276_v39  ;;  %v2580_v1 = vsel %vm2552_vm14, %v2515_v20, %v17278_v15  ;;  %v2586_v59 = vsel %vm2552_vm14, %v2521_v46, %v10797_v30  ;;  %v2094_v40 = vpop.permute.xlu1 %2093  ;;  %v17281_v12 = vld [vmem:[#allocation426_spill] sm:$0xff] }
 0x32a   : > { %3207 = vrot.lane.b32.xlu1 %v17016_v56, %s8046_s18  ;;  %7767 = vmatprep.mubr.msk.bf16.mxu1 %vm2869_vm15, %v2731_v48  ;;  %v2737_v58 = vor.u32 %v2736_v61, %v2732_v25  ;;  %v2746_v49 = vrot.slane %v2744_v11, 1  ;;  %v2754_v0 = vshll.u32 %v2647_v23, 16  ;;  %v2740_v17 = vrot.slane %v2738_v54, 1  ;;  %v17282_v61 = vld [vmem:[#allocation435_spill] sm:$0xff]  ;;  %v17283_v54 = vld [vmem:[#allocation334_spill] sm:$0xff]  ;;  %v17285_v48 = vld [vmem:[#allocation401_spill] sm:$0xff] }
 0x32b   : > { %v11339_v4 = vsel %vm574_vm1, %v17280_v32, %v17279_v62  ;;  %v2519_v20 = vsel %vm2487_vm12, %v11081_v21, %v17281_v12  ;;  %v2651_v57 = vsel %vm2617_vm13, %v2586_v59, %v2100_v37  ;;  %v2645_v30 = vsel %vm2617_vm13, %v2580_v1, %v2094_v40  ;;  %v17284_v37 = vld [vmem:[#allocation414_spill] sm:$0xff]  ;;  %v17287_v40 = vld [vmem:[#allocation428_spill] sm:$0xff]  ;;  %v17288_v12 = vld [vmem:[#allocation353_spill] sm:$0xff] }
 0x32c   : > { %v2525_v11 = vsel %vm2487_vm12, %v11169_v35, %v17282_v61  ;;  %v2742_v19 = vshrl.u32 %v2643_v60, 16  ;;  %v2748_v46 = vshll.u32 %v2645_v30, 16  ;;  %v2741_v25 = vsel %vm16452_vm6, %v2737_v58, %v2740_v17  ;;  %v17286_v39 = vld [vmem:[#allocation458_spill] sm:$0xff]  ;;  %v2108_v60 = vpop.permute.xlu0 %2107  ;;  %v17290_v30 = vld [vmem:[#allocation437_spill] sm:$0xff] }
 0x32d   : > { %3221 = vrot.lane.b32.xlu0 %v17258_v6, %s8046_s18  ;;  %v2281_v21 = vsel %vm2227_vm8, %v2211_v22, %v17283_v54  ;;  %v2217_v10 = vsel %vm574_vm1, %v17285_v48, %v17284_v37  ;;  %v2584_v29 = vsel %vm2552_vm14, %v2519_v20, %v17286_v39  ;;  %v2590_v35 = vsel %vm2552_vm14, %v2525_v11, %v10856_v16  ;;  %v2098_v17 = vpop.permute.xlu1 %2097 }
 0x32e   : > { %3211 = vrot.lane.b32.xlu1 %v17024_v53, %s8046_s18  ;;  %7768 = vmatmul.mubr.msk.bf16.gmra.mxu1 %vm2869_vm15, %v2741_v25  ;;  %v2747_v15 = vor.u32 %v2746_v49, %v2742_v19  ;;  %v2756_v1 = vrot.slane %v2754_v0, 1  ;;  %v2764_v59 = vshll.u32 %v2651_v57, 16  ;;  %v2750_v58 = vrot.slane %v2748_v46, 1  ;;  %v17292_v46 = vld [vmem:[#allocation148_spill] sm:$0xff] }
 0x32f   : > { %v2523_v22 = vsel %vm2487_vm12, %v11093_v18, %v17287_v40  ;;  %v2655_v62 = vsel %vm2617_vm13, %v2590_v35, %v2104_v13  ;;  %v2649_v32 = vsel %vm2617_vm13, %v2584_v29, %v2098_v17  ;;  %v17289_v16 = vmov 0.0|0.0   ;;  %v17291_v13 = vld [vmem:[#allocation410_spill] sm:$0xff] }
 0x330   : > { %v11372_v20 = vrot.slane %v17289_v16, 2  ;;  %v2529_v49 = vsel %vm2487_vm12, %v11181_v51, %v17290_v30  ;;  %v2752_v0 = vshrl.u32 %v2647_v23, 16  ;;  %v2758_v61 = vshll.u32 %v2649_v32, 16  ;;  %v2112_v23 = vpop.permute.xlu0 %2111  ;;  %v17296_v32 = vld [vmem:[#allocation164_spill] sm:$0xff] }
 0x331   : > { %3225 = vrot.lane.b32.xlu0 %v17288_v12, %s8046_s18  ;;  %v2751_v18 = vsel %vm16452_vm6, %v2747_v15, %v2750_v58  ;;  %v2407_v11 = vsel %vm2357_vm10, %v11281_v24, %v17291_v13  ;;  %v2285_v19 = vsel %vm2227_vm8, %v2217_v10, %v17288_v12  ;;  %v2588_v25 = vsel %vm2552_vm14, %v2523_v22, %v17292_v46  ;;  %v2102_v35 = vpop.permute.xlu1 %2101  ;;  %v17293_v15 = vld [vmem:[#allocation402_spill] sm:$0xff] }
 0x332   : > { %3215 = vrot.lane.b32.xlu1 %v17032_v50, %s8046_s18  ;;  %v2594_v51 = vsel %vm2552_vm14, %v2529_v49, %v10905_v43  ;;  %7771 = vmatprep.mubr.msk.bf16.mxu1 %vm2869_vm15, %v2751_v18  ;;  %v2757_v37 = vor.u32 %v2756_v1, %v2752_v0  ;;  %v2766_v48 = vrot.slane %v2764_v59, 1  ;;  %v2774_v39 = vshll.u32 %v2655_v62, 16  ;;  %v17294_v58 = vld [vmem:[#allocation430_spill] sm:$0xff]  ;;  %v17295_v43 = vld [vmem:[#allocation439_spill] sm:$0xff] }
 0x333   : > { %v2760_v29 = vrot.slane %v2758_v61, 1  ;;  %v2346_v24 = vsel %vm2292_vm9, %v2281_v21, %v17293_v15  ;;  %v2527_v10 = vsel %vm2487_vm12, %v11138_v14, %v17294_v58  ;;  %v2659_v17 = vsel %vm2617_vm13, %v2594_v51, %v2108_v60  ;;  %v17297_v60 = vld [vmem:[#allocation400_spill] sm:$0xff]  ;;  %v17298_v49 = vld [vmem:[#allocation98_spill] sm:$0xff] }
 0x334   : > { %v2653_v40 = vsel %vm2617_vm13, %v2588_v25, %v2102_v35  ;;  %v2533_v1 = vsel %vm2487_vm12, %v11302_v63, %v17295_v43  ;;  %v2762_v59 = vshrl.u32 %v2651_v57, 16  ;;  %v2350_v14 = vsel %vm2292_vm9, %v2285_v19, %v17296_v32  ;;  %v2116_v63 = vpop.permute.xlu0 %2115  ;;  %v17299_v51 = vld [vmem:[#allocation416_spill] sm:$0xff]  ;;  %v17302_v58 = vld [vmem:[#allocation346_spill] sm:$0xff] }
 0x335   : > { %3393 = vrot.lane.b32.xlu0 %v11372_v20, %s8047_s21  ;;  %v2768_v22 = vshll.u32 %v2653_v40, 16  ;;  %v2761_v21 = vsel %vm16452_vm6, %v2757_v37, %v2760_v29  ;;  %v2472_v30 = vsel %vm2422_vm11, %v2407_v11, %v17297_v60  ;;  %v2592_v0 = vsel %vm2552_vm14, %v2527_v10, %v17298_v49  ;;  %v2106_v25 = vpop.permute.xlu1 %2105  ;;  %v17300_v37 = vld [vmem:[#allocation432_spill] sm:$0xff]  ;;  %v17304_v60 = vld [vmem:[#allocation434_spill] sm:$0xff] }
 0x336   : > { %3219 = vrot.lane.b32.xlu1 %v17222_v28, %s8046_s18  ;;  %v2598_v61 = vsel %vm2552_vm14, %v2533_v1, %v10953_v7  ;;  %7772 = vmatmul.mubr.msk.bf16.gmra.mxu1 %vm2869_vm15, %v2761_v21  ;;  %v2767_v57 = vor.u32 %v2766_v48, %v2762_v59  ;;  %v2776_v18 = vrot.slane %v2774_v39, 1  ;;  %v2784_v13 = vshll.u32 %v2659_v17, 16  ;;  %v17301_v7 = vld [vmem:[#allocation441_spill] sm:$0xff] }
 0x337   : > { %v2770_v46 = vrot.slane %v2768_v22, 1  ;;  %v2411_v19 = vsel %vm2357_vm10, %v2346_v24, %v17299_v51  ;;  %v2531_v11 = vsel %vm2487_vm12, %v11149_v34, %v17300_v37  ;;  %v2663_v29 = vsel %vm2617_vm13, %v2598_v61, %v2112_v23  ;;  %v17303_v23 = vld [vmem:[#allocation196_spill] sm:$0xff] }
 0x338   : > { %v2657_v35 = vsel %vm2617_vm13, %v2592_v0, %v2106_v25  ;;  %v2537_v48 = vsel %vm2487_vm12, %v2472_v30, %v17301_v7  ;;  %v2772_v39 = vshrl.u32 %v2655_v62, 16  ;;  %v2287_v34 = vsel %vm2227_vm8, %v11339_v4, %v17302_v58  ;;  %v2120_v62 = vpop.permute.xlu0 %2119  ;;  %v17305_v30 = vld [vmem:[#allocation412_spill] sm:$0xff]  ;;  %v17388_v58 = vld [vmem:[#allocation186_spill] sm:$0xff] }
 0x339   : > { %3397 = vrot.lane.b32.xlu0 %v10768_v33, %s8047_s21  ;;  %v2778_v15 = vshll.u32 %v2657_v35, 16  ;;  %v2771_v24 = vsel %vm16452_vm6, %v2767_v57, %v2770_v46  ;;  %v2415_v10 = vsel %vm2357_vm10, %v2350_v14, %v17303_v23  ;;  %v2596_v40 = vsel %vm2552_vm14, %v2531_v11, %v10789_v41  ;;  %v2110_v32 = vpop.permute.xlu1 %2109  ;;  %v17309_v51 = vld [vmem:[#allocation204_spill] sm:$0xff]  ;;  %v17312_v23 = vld [vmem:[#allocation201_spill] sm:$0xff] }
 0x33a   : > { %3223 = vrot.lane.b32.xlu1 %v17283_v54, %s8046_s18  ;;  %v2602_v43 = vsel %vm2552_vm14, %v2537_v48, %v11004_v27  ;;  %7775 = vmatprep.mubr.msk.bf16.mxu1 %vm2869_vm15, %v2771_v24  ;;  %v2777_v1 = vor.u32 %v2776_v18, %v2772_v39  ;;  %v2786_v59 = vrot.slane %v2784_v13, 1  ;;  %v2794_v22 = vshll.u32 %v2663_v29, 16  ;;  %v17306_v27 = vld [vmem:[#allocation443_spill] sm:$0xff]  ;;  %v17307_v18 = vld [vmem:[#allocation405_spill] sm:$0xff]  ;;  %v17310_v39 = vld [vmem:[#allocation436_spill] sm:$0xff] }
 0x33b   : > { %v2780_v21 = vrot.slane %v2778_v15, 1  ;;  %v2535_v4 = vsel %vm2487_vm12, %v11219_v55, %v17304_v60  ;;  %v2476_v14 = vsel %vm2422_vm11, %v2411_v19, %v17305_v30  ;;  %v2667_v41 = vsel %vm2617_vm13, %v2602_v43, %v2116_v63  ;;  %v17308_v63 = vld [vmem:[#allocation155_spill] sm:$0xff]  ;;  %v17311_v15 = vld [vmem:[#allocation404_spill] sm:$0xff] }
 0x33c   : > { %v2661_v49 = vsel %vm2617_vm13, %v2596_v40, %v2110_v32  ;;  %v2541_v0 = vsel %vm2487_vm12, %v2476_v14, %v17306_v27  ;;  %v2782_v61 = vshrl.u32 %v2659_v17, 16  ;;  %v2413_v13 = vsel %vm2357_vm10, %v11298_v8, %v17307_v18  ;;  %v2124_v17 = vpop.permute.xlu0 %2123  ;;  %v17313_v40 = vld [vmem:[#allocation445_spill] sm:$0xff]  ;;  %v17316_v32 = vld [vmem:[#allocation215_spill] sm:$0xff] }
 0x33d   : > { %3401 = vrot.lane.b32.xlu0 %v10780_v5, %s8047_s21  ;;  %v2788_v57 = vshll.u32 %v2661_v49, 16  ;;  %v2781_v55 = vsel %vm16452_vm6, %v2777_v1, %v2780_v21  ;;  %v2352_v46 = vsel %vm2292_vm9, %v2287_v34, %v17308_v63  ;;  %v2600_v25 = vsel %vm2552_vm14, %v2535_v4, %v10841_v52  ;;  %v2114_v48 = vpop.permute.xlu1 %2113  ;;  %v17315_v21 = vld [vmem:[#allocation407_spill] sm:$0xff]  ;;  %v17321_v63 = vld [vmem:[#allocation438_spill] sm:$0xff] }
 0x33e   : > { %3391 = vrot.lane.b32.xlu1 %v11372_v20, %s8047_s21  ;;  %v2606_v19 = vsel %vm2552_vm14, %v2541_v0, %v17309_v51  ;;  %7776 = vmatmul.mubr.msk.bf16.gmra.mxu1 %vm2869_vm15, %v2781_v55  ;;  %v2787_v37 = vor.u32 %v2786_v59, %v2782_v61  ;;  %v2796_v11 = vrot.slane %v2794_v22, 1  ;;  %v2804_v35 = vshll.u32 %v2667_v41, 16  ;;  %v17314_v22 = vld [vmem:[#allocation202_spill] sm:$0xff]  ;;  %v17317_v60 = vld [vmem:[#allocation175_spill] sm:$0xff] }
 0x33f   : > { %v2790_v7 = vrot.slane %v2788_v57, 1  ;;  %v2539_v8 = vsel %vm2487_vm12, %v11326_v3, %v17310_v39  ;;  %v2480_v24 = vsel %vm2422_vm11, %v2415_v10, %v17311_v15  ;;  %v2671_v52 = vsel %vm2617_vm13, %v2606_v19, %v2120_v62  ;;  %v17318_v30 = vld [vmem:[#allocation3_spill] sm:$0xff]  ;;  %v17319_v55 = vld [vmem:[#allocation406_spill] sm:$0xff]  ;;  %v17324_v39 = vld [vmem:[#allocation156_spill] sm:$0xff] }
 0x340   : > { %v2665_v34 = vsel %vm2617_vm13, %v2600_v25, %v2114_v48  ;;  %v2545_v43 = vsel %vm2487_vm12, %v2480_v24, %v17313_v40  ;;  %v2792_v1 = vshrl.u32 %v2663_v29, 16  ;;  %v2478_v10 = vsel %vm2422_vm11, %v2413_v13, %v17315_v21  ;;  %v2128_v49 = vpop.permute.xlu0 %2127  ;;  %v17320_v18 = vld [vmem:[#allocation191_spill] sm:$0xff]  ;;  %v17325_v15 = vld [vmem:[#allocation190_spill] sm:$0xff]  ;;  %v17326_v24 = vld [vmem:[#allocation460_spill] sm:$0xff] }
 0x341   : > { %3405 = vrot.lane.b32.xlu0 %v17312_v23, %s8047_s21  ;;  %v2798_v59 = vshll.u32 %v2665_v34, 16  ;;  %v2791_v3 = vsel %vm16452_vm6, %v2787_v37, %v2790_v7  ;;  %v2604_v62 = vsel %vm2552_vm14, %v2539_v8, %v17316_v32  ;;  %v2610_v4 = vsel %vm2552_vm14, %v2545_v43, %v17317_v60  ;;  %v2118_v57 = vpop.permute.xlu1 %2117  ;;  %v17322_v37 = vld [vmem:[#allocation160_spill] sm:$0xff]  ;;  %v17330_v60 = vld [vmem:[#allocation409_spill] sm:$0xff] }
 0x342   : > { %3395 = vrot.lane.b32.xlu1 %v17314_v22, %s8047_s21  ;;  %v7914_v14 = vunpack.i.l.bf16 %v17318_v30  ;;  %7779 = vmatprep.mubr.msk.bf16.mxu1 %vm2869_vm15, %v2791_v3  ;;  %v2797_v29 = vor.u32 %v2796_v11, %v2792_v1  ;;  %v2806_v27 = vrot.slane %v2804_v35, 1  ;;  %v2814_v0 = vshll.u32 %v2671_v52, 16  ;;  %v17323_v7 = vld [vmem:[#allocation448_spill] sm:$0xff] }
 0x343   : > { %v2800_v61 = vrot.slane %v2798_v59, 1  ;;  %v2484_v13 = vsel %vm2422_vm11, %v17320_v18, %v17319_v55  ;;  %v2543_v25 = vsel %vm2487_vm12, %v2478_v10, %v17321_v63  ;;  %v2675_v51 = vsel %vm2617_vm13, %v2610_v4, %v2124_v17  ;;  %v17327_v17 = vld [vmem:[#allocation171_spill] sm:$0xff]  ;;  %v17328_v43 = vld [vmem:[#allocation208_spill] sm:$0xff]  ;;  %v17334_v55 = vld [vmem:[#allocation298_spill] sm:$0xff] }
 0x344   : > { %v2669_v19 = vsel %vm2617_vm13, %v2604_v62, %v2118_v57  ;;  %v2549_v11 = vsel %vm2487_vm12, %v2484_v13, %v17323_v7  ;;  %v2802_v35 = vshrl.u32 %v2667_v41, 16  ;;  %v2356_v34 = vsel %vm2292_vm9, %v17326_v24, %v17325_v15  ;;  %v11506_v3 = vpop.permute.xlu0 %3115  ;;  %v17338_v7 = vld [vmem:[#allocation195_spill] sm:$0xff]  ;;  %v17341_v24 = vld [vmem:[#allocation262_spill] sm:$0xff] }
 0x345   : > { %3409 = vrot.lane.b32.xlu0 %v17322_v37, %s8047_s21  ;;  %v2808_v48 = vshll.u32 %v2669_v19, 16  ;;  %v2801_v8 = vsel %vm16452_vm6, %v2797_v29, %v2800_v61  ;;  %v2417_v40 = vsel %vm2357_vm10, %v2352_v46, %v17327_v17  ;;  %v2608_v1 = vsel %vm2552_vm14, %v2543_v25, %v17328_v43  ;;  %17329 = vst [vmem:[#allocation212_spill] sm:$0xff] %v11506_v3  ;;  %v2122_v62 = vpop.permute.xlu1 %2121  ;;  %v17331_v61 = vld [vmem:[#allocation218_spill] sm:$0xff]  ;;  %v17337_v19 = vld [vmem:[#allocation188_spill] sm:$0xff] }
 0x346   : > { %3399 = vrot.lane.b32.xlu1 %v17324_v39, %s8047_s21  ;;  %v2614_v59 = vsel %vm2552_vm14, %v2549_v11, %v7914_v14  ;;  %7780 = vmatmul.mubr.msk.bf16.gmra.mxu1 %vm2869_vm15, %v2801_v8  ;;  %v2807_v41 = vor.u32 %v2806_v27, %v2802_v35  ;;  %v2816_v21 = vrot.slane %v2814_v0, 1  ;;  %v2824_v10 = vshll.u32 %v2675_v51, 16  ;;  %v17332_v14 = vld [vmem:[#allocation307_spill] sm:$0xff]  ;;  %v17336_v0 = vld [vmem:[#allocation440_spill] sm:$0xff] }
 0x347   : > { %v2810_v32 = vrot.slane %v2808_v48, 1  ;;  %v2482_v4 = vsel %vm2422_vm11, %v2417_v40, %v17330_v60  ;;  %v2679_v29 = vsel %vm2617_vm13, %v2614_v59, %v2128_v49  ;;  %v2673_v46 = vsel %vm2617_vm13, %v2608_v1, %v2122_v62  ;;  %v17340_v8 = vld [vmem:[#allocation264_spill] sm:$0xff] }
 0x348   : > { %v17333_v57 = vrot.slane %v17332_v14, 2  ;;  %v17335_v18 = vrot.slane %v17334_v55, 2  ;;  %v2547_v13 = vsel %vm2487_vm12, %v2482_v4, %v17336_v0  ;;  %v2812_v63 = vshrl.u32 %v2671_v52, 16  ;;  %v11530_v48 = vpop.permute.xlu0 %3119  ;;  %v17342_v62 = vld [vmem:[#allocation192_spill] sm:$0xff]  ;;  %v17344_v4 = vld [vmem:[#allocation229_spill] sm:$0xff]  ;;  %v17346_v0 = vld [vmem:[#allocation106_spill] sm:$0xff] }
 0x349   : > { %3413 = vrot.lane.b32.xlu0 %v17331_v61, %s8047_s21  ;;  %v2818_v25 = vshll.u32 %v2673_v46, 16  ;;  %v2811_v49 = vsel %vm16452_vm6, %v2807_v41, %v2810_v32  ;;  %v2612_v11 = vsel %vm2552_vm14, %v2547_v13, %v17338_v7  ;;  %v7915_v35 = vunpack.i.h.bf16 %v17318_v30  ;;  %17339 = vst [vmem:[#allocation205_spill] sm:$0xff] %v11530_v48  ;;  %v2126_v59 = vpop.permute.xlu1 %2125  ;;  %v17343_v30 = vld [vmem:[#allocation214_spill] sm:$0xff] }
 0x34a   : > { %v11520_v27 = vsel %vm16348_vm2, %v17335_v18, %v17333_v57  ;;  %3403 = vrot.lane.b32.xlu1 %v17337_v19, %s8047_s21  ;;  %7783 = vmatprep.mubr.msk.bf16.mxu1 %vm2869_vm15, %v2811_v49  ;;  %v3388_v15 = vrot.slane %v17340_v8, 2  ;;  %v3389_v17 = vrot.slane %v17341_v24, 2  ;;  %v2817_v52 = vor.u32 %v2816_v21, %v2812_v63  ;;  %v17345_v57 = vld [vmem:[#allocation411_spill] sm:$0xff] }
 0x34b   : > { %v2826_v40 = vrot.slane %v2824_v10, 1  ;;  %v2834_v43 = vshll.u32 %v2679_v29, 16  ;;  %v2820_v1 = vrot.slane %v2818_v25, 1  ;;  %v2421_v41 = vsel %vm2357_vm10, %v2356_v34, %v17342_v62  ;;  %v17347_v34 = vld [vmem:[#allocation442_spill] sm:$0xff]  ;;  %v17392_v24 = vld [vmem:[#allocation115_spill] sm:$0xff] }
 0x34c   : > { %v2677_v32 = vsel %vm2617_vm13, %v2612_v11, %v2126_v59  ;;  %v3373_v60 = vrot.slane %v17343_v30, 2  ;;  %v3374_v46 = vrot.slane %v17344_v4, 2  ;;  %v2486_v18 = vsel %vm2422_vm11, %v2421_v41, %v17345_v57  ;;  %v11549_v25 = vpop.permute.xlu0 %3123  ;;  %v17350_v57 = vld [vmem:[#allocation269_spill] sm:$0xff] }
 0x34d   : > { %3417 = vrot.lane.b32.xlu0 %v11520_v27, %s8047_s21  ;;  %v2822_v21 = vshrl.u32 %v2675_v51, 16  ;;  %v2828_v10 = vshll.u32 %v2677_v32, 16  ;;  %v2821_v13 = vsel %vm16452_vm6, %v2817_v52, %v2820_v1  ;;  %v2551_v63 = vsel %vm2487_vm12, %v2486_v18, %v17347_v34  ;;  %17348 = vst [vmem:[#allocation206_spill] sm:$0xff] %v11549_v25  ;;  %v2130_v51 = vpop.permute.xlu1 %2129  ;;  %v17349_v1 = vld [vmem:[#allocation289_spill] sm:$0xff]  ;;  %v17355_v34 = vld [vmem:[#allocation232_spill] sm:$0xff]  ;;  %v17381_v25 = vld [vmem:[#allocation110_spill] sm:$0xff] }
 0x34e   : > { %3407 = vrot.lane.b32.xlu1 %v17346_v0, %s8047_s21  ;;  %7784 = vmatmul.mubr.msk.bf16.gmra.mxu1 %vm2869_vm15, %v2821_v13  ;;  %v11553_v49 = vsel %vm16348_vm2, %v3388_v15, %v3389_v17  ;;  %v2836_v11 = vrot.slane %v2834_v43, 1  ;;  %v2616_v62 = vsel %vm2552_vm14, %v2551_v63, %v7915_v35  ;;  %v11560_v52 = vsel %vm16348_vm2, %v3373_v60, %v3374_v46  ;;  %v17353_v60 = vld [vmem:[#allocation95_spill] sm:$0xff] }
 0x34f   : > { %v2827_v7 = vor.u32 %v2826_v40, %v2822_v21  ;;  %v2830_v59 = vrot.slane %v2828_v10, 1  ;;  %v2681_v41 = vsel %vm2617_vm13, %v2616_v62, %v2130_v51  ;;  %v3379_v32 = vrot.slane %v17349_v1, 2  ;;  %v17358_v51 = vld [vmem:[#allocation116_spill] sm:$0xff] }
 0x350   : > { %v3380_v18 = vrot.slane %v17350_v57, 2  ;;  %v2832_v15 = vshrl.u32 %v2679_v29, 16  ;;  %v2838_v17 = vshll.u32 %v2681_v41, 16  ;;  %v11567_v35 = vpop.permute.xlu0 %3127  ;;  %v17354_v29 = vld [vmem:[#allocation235_spill] sm:$0xff]  ;;  %v3386_v63 = vrot.slane %v17355_v34, 2 }
 0x351   : > { %3421 = vrot.lane.b32.xlu0 %v11553_v49, %s8047_s21  ;;  %v2831_v40 = vsel %vm16452_vm6, %v2827_v7, %v2830_v59  ;;  %17351 = vst [vmem:[#allocation209_spill] sm:$0xff] %v11567_v35  ;;  %v11570_v10 = vpop.permute.xlu1 %3117  ;;  %v3385_v13 = vrot.slane %v17354_v29, 2 }
 0x352   : > { %3411 = vrot.lane.b32.xlu1 %v11560_v52, %s8047_s21  ;;  %7787 = vmatprep.mubr.msk.bf16.mxu1 %vm2869_vm15, %v2831_v40  ;;  %v2837_v43 = vor.u32 %v2836_v11, %v2832_v15  ;;  %v2840_v21 = vrot.slane %v2838_v17, 1  ;;  %17352 = vst [vmem:[#allocation213_spill] sm:$0xff] %v11570_v10  ;;  %v11575_v46 = vsel %vm16348_vm2, %v3379_v32, %v3380_v18  ;;  %v7751_v18 = vpop.f32.mrf.mxu1  ;;  %v17361_v15 = vld [vmem:[#allocation123_spill] sm:$0xff]  ;;  %v17371_v10 = vld [vmem:[#allocation124_spill] sm:$0xff] }
 0x353   : > { %v11590_v62 = vsel %vm16348_vm2, %v3385_v13, %v3386_v63  ;;  %v17364_v13 = vld [vmem:[#allocation143_spill] sm:$0xff]  ;;  %v17365_v63 = vld [vmem:[#allocation108_spill] sm:$0xff] }
 0x354   : > { %v2841_v7 = vsel %vm16452_vm6, %v2837_v43, %v2840_v21  ;;  %v11582_v59 = vpop.permute.xlu0 %3131  ;;  %v927_v17 = vpop.f32.mrf.mxu1 }
 0x355   : > { %3425 = vrot.lane.b32.xlu0 %v17353_v60, %s8048_s22  ;;  %17356 = vst [vmem:[#allocation258_spill] sm:$0xff] %v11582_v59  ;;  %v11585_v11 = vpop.permute.xlu1 %3121  ;;  %v17368_v17 = vld [vmem:[#allocation120_spill] sm:$0xff]  ;;  %v17374_v59 = vld [vmem:[#allocation127_spill] sm:$0xff] }
 0x356   : > { %3415 = vrot.lane.b32.xlu1 %v11575_v46, %s8047_s21  ;;  %7788 = vmatmul.mubr.msk.bf16.gmra.mxu1 %vm2869_vm15, %v2841_v7  ;;  %17357 = vst [vmem:[#allocation240_spill] sm:$0xff] %v11585_v11  ;;  %v7752_v21 = vpop.f32.mrf.mxu1 }
 0x358   : > { %v11594_v41 = vpop.permute.xlu0 %3135  ;;  %v930_v7 = vpop.f32.mrf.mxu1 }
 0x359   : > { %3429 = vrot.lane.b32.xlu0 %v17358_v51, %s8048_s22  ;;  %17359 = vst [vmem:[#allocation219_spill] sm:$0xff] %v11594_v41  ;;  %v11596_v32 = vpop.permute.xlu1 %3125 }
 0x35a   : > { %3419 = vrot.lane.b32.xlu1 %v11590_v62, %s8047_s21  ;;  %17360 = vst [vmem:[#allocation220_spill] sm:$0xff] %v11596_v32 }
 0x35c   : > { %v11602_v40 = vpop.permute.xlu0 %3139 }
 0x35d   : > { %3433 = vrot.lane.b32.xlu0 %v17361_v15, %s8048_s22  ;;  %17362 = vst [vmem:[#allocation227_spill] sm:$0xff] %v11602_v40  ;;  %v11604_v43 = vpop.permute.xlu1 %3129  ;;  %v17400_v40 = vld [vmem:[#allocation203_spill] sm:$0xff] }
 0x35e   : > { %3423 = vrot.lane.b32.xlu1 %v17289_v16, %s8048_s22  ;;  %17363 = vst [vmem:[#allocation223_spill] sm:$0xff] %v11604_v43  ;;  %v17396_v16 = vld [vmem:[#allocation152_spill] sm:$0xff] }
 0x360   : > { %v11610_v18 = vpop.permute.xlu0 %3143 }
 0x361   : > { %3437 = vrot.lane.b32.xlu0 %v17364_v13, %s8048_s22  ;;  %17366 = vst [vmem:[#allocation224_spill] sm:$0xff] %v11610_v18  ;;  %v11612_v48 = vpop.permute.xlu1 %3133 }
 0x362   : > { %3427 = vrot.lane.b32.xlu1 %v17365_v63, %s8048_s22  ;;  %17367 = vst [vmem:[#allocation231_spill] sm:$0xff] %v11612_v48  ;;  %v17378_v48 = vld [vmem:[#allocation255_spill] sm:$0xff] }
 0x364   : > { %v11618_v3 = vpop.permute.xlu0 %7917 }
 0x365   : > { %3441 = vrot.lane.b32.xlu0 %v17343_v30, %s8048_s22  ;;  %17369 = vst [vmem:[#allocation236_spill] sm:$0xff] %v11618_v3  ;;  %v11620_v21 = vpop.permute.xlu1 %3137 }
 0x366   : > { %3431 = vrot.lane.b32.xlu1 %v17368_v17, %s8048_s22  ;;  %17370 = vst [vmem:[#allocation286_spill] sm:$0xff] %v11620_v21  ;;  %v17377_v21 = vld [vmem:[#allocation92_spill] sm:$0xff] }
 0x368   : > { %v11626_v7 = vpop.permute.xlu0 %3165 }
 0x369   : > { %3445 = vrot.lane.b32.xlu0 %v17349_v1, %s8048_s22  ;;  %17372 = vst [vmem:[#allocation244_spill] sm:$0xff] %v11626_v7  ;;  %v11628_v41 = vpop.permute.xlu1 %3141  ;;  %v17384_v7 = vld [vmem:[#allocation126_spill] sm:$0xff] }
 0x36a   : > { %3435 = vrot.lane.b32.xlu1 %v17371_v10, %s8048_s22  ;;  %17373 = vst [vmem:[#allocation230_spill] sm:$0xff] %v11628_v41 }
 0x36c   : > { %v11634_v35 = vpop.permute.xlu0 %3169 }
 0x36d   : > { %3449 = vrot.lane.b32.xlu0 %v17354_v29, %s8048_s22  ;;  %17375 = vst [vmem:[#allocation261_spill] sm:$0xff] %v11634_v35  ;;  %v11636_v3 = vpop.permute.xlu1 %3145 }
 0x36e   : > { %3439 = vrot.lane.b32.xlu1 %v17374_v59, %s8048_s22  ;;  %17376 = vst [vmem:[#allocation259_spill] sm:$0xff] %v11636_v3 }
 0x370   : > { %v11642_v43 = vpop.permute.xlu0 %3173 }
 0x371   : > { %3453 = vrot.lane.b32.xlu0 %v17377_v21, %s8048_s22  ;;  %17379 = vst [vmem:[#allocation266_spill] sm:$0xff] %v11642_v43  ;;  %v11644_v32 = vpop.permute.xlu1 %3163 }
 0x372   : > { %3443 = vrot.lane.b32.xlu1 %v17378_v48, %s8048_s22  ;;  %17380 = vst [vmem:[#allocation222_spill] sm:$0xff] %v11644_v32  ;;  %v17387_v32 = vld [vmem:[#allocation189_spill] sm:$0xff] }
 0x374   : > { %v11650_v11 = vpop.permute.xlu0 %3177 }
 0x375   : > { %3457 = vrot.lane.b32.xlu0 %v17381_v25, %s8049_s23  ;;  %17382 = vst [vmem:[#allocation233_spill] sm:$0xff] %v11650_v11  ;;  %v11652_v35 = vpop.permute.xlu1 %3167 }
 0x376   : > { %3447 = vrot.lane.b32.xlu1 %v17334_v55, %s8048_s22  ;;  %17383 = vst [vmem:[#allocation210_spill] sm:$0xff] %v11652_v35  ;;  %v17391_v35 = vld [vmem:[#allocation221_spill] sm:$0xff] }
 0x378   : > { %v11658_v9 = vpop.permute.xlu0 %3181 }
 0x379   : > { %3461 = vrot.lane.b32.xlu0 %v17384_v7, %s8049_s23  ;;  %17385 = vst [vmem:[#allocation284_spill] sm:$0xff] %v11658_v9  ;;  %v11660_v43 = vpop.permute.xlu1 %3171 }
 0x37a   : > { %3451 = vrot.lane.b32.xlu1 %v17340_v8, %s8048_s22  ;;  %17386 = vst [vmem:[#allocation277_spill] sm:$0xff] %v11660_v43  ;;  %v17395_v43 = vld [vmem:[#allocation263_spill] sm:$0xff] }
 0x37c   : > { %v11666_v47 = vpop.permute.xlu0 %3185 }
 0x37d   : > { %3465 = vrot.lane.b32.xlu0 %v17387_v32, %s8049_s23  ;;  %17389 = vst [vmem:[#allocation305_spill] sm:$0xff] %v11666_v47  ;;  %v11668_v11 = vpop.permute.xlu1 %3175  ;;  %v17407_v47 = vld [vmem:[#allocation287_spill] sm:$0xff] }
 0x37e   : > { %7922 = vrot.lane.b32.xlu1 %v17388_v58, %s8049_s23  ;;  %17390 = vst [vmem:[#allocation252_spill] sm:$0xff] %v11668_v11  ;;  %v17399_v11 = vld [vmem:[#allocation310_spill] sm:$0xff] }
 0x381   : > { %3469 = vrot.lane.b32.xlu0 %v17391_v35, %s8049_s23  ;;  %v11674_v34 = vpop.permute.xlu0 %3189 }
 0x382   : > { %3459 = vrot.lane.b32.xlu1 %v17392_v24, %s8049_s23  ;;  %17393 = vst [vmem:[#allocation225_spill] sm:$0xff] %v11674_v34  ;;  %v11676_v9 = vpop.permute.xlu1 %3179 }
 0x383   : > { %17394 = vst [vmem:[#allocation256_spill] sm:$0xff] %v11676_v9  ;;  %v17403_v9 = vld [vmem:[#allocation237_spill] sm:$0xff] }
 0x385   : > { %3473 = vrot.lane.b32.xlu0 %v17395_v43, %s8049_s23 }
 0x386   : > { %3463 = vrot.lane.b32.xlu1 %v17396_v16, %s8049_s23 }
 0x387   : > { %v11682_v58 = vpop.permute.xlu0 %3197 }
 0x388   : > { %17397 = vst [vmem:[#allocation245_spill] sm:$0xff] %v11682_v58  ;;  %v11684_v18 = vpop.permute.xlu1 %3183 }
 0x389   : > { %17398 = vst [vmem:[#allocation242_spill] sm:$0xff] %v11684_v18  ;;  %3477 = vrot.lane.b32.xlu0 %v17399_v11, %s8049_s23  ;;  %v17406_v18 = vld [vmem:[#allocation100_spill] sm:$0xff] }
 0x38a   : > { %3467 = vrot.lane.b32.xlu1 %v17400_v40, %s8049_s23 }
 0x38b   : > { %v11690_v3 = vpop.permute.xlu0 %3201 }
 0x38c   : > { %17401 = vst [vmem:[#allocation265_spill] sm:$0xff] %v11690_v3  ;;  %v11692_v34 = vpop.permute.xlu1 %3187 }
 0x38d   : > { %17402 = vst [vmem:[#allocation275_spill] sm:$0xff] %v11692_v34  ;;  %3481 = vrot.lane.b32.xlu0 %v17244_v44, %s8049_s23  ;;  %v17410_v34 = vld [vmem:[#allocation326_spill] sm:$0xff] }
 0x38e   : > { %3471 = vrot.lane.b32.xlu1 %v17403_v9, %s8049_s23 }
 0x38f   : > { %v11698_v41 = vpop.permute.xlu0 %3205 }
 0x390   : > { %17404 = vst [vmem:[#allocation290_spill] sm:$0xff] %v11698_v41  ;;  %v11700_v58 = vpop.permute.xlu1 %3195 }
 0x391   : > { %17405 = vst [vmem:[#allocation301_spill] sm:$0xff] %v11700_v58  ;;  %3485 = vrot.lane.b32.xlu0 %v17406_v18, %s8049_s23  ;;  %v17413_v58 = vld [vmem:[#allocation356_spill] sm:$0xff] }
 0x392   : > { %3475 = vrot.lane.b32.xlu1 %v17407_v47, %s8049_s23 }
 0x393   : > { %v11706_v11 = vpop.permute.xlu0 %3209 }
 0x394   : > { %17408 = vst [vmem:[#allocation293_spill] sm:$0xff] %v11706_v11  ;;  %v11708_v3 = vpop.permute.xlu1 %3199 }
 0x395   : > { %17409 = vst [vmem:[#allocation253_spill] sm:$0xff] %v11708_v3  ;;  %3489 = vrot.lane.b32.xlu0 %v17102_v42, %s8050_s26 }
 0x396   : > { %3479 = vrot.lane.b32.xlu1 %v17410_v34, %s8049_s23 }
 0x397   : > { %v11714_v44 = vpop.permute.xlu0 %3213 }
 0x398   : > { %17411 = vst [vmem:[#allocation319_spill] sm:$0xff] %v11714_v44  ;;  %v11716_v41 = vpop.permute.xlu1 %3203 }
 0x399   : > { %17412 = vst [vmem:[#allocation299_spill] sm:$0xff] %v11716_v41  ;;  %3493 = vrot.lane.b32.xlu0 %v17008_v36, %s8050_s26  ;;  %v17418_v41 = vld [vmem:[#allocation113_spill] sm:$0xff] }
 0x39a   : > { %3483 = vrot.lane.b32.xlu1 %v17413_v58, %s8049_s23 }
 0x39b   : > { %v11722_v18 = vpop.permute.xlu0 %3217 }
 0x39c   : > { %17414 = vst [vmem:[#allocation271_spill] sm:$0xff] %v11722_v18  ;;  %v11724_v11 = vpop.permute.xlu1 %3207 }
 0x39d   : > { %17415 = vst [vmem:[#allocation288_spill] sm:$0xff] %v11724_v11  ;;  %3497 = vrot.lane.b32.xlu0 %v17016_v56, %s8050_s26  ;;  %v17429_v56 = vld [vmem:[#allocation118_spill] sm:$0xff] }
 0x39e   : > { %3487 = vrot.lane.b32.xlu1 %v17233_v31, %s8050_s26 }
 0x39f   : > { %v11730_v3 = vpop.permute.xlu0 %3221 }
 0x3a0   : > { %17416 = vst [vmem:[#allocation291_spill] sm:$0xff] %v11730_v3  ;;  %v11732_v44 = vpop.permute.xlu1 %3211 }
 0x3a1   : > { %17417 = vst [vmem:[#allocation309_spill] sm:$0xff] %v11732_v44  ;;  %3501 = vrot.lane.b32.xlu0 %v17024_v53, %s8050_s26 }
 0x3a2   : > { %3491 = vrot.lane.b32.xlu1 %v17418_v41, %s8050_s26  ;;  %v17435_v41 = vld [vmem:[#allocation340_spill] sm:$0xff] }
 0x3a3   : > { %v11738_v36 = vpop.permute.xlu0 %3225 }
 0x3a4   : > { %17419 = vst [vmem:[#allocation294_spill] sm:$0xff] %v11738_v36  ;;  %v11740_v18 = vpop.permute.xlu1 %3215 }
 0x3a5   : > { %17420 = vst [vmem:[#allocation336_spill] sm:$0xff] %v11740_v18  ;;  %3505 = vrot.lane.b32.xlu0 %v17032_v50, %s8050_s26  ;;  %v17425_v18 = vshrl.u32 %v17353_v60, 16 }
 0x3a6   : > { %3495 = vrot.lane.b32.xlu1 %v17012_v26, %s8050_s26 }
 0x3a7   : > { %v11746_v31 = vpop.permute.xlu0 %3393  ;;  %v3244_v3 = vrot.slane %v17425_v18, 1 }
 0x3a8   : > { %17421 = vst [vmem:[#allocation327_spill] sm:$0xff] %v11746_v31  ;;  %v11748_v11 = vpop.permute.xlu1 %3219  ;;  %v17426_v31 = vshll.u32 %v17353_v60, 16 }
 0x3a9   : > { %17422 = vst [vmem:[#allocation273_spill] sm:$0xff] %v11748_v11  ;;  %3509 = vrot.lane.b32.xlu0 %v17222_v28, %s8050_s26  ;;  %v17428_v28 = vld [vmem:[#allocation121_spill] sm:$0xff] }
 0x3aa   : > { %3499 = vrot.lane.b32.xlu1 %v17020_v2, %s8050_s26  ;;  %v3245_v50 = vrot.slane %v17426_v31, 2  ;;  %v3258_v53 = vrot.slane %v17428_v28, 1  ;;  %v17437_v28 = vld [vmem:[#allocation101_spill] sm:$0xff] }
 0x3ab   : > { %v11754_v44 = vpop.permute.xlu0 %3397 }
 0x3ac   : > { %17423 = vst [vmem:[#allocation308_spill] sm:$0xff] %v11754_v44  ;;  %v11756_v36 = vpop.permute.xlu1 %3223  ;;  %v3259_v44 = vrot.slane %v17429_v56, 2  ;;  %v3246_v31 = vor.u32 %v3245_v50, %v3244_v3  ;;  %v17444_v3 = vld [vmem:[#allocation147_spill] sm:$0xff] }
 0x3ad   : > { %17424 = vst [vmem:[#allocation318_spill] sm:$0xff] %v11756_v36  ;;  %3513 = vrot.lane.b32.xlu0 %v17283_v54, %s8050_s26  ;;  %v17431_v36 = vld [vmem:[#allocation114_spill] sm:$0xff]  ;;  %v17433_v54 = vld [vmem:[#allocation111_spill] sm:$0xff] }
 0x3ae   : > { %3503 = vrot.lane.b32.xlu1 %v17028_v45, %s8050_s26  ;;  %v11773_v2 = vrot.slane %v17431_v36, 1  ;;  %v17434_v26 = vshll.u32 %v17433_v54, 16  ;;  %v11785_v56 = vsel %vm3227_vm7, %v3246_v31, %v17437_v28  ;;  %v17439_v45 = vld [vmem:[#allocation172_spill] sm:$0xff]  ;;  %v17441_v54 = vld [vmem:[#allocation158_spill] sm:$0xff]  ;;  %v17447_v28 = vmov 0  }
 0x3af   : > { %v11766_v11 = vpop.permute.xlu0 %3401  ;;  %17438 = vst [vmem:[#allocation352_spill] sm:$0xff] %v11785_v56  ;;  %v3272_v36 = vrot.slane %v17439_v45, 1  ;;  %v3273_v58 = vrot.slane %v17441_v54, 2  ;;  %v17451_v54 = vld [vmem:[#allocation257_spill] sm:$0xff]  ;;  %v17453_v45 = vld [vmem:[#allocation234_spill] sm:$0xff] }
 0x3b0   : > { %17427 = vst [vmem:[#allocation313_spill] sm:$0xff] %v11766_v11  ;;  %v11770_v42 = vpop.permute.xlu1 %3391  ;;  %17432 = vst [vmem:[#allocation323_spill] sm:$0xff] %v11773_v2  ;;  %v3262_v18 = vrot.slane %v17434_v26, 2 }
 0x3b1   : > { %17430 = vst [vmem:[#allocation300_spill] sm:$0xff] %v11770_v42  ;;  %3517 = vrot.lane.b32.xlu0 %v17435_v41, %s8050_s26  ;;  %v3260_v42 = vor.u32 %v3259_v44, %v3258_v53  ;;  %v17442_v41 = vld [vmem:[#allocation151_spill] sm:$0xff]  ;;  %v3229_v44 = vrot.slane %v17447_v28, 2 }
 0x3b2   : > { %3507 = vrot.lane.b32.xlu1 %v17212_v38, %s8050_s26  ;;  %v3263_v26 = vor.u32 %v3262_v18, %v11773_v2  ;;  %v11793_v50 = vrot.slane %v17442_v41, 1  ;;  %v17445_v38 = vshll.u32 %v17444_v3, 16  ;;  %v17452_v2 = vld [vmem:[#allocation247_spill] sm:$0xff]  ;;  %v17460_v41 = vld [vmem:[#allocation149_spill] sm:$0xff]  ;;  %v17461_v3 = vld [vmem:[#allocation140_spill] sm:$0xff] }
 0x3b3   : > { %v11781_v11 = vpop.permute.xlu0 %3405  ;;  %v3301_v28 = vrot.slane %v17452_v2, 2 }
 0x3b4   : > { %17436 = vst [vmem:[#allocation325_spill] sm:$0xff] %v11781_v11  ;;  %v11788_v43 = vpop.permute.xlu1 %3395  ;;  %17443 = vst [vmem:[#allocation295_spill] sm:$0xff] %v11793_v50  ;;  %v3276_v35 = vrot.slane %v17445_v38, 2  ;;  %v11805_v18 = vsel %vm3227_vm7, %v3260_v42, %v3263_v26  ;;  %v11819_v42 = vrot.slane %v17453_v45, 1  ;;  %v17455_v26 = vshll.u32 %v17344_v4, 16  ;;  %v17464_v45 = vld [vmem:[#allocation125_spill] sm:$0xff] }
 0x3b5   : > { %17440 = vst [vmem:[#allocation329_spill] sm:$0xff] %v11788_v43  ;;  %3528 = vrot.lane.b32.xlu0 %v11785_v56, %s8051_s27  ;;  %17448 = vst [vmem:[#allocation339_spill] sm:$0xff] %v11805_v18  ;;  %v3274_v43 = vor.u32 %v3273_v58, %v3272_v36  ;;  %v17456_v58 = vld [vmem:[#allocation70_spill] sm:$0xff]  ;;  %v17465_v56 = vshll.u32 %v17464_v45, 16 }
 0x3b6   : > { %3511 = vrot.lane.b32.xlu1 %v17258_v6, %s8050_s26  ;;  %v3277_v11 = vor.u32 %v3276_v35, %v11793_v50  ;;  %17454 = vst [vmem:[#allocation311_spill] sm:$0xff] %v11819_v42  ;;  %v3304_v36 = vrot.slane %v17455_v26, 2  ;;  %v11824_v35 = vor.u32 %v3229_v44, %v17456_v58  ;;  %v17468_v58 = vld [vmem:[#allocation302_spill] sm:$0xff] }
 0x3b7   : > { %v11801_v53 = vpop.permute.xlu0 %3409 }
 0x3b8   : > { %17446 = vst [vmem:[#allocation314_spill] sm:$0xff] %v11801_v53  ;;  %v11807_v31 = vpop.permute.xlu1 %3399  ;;  %v3300_v53 = vrot.slane %v17451_v54, 1  ;;  %17457 = vst [vmem:[#allocation321_spill] sm:$0xff] %v11824_v35  ;;  %v3266_v54 = vrot.slane %v17461_v3, 2  ;;  %v3305_v44 = vor.u32 %v3304_v36, %v11819_v42  ;;  %v17469_v3 = vld [vmem:[#allocation297_spill] sm:$0xff] }
 0x3b9   : > { %17449 = vst [vmem:[#allocation338_spill] sm:$0xff] %v11807_v31  ;;  %3532 = vrot.lane.b32.xlu0 %v11805_v18, %s8051_s27  ;;  %v11827_v31 = vsel %vm3227_vm7, %v3274_v43, %v3277_v11  ;;  %v17462_v18 = vld [vmem:[#allocation134_spill] sm:$0xff] }
 0x3ba   : > { %3515 = vrot.lane.b32.xlu1 %v17288_v12, %s8050_s26  ;;  %17458 = vst [vmem:[#allocation351_spill] sm:$0xff] %v11827_v31  ;;  %v11834_v2 = vrot.slane %v17462_v18, 1  ;;  %v3269_v12 = vrot.slane %v17465_v56, 2  ;;  %v3302_v43 = vor.u32 %v3301_v28, %v3300_v53  ;;  %v17470_v18 = vld [vmem:[#allocation285_spill] sm:$0xff]  ;;  %v17472_v56 = vshll.u32 %v17350_v57, 16  ;;  %v17474_v53 = vld [vmem:[#allocation135_spill] sm:$0xff] }
 0x3bb   : > { %v11814_v38 = vpop.permute.xlu0 %3413  ;;  %v11850_v45 = vrot.slane %v17470_v18, 1 }
 0x3bc   : > { %17450 = vst [vmem:[#allocation343_spill] sm:$0xff] %v11814_v38  ;;  %v11829_v50 = vpop.permute.xlu1 %3403  ;;  %v3265_v38 = vrot.slane %v17460_v41, 1  ;;  %17463 = vst [vmem:[#allocation324_spill] sm:$0xff] %v11834_v2  ;;  %v3315_v41 = vrot.slane %v17469_v3, 2  ;;  %v3318_v4 = vrot.slane %v17472_v56, 2  ;;  %v11862_v36 = vsel %vm3227_vm7, %v3302_v43, %v3305_v44  ;;  %v17481_v43 = vld [vmem:[#allocation97_spill] sm:$0xff] }
 0x3bd   : > { %17459 = vst [vmem:[#allocation350_spill] sm:$0xff] %v11829_v50  ;;  %3536 = vrot.lane.b32.xlu0 %v11827_v31, %s8051_s27  ;;  %v3314_v50 = vrot.slane %v17468_v58, 1  ;;  %17471 = vst [vmem:[#allocation330_spill] sm:$0xff] %v11850_v45  ;;  %v3519_v44 = vrot.slane %v17481_v43, 1  ;;  %v17482_v58 = vld [vmem:[#allocation94_spill] sm:$0xff] }
 0x3be   : > { %3526 = vrot.lane.b32.xlu1 %v11824_v35, %s8051_s27  ;;  %v3267_v31 = vor.u32 %v3266_v54, %v3265_v38  ;;  %v3270_v35 = vor.u32 %v3269_v12, %v11834_v2  ;;  %17476 = vst [vmem:[#allocation332_spill] sm:$0xff] %v11862_v36  ;;  %v3319_v42 = vor.u32 %v3318_v4, %v11850_v45  ;;  %v17479_v12 = vld [vmem:[#allocation276_spill] sm:$0xff] }
 0x3bf   : > { %v11842_v11 = vpop.permute.xlu0 %3417  ;;  %v3316_v3 = vor.u32 %v3315_v41, %v3314_v50  ;;  %v3307_v38 = vrot.slane %v17479_v12, 1  ;;  %v17483_v41 = vld [vmem:[#allocation268_spill] sm:$0xff] }
 0x3c0   : > { %17466 = vst [vmem:[#allocation335_spill] sm:$0xff] %v11842_v11  ;;  %v11845_v26 = vpop.permute.xlu1 %3407  ;;  %v17473_v11 = vld [vmem:[#allocation154_spill] sm:$0xff]  ;;  %v11868_v54 = vsel %vm3227_vm7, %v3267_v31, %v3270_v35  ;;  %v3308_v50 = vrot.slane %v17483_v41, 2  ;;  %v17484_v4 = vld [vmem:[#allocation260_spill] sm:$0xff]  ;;  %v17486_v31 = vld [vmem:[#allocation239_spill] sm:$0xff] }
 0x3c1   : > { %17467 = vst [vmem:[#allocation315_spill] sm:$0xff] %v11845_v26  ;;  %3540 = vrot.lane.b32.xlu0 %v17473_v11, %s8051_s27  ;;  %17478 = vst [vmem:[#allocation342_spill] sm:$0xff] %v11868_v54  ;;  %v11881_v45 = vrot.slane %v17484_v4, 1  ;;  %v17487_v35 = vshll.u32 %v17486_v31, 16  ;;  %v11886_v18 = vsel %vm3227_vm7, %v3316_v3, %v3319_v42  ;;  %v17493_v41 = vld [vmem:[#allocation90_spill] sm:$0xff] }
 0x3c2   : > { %3530 = vrot.lane.b32.xlu1 %v17474_v53, %s8051_s27  ;;  %17488 = vst [vmem:[#allocation363_spill] sm:$0xff] %v11886_v18  ;;  %v17494_v12 = vshll.u32 %v17493_v41, 16 }
 0x3c3   : > { %v11859_v28 = vpop.permute.xlu0 %3421  ;;  %17485 = vst [vmem:[#allocation355_spill] sm:$0xff] %v11881_v45  ;;  %v3311_v2 = vrot.slane %v17487_v35, 2  ;;  %v3309_v35 = vor.u32 %v3308_v50, %v3307_v38  ;;  %v17502_v38 = vld [vmem:[#allocation142_spill] sm:$0xff] }
 0x3c4   : > { %17475 = vst [vmem:[#allocation364_spill] sm:$0xff] %v11859_v28  ;;  %v11864_v26 = vpop.permute.xlu1 %3411  ;;  %v3523_v4 = vrot.slane %v17494_v12, 2  ;;  %v17501_v12 = vld [vmem:[#allocation248_spill] sm:$0xff] }
 0x3c5   : > { %17477 = vst [vmem:[#allocation328_spill] sm:$0xff] %v11864_v26  ;;  %3544 = vrot.lane.b32.xlu0 %v11862_v36, %s8051_s27  ;;  %v3520_v26 = vrot.slane %v17482_v58, 2  ;;  %v17491_v58 = vld [vmem:[#allocation91_spill] sm:$0xff]  ;;  %v3312_v3 = vor.u32 %v3311_v2, %v11881_v45 }
 0x3c6   : > { %3534 = vrot.lane.b32.xlu1 %v11868_v54, %s8051_s27  ;;  %v11895_v43 = vrot.slane %v17491_v58, 1  ;;  %v17498_v54 = vld [vmem:[#allocation312_spill] sm:$0xff]  ;;  %v17500_v58 = vshll.u32 %v17332_v14, 16  ;;  %v17572_v45 = vld [vmem:[#allocation199_spill] sm:$0xff] }
 0x3c7   : > { %v11875_v56 = vpop.permute.xlu0 %3425  ;;  %v3521_v31 = vor.u32 %v3520_v26, %v3519_v44 }
 0x3c8   : > { %17480 = vst [vmem:[#allocation349_spill] sm:$0xff] %v11875_v56  ;;  %v11888_v57 = vpop.permute.xlu1 %3415  ;;  %v17490_v56 = vld [vmem:[#allocation137_spill] sm:$0xff]  ;;  %17492 = vst [vmem:[#allocation333_spill] sm:$0xff] %v11895_v43  ;;  %v3325_v53 = vrot.slane %v17500_v58, 2  ;;  %v3524_v2 = vor.u32 %v3523_v4, %v11895_v43 }
 0x3c9   : > { %17489 = vst [vmem:[#allocation358_spill] sm:$0xff] %v11888_v57  ;;  %3548 = vrot.lane.b32.xlu0 %v11886_v18, %s8051_s27  ;;  %v17496_v57 = vld [vmem:[#allocation322_spill] sm:$0xff]  ;;  %v17497_v18 = vld [vmem:[#allocation317_spill] sm:$0xff] }
 0x3ca   : > { %3538 = vrot.lane.b32.xlu1 %v17490_v56, %s8051_s27  ;;  %v3321_v36 = vrot.slane %v17496_v57, 1  ;;  %v3322_v11 = vrot.slane %v17497_v18, 2  ;;  %v11907_v56 = vrot.slane %v17498_v54, 1  ;;  %v11921_v44 = vsel %vm3227_vm7, %v3521_v31, %v3524_v2  ;;  %v17540_v43 = vld [vmem:[#allocation93_spill] sm:$0xff] }
 0x3cb   : > { %v11899_v28 = vpop.permute.xlu0 %3429  ;;  %17505 = vst [vmem:[#allocation450_spill] sm:$0xff] %v11921_v44  ;;  %v17603_v54 = vld [vmem:[#allocation137_spill] sm:$0xff] }
 0x3cc   : > { %17495 = vst [vmem:[#allocation366_spill] sm:$0xff] %v11899_v28  ;;  %v11902_v42 = vpop.permute.xlu1 %3419  ;;  %17499 = vst [vmem:[#allocation345_spill] sm:$0xff] %v11907_v56  ;;  %v11924_v28 = vsel %vm3227_vm7, %v3309_v35, %v3312_v3  ;;  %v3323_v18 = vor.u32 %v3322_v11, %v3321_v36  ;;  %v3326_v58 = vor.u32 %v3325_v53, %v11907_v56  ;;  %v17511_v36 = vld [vmem:[#allocation281_spill] sm:$0xff] }
 0x3cd   : > { %3552 = vrot.lane.b32.xlu0 %v17501_v12, %s8051_s27  ;;  %17506 = vst [vmem:[#allocation359_spill] sm:$0xff] %v11924_v28 }
 0x3ce   : > { %3542 = vrot.lane.b32.xlu1 %v17502_v38, %s8051_s27 }
 0x3cf   : > { %v11916_v50 = vpop.permute.xlu0 %3433 }
 0x3d0   : > { %17503 = vst [vmem:[#allocation354_spill] sm:$0xff] %v11916_v50  ;;  %v11918_v26 = vpop.permute.xlu1 %3423 }
 0x3d1   : > { %17504 = vst [vmem:[#allocation357_spill] sm:$0xff] %v11918_v26  ;;  %3556 = vrot.lane.b32.xlu0 %v11921_v44, %s8051_s27  ;;  %v11936_v26 = vsel %vm3227_vm7, %v3323_v18, %v3326_v58 }
 0x3d2   : > { %3546 = vrot.lane.b32.xlu1 %v11924_v28, %s8051_s27 }
 0x3d3   : > { %v11931_v4 = vpop.permute.xlu0 %3437 }
 0x3d4   : > { %17507 = vst [vmem:[#allocation372_spill] sm:$0xff] %v11931_v4  ;;  %v11933_v50 = vpop.permute.xlu1 %3427 }
 0x3d5   : > { %17508 = vst [vmem:[#allocation361_spill] sm:$0xff] %v11933_v50  ;;  %3563 = vrot.lane.b32.xlu0 %v17314_v22, %s8052_s28 }
 0x3d6   : > { %3550 = vrot.lane.b32.xlu1 %v11936_v26, %s8051_s27 }
 0x3d7   : > { %v11942_v11 = vpop.permute.xlu0 %3441 }
 0x3d8   : > { %17509 = vst [vmem:[#allocation347_spill] sm:$0xff] %v11942_v11  ;;  %v11944_v53 = vpop.permute.xlu1 %3431 }
 0x3d9   : > { %17510 = vst [vmem:[#allocation365_spill] sm:$0xff] %v11944_v53  ;;  %3567 = vrot.lane.b32.xlu0 %v17324_v39, %s8052_s28 }
 0x3da   : > { %3554 = vrot.lane.b32.xlu1 %v17511_v36, %s8051_s27 }
 0x3db   : > { %v11950_v31 = vpop.permute.xlu0 %3445 }
 0x3dc   : > { %17512 = vst [vmem:[#allocation362_spill] sm:$0xff] %v11950_v31  ;;  %v11952_v18 = vpop.permute.xlu1 %3435 }
 0x3dd   : > { %17513 = vst [vmem:[#allocation360_spill] sm:$0xff] %v11952_v18  ;;  %3571 = vrot.lane.b32.xlu0 %v17337_v19, %s8052_s28 }
 0x3de   : > { %3561 = vrot.lane.b32.xlu1 %v11372_v20, %s8052_s28 }
 0x3df   : > { %v11958_v35 = vpop.permute.xlu0 %3449 }
 0x3e0   : > { %17514 = vst [vmem:[#allocation369_spill] sm:$0xff] %v11958_v35  ;;  %v11960_v3 = vpop.permute.xlu1 %3439 }
 0x3e1   : > { %17515 = vst [vmem:[#allocation371_spill] sm:$0xff] %v11960_v3  ;;  %3575 = vrot.lane.b32.xlu0 %v17346_v0, %s8052_s28 }
 0x3e2   : > { %3565 = vrot.lane.b32.xlu1 %v10768_v33, %s8052_s28 }
 0x3e3   : > { %v11966_v2 = vpop.permute.xlu0 %3453 }
 0x3e4   : > { %17516 = vst [vmem:[#allocation368_spill] sm:$0xff] %v11966_v2  ;;  %v11968_v58 = vpop.permute.xlu1 %3443 }
 0x3e5   : > { %17517 = vst [vmem:[#allocation384_spill] sm:$0xff] %v11968_v58  ;;  %3579 = vrot.lane.b32.xlu0 %v11560_v52, %s8052_s28  ;;  %v3558_v58 = vrot.slane %v17377_v21, 2 }
 0x3e6   : > { %3569 = vrot.lane.b32.xlu1 %v10780_v5, %s8052_s28 }
 0x3e7   : > { %v11974_v20 = vpop.permute.xlu0 %3457 }
 0x3e8   : > { %17518 = vst [vmem:[#allocation377_spill] sm:$0xff] %v11974_v20  ;;  %v11976_v50 = vpop.permute.xlu1 %3447  ;;  %v3559_v20 = vrot.slane %v17493_v41, 2 }
 0x3e9   : > { %17519 = vst [vmem:[#allocation419_spill] sm:$0xff] %v11976_v50  ;;  %3583 = vrot.lane.b32.xlu0 %v11575_v46, %s8052_s28 }
 0x3ea   : > { %3573 = vrot.lane.b32.xlu1 %v17312_v23, %s8052_s28  ;;  %v11997_v4 = vsel %vm16348_vm2, %v3558_v58, %v3559_v20 }
 0x3eb   : > { %v11982_v31 = vpop.permute.xlu0 %3461 }
 0x3ec   : > { %17520 = vst [vmem:[#allocation376_spill] sm:$0xff] %v11982_v31  ;;  %v11984_v3 = vpop.permute.xlu1 %3451 }
 0x3ed   : > { %17521 = vst [vmem:[#allocation452_spill] sm:$0xff] %v11984_v3  ;;  %3587 = vrot.lane.b32.xlu0 %v11590_v62, %s8052_s28 }
 0x3ee   : > { %3577 = vrot.lane.b32.xlu1 %v17322_v37, %s8052_s28 }
 0x3ef   : > { %v11992_v18 = vpop.permute.xlu0 %3465 }
 0x3f0   : > { %17522 = vst [vmem:[#allocation367_spill] sm:$0xff] %v11992_v18  ;;  %v11994_v11 = vpop.permute.xlu1 %7922 }
 0x3f1   : > { %17523 = vst [vmem:[#allocation373_spill] sm:$0xff] %v11994_v11  ;;  %3591 = vrot.lane.b32.xlu0 %v11997_v4, %s8052_s28 }
 0x3f2   : > { %3581 = vrot.lane.b32.xlu1 %v17331_v61, %s8052_s28 }
 0x3f3   : > { %v12003_v31 = vpop.permute.xlu0 %3469 }
 0x3f4   : > { %17524 = vst [vmem:[#allocation374_spill] sm:$0xff] %v12003_v31  ;;  %v12005_v53 = vpop.permute.xlu1 %3459 }
 0x3f5   : > { %17525 = vst [vmem:[#allocation375_spill] sm:$0xff] %v12005_v53  ;;  %3595 = vrot.lane.b32.xlu0 %v17365_v63, %s8054_s20 }
 0x3f6   : > { %3585 = vrot.lane.b32.xlu1 %v11520_v27, %s8052_s28 }
 0x3f7   : > { %v12011_v11 = vpop.permute.xlu0 %3473 }
 0x3f8   : > { %17526 = vst [vmem:[#allocation386_spill] sm:$0xff] %v12011_v11  ;;  %v12013_v58 = vpop.permute.xlu1 %3463 }
 0x3f9   : > { %17527 = vst [vmem:[#allocation383_spill] sm:$0xff] %v12013_v58  ;;  %3599 = vrot.lane.b32.xlu0 %v17368_v17, %s8054_s20 }
 0x3fa   : > { %3589 = vrot.lane.b32.xlu1 %v11553_v49, %s8052_s28 }
 0x3fb   : > { %v12019_v20 = vpop.permute.xlu0 %3477 }
 0x3fc   : > { %17528 = vst [vmem:[#allocation413_spill] sm:$0xff] %v12019_v20  ;;  %v12021_v53 = vpop.permute.xlu1 %3467 }
 0x3fd   : > { %17529 = vst [vmem:[#allocation421_spill] sm:$0xff] %v12021_v53  ;;  %3603 = vrot.lane.b32.xlu0 %v17371_v10, %s8054_s20 }
 0x3fe   : > { %3593 = vrot.lane.b32.xlu1 %v17353_v60, %s8054_s20 }
 0x3ff   : > { %v12027_v31 = vpop.permute.xlu0 %3481 }
 0x400   : > { %17530 = vst [vmem:[#allocation370_spill] sm:$0xff] %v12027_v31  ;;  %v12029_v11 = vpop.permute.xlu1 %3471 }
 0x401   : > { %17531 = vst [vmem:[#allocation444_spill] sm:$0xff] %v12029_v11  ;;  %3607 = vrot.lane.b32.xlu0 %v17374_v59, %s8054_s20 }
 0x402   : > { %3597 = vrot.lane.b32.xlu1 %v17358_v51, %s8054_s20 }
 0x403   : > { %v12035_v18 = vpop.permute.xlu0 %3485 }
 0x404   : > { %17532 = vst [vmem:[#allocation454_spill] sm:$0xff] %v12035_v18  ;;  %v12037_v20 = vpop.permute.xlu1 %3475 }
 0x405   : > { %17533 = vst [vmem:[#allocation380_spill] sm:$0xff] %v12037_v20  ;;  %3611 = vrot.lane.b32.xlu0 %v17378_v48, %s8054_s20 }
 0x406   : > { %3601 = vrot.lane.b32.xlu1 %v17361_v15, %s8054_s20 }
 0x407   : > { %v12043_v60 = vpop.permute.xlu0 %3489 }
 0x408   : > { %17534 = vst [vmem:[#allocation378_spill] sm:$0xff] %v12043_v60  ;;  %v12045_v53 = vpop.permute.xlu1 %3479 }
 0x409   : > { %17535 = vst [vmem:[#allocation415_spill] sm:$0xff] %v12045_v53  ;;  %3615 = vrot.lane.b32.xlu0 %v17334_v55, %s8054_s20 }
 0x40a   : > { %3605 = vrot.lane.b32.xlu1 %v17364_v13, %s8054_s20 }
 0x40b   : > { %v12051_v11 = vpop.permute.xlu0 %3493 }
 0x40c   : > { %17536 = vst [vmem:[#allocation423_spill] sm:$0xff] %v12051_v11  ;;  %v12053_v58 = vpop.permute.xlu1 %3483 }
 0x40d   : > { %17537 = vst [vmem:[#allocation385_spill] sm:$0xff] %v12053_v58  ;;  %3619 = vrot.lane.b32.xlu0 %v17340_v8, %s8054_s20  ;;  %v17616_v8 = vld [vmem:[#allocation102_spill] sm:$0xff] }
 0x40e   : > { %3609 = vrot.lane.b32.xlu1 %v17343_v30, %s8054_s20 }
 0x40f   : > { %v12059_v20 = vpop.permute.xlu0 %3497 }
 0x410   : > { %17538 = vst [vmem:[#allocation388_spill] sm:$0xff] %v12059_v20  ;;  %v12061_v60 = vpop.permute.xlu1 %3487 }
 0x411   : > { %17539 = vst [vmem:[#allocation447_spill] sm:$0xff] %v12061_v60  ;;  %3623 = vrot.lane.b32.xlu0 %v17540_v43, %s8054_s20 }
 0x412   : > { %3613 = vrot.lane.b32.xlu1 %v17349_v1, %s8054_s20 }
 0x413   : > { %v12067_v56 = vpop.permute.xlu0 %3501 }
 0x414   : > { %17541 = vst [vmem:[#allocation456_spill] sm:$0xff] %v12067_v56  ;;  %v12069_v11 = vpop.permute.xlu1 %3491 }
 0x415   : > { %17542 = vst [vmem:[#allocation387_spill] sm:$0xff] %v12069_v11  ;;  %3627 = vrot.lane.b32.xlu0 %v17392_v24, %s8055_s24 }
 0x416   : > { %3617 = vrot.lane.b32.xlu1 %v17354_v29, %s8054_s20 }
 0x417   : > { %v12075_v20 = vpop.permute.xlu0 %3505 }
 0x418   : > { %17543 = vst [vmem:[#allocation417_spill] sm:$0xff] %v12075_v20  ;;  %v12077_v60 = vpop.permute.xlu1 %3495 }
 0x419   : > { %17544 = vst [vmem:[#allocation425_spill] sm:$0xff] %v12077_v60  ;;  %3631 = vrot.lane.b32.xlu0 %v17396_v16, %s8055_s24  ;;  %v17568_v60 = vld [vmem:[#allocation144_spill] sm:$0xff] }
 0x41a   : > { %3621 = vrot.lane.b32.xlu1 %v17377_v21, %s8054_s20 }
 0x41b   : > { %v12083_v56 = vpop.permute.xlu0 %3509 }
 0x41c   : > { %17545 = vst [vmem:[#allocation389_spill] sm:$0xff] %v12083_v56  ;;  %v12085_v11 = vpop.permute.xlu1 %3499 }
 0x41d   : > { %17546 = vst [vmem:[#allocation449_spill] sm:$0xff] %v12085_v11  ;;  %3635 = vrot.lane.b32.xlu0 %v17400_v40, %s8055_s24  ;;  %v17560_v11 = vld [vmem:[#allocation105_spill] sm:$0xff] }
 0x41e   : > { %3625 = vrot.lane.b32.xlu1 %v17381_v25, %s8055_s24 }
 0x41f   : > { %v12091_v24 = vpop.permute.xlu0 %3513 }
 0x420   : > { %17547 = vst [vmem:[#allocation153_spill] sm:$0xff] %v12091_v24  ;;  %v12093_v20 = vpop.permute.xlu1 %3503 }
 0x421   : > { %17548 = vst [vmem:[#allocation394_spill] sm:$0xff] %v12093_v20  ;;  %3639 = vrot.lane.b32.xlu0 %v17403_v9, %s8055_s24  ;;  %v17553_v9 = vld [vmem:[#allocation221_spill] sm:$0xff] }
 0x422   : > { %3629 = vrot.lane.b32.xlu1 %v17384_v7, %s8055_s24 }
 0x423   : > { %v12099_v16 = vpop.permute.xlu0 %3517 }
 0x424   : > { %17549 = vst [vmem:[#allocation379_spill] sm:$0xff] %v12099_v16  ;;  %v12101_v56 = vpop.permute.xlu1 %3507 }
 0x425   : > { %17550 = vst [vmem:[#allocation418_spill] sm:$0xff] %v12101_v56  ;;  %3643 = vrot.lane.b32.xlu0 %v17407_v47, %s8055_s24  ;;  %v17556_v56 = vld [vmem:[#allocation356_spill] sm:$0xff]  ;;  %v17557_v47 = vld [vmem:[#allocation263_spill] sm:$0xff] }
 0x426   : > { %3633 = vrot.lane.b32.xlu1 %v17387_v32, %s8055_s24 }
 0x427   : > { %v12107_v25 = vpop.permute.xlu0 %3528 }
 0x428   : > { %17551 = vst [vmem:[#allocation427_spill] sm:$0xff] %v12107_v25  ;;  %v12109_v40 = vpop.permute.xlu1 %3511 }
 0x429   : > { %17552 = vst [vmem:[#allocation391_spill] sm:$0xff] %v12109_v40  ;;  %3647 = vrot.lane.b32.xlu0 %v17410_v34, %s8055_s24  ;;  %v17561_v34 = vld [vmem:[#allocation310_spill] sm:$0xff] }
 0x42a   : > { %3637 = vrot.lane.b32.xlu1 %v17553_v9, %s8055_s24 }
 0x42b   : > { %v12115_v7 = vpop.permute.xlu0 %3532 }
 0x42c   : > { %17554 = vst [vmem:[#allocation393_spill] sm:$0xff] %v12115_v7  ;;  %v12117_v20 = vpop.permute.xlu1 %3515 }
 0x42d   : > { %17555 = vst [vmem:[#allocation392_spill] sm:$0xff] %v12117_v20  ;;  %3651 = vrot.lane.b32.xlu0 %v17556_v56, %s8055_s24  ;;  %v17564_v56 = vld [vmem:[#allocation113_spill] sm:$0xff] }
 0x42e   : > { %3641 = vrot.lane.b32.xlu1 %v17557_v47, %s8055_s24  ;;  %v17565_v47 = vld [vmem:[#allocation348_spill] sm:$0xff] }
 0x42f   : > { %v12123_v32 = vpop.permute.xlu0 %3536 }
 0x430   : > { %17558 = vst [vmem:[#allocation451_spill] sm:$0xff] %v12123_v32  ;;  %v12125_v25 = vpop.permute.xlu1 %3526 }
 0x431   : > { %17559 = vst [vmem:[#allocation139_spill] sm:$0xff] %v12125_v25  ;;  %3655 = vrot.lane.b32.xlu0 %v17560_v11, %s8055_s24 }
 0x432   : > { %3645 = vrot.lane.b32.xlu1 %v17561_v34, %s8055_s24  ;;  %v17569_v34 = vld [vmem:[#allocation100_spill] sm:$0xff] }
 0x433   : > { %v12131_v9 = vpop.permute.xlu0 %3540 }
 0x434   : > { %17562 = vst [vmem:[#allocation320_spill] sm:$0xff] %v12131_v9  ;;  %v12133_v7 = vpop.permute.xlu1 %3530 }
 0x435   : > { %17563 = vst [vmem:[#allocation420_spill] sm:$0xff] %v12133_v7  ;;  %3659 = vrot.lane.b32.xlu0 %v17564_v56, %s8056_s25  ;;  %v17573_v56 = vld [vmem:[#allocation107_spill] sm:$0xff] }
 0x436   : > { %3649 = vrot.lane.b32.xlu1 %v17565_v47, %s8055_s24 }
 0x437   : > { %v12139_v32 = vpop.permute.xlu0 %3544 }
 0x438   : > { %17566 = vst [vmem:[#allocation429_spill] sm:$0xff] %v12139_v32  ;;  %v12141_v25 = vpop.permute.xlu1 %3534 }
 0x439   : > { %17567 = vst [vmem:[#allocation396_spill] sm:$0xff] %v12141_v25  ;;  %3663 = vrot.lane.b32.xlu0 %v17568_v60, %s8056_s25  ;;  %v17576_v25 = vld [vmem:[#allocation228_spill] sm:$0xff]  ;;  %v17577_v60 = vld [vmem:[#allocation119_spill] sm:$0xff] }
 0x43a   : > { %3653 = vrot.lane.b32.xlu1 %v17569_v34, %s8055_s24  ;;  %v17591_v34 = vld [vmem:[#allocation344_spill] sm:$0xff] }
 0x43b   : > { %v12147_v9 = vpop.permute.xlu0 %3548 }
 0x43c   : > { %17570 = vst [vmem:[#allocation453_spill] sm:$0xff] %v12147_v9  ;;  %v12149_v7 = vpop.permute.xlu1 %3538 }
 0x43d   : > { %17571 = vst [vmem:[#allocation459_spill] sm:$0xff] %v12149_v7  ;;  %3667 = vrot.lane.b32.xlu0 %v17572_v45, %s8056_s25  ;;  %v17580_v7 = vld [vmem:[#allocation278_spill] sm:$0xff]  ;;  %v17581_v45 = vld [vmem:[#allocation161_spill] sm:$0xff] }
 0x43e   : > { %3657 = vrot.lane.b32.xlu1 %v17573_v56, %s8056_s25 }
 0x43f   : > { %v12155_v47 = vpop.permute.xlu0 %3552 }
 0x440   : > { %17574 = vst [vmem:[#allocation382_spill] sm:$0xff] %v12155_v47  ;;  %v12157_v32 = vpop.permute.xlu1 %3542 }
 0x441   : > { %17575 = vst [vmem:[#allocation422_spill] sm:$0xff] %v12157_v32  ;;  %3671 = vrot.lane.b32.xlu0 %v17576_v25, %s8056_s25  ;;  %v17584_v25 = vld [vmem:[#allocation211_spill] sm:$0xff] }
 0x442   : > { %3661 = vrot.lane.b32.xlu1 %v17577_v60, %s8056_s25 }
 0x443   : > { %v12163_v57 = vpop.permute.xlu0 %3556 }
 0x444   : > { %17578 = vst [vmem:[#allocation431_spill] sm:$0xff] %v12163_v57  ;;  %v12165_v9 = vpop.permute.xlu1 %3546 }
 0x445   : > { %17579 = vst [vmem:[#allocation395_spill] sm:$0xff] %v12165_v9  ;;  %3675 = vrot.lane.b32.xlu0 %v17580_v7, %s8056_s25  ;;  %v17587_v9 = vld [vmem:[#allocation353_spill] sm:$0xff]  ;;  %v17588_v7 = vld [vmem:[#allocation254_spill] sm:$0xff] }
 0x446   : > { %3665 = vrot.lane.b32.xlu1 %v17581_v45, %s8056_s25 }
 0x447   : > { %v12171_v56 = vpop.permute.xlu0 %3563 }
 0x448   : > { %17582 = vst [vmem:[#allocation390_spill] sm:$0xff] %v12171_v56  ;;  %v12173_v11 = vpop.permute.xlu1 %3550 }
 0x449   : > { %17583 = vst [vmem:[#allocation455_spill] sm:$0xff] %v12173_v11  ;;  %3679 = vrot.lane.b32.xlu0 %v17258_v6, %s8056_s25  ;;  %v17592_v6 = vld [vmem:[#allocation296_spill] sm:$0xff] }
 0x44a   : > { %3669 = vrot.lane.b32.xlu1 %v17584_v25, %s8056_s25 }
 0x44b   : > { %v12179_v60 = vpop.permute.xlu0 %3567 }
 0x44c   : > { %17585 = vst [vmem:[#allocation194_spill] sm:$0xff] %v12179_v60  ;;  %v12181_v32 = vpop.permute.xlu1 %3554 }
 0x44d   : > { %17586 = vst [vmem:[#allocation397_spill] sm:$0xff] %v12181_v32  ;;  %3683 = vrot.lane.b32.xlu0 %v17587_v9, %s8056_s25  ;;  %v17595_v9 = vld [vmem:[#allocation135_spill] sm:$0xff] }
 0x44e   : > { %3673 = vrot.lane.b32.xlu1 %v17588_v7, %s8056_s25  ;;  %v17596_v7 = vld [vmem:[#allocation334_spill] sm:$0xff] }
 0x44f   : > { %v12187_v45 = vpop.permute.xlu0 %3571 }
 0x450   : > { %17589 = vst [vmem:[#allocation424_spill] sm:$0xff] %v12187_v45  ;;  %v12189_v56 = vpop.permute.xlu1 %3561 }
 0x451   : > { %17590 = vst [vmem:[#allocation433_spill] sm:$0xff] %v12189_v56  ;;  %3687 = vrot.lane.b32.xlu0 %v17591_v34, %s8056_s25  ;;  %v17599_v34 = vld [vmem:[#allocation342_spill] sm:$0xff] }
 0x452   : > { %3677 = vrot.lane.b32.xlu1 %v17592_v6, %s8056_s25  ;;  %v17600_v6 = vld [vmem:[#allocation340_spill] sm:$0xff] }
 0x453   : > { %v12195_v25 = vpop.permute.xlu0 %3575 }
 0x454   : > { %17593 = vst [vmem:[#allocation399_spill] sm:$0xff] %v12195_v25  ;;  %v12197_v60 = vpop.permute.xlu1 %3565 }
 0x455   : > { %17594 = vst [vmem:[#allocation408_spill] sm:$0xff] %v12197_v60  ;;  %3698 = vrot.lane.b32.xlu0 %v17595_v9, %s8057_s29  ;;  %v17604_v9 = vld [vmem:[#allocation352_spill] sm:$0xff] }
 0x456   : > { %3681 = vrot.lane.b32.xlu1 %v17596_v7, %s8056_s25 }
 0x457   : > { %v12203_v45 = vpop.permute.xlu0 %3579 }
 0x458   : > { %17597 = vst [vmem:[#allocation381_spill] sm:$0xff] %v12203_v45  ;;  %v12205_v56 = vpop.permute.xlu1 %3569 }
 0x459   : > { %17598 = vst [vmem:[#allocation457_spill] sm:$0xff] %v12205_v56  ;;  %3702 = vrot.lane.b32.xlu0 %v17599_v34, %s8057_s29  ;;  %v17606_v56 = vld [vmem:[#allocation339_spill] sm:$0xff] }
 0x45a   : > { %3685 = vrot.lane.b32.xlu1 %v17600_v6, %s8056_s25 }
 0x45b   : > { %v12211_v25 = vpop.permute.xlu0 %3583 }
 0x45c   : > { %17601 = vst [vmem:[#allocation403_spill] sm:$0xff] %v12211_v25  ;;  %v12213_v60 = vpop.permute.xlu1 %3573 }
 0x45d   : > { %17602 = vst [vmem:[#allocation398_spill] sm:$0xff] %v12213_v60  ;;  %3706 = vrot.lane.b32.xlu0 %v17603_v54, %s8057_s29  ;;  %v17608_v60 = vld [vmem:[#allocation351_spill] sm:$0xff] }
 0x45e   : > { %3696 = vrot.lane.b32.xlu1 %v17604_v9, %s8057_s29 }
 0x45f   : > { %v12219_v7 = vpop.permute.xlu0 %3587 }
 0x460   : > { %v12221_v45 = vpop.permute.xlu1 %3577 }
 0x461   : > { %17605 = vst [vmem:[#allocation426_spill] sm:$0xff] %v12221_v45  ;;  %3710 = vrot.lane.b32.xlu0 %v17502_v38, %s8057_s29  ;;  %v17610_v45 = vld [vmem:[#allocation99_spill] sm:$0xff]  ;;  %v17612_v38 = vld [vmem:[#allocation96_spill] sm:$0xff] }
 0x462   : > { %3700 = vrot.lane.b32.xlu1 %v17606_v56, %s8057_s29  ;;  %v12240_v6 = vrot.slane %v17610_v45, 1  ;;  %v17613_v41 = vshll.u32 %v17612_v38, 16 }
 0x463   : > { %v12227_v34 = vpop.permute.xlu0 %3591 }
 0x464   : > { %v12229_v25 = vpop.permute.xlu1 %3581  ;;  %17611 = vst [vmem:[#allocation401_spill] sm:$0xff] %v12240_v6  ;;  %v3693_v56 = vrot.slane %v17613_v41, 2  ;;  %v17618_v41 = vld [vmem:[#allocation332_spill] sm:$0xff] }
 0x465   : > { %17607 = vst [vmem:[#allocation435_spill] sm:$0xff] %v12229_v25  ;;  %3714 = vrot.lane.b32.xlu0 %v11924_v28, %s8057_s29  ;;  %v17614_v25 = vld [vmem:[#allocation154_spill] sm:$0xff]  ;;  %v17615_v28 = vld [vmem:[#allocation103_spill] sm:$0xff] }
 0x466   : > { %3704 = vrot.lane.b32.xlu1 %v17608_v60, %s8057_s29  ;;  %v3689_v14 = vrot.slane %v17615_v28, 1  ;;  %v3690_v60 = vrot.slane %v17616_v8, 2  ;;  %v3694_v45 = vor.u32 %v3693_v56, %v12240_v6 }
 0x467   : > { %v12235_v9 = vpop.permute.xlu0 %3595 }
 0x468   : > { %17609 = vst [vmem:[#allocation414_spill] sm:$0xff] %v12235_v9  ;;  %v12237_v54 = vpop.permute.xlu1 %3585  ;;  %v3691_v48 = vor.u32 %v3690_v60, %v3689_v14 }
 0x469   : > { %3718 = vrot.lane.b32.xlu0 %v11936_v26, %s8057_s29 }
 0x46a   : > { %3708 = vrot.lane.b32.xlu1 %v17614_v25, %s8057_s29  ;;  %v12264_v28 = vsel %vm3227_vm7, %v3691_v48, %v3694_v45  ;;  %vm4132_vm7 = vcmask 359424  }
 0x46b   : > { %v12250_v55 = vpop.permute.xlu0 %3599  ;;  %17621 = vst [vmem:[#allocation410_spill] sm:$0xff] %v12264_v28 }
 0x46c   : > { %17617 = vst [vmem:[#allocation458_spill] sm:$0xff] %v12250_v55  ;;  %v12252_v9 = vpop.permute.xlu1 %3589  ;;  %v17622_v55 = vld [vmem:[#allocation363_spill] sm:$0xff] }
 0x46d   : > { %3722 = vrot.lane.b32.xlu0 %v17511_v36, %s8057_s29 }
 0x46e   : > { %3712 = vrot.lane.b32.xlu1 %v17618_v41, %s8057_s29 }
 0x46f   : > { %v12259_v21 = vpop.permute.xlu0 %3603 }
 0x470   : > { %17619 = vst [vmem:[#allocation428_spill] sm:$0xff] %v12259_v21  ;;  %v12261_v25 = vpop.permute.xlu1 %3593 }
 0x471   : > { %17620 = vst [vmem:[#allocation437_spill] sm:$0xff] %v12261_v25  ;;  %3726 = vrot.lane.b32.xlu0 %v12264_v28, %s8057_s29  ;;  %v17727_v25 = vld [vmem:[#allocation238_spill] sm:$0xff] }
 0x472   : > { %3716 = vrot.lane.b32.xlu1 %v17622_v55, %s8057_s29 }
 0x473   : > { %v12270_v56 = vpop.permute.xlu0 %3607 }
 0x474   : > { %17623 = vst [vmem:[#allocation148_spill] sm:$0xff] %v12270_v56  ;;  %v12272_v6 = vpop.permute.xlu1 %3597 }
 0x475   : > { %17624 = vst [vmem:[#allocation402_spill] sm:$0xff] %v12272_v6  ;;  %3733 = vrot.lane.b32.xlu0 %v10768_v33, %s8058_s11 }
 0x476   : > { %3720 = vrot.lane.b32.xlu1 %v17501_v12, %s8057_s29 }
 0x477   : > { %v12278_v14 = vpop.permute.xlu0 %3611 }
 0x478   : > { %17625 = vst [vmem:[#allocation430_spill] sm:$0xff] %v12278_v14  ;;  %v12280_v48 = vpop.permute.xlu1 %3601 }
 0x479   : > { %17626 = vst [vmem:[#allocation439_spill] sm:$0xff] %v12280_v48  ;;  %3737 = vrot.lane.b32.xlu0 %v10780_v5, %s8058_s11  ;;  %v17719_v48 = vld [vmem:[#allocation234_spill] sm:$0xff] }
 0x47a   : > { %3724 = vrot.lane.b32.xlu1 %v11921_v44, %s8057_s29  ;;  %v17731_v44 = vld [vmem:[#allocation100_spill] sm:$0xff] }
 0x47b   : > { %v12286_v60 = vpop.permute.xlu0 %3615 }
 0x47c   : > { %17627 = vst [vmem:[#allocation164_spill] sm:$0xff] %v12286_v60  ;;  %v12288_v45 = vpop.permute.xlu1 %3605 }
 0x47d   : > { %17628 = vst [vmem:[#allocation400_spill] sm:$0xff] %v12288_v45  ;;  %3741 = vrot.lane.b32.xlu0 %v17312_v23, %s8058_s11  ;;  %v17639_v45 = vld [vmem:[#allocation291_spill] sm:$0xff] }
 0x47e   : > { %3731 = vrot.lane.b32.xlu1 %v17314_v22, %s8058_s11 }
 0x47f   : > { %v3620_v33 = vpop.permute.xlu0 %3619 }
 0x480   : > { %v12294_v14 = vpop.permute.xlu1 %3609 }
 0x481   : > { %17629 = vst [vmem:[#allocation98_spill] sm:$0xff] %v12294_v14  ;;  %3745 = vrot.lane.b32.xlu0 %v17322_v37, %s8058_s11 }
 0x482   : > { %3735 = vrot.lane.b32.xlu1 %v17324_v39, %s8058_s11 }
 0x483   : > { %v12300_v5 = vpop.permute.xlu0 %3623 }
 0x484   : > { %v12302_v60 = vpop.permute.xlu1 %3613 }
 0x485   : > { %17630 = vst [vmem:[#allocation416_spill] sm:$0xff] %v12302_v60  ;;  %3749 = vrot.lane.b32.xlu0 %v17331_v61, %s8058_s11  ;;  %v3729_v60 = vrot.slane %v17612_v38, 2  ;;  %v3728_v61 = vrot.slane %v17540_v43, 2 }
 0x486   : > { %3739 = vrot.lane.b32.xlu1 %v17337_v19, %s8058_s11 }
 0x487   : > { %v12308_v23 = vpop.permute.xlu0 %3627 }
 0x488   : > { %17631 = vst [vmem:[#allocation432_spill] sm:$0xff] %v12308_v23  ;;  %v12310_v22 = vpop.permute.xlu1 %3617  ;;  %v17636_v23 = vld [vmem:[#allocation305_spill] sm:$0xff] }
 0x489   : > { %3753 = vrot.lane.b32.xlu0 %v11520_v27, %s8058_s11 }
 0x48a   : > { %3743 = vrot.lane.b32.xlu1 %v17346_v0, %s8058_s11  ;;  %v3730_v0 = vsel %vm16348_vm2, %v3728_v61, %v3729_v60  ;;  %v17642_v61 = vld [vmem:[#allocation259_spill] sm:$0xff]  ;;  %vm16349_vm2 = vcmask 392192  }
 0x48b   : > { %v12316_v37 = vpop.permute.xlu0 %3631 }
 0x48c   : > { %17632 = vst [vmem:[#allocation441_spill] sm:$0xff] %v12316_v37  ;;  %v12318_v39 = vpop.permute.xlu1 %3621 }
 0x48d   : > { %3757 = vrot.lane.b32.xlu0 %v11553_v49, %s8058_s11  ;;  %v17637_v49 = vld [vmem:[#allocation230_spill] sm:$0xff] }
 0x48e   : > { %3747 = vrot.lane.b32.xlu1 %v11560_v52, %s8058_s11  ;;  %v3836_v14 = vsel %vm574_vm1, %v17637_v49, %v17636_v23 }
 0x48f   : > { %v12326_v19 = vpop.permute.xlu0 %3635 }
 0x490   : > { %17633 = vst [vmem:[#allocation196_spill] sm:$0xff] %v12326_v19  ;;  %v12328_v27 = vpop.permute.xlu1 %3625  ;;  %v3870_v19 = vsel %vm2227_vm8, %v3836_v14, %v17639_v45  ;;  %v17645_v14 = vld [vmem:[#allocation294_spill] sm:$0xff] }
 0x491   : > { %17634 = vst [vmem:[#allocation434_spill] sm:$0xff] %v12328_v27  ;;  %3761 = vrot.lane.b32.xlu0 %v3730_v0, %s8058_s11  ;;  %v12354_v23 = vsel %vm2292_vm9, %v3870_v19, %v11936_v26  ;;  %v17715_v27 = vld [vmem:[#allocation145_spill] sm:$0xff] }
 0x492   : > { %3751 = vrot.lane.b32.xlu1 %v11575_v46, %s8058_s11  ;;  %v17641_v46 = vld [vmem:[#allocation225_spill] sm:$0xff]  ;;  %17643 = vst [vmem:[#allocation155_spill] sm:$0xff] %v12354_v23 }
 0x493   : > { %v12334_v37 = vpop.permute.xlu0 %3639  ;;  %v3842_v0 = vsel %vm574_vm1, %v17642_v61, %v17641_v46 }
 0x494   : > { %17635 = vst [vmem:[#allocation412_spill] sm:$0xff] %v12334_v37  ;;  %v12339_v52 = vpop.permute.xlu1 %3629  ;;  %v3874_v45 = vsel %vm2227_vm8, %v3842_v0, %v17645_v14  ;;  %v17651_v0 = vld [vmem:[#allocation227_spill] sm:$0xff]  ;;  %v17714_v37 = vld [vmem:[#allocation312_spill] sm:$0xff] }
 0x495   : > { %17638 = vst [vmem:[#allocation443_spill] sm:$0xff] %v12339_v52  ;;  %3765 = vrot.lane.b32.xlu0 %v17358_v51, %s8059_s12  ;;  %v17646_v52 = vld [vmem:[#allocation335_spill] sm:$0xff]  ;;  %v12375_v46 = vsel %vm2292_vm9, %v3874_v45, %v17511_v36  ;;  %v17653_v36 = vld [vmem:[#allocation273_spill] sm:$0xff] }
 0x496   : > { %3755 = vrot.lane.b32.xlu1 %v11590_v62, %s8058_s11  ;;  %v3934_v51 = vsel %vm2357_vm10, %v12354_v23, %v17646_v52  ;;  %17648 = vst [vmem:[#allocation404_spill] sm:$0xff] %v12375_v46 }
 0x497   : > { %v12347_v60 = vpop.permute.xlu0 %3643  ;;  %v3966_v62 = vsel %vm2422_vm11, %v3934_v51, %v11958_v35  ;;  %v17652_v51 = vld [vmem:[#allocation364_spill] sm:$0xff] }
 0x498   : > { %17640 = vst [vmem:[#allocation405_spill] sm:$0xff] %v12347_v60  ;;  %v12356_v49 = vpop.permute.xlu1 %3633  ;;  %v3998_v26 = vsel %vm2487_vm12, %v3966_v62, %v12027_v31  ;;  %v17712_v60 = vld [vmem:[#allocation151_spill] sm:$0xff] }
 0x499   : > { %17644 = vst [vmem:[#allocation204_spill] sm:$0xff] %v12356_v49  ;;  %3769 = vrot.lane.b32.xlu0 %v17361_v15, %s8059_s12  ;;  %v4030_v52 = vsel %vm2552_vm14, %v3998_v26, %v12091_v24  ;;  %v17650_v15 = vld [vmem:[#allocation242_spill] sm:$0xff]  ;;  %v17711_v49 = vld [vmem:[#allocation260_spill] sm:$0xff] }
 0x49a   : > { %3759 = vrot.lane.b32.xlu1 %v11997_v4, %s8058_s11  ;;  %v3833_v14 = vsel %vm574_vm1, %v17651_v0, %v17650_v15  ;;  %v3938_v4 = vsel %vm2357_vm10, %v12375_v46, %v17652_v51  ;;  %v4062_v62 = vsel %vm2617_vm13, %v4030_v52, %v12155_v47  ;;  %v17739_v46 = vld [vmem:[#allocation226_spill] sm:$0xff] }
 0x49b   : > { %v12371_v19 = vpop.permute.xlu0 %3647  ;;  %v3868_v45 = vsel %vm2227_vm8, %v3833_v14, %v17653_v36  ;;  %v3970_v26 = vsel %vm2422_vm11, %v3938_v4, %v11966_v2  ;;  %v17655_v4 = vld [vmem:[#allocation275_spill] sm:$0xff]  ;;  %v17751_v47 = vld [vmem:[#allocation346_spill] sm:$0xff] }
 0x49c   : > { %17647 = vst [vmem:[#allocation436_spill] sm:$0xff] %v12371_v19  ;;  %v12379_v61 = vpop.permute.xlu1 %3637  ;;  %v4002_v15 = vsel %vm2487_vm12, %v3970_v26, %v12035_v18  ;;  %v17659_v26 = vld [vmem:[#allocation358_spill] sm:$0xff]  ;;  %v17734_v18 = vld [vmem:[#allocation105_spill] sm:$0xff] }
 0x49d   : > { %17649 = vst [vmem:[#allocation201_spill] sm:$0xff] %v12379_v61  ;;  %3773 = vrot.lane.b32.xlu0 %v17364_v13, %s8059_s12  ;;  %v4094_v61 = vsel %vm2869_vm15, %v4062_v62, %v12219_v7  ;;  %v4034_v0 = vsel %vm2552_vm14, %v4002_v15, %v12099_v16  ;;  %v17656_v7 = vld [vmem:[#allocation224_spill] sm:$0xff]  ;;  %v17709_v19 = vld [vmem:[#allocation114_spill] sm:$0xff] }
 0x49e   : > { %3763 = vrot.lane.b32.xlu1 %v17365_v63, %s8059_s12  ;;  %v4127_v52 = vsel %vm4099_vm4, %v4094_v61, %v3620_v33  ;;  %v3839_v62 = vsel %vm574_vm1, %v17656_v7, %v17655_v4  ;;  %v12412_v63 = vsel %vm2292_vm9, %v3868_v45, %v17622_v55  ;;  %v4066_v33 = vsel %vm2617_vm13, %v4034_v0, %v12163_v57  ;;  %v17658_v61 = vld [vmem:[#allocation318_spill] sm:$0xff] }
 0x49f   : > { %v3652_v13 = vpop.permute.xlu0 %3651  ;;  %17657 = vst [vmem:[#allocation202_spill] sm:$0xff] %v12412_v63  ;;  %v3872_v36 = vsel %vm2227_vm8, %v3839_v62, %v17658_v61  ;;  %v3932_v15 = vsel %vm2357_vm10, %v12412_v63, %v17659_v26  ;;  %v17733_v16 = vld [vmem:[#allocation138_spill] sm:$0xff] }
 0x4a0   : > { %v4160_v14 = vsel %vm4132_vm7, %v4127_v52, %v3652_v13  ;;  %v12405_v51 = vpop.permute.xlu1 %3641  ;;  %v4098_v52 = vsel %vm2869_vm15, %v4066_v33, %v12227_v34  ;;  %v3964_v55 = vsel %vm2422_vm11, %v3932_v15, %v11976_v50  ;;  %v12438_v34 = vsel %vm2292_vm9, %v3872_v36, %v17501_v12  ;;  %v17752_v24 = vld [vmem:[#allocation246_spill] sm:$0xff] }
 0x4a1   : > { %17654 = vst [vmem:[#allocation445_spill] sm:$0xff] %v12405_v51  ;;  %3777 = vrot.lane.b32.xlu0 %v17343_v30, %s8059_s12  ;;  %v4131_v45 = vsel %vm4099_vm4, %v4098_v52, %v12300_v5  ;;  %v3996_v13 = vsel %vm2487_vm12, %v3964_v55, %v12045_v53  ;;  %17661 = vst [vmem:[#allocation215_spill] sm:$0xff] %v12438_v34  ;;  %v3936_v5 = vsel %vm2357_vm10, %v12438_v34, %v11902_v42  ;;  %v17708_v51 = vld [vmem:[#allocation131_spill] sm:$0xff]  ;;  %v17749_v34 = vld [vmem:[#allocation121_spill] sm:$0xff] }
 0x4a2   : > { %3767 = vrot.lane.b32.xlu1 %v17368_v17, %s8059_s12  ;;  %v4028_v17 = vsel %vm2552_vm14, %v3996_v13, %v12109_v40  ;;  %v3968_v12 = vsel %vm2422_vm11, %v3936_v5, %v11984_v3  ;;  %v17669_v13 = vld [vmem:[#allocation298_spill] sm:$0xff]  ;;  %v17672_v5 = vld [vmem:[#allocation111_spill] sm:$0xff]  ;;  %v17766_v53 = vld [vmem:[#allocation140_spill] sm:$0xff] }
 0x4a3   : > { %v3656_v30 = vpop.permute.xlu0 %3655  ;;  %v4060_v7 = vsel %vm2617_vm13, %v4028_v17, %v12173_v11  ;;  %v17747_v3 = vld [vmem:[#allocation207_spill] sm:$0xff] }
 0x4a4   : > { %v4164_v0 = vsel %vm4132_vm7, %v4131_v45, %v3656_v30  ;;  %v12434_v4 = vpop.permute.xlu1 %3645  ;;  %v4092_v62 = vsel %vm2869_vm15, %v4060_v7, %v12237_v54  ;;  %v17664_v45 = vld [vmem:[#allocation92_spill] sm:$0xff]  ;;  %v17759_v11 = vld [vmem:[#allocation331_spill] sm:$0xff] }
 0x4a5   : > { %17660 = vst [vmem:[#allocation407_spill] sm:$0xff] %v12434_v4  ;;  %3781 = vrot.lane.b32.xlu0 %v17349_v1, %s8059_s12  ;;  %v4000_v1 = vsel %vm2487_vm12, %v3968_v12, %v12053_v58  ;;  %v4125_v42 = vsel %vm4099_vm4, %v4092_v62, %v12310_v22  ;;  %v17673_v7 = vld [vmem:[#allocation264_spill] sm:$0xff]  ;;  %v17743_v58 = vld [vmem:[#allocation157_spill] sm:$0xff] }
 0x4a6   : > { %3771 = vrot.lane.b32.xlu1 %v17371_v10, %s8059_s12  ;;  %v4032_v36 = vsel %vm2552_vm14, %v4000_v1, %v12117_v20  ;;  %v17676_v1 = vld [vmem:[#allocation147_spill] sm:$0xff]  ;;  %v17742_v20 = vld [vmem:[#allocation272_spill] sm:$0xff] }
 0x4a7   : > { %v12455_v33 = vpop.permute.xlu0 %3659  ;;  %v4064_v54 = vsel %vm2617_vm13, %v4032_v36, %v12181_v32  ;;  %v17679_v36 = vld [vmem:[#allocation141_spill] sm:$0xff] }
 0x4a8   : > { %17662 = vst [vmem:[#allocation175_spill] sm:$0xff] %v12455_v33  ;;  %v3650_v61 = vpop.permute.xlu1 %3649  ;;  %v4096_v26 = vsel %vm2869_vm15, %v4064_v54, %v12252_v9  ;;  %v17668_v9 = vmov 0.0|0.0   ;;  %v17680_v54 = vld [vmem:[#allocation104_spill] sm:$0xff]  ;;  %v17706_v33 = vld [vmem:[#allocation129_spill] sm:$0xff] }
 0x4a9   : > { %v4158_v10 = vsel %vm4132_vm7, %v4125_v42, %v3650_v61  ;;  %3785 = vrot.lane.b32.xlu0 %v17354_v29, %s8059_s12  ;;  %v4129_v22 = vsel %vm4099_vm4, %v4096_v26, %v12318_v39  ;;  %v17665_v29 = vld [vmem:[#allocation255_spill] sm:$0xff]  ;;  %v17740_v32 = vld [vmem:[#allocation117_spill] sm:$0xff] }
 0x4aa   : > { %3775 = vrot.lane.b32.xlu1 %v17374_v59, %s8059_s12 }
 0x4ab   : > { %v12472_v15 = vpop.permute.xlu0 %3663 }
 0x4ac   : > { %17663 = vst [vmem:[#allocation3_spill] sm:$0xff] %v12472_v15  ;;  %v3654_v52 = vpop.permute.xlu1 %3653 }
 0x4ad   : > { %v4162_v55 = vsel %vm4132_vm7, %v4129_v22, %v3654_v52  ;;  %3789 = vrot.lane.b32.xlu0 %v17664_v45, %s8059_s12 }
 0x4ae   : > { %3779 = vrot.lane.b32.xlu1 %v17665_v29, %s8059_s12  ;;  %v17682_v29 = vld [vmem:[#allocation229_spill] sm:$0xff] }
 0x4af   : > { %v12481_v30 = vpop.permute.xlu0 %3667 }
 0x4b0   : > { %17666 = vst [vmem:[#allocation406_spill] sm:$0xff] %v12481_v30  ;;  %v12483_v59 = vpop.permute.xlu1 %3657 }
 0x4b1   : > { %17667 = vst [vmem:[#allocation191_spill] sm:$0xff] %v12483_v59  ;;  %3793 = vrot.lane.b32.xlu0 %v17668_v9, %s8059_s12 }
 0x4b2   : > { %3783 = vrot.lane.b32.xlu1 %v17669_v13, %s8059_s12  ;;  %v17683_v13 = vld [vmem:[#allocation125_spill] sm:$0xff] }
 0x4b3   : > { %v12489_v39 = vpop.permute.xlu0 %3671 }
 0x4b4   : > { %17670 = vst [vmem:[#allocation438_spill] sm:$0xff] %v12489_v39  ;;  %v12491_v17 = vpop.permute.xlu1 %3661  ;;  %v17691_v39 = vld [vmem:[#allocation239_spill] sm:$0xff] }
 0x4b5   : > { %17671 = vst [vmem:[#allocation160_spill] sm:$0xff] %v12491_v17  ;;  %4299 = vrot.lane.b32.xlu0 %v17672_v5, %s8053_s19  ;;  %v17689_v17 = vld [vmem:[#allocation128_spill] sm:$0xff] }
 0x4b6   : > { %3787 = vrot.lane.b32.xlu1 %v17673_v7, %s8059_s12 }
 0x4b7   : > { %v12497_v12 = vpop.permute.xlu0 %3675 }
 0x4b8   : > { %17674 = vst [vmem:[#allocation448_spill] sm:$0xff] %v12497_v12  ;;  %v12499_v62 = vpop.permute.xlu1 %3665  ;;  %v17688_v12 = vld [vmem:[#allocation232_spill] sm:$0xff] }
 0x4b9   : > { %17675 = vst [vmem:[#allocation156_spill] sm:$0xff] %v12499_v62  ;;  %4303 = vrot.lane.b32.xlu0 %v17676_v1, %s8053_s19  ;;  %v17685_v62 = vld [vmem:[#allocation269_spill] sm:$0xff] }
 0x4ba   : > { %3791 = vrot.lane.b32.xlu1 %v17540_v43, %s8059_s12 }
 0x4bb   : > { %v12505_v42 = vpop.permute.xlu0 %3679 }
 0x4bc   : > { %17677 = vst [vmem:[#allocation190_spill] sm:$0xff] %v12505_v42  ;;  %v12507_v61 = vpop.permute.xlu1 %3669 }
 0x4bd   : > { %17678 = vst [vmem:[#allocation460_spill] sm:$0xff] %v12507_v61  ;;  %4307 = vrot.lane.b32.xlu0 %v17679_v36, %s8053_s19 }
 0x4be   : > { %4297 = vrot.lane.b32.xlu1 %v17680_v54, %s8053_s19  ;;  %v17686_v54 = vld [vmem:[#allocation122_spill] sm:$0xff] }
 0x4bf   : > { %v3684_v26 = vpop.permute.xlu0 %3683 }
 0x4c0   : > { %v4193_v22 = vsel %vm16349_vm2, %v4160_v14, %v3684_v26  ;;  %v12514_v52 = vpop.permute.xlu1 %3673 }
 0x4c1   : > { %17681 = vst [vmem:[#allocation171_spill] sm:$0xff] %v12514_v52  ;;  %4311 = vrot.lane.b32.xlu0 %v17682_v29, %s8053_s19 }
 0x4c2   : > { %4301 = vrot.lane.b32.xlu1 %v17683_v13, %s8053_s19 }
 0x4c3   : > { %v3688_v7 = vpop.permute.xlu0 %3687 }
 0x4c4   : > { %v4197_v61 = vsel %vm16349_vm2, %v4164_v0, %v3688_v7  ;;  %v12521_v42 = vpop.permute.xlu1 %3677 }
 0x4c5   : > { %17684 = vst [vmem:[#allocation208_spill] sm:$0xff] %v12521_v42  ;;  %4315 = vrot.lane.b32.xlu0 %v17685_v62, %s8053_s19 }
 0x4c6   : > { %4305 = vrot.lane.b32.xlu1 %v17686_v54, %s8053_s19 }
 0x4c7   : > { %v12527_v14 = vpop.permute.xlu0 %3698 }
 0x4c8   : > { %17687 = vst [vmem:[#allocation409_spill] sm:$0xff] %v12527_v14  ;;  %v3682_v26 = vpop.permute.xlu1 %3681 }
 0x4c9   : > { %v4191_v52 = vsel %vm16349_vm2, %v4158_v10, %v3682_v26  ;;  %4319 = vrot.lane.b32.xlu0 %v17688_v12, %s8053_s19  ;;  %v17694_v26 = vld [vmem:[#allocation307_spill] sm:$0xff] }
 0x4ca   : > { %4309 = vrot.lane.b32.xlu1 %v17689_v17, %s8053_s19 }
 0x4cb   : > { %v12534_v0 = vpop.permute.xlu0 %3702 }
 0x4cc   : > { %17690 = vst [vmem:[#allocation218_spill] sm:$0xff] %v12534_v0  ;;  %v3686_v7 = vpop.permute.xlu1 %3685 }
 0x4cd   : > { %v4195_v42 = vsel %vm16349_vm2, %v4162_v55, %v3686_v7  ;;  %4323 = vrot.lane.b32.xlu0 %v17664_v45, %s8053_s19  ;;  %v17697_v55 = vld [vmem:[#allocation262_spill] sm:$0xff]  ;;  %vm16351_vm2 = vcmask 424960  }
 0x4ce   : > { %4313 = vrot.lane.b32.xlu1 %v17691_v39, %s8053_s19 }
 0x4cf   : > { %v12541_v14 = vpop.permute.xlu0 %3706 }
 0x4d0   : > { %17692 = vst [vmem:[#allocation440_spill] sm:$0xff] %v12541_v14  ;;  %v12543_v10 = vpop.permute.xlu1 %3696  ;;  %v17701_v14 = vld [vmem:[#allocation90_spill] sm:$0xff] }
 0x4d1   : > { %17693 = vst [vmem:[#allocation188_spill] sm:$0xff] %v12543_v10  ;;  %4327 = vrot.lane.b32.xlu0 %v17540_v43, %s8053_s19  ;;  %v17700_v10 = vld [vmem:[#allocation109_spill] sm:$0xff] }
 0x4d2   : > { %4317 = vrot.lane.b32.xlu1 %v17694_v26, %s8053_s19 }
 0x4d3   : > { %v12549_v0 = vpop.permute.xlu0 %3710 }
 0x4d4   : > { %17695 = vst [vmem:[#allocation195_spill] sm:$0xff] %v12549_v0  ;;  %v12551_v59 = vpop.permute.xlu1 %3700 }
 0x4d5   : > { %17696 = vst [vmem:[#allocation192_spill] sm:$0xff] %v12551_v59  ;;  %4331 = vrot.lane.b32.xlu0 %v17668_v9, %s8053_s19  ;;  %v17704_v59 = vld [vmem:[#allocation134_spill] sm:$0xff] }
 0x4d6   : > { %4321 = vrot.lane.b32.xlu1 %v17697_v55, %s8053_s19 }
 0x4d7   : > { %v12557_v45 = vpop.permute.xlu0 %3714 }
 0x4d8   : > { %17698 = vst [vmem:[#allocation214_spill] sm:$0xff] %v12557_v45  ;;  %v12559_v7 = vpop.permute.xlu1 %3704 }
 0x4d9   : > { %17699 = vst [vmem:[#allocation411_spill] sm:$0xff] %v12559_v7  ;;  %4335 = vrot.lane.b32.xlu0 %v17700_v10, %s8043_s13 }
 0x4da   : > { %4325 = vrot.lane.b32.xlu1 %v17701_v14, %s8053_s19 }
 0x4db   : > { %v12565_v30 = vpop.permute.xlu0 %3718 }
 0x4dc   : > { %17702 = vst [vmem:[#allocation106_spill] sm:$0xff] %v12565_v30  ;;  %v12567_v0 = vpop.permute.xlu1 %3708 }
 0x4dd   : > { %17703 = vst [vmem:[#allocation442_spill] sm:$0xff] %v12567_v0  ;;  %4339 = vrot.lane.b32.xlu0 %v17704_v59, %s8043_s13 }
 0x4de   : > { %4329 = vrot.lane.b32.xlu1 %v17612_v38, %s8053_s19 }
 0x4df   : > { %v3723_v45 = vpop.permute.xlu0 %3722 }
 0x4e0   : > { %v4226_v7 = vsel %vm16351_vm2, %v4193_v22, %v3723_v45  ;;  %v12574_v15 = vpop.permute.xlu1 %3712 }
 0x4e1   : > { %17705 = vst [vmem:[#allocation289_spill] sm:$0xff] %v12574_v15  ;;  %4343 = vrot.lane.b32.xlu0 %v17706_v33, %s8043_s13 }
 0x4e2   : > { %4333 = vrot.lane.b32.xlu1 %v17668_v9, %s8053_s19 }
 0x4e3   : > { %v3727_v30 = vpop.permute.xlu0 %3726 }
 0x4e4   : > { %v4230_v0 = vsel %vm16351_vm2, %v4197_v61, %v3727_v30  ;;  %v12581_v4 = vpop.permute.xlu1 %3716 }
 0x4e5   : > { %17707 = vst [vmem:[#allocation95_spill] sm:$0xff] %v12581_v4  ;;  %4347 = vrot.lane.b32.xlu0 %v17708_v51, %s8043_s13 }
 0x4e6   : > { %4337 = vrot.lane.b32.xlu1 %v17709_v19, %s8043_s13 }
 0x4e7   : > { %v12587_v22 = vpop.permute.xlu0 %3733 }
 0x4e8   : > { %17710 = vst [vmem:[#allocation235_spill] sm:$0xff] %v12587_v22  ;;  %v3721_v45 = vpop.permute.xlu1 %3720 }
 0x4e9   : > { %v4224_v15 = vsel %vm16351_vm2, %v4191_v52, %v3721_v45  ;;  %4351 = vrot.lane.b32.xlu0 %v17711_v49, %s8043_s13  ;;  %v17718_v45 = vld [vmem:[#allocation267_spill] sm:$0xff] }
 0x4ea   : > { %4341 = vrot.lane.b32.xlu1 %v17712_v60, %s8043_s13 }
 0x4eb   : > { %v12594_v30 = vpop.permute.xlu0 %3737 }
 0x4ec   : > { %17713 = vst [vmem:[#allocation116_spill] sm:$0xff] %v12594_v30  ;;  %v3725_v61 = vpop.permute.xlu1 %3724 }
 0x4ed   : > { %v4228_v4 = vsel %vm16351_vm2, %v4195_v42, %v3725_v61  ;;  %4355 = vrot.lane.b32.xlu0 %v17714_v37, %s8043_s13  ;;  %v17722_v42 = vld [vmem:[#allocation91_spill] sm:$0xff]  ;;  %v17723_v61 = vld [vmem:[#allocation285_spill] sm:$0xff]  ;;  %vm16367_vm2 = vcmask 457728  }
 0x4ee   : > { %4345 = vrot.lane.b32.xlu1 %v17715_v27, %s8043_s13 }
 0x4ef   : > { %v12601_v22 = vpop.permute.xlu0 %3741 }
 0x4f0   : > { %17716 = vst [vmem:[#allocation123_spill] sm:$0xff] %v12601_v22  ;;  %v12603_v52 = vpop.permute.xlu1 %3731 }
 0x4f1   : > { %17717 = vst [vmem:[#allocation143_spill] sm:$0xff] %v12603_v52  ;;  %4359 = vrot.lane.b32.xlu0 %v17718_v45, %s8043_s13  ;;  %v17726_v52 = vld [vmem:[#allocation99_spill] sm:$0xff] }
 0x4f2   : > { %4349 = vrot.lane.b32.xlu1 %v17719_v48, %s8043_s13 }
 0x4f3   : > { %v12609_v30 = vpop.permute.xlu0 %3745 }
 0x4f4   : > { %17720 = vst [vmem:[#allocation108_spill] sm:$0xff] %v12609_v30  ;;  %v12611_v6 = vpop.permute.xlu1 %3735 }
 0x4f5   : > { %17721 = vst [vmem:[#allocation120_spill] sm:$0xff] %v12611_v6  ;;  %4363 = vrot.lane.b32.xlu0 %v17722_v42, %s8043_s13  ;;  %v17730_v6 = vld [vmem:[#allocation112_spill] sm:$0xff] }
 0x4f6   : > { %4353 = vrot.lane.b32.xlu1 %v17723_v61, %s8043_s13 }
 0x4f7   : > { %v12617_v56 = vpop.permute.xlu0 %3749 }
 0x4f8   : > { %17724 = vst [vmem:[#allocation124_spill] sm:$0xff] %v12617_v56  ;;  %v12619_v22 = vpop.permute.xlu1 %3739 }
 0x4f9   : > { %17725 = vst [vmem:[#allocation127_spill] sm:$0xff] %v12619_v22  ;;  %4367 = vrot.lane.b32.xlu0 %v17726_v52, %s8043_s13 }
 0x4fa   : > { %4357 = vrot.lane.b32.xlu1 %v17727_v25, %s8043_s13 }
 0x4fb   : > { %v12625_v21 = vpop.permute.xlu0 %3753 }
 0x4fc   : > { %17728 = vst [vmem:[#allocation110_spill] sm:$0xff] %v12625_v21  ;;  %v12627_v30 = vpop.permute.xlu1 %3743 }
 0x4fd   : > { %17729 = vst [vmem:[#allocation126_spill] sm:$0xff] %v12627_v30  ;;  %4373 = vrot.lane.b32.xlu0 %v17730_v6, %s8046_s18  ;;  %v17736_v6 = vld [vmem:[#allocation193_spill] sm:$0xff] }
 0x4fe   : > { %4361 = vrot.lane.b32.xlu1 %v17731_v44, %s8043_s13  ;;  %v17737_v44 = vld [vmem:[#allocation71_spill] sm:$0xff] }
 0x4ff   : > { %v3758_v56 = vpop.permute.xlu0 %3757 }
 0x500   : > { %v4259_v22 = vsel %vm16367_vm2, %v4226_v7, %v3758_v56  ;;  %v12634_v57 = vpop.permute.xlu1 %3747 }
 0x501   : > { %17732 = vst [vmem:[#allocation189_spill] sm:$0xff] %v12634_v57  ;;  %4377 = vrot.lane.b32.xlu0 %v17733_v16, %s8046_s18 }
 0x502   : > { %4365 = vrot.lane.b32.xlu1 %v17734_v18, %s8043_s13 }
 0x503   : > { %v3762_v21 = vpop.permute.xlu0 %3761 }
 0x504   : > { %v4263_v30 = vsel %vm16367_vm2, %v4230_v0, %v3762_v21  ;;  %v12641_v2 = vpop.permute.xlu1 %3751 }
 0x505   : > { %17735 = vst [vmem:[#allocation115_spill] sm:$0xff] %v12641_v2  ;;  %4381 = vrot.lane.b32.xlu0 %v17736_v6, %s8046_s18 }
 0x506   : > { %7927 = vrot.lane.b32.xlu1 %v17737_v44, %s8043_s13 }
 0x507   : > { %v12647_v56 = vpop.permute.xlu0 %3765 }
 0x508   : > { %17738 = vst [vmem:[#allocation152_spill] sm:$0xff] %v12647_v56  ;;  %v3756_v7 = vpop.permute.xlu1 %3755 }
 0x509   : > { %v4257_v57 = vsel %vm16367_vm2, %v4224_v15, %v3756_v7  ;;  %4385 = vrot.lane.b32.xlu0 %v17739_v46, %s8046_s18  ;;  %v17746_v7 = vld [vmem:[#allocation316_spill] sm:$0xff] }
 0x50a   : > { %4375 = vrot.lane.b32.xlu1 %v17740_v32, %s8046_s18 }
 0x50b   : > { %v12654_v21 = vpop.permute.xlu0 %3769 }
 0x50c   : > { %17741 = vst [vmem:[#allocation203_spill] sm:$0xff] %v12654_v21  ;;  %v3760_v0 = vpop.permute.xlu1 %3759 }
 0x50d   : > { %v4261_v2 = vsel %vm16367_vm2, %v4228_v4, %v3760_v0  ;;  %4389 = vrot.lane.b32.xlu0 %v17742_v20, %s8046_s18  ;;  %v4418_v4 = vrot.slane %v17749_v34, 7  ;;  %vm4264_vm2 = vcmask 490496  }
 0x50e   : > { %4379 = vrot.lane.b32.xlu1 %v17743_v58, %s8046_s18 }
 0x50f   : > { %v12661_v56 = vpop.permute.xlu0 %3773 }
 0x510   : > { %17744 = vst [vmem:[#allocation237_spill] sm:$0xff] %v12661_v56  ;;  %v12663_v15 = vpop.permute.xlu1 %3763 }
 0x511   : > { %17745 = vst [vmem:[#allocation287_spill] sm:$0xff] %v12663_v15  ;;  %4393 = vrot.lane.b32.xlu0 %v17746_v7, %s8046_s18  ;;  %v17754_v15 = vld [vmem:[#allocation118_spill] sm:$0xff] }
 0x512   : > { %4383 = vrot.lane.b32.xlu1 %v17747_v3, %s8046_s18  ;;  %v4419_v31 = vor.u32 %v4418_v4, %v17754_v15 }
 0x513   : > { %v12669_v21 = vpop.permute.xlu0 %3777 }
 0x514   : > { %17748 = vst [vmem:[#allocation326_spill] sm:$0xff] %v12669_v21  ;;  %v12672_v0 = vpop.permute.xlu1 %3767  ;;  %v17756_v21 = vld [vmem:[#allocation292_spill] sm:$0xff] }
 0x515   : > { %17750 = vst [vmem:[#allocation101_spill] sm:$0xff] %v12672_v0  ;;  %4397 = vrot.lane.b32.xlu0 %v17751_v47, %s8046_s18 }
 0x516   : > { %4387 = vrot.lane.b32.xlu1 %v17752_v24, %s8046_s18 }
 0x517   : > { %v12678_v56 = vpop.permute.xlu0 %3781 }
 0x518   : > { %17753 = vst [vmem:[#allocation248_spill] sm:$0xff] %v12678_v56  ;;  %v12681_v35 = vpop.permute.xlu1 %3771 }
 0x519   : > { %17755 = vst [vmem:[#allocation281_spill] sm:$0xff] %v12681_v35  ;;  %4455 = vrot.lane.b32.xlu0 %v4419_v31, %s8047_s21  ;;  %v17762_v31 = vld [vmem:[#allocation149_spill] sm:$0xff] }
 0x51a   : > { %4391 = vrot.lane.b32.xlu1 %v17756_v21, %s8046_s18  ;;  %v4420_v23 = vrot.slane %v17762_v31, 7  ;;  %v17771_v31 = vld [vmem:[#allocation158_spill] sm:$0xff] }
 0x51b   : > { %v12686_v34 = vpop.permute.xlu0 %3785 }
 0x51c   : > { %17757 = vst [vmem:[#allocation93_spill] sm:$0xff] %v12686_v34  ;;  %v12688_v0 = vpop.permute.xlu1 %3775  ;;  %v17763_v34 = vld [vmem:[#allocation340_spill] sm:$0xff]  ;;  %v4421_v50 = vor.u32 %v4420_v23, %v17766_v53 }
 0x51d   : > { %17758 = vst [vmem:[#allocation221_spill] sm:$0xff] %v12688_v0  ;;  %4457 = vrot.lane.b32.xlu0 %v4418_v4, %s8047_s21 }
 0x51e   : > { %4395 = vrot.lane.b32.xlu1 %v17759_v11, %s8046_s18 }
 0x51f   : > { %v3790_v56 = vpop.permute.xlu0 %3789 }
 0x520   : > { %v12694_v15 = vsel %vm4264_vm2, %v4259_v22, %v3790_v56  ;;  %v12696_v35 = vpop.permute.xlu1 %3779 }
 0x521   : > { %17760 = vst [vmem:[#allocation356_spill] sm:$0xff] %v12694_v15  ;;  %17761 = vst [vmem:[#allocation263_spill] sm:$0xff] %v12696_v35  ;;  %4521 = vrot.lane.b32.xlu0 %v17672_v5, %s8048_s22 }
 0x522   : > { %4399 = vrot.lane.b32.xlu1 %v17763_v34, %s8046_s18 }
 0x523   : > { %v3794_v0 = vpop.permute.xlu0 %3793 }
 0x524   : > { %v12704_v4 = vsel %vm4264_vm2, %v4263_v30, %v3794_v0  ;;  %v12706_v40 = vpop.permute.xlu1 %3783  ;;  %v17768_v0 = vld [vmem:[#allocation172_spill] sm:$0xff] }
 0x525   : > { %17764 = vst [vmem:[#allocation310_spill] sm:$0xff] %v12704_v4  ;;  %17765 = vst [vmem:[#allocation113_spill] sm:$0xff] %v12706_v40  ;;  %4568 = vrot.lane.b32.xlu0 %v17709_v19, %s8049_s23  ;;  %v4422_v53 = vrot.slane %v17768_v0, 7  ;;  %v17786_v40 = vld [vmem:[#allocation146_spill] sm:$0xff] }
 0x526   : > { %4459 = vrot.lane.b32.xlu1 %v4421_v50, %s8047_s21  ;;  %v17770_v50 = vld [vmem:[#allocation323_spill] sm:$0xff]  ;;  %v17787_v35 = vrot.slane %v17786_v40, 7 }
 0x527   : > { %v12712_v22 = vpop.permute.xlu0 %4299 }
 0x528   : > { %v3788_v56 = vpop.permute.xlu1 %3787 }
 0x529   : > { %v12715_v5 = vsel %vm4264_vm2, %v4257_v57, %v3788_v56  ;;  %4609 = vrot.lane.b32.xlu0 %v17740_v32, %s8050_s26  ;;  %v4423_v32 = vor.u32 %v4422_v53, %v17771_v31 }
 0x52a   : > { %17767 = vst [vmem:[#allocation348_spill] sm:$0xff] %v12715_v5  ;;  %4461 = vrot.lane.b32.xlu1 %v4420_v23, %s8047_s21 }
 0x52b   : > { %v12720_v30 = vpop.permute.xlu0 %4303 }
 0x52c   : > { %v3792_v34 = vpop.permute.xlu1 %3791 }
 0x52d   : > { %v12724_v19 = vsel %vm4264_vm2, %v4261_v2, %v3792_v34  ;;  %4654 = vrot.lane.b32.xlu0 %v17770_v50, %s8051_s27  ;;  %v17773_v34 = vld [vmem:[#allocation324_spill] sm:$0xff] }
 0x52e   : > { %17769 = vst [vmem:[#allocation144_spill] sm:$0xff] %v12724_v19  ;;  %4523 = vrot.lane.b32.xlu1 %v17683_v13, %s8048_s22 }
 0x52f   : > { %v12730_v57 = vpop.permute.xlu0 %4307 }
 0x530   : > { %v12733_v56 = vpop.permute.xlu1 %4297 }
 0x531   : > { %4463 = vrot.lane.b32.xlu0 %v4423_v32, %s8047_s21 }
 0x532   : > { %4570 = vrot.lane.b32.xlu1 %v17704_v59, %s8049_s23 }
 0x533   : > { %v12738_v23 = vpop.permute.xlu0 %4311 }
 0x534   : > { %v12740_v2 = vpop.permute.xlu1 %4301 }
 0x535   : > { %4465 = vrot.lane.b32.xlu0 %v4422_v53, %s8047_s21  ;;  %v17775_v53 = vld [vmem:[#allocation159_spill] sm:$0xff] }
 0x536   : > { %4611 = vrot.lane.b32.xlu1 %v17733_v16, %s8050_s26 }
 0x537   : > { %v12745_v13 = vpop.permute.xlu0 %4315 }
 0x538   : > { %17772 = vst [vmem:[#allocation199_spill] sm:$0xff] %v12745_v13  ;;  %v12747_v0 = vpop.permute.xlu1 %4305 }
 0x539   : > { %4525 = vrot.lane.b32.xlu0 %v17676_v1, %s8048_s22  ;;  %v17777_v1 = vld [vmem:[#allocation130_spill] sm:$0xff] }
 0x53a   : > { %4656 = vrot.lane.b32.xlu1 %v17773_v34, %s8051_s27  ;;  %v17778_v19 = vrot.slane %v17777_v1, 7 }
 0x53b   : > { %v12753_v59 = vpop.permute.xlu0 %4319 }
 0x53c   : > { %17774 = vst [vmem:[#allocation107_spill] sm:$0xff] %v12753_v59  ;;  %v12755_v31 = vpop.permute.xlu1 %4309  ;;  %v17797_v59 = vld [vmem:[#allocation247_spill] sm:$0xff] }
 0x53d   : > { %4572 = vrot.lane.b32.xlu0 %v17712_v60, %s8049_s23  ;;  %v17781_v60 = vld [vmem:[#allocation295_spill] sm:$0xff] }
 0x53e   : > { %4467 = vrot.lane.b32.xlu1 %v17775_v53, %s8047_s21 }
 0x53f   : > { %v12761_v16 = vpop.permute.xlu0 %4323 }
 0x540   : > { %17776 = vst [vmem:[#allocation228_spill] sm:$0xff] %v12761_v16  ;;  %v12763_v32 = vpop.permute.xlu1 %4313 }
 0x541   : > { %4613 = vrot.lane.b32.xlu0 %v17743_v58, %s8050_s26  ;;  %v17784_v58 = vld [vmem:[#allocation165_spill] sm:$0xff] }
 0x542   : > { %4469 = vrot.lane.b32.xlu1 %v17778_v19, %s8047_s21 }
 0x543   : > { %v12770_v4 = vpop.permute.xlu0 %4327 }
 0x544   : > { %17779 = vst [vmem:[#allocation119_spill] sm:$0xff] %v12770_v4  ;;  %v12772_v15 = vpop.permute.xlu1 %4317 }
 0x545   : > { %17780 = vst [vmem:[#allocation278_spill] sm:$0xff] %v12772_v15  ;;  %4658 = vrot.lane.b32.xlu0 %v17781_v60, %s8051_s27 }
 0x546   : > { %4527 = vrot.lane.b32.xlu1 %v17686_v54, %s8048_s22 }
 0x547   : > { %v12778_v53 = vpop.permute.xlu0 %4331 }
 0x548   : > { %17782 = vst [vmem:[#allocation161_spill] sm:$0xff] %v12778_v53  ;;  %v12780_v5 = vpop.permute.xlu1 %4321 }
 0x549   : > { %17783 = vst [vmem:[#allocation211_spill] sm:$0xff] %v12780_v5  ;;  %4471 = vrot.lane.b32.xlu0 %v17784_v58, %s8047_s21 }
 0x54a   : > { %4574 = vrot.lane.b32.xlu1 %v17706_v33, %s8049_s23  ;;  %v17789_v33 = vld [vmem:[#allocation133_spill] sm:$0xff] }
 0x54b   : > { %v12786_v19 = vpop.permute.xlu0 %4335 }
 0x54c   : > { %v12788_v1 = vpop.permute.xlu1 %4325 }
 0x54d   : > { %17785 = vst [vmem:[#allocation353_spill] sm:$0xff] %v12788_v1  ;;  %4473 = vrot.lane.b32.xlu0 %v17787_v35, %s8047_s21  ;;  %v17791_v35 = vld [vmem:[#allocation166_spill] sm:$0xff] }
 0x54e   : > { %4615 = vrot.lane.b32.xlu1 %v17736_v6, %s8050_s26 }
 0x54f   : > { %v12795_v54 = vpop.permute.xlu0 %4339 }
 0x550   : > { %v12797_v53 = vpop.permute.xlu1 %4329 }
 0x551   : > { %17788 = vst [vmem:[#allocation254_spill] sm:$0xff] %v12797_v53  ;;  %4529 = vrot.lane.b32.xlu0 %v17679_v36, %s8048_s22  ;;  %v17792_v36 = vld [vmem:[#allocation132_spill] sm:$0xff] }
 0x552   : > { %4660 = vrot.lane.b32.xlu1 %v17789_v33, %s8051_s27  ;;  %v17793_v53 = vrot.slane %v17792_v36, 7 }
 0x553   : > { %v12803_v58 = vpop.permute.xlu0 %4343 }
 0x554   : > { %v12805_v4 = vpop.permute.xlu1 %4333 }
 0x555   : > { %17790 = vst [vmem:[#allocation296_spill] sm:$0xff] %v12805_v4  ;;  %4576 = vrot.lane.b32.xlu0 %v17715_v27, %s8049_s23  ;;  %v17794_v4 = vld [vmem:[#allocation257_spill] sm:$0xff]  ;;  %v17795_v27 = vld [vmem:[#allocation150_spill] sm:$0xff] }
 0x556   : > { %4475 = vrot.lane.b32.xlu1 %v17791_v35, %s8047_s21  ;;  %v4430_v16 = vrot.slane %v17794_v4, 7 }
 0x557   : > { %v12811_v40 = vpop.permute.xlu0 %4347 }
 0x558   : > { %v12813_v6 = vpop.permute.xlu1 %4337 }
 0x559   : > { %4617 = vrot.lane.b32.xlu0 %v17747_v3, %s8050_s26  ;;  %v4431_v3 = vor.u32 %v4430_v16, %v17797_v59  ;;  %v17801_v59 = vld [vmem:[#allocation276_spill] sm:$0xff] }
 0x55a   : > { %4477 = vrot.lane.b32.xlu1 %v17793_v53, %s8047_s21 }
 0x55b   : > { %v12820_v1 = vpop.permute.xlu0 %4351 }
 0x55c   : > { %v12823_v5 = vpop.permute.xlu1 %4341 }
 0x55d   : > { %4662 = vrot.lane.b32.xlu0 %v17795_v27, %s8051_s27 }
 0x55e   : > { %4531 = vrot.lane.b32.xlu1 %v17689_v17, %s8048_s22 }
 0x55f   : > { %v12829_v35 = vpop.permute.xlu0 %4355 }
 0x560   : > { %17796 = vst [vmem:[#allocation334_spill] sm:$0xff] %v12829_v35  ;;  %v12832_v15 = vpop.permute.xlu1 %4345  ;;  %v4432_v35 = vrot.slane %v17801_v59, 7 }
 0x561   : > { %4479 = vrot.lane.b32.xlu0 %v4431_v3, %s8047_s21 }
 0x562   : > { %4578 = vrot.lane.b32.xlu1 %v17708_v51, %s8049_s23  ;;  %v17802_v51 = vld [vmem:[#allocation136_spill] sm:$0xff] }
 0x563   : > { %v12837_v4 = vpop.permute.xlu0 %4359 }
 0x564   : > { %17798 = vst [vmem:[#allocation96_spill] sm:$0xff] %v12837_v4  ;;  %v12839_v53 = vpop.permute.xlu1 %4349 }
 0x565   : > { %4481 = vrot.lane.b32.xlu0 %v4430_v16, %s8047_s21  ;;  %v17805_v16 = vld [vmem:[#allocation268_spill] sm:$0xff] }
 0x566   : > { %4619 = vrot.lane.b32.xlu1 %v17739_v46, %s8050_s26  ;;  %v4433_v13 = vor.u32 %v4432_v35, %v17805_v16  ;;  %v17809_v16 = vld [vmem:[#allocation311_spill] sm:$0xff] }
 0x567   : > { %v12844_v17 = vpop.permute.xlu0 %4363 }
 0x568   : > { %17799 = vst [vmem:[#allocation102_spill] sm:$0xff] %v12844_v17  ;;  %v12846_v36 = vpop.permute.xlu1 %4353 }
 0x569   : > { %17800 = vst [vmem:[#allocation332_spill] sm:$0xff] %v12846_v36  ;;  %4533 = vrot.lane.b32.xlu0 %v17682_v29, %s8048_s22 }
 0x56a   : > { %4664 = vrot.lane.b32.xlu1 %v17802_v51, %s8051_s27 }
 0x56b   : > { %v12853_v3 = vpop.permute.xlu0 %4367 }
 0x56c   : > { %17803 = vst [vmem:[#allocation363_spill] sm:$0xff] %v12853_v3  ;;  %v12855_v4 = vpop.permute.xlu1 %4357  ;;  %v17807_v3 = vld [vmem:[#allocation302_spill] sm:$0xff] }
 0x56d   : > { %17804 = vst [vmem:[#allocation305_spill] sm:$0xff] %v12855_v4  ;;  %4580 = vrot.lane.b32.xlu0 %v17719_v48, %s8049_s23  ;;  %v4434_v17 = vrot.slane %v17807_v3, 7 }
 0x56e   : > { %4483 = vrot.lane.b32.xlu1 %v4433_v13, %s8047_s21  ;;  %v17810_v13 = vld [vmem:[#allocation297_spill] sm:$0xff] }
 0x56f   : > { %v12861_v46 = vpop.permute.xlu0 %4373 }
 0x570   : > { %v12863_v59 = vpop.permute.xlu1 %4361 }
 0x571   : > { %17806 = vst [vmem:[#allocation230_spill] sm:$0xff] %v12863_v59  ;;  %4621 = vrot.lane.b32.xlu0 %v17752_v24, %s8050_s26  ;;  %v4435_v59 = vor.u32 %v4434_v17, %v17810_v13  ;;  %v17813_v13 = vld [vmem:[#allocation322_spill] sm:$0xff] }
 0x572   : > { %4485 = vrot.lane.b32.xlu1 %v4432_v35, %s8047_s21 }
 0x573   : > { %v12868_v29 = vpop.permute.xlu0 %4377 }
 0x574   : > { %v12871_v4 = vpop.permute.xlu1 %4365 }
 0x575   : > { %17808 = vst [vmem:[#allocation291_spill] sm:$0xff] %v12871_v4  ;;  %4666 = vrot.lane.b32.xlu0 %v17809_v16, %s8051_s27 }
 0x576   : > { %4535 = vrot.lane.b32.xlu1 %v17691_v39, %s8048_s22 }
 0x577   : > { %v12877_v48 = vpop.permute.xlu0 %4381 }
 0x578   : > { %v12880_v36 = vpop.permute.xlu1 %7927 }
 0x579   : > { %17811 = vst [vmem:[#allocation225_spill] sm:$0xff] %v12880_v36  ;;  %4487 = vrot.lane.b32.xlu0 %v4435_v59, %s8047_s21  ;;  %v4436_v36 = vrot.slane %v17813_v13, 7 }
 0x57a   : > { %4582 = vrot.lane.b32.xlu1 %v17711_v49, %s8049_s23  ;;  %v17814_v49 = vld [vmem:[#allocation355_spill] sm:$0xff] }
 0x57b   : > { %v12885_v24 = vpop.permute.xlu0 %4385 }
 0x57c   : > { %v12887_v35 = vpop.permute.xlu1 %4375 }
 0x57d   : > { %4489 = vrot.lane.b32.xlu0 %v4434_v17, %s8047_s21  ;;  %v17817_v17 = vld [vmem:[#allocation317_spill] sm:$0xff] }
 0x57e   : > { %4623 = vrot.lane.b32.xlu1 %v17742_v20, %s8050_s26  ;;  %v4437_v63 = vor.u32 %v4436_v36, %v17817_v17  ;;  %v17821_v17 = vld [vmem:[#allocation330_spill] sm:$0xff] }
 0x57f   : > { %v12892_v39 = vpop.permute.xlu0 %4389 }
 0x580   : > { %v12894_v3 = vpop.permute.xlu1 %4379 }
 0x581   : > { %17812 = vst [vmem:[#allocation259_spill] sm:$0xff] %v12894_v3  ;;  %4537 = vrot.lane.b32.xlu0 %v17685_v62, %s8048_s22 }
 0x582   : > { %4668 = vrot.lane.b32.xlu1 %v17814_v49, %s8051_s27  ;;  %v17839_v49 = vld [vmem:[#allocation103_spill] sm:$0xff] }
 0x583   : > { %v12901_v59 = vpop.permute.xlu0 %4393  ;;  %v4444_v50 = vrot.slane %v17839_v49, 7 }
 0x584   : > { %17815 = vst [vmem:[#allocation294_spill] sm:$0xff] %v12901_v59  ;;  %v12903_v4 = vpop.permute.xlu1 %4383 }
 0x585   : > { %17816 = vst [vmem:[#allocation335_spill] sm:$0xff] %v12903_v4  ;;  %4584 = vrot.lane.b32.xlu0 %v17723_v61, %s8049_s23 }
 0x586   : > { %4491 = vrot.lane.b32.xlu1 %v4437_v63, %s8047_s21 }
 0x587   : > { %v12909_v20 = vpop.permute.xlu0 %4397 }
 0x588   : > { %17818 = vst [vmem:[#allocation242_spill] sm:$0xff] %v12909_v20  ;;  %v12911_v13 = vpop.permute.xlu1 %4387  ;;  %v17823_v20 = vld [vmem:[#allocation283_spill] sm:$0xff] }
 0x589   : > { %17819 = vst [vmem:[#allocation227_spill] sm:$0xff] %v12911_v13  ;;  %4625 = vrot.lane.b32.xlu0 %v17756_v21, %s8050_s26  ;;  %v8019_v13 = vld [vmem:[%s8135_s17 + $0x50] sm:$0xff]  }
 0x58a   : > { %4493 = vrot.lane.b32.xlu1 %v4436_v36, %s8047_s21 }
 0x58b   : > { %v12916_v62 = vpop.permute.xlu0 %4455 }
 0x58c   : > { %v12918_v59 = vpop.permute.xlu1 %4391 }
 0x58d   : > { %17820 = vst [vmem:[#allocation364_spill] sm:$0xff] %v12918_v59  ;;  %4670 = vrot.lane.b32.xlu0 %v17821_v17, %s8051_s27  ;;  %v17825_v59 = vld [vmem:[#allocation241_spill] sm:$0xff] }
 0x58e   : > { %4539 = vrot.lane.b32.xlu1 %v17694_v26, %s8048_s22  ;;  %v17826_v17 = vrot.slane %v17825_v59, 7  ;;  %v17829_v59 = vld [vmem:[#allocation306_spill] sm:$0xff] }
 0x58f   : > { %v12924_v63 = vpop.permute.xlu0 %4457 }
 0x590   : > { %v12926_v61 = vpop.permute.xlu1 %4395 }
 0x591   : > { %17822 = vst [vmem:[#allocation273_spill] sm:$0xff] %v12926_v61  ;;  %4495 = vrot.lane.b32.xlu0 %v17823_v20, %s8047_s21 }
 0x592   : > { %4586 = vrot.lane.b32.xlu1 %v17714_v37, %s8049_s23  ;;  %v17827_v37 = vld [vmem:[#allocation345_spill] sm:$0xff] }
 0x593   : > { %v12932_v21 = vpop.permute.xlu0 %4521 }
 0x594   : > { %v12934_v36 = vpop.permute.xlu1 %4399 }
 0x595   : > { %17824 = vst [vmem:[#allocation275_spill] sm:$0xff] %v12934_v36  ;;  %4497 = vrot.lane.b32.xlu0 %v17826_v17, %s8047_s21 }
 0x596   : > { %4627 = vrot.lane.b32.xlu1 %v17746_v7, %s8050_s26 }
 0x597   : > { %v12941_v26 = vpop.permute.xlu0 %4568 }
 0x598   : > { %v12943_v61 = vpop.permute.xlu1 %4459 }
 0x599   : > { %4541 = vrot.lane.b32.xlu0 %v17688_v12, %s8048_s22  ;;  %v17832_v12 = vld [vmem:[#allocation270_spill] sm:$0xff] }
 0x59a   : > { %4672 = vrot.lane.b32.xlu1 %v17827_v37, %s8051_s27  ;;  %v17833_v37 = vrot.slane %v17832_v12, 7 }
 0x59b   : > { %v12949_v20 = vpop.permute.xlu0 %4609 }
 0x59c   : > { %v12951_v36 = vpop.permute.xlu1 %4461 }
 0x59d   : > { %17828 = vst [vmem:[#allocation224_spill] sm:$0xff] %v12951_v36  ;;  %4588 = vrot.lane.b32.xlu0 %v17727_v25, %s8049_s23  ;;  %v17834_v36 = vld [vmem:[#allocation97_spill] sm:$0xff]  ;;  %v17836_v25 = vld [vmem:[#allocation243_spill] sm:$0xff] }
 0x59e   : > { %4499 = vrot.lane.b32.xlu1 %v17829_v59, %s8047_s21  ;;  %v4442_v27 = vrot.slane %v17834_v36, 7 }
 0x59f   : > { %v12957_v7 = vpop.permute.xlu0 %4654 }
 0x5a0   : > { %17830 = vst [vmem:[#allocation318_spill] sm:$0xff] %v12957_v7  ;;  %v12959_v17 = vpop.permute.xlu1 %4523 }
 0x5a1   : > { %17831 = vst [vmem:[#allocation358_spill] sm:$0xff] %v12959_v17  ;;  %4629 = vrot.lane.b32.xlu0 %v17759_v11, %s8050_s26  ;;  %v17838_v17 = vld [vmem:[#allocation94_spill] sm:$0xff] }
 0x5a2   : > { %4501 = vrot.lane.b32.xlu1 %v17833_v37, %s8047_s21  ;;  %v4443_v11 = vor.u32 %v4442_v27, %v17838_v17  ;;  %v4445_v37 = vor.u32 %v4444_v50, %v17616_v8 }
 0x5a3   : > { %v12966_v16 = vpop.permute.xlu0 %4463 }
 0x5a4   : > { %v12969_v60 = vpop.permute.xlu1 %4570 }
 0x5a5   : > { %17835 = vst [vmem:[#allocation92_spill] sm:$0xff] %v12969_v60  ;;  %4674 = vrot.lane.b32.xlu0 %v17836_v25, %s8051_s27 }
 0x5a6   : > { %4543 = vrot.lane.b32.xlu1 %v17697_v55, %s8048_s22 }
 0x5a7   : > { %v12975_v59 = vpop.permute.xlu0 %4465 }
 0x5a8   : > { %17837 = vst [vmem:[#allocation255_spill] sm:$0xff] %v12975_v59  ;;  %v12979_v12 = vpop.permute.xlu1 %4611 }
 0x5a9   : > { %17840 = vst [vmem:[#allocation298_spill] sm:$0xff] %v12979_v12  ;;  %4503 = vrot.lane.b32.xlu0 %v4443_v11, %s8047_s21 }
 0x5aa   : > { %4590 = vrot.lane.b32.xlu1 %v17718_v45, %s8049_s23  ;;  %v17845_v45 = vld [vmem:[#allocation274_spill] sm:$0xff] }
 0x5ab   : > { %v12984_v36 = vpop.permute.xlu0 %4525 }
 0x5ac   : > { %17841 = vst [vmem:[#allocation111_spill] sm:$0xff] %v12984_v36  ;;  %v12987_v25 = vpop.permute.xlu1 %4656 }
 0x5ad   : > { %17842 = vst [vmem:[#allocation264_spill] sm:$0xff] %v12987_v25  ;;  %4507 = vrot.lane.b32.xlu0 %v4445_v37, %s8047_s21 }
 0x5ae   : > { %4631 = vrot.lane.b32.xlu1 %v17751_v47, %s8050_s26  ;;  %v17848_v47 = vld [vmem:[#allocation337_spill] sm:$0xff] }
 0x5af   : > { %v12992_v55 = vpop.permute.xlu0 %4572 }
 0x5b0   : > { %17843 = vst [vmem:[#allocation147_spill] sm:$0xff] %v12992_v55  ;;  %v12994_v49 = vpop.permute.xlu1 %4467  ;;  %v17916_v55 = vld [vmem:[#allocation256_spill] sm:$0xff] }
 0x5b1   : > { %17844 = vst [vmem:[#allocation141_spill] sm:$0xff] %v12994_v49  ;;  %4547 = vrot.lane.b32.xlu0 %v17540_v43, %s8048_s22 }
 0x5b2   : > { %4676 = vrot.lane.b32.xlu1 %v17845_v45, %s8051_s27 }
 0x5b3   : > { %v13000_v17 = vpop.permute.xlu0 %4613 }
 0x5b4   : > { %17846 = vst [vmem:[#allocation104_spill] sm:$0xff] %v13000_v17  ;;  %v13002_v8 = vpop.permute.xlu1 %4469  ;;  %v8018_v17 = vld [vmem:[%s8135_s17 + $0xd0] sm:$0xff]  }
 0x5b5   : > { %17847 = vst [vmem:[#allocation229_spill] sm:$0xff] %v13002_v8  ;;  %4545 = vrot.lane.b32.xlu0 %v17701_v14, %s8048_s22  ;;  %v8016_v8 = vld [vmem:[%s8135_s17 + $0x48] sm:$0xff]   ;;  %v17852_v14 = vld [vmem:[#allocation344_spill] sm:$0xff] }
 0x5b6   : > { %4401 = vrot.lane.b32.xlu1 %v17848_v47, %s8046_s18  ;;  %v5621_v25 = vunpack.c.l.bf16 %v8016_v8  ;;  %v13025_v60 = vunpack.c.h.bf16 %v8016_v8  ;;  %v17861_v8 = vld [vmem:[#allocation18_spill] sm:$0xff] }
 0x5b7   : > { %v13008_v11 = vpop.permute.xlu0 %4658 }
 0x5b8   : > { %17849 = vst [vmem:[#allocation125_spill] sm:$0xff] %v13008_v11  ;;  %v13010_v37 = vpop.permute.xlu1 %4527  ;;  %17854 = vst [vmem:[#allocation128_spill] sm:$0xff] %v13025_v60  ;;  %v13028_v11 = vpop.f32.mrf.mxu1  ;;  %v13037_v49 = vsel %vm398_vm3, %v5621_v25, -1e+30 }
 0x5b9   : > { %17850 = vst [vmem:[#allocation269_spill] sm:$0xff] %v13010_v37  ;;  %4549 = vrot.lane.b32.xlu0 %v17612_v38, %s8048_s22  ;;  %v8017_v37 = vld [vmem:[%s8135_s17 + $0x60] sm:$0xff]   ;;  %17855 = vst [vmem:[#allocation239_spill] sm:$0xff] %v13028_v11  ;;  %v5788_v25 = vrot.slane %v13037_v49, 1 }
 0x5ba   : > { %4505 = vrot.lane.b32.xlu1 %v4442_v27, %s8047_s21  ;;  %v5627_v38 = vunpack.c.l.bf16 %v8017_v37  ;;  %17859 = vst [vmem:[#allocation109_spill] sm:$0xff] %v13037_v49  ;;  %v13048_v59 = vunpack.c.h.bf16 %v8017_v37  ;;  %v8021_v11 = vld [vmem:[%s8135_s17 + $0x40] sm:$0xff]  }
 0x5bb   : > { %v13015_v43 = vpop.permute.xlu0 %4471  ;;  %v17898_v49 = vld [vmem:[#allocation206_spill] sm:$0xff] }
 0x5bc   : > { %v13017_v45 = vpop.permute.xlu1 %4574  ;;  %17864 = vst [vmem:[#allocation90_spill] sm:$0xff] %v13048_v59  ;;  %v13057_v7 = vsel %vm398_vm3, %v5627_v38, -1e+30 }
 0x5bd   : > { %17851 = vst [vmem:[#allocation122_spill] sm:$0xff] %v13017_v45  ;;  %4635 = vrot.lane.b32.xlu0 %v17852_v14, %s8050_s26  ;;  %v13033_v45 = vunpack.c.l.bf16 %v8018_v17  ;;  %17866 = vst [vmem:[#allocation129_spill] sm:$0xff] %v13057_v7 }
 0x5be   : > { %4509 = vrot.lane.b32.xlu1 %v4444_v50, %s8047_s21  ;;  %v17860_v50 = vld [vmem:[#allocation17_spill] sm:$0xff] }
 0x5bf   : > { %v13023_v12 = vpop.permute.xlu0 %4473  ;;  %17857 = vst [vmem:[#allocation262_spill] sm:$0xff] %v13033_v45 }
 0x5c0   : > { %17853 = vst [vmem:[#allocation232_spill] sm:$0xff] %v13023_v12  ;;  %v13030_v27 = vpop.permute.xlu1 %4615  ;;  %v6115_v12 = vmax.f32 %v17861_v8, %v17860_v50  ;;  %v5624_v50 = vunpack.c.h.bf16 %v8019_v13  ;;  %v17870_v13 = vld [vmem:[#allocation14_spill] sm:$0xff] }
 0x5c1   : > { %17856 = vst [vmem:[#allocation307_spill] sm:$0xff] %v13030_v27  ;;  %4633 = vrot.lane.b32.xlu0 %v17848_v47, %s8050_s26  ;;  %v17863_v27 = vld [vmem:[#allocation22_spill] sm:$0xff]  ;;  %v13072_v38 = vrot.slane %v17870_v13, 2  ;;  %v17872_v47 = vld [vmem:[#allocation20_spill] sm:$0xff] }
 0x5c2   : > { %4594 = vrot.lane.b32.xlu1 %v17734_v18, %s8049_s23  ;;  %v6117_v17 = vmax.f32 %v17861_v8, %v17863_v27  ;;  %v13059_v18 = vpop.f32.mrf.mxu1  ;;  %v13079_v27 = vunpack.c.l.bf16 %v8021_v11  ;;  %v17876_v8 = vld [vmem:[#allocation24_spill] sm:$0xff]  ;;  %v8022_v11 = vld [vmem:[%s8135_s17 + $0x58] sm:$0xff]  }
 0x5c3   : > { %v13050_v51 = vpop.permute.xlu0 %4529  ;;  %17867 = vst [vmem:[#allocation131_spill] sm:$0xff] %v13059_v18  ;;  %17871 = vst [vmem:[#allocation151_spill] sm:$0xff] %v13072_v38  ;;  %v13075_v18 = vmax.f32 %v6115_v12, %v17872_v47  ;;  %v17879_v12 = vrot.slane %v13025_v60, 1  ;;  %v17889_v60 = vrot.slane %v13048_v59, 1 }
 0x5c4   : > { %17865 = vst [vmem:[#allocation134_spill] sm:$0xff] %v13050_v51  ;;  %v13061_v36 = vpop.permute.xlu1 %4660  ;;  %v8020_v51 = vld [vmem:[%s8135_s17 + $0x28] sm:$0xff]   ;;  %17875 = vst [vmem:[#allocation145_spill] sm:$0xff] %v13079_v27  ;;  %v13085_v45 = vmax.f32 %v6117_v17, %v17876_v8  ;;  %v13104_v37 = vpop.f32.mrf.mxu1 }
 0x5c5   : > { %17868 = vst [vmem:[#allocation114_spill] sm:$0xff] %v13061_v36  ;;  %v13067_v4 = vunpack.c.l.bf16 %v8020_v51  ;;  %4403 = vrot.lane.b32.xlu0 %v17852_v14, %s8046_s18  ;;  %17873 = vst [vmem:[#allocation312_spill] sm:$0xff] %v13075_v18  ;;  %v5798_v14 = vrot.slane %v13057_v7, 1  ;;  %v13094_v47 = vsel %vm16453_vm5, %v5788_v25, %v17879_v12  ;;  %v13101_v51 = vunpack.c.l.bf16 %v8022_v11  ;;  %v8023_v17 = vld [vmem:[%s8135_s17 + $0x68] sm:$0xff]   ;;  %v17886_v12 = vld [vmem:[#allocation333_spill] sm:$0xff] }
 0x5c6   : > { %4592 = vrot.lane.b32.xlu1 %v17722_v42, %s8049_s23  ;;  %17877 = vst [vmem:[#allocation267_spill] sm:$0xff] %v13085_v45  ;;  %17880 = vst [vmem:[#allocation91_spill] sm:$0xff] %v13094_v47  ;;  %v13098_v42 = vsel %vm398_vm3, %v5624_v50, -1e+30  ;;  %v5630_v8 = vunpack.c.h.bf16 %v8023_v17  ;;  %v17887_v50 = vmov 0   ;;  %v17892_v25 = vld [vmem:[#allocation244_spill] sm:$0xff]  ;;  %v13140_v45 = vpop.f32.mrf.mxu1 }
 0x5c7   : > { %17869 = vst [vmem:[#allocation260_spill] sm:$0xff] %v13067_v4  ;;  %v13089_v38 = vpop.permute.xlu0 %4576  ;;  %17881 = vst [vmem:[#allocation285_spill] sm:$0xff] %v13098_v42  ;;  %v4446_v36 = vrot.slane %v17887_v50, 7  ;;  %v13127_v11 = vsel %vm16453_vm5, %v5798_v14, %v17889_v60  ;;  %v17893_v47 = vld [vmem:[#allocation240_spill] sm:$0xff]  ;;  %v17897_v42 = vld [vmem:[#allocation210_spill] sm:$0xff] }
 0x5c8   : > { %17878 = vst [vmem:[#allocation234_spill] sm:$0xff] %v13089_v38  ;;  %17882 = vst [vmem:[#allocation99_spill] sm:$0xff] %v13101_v51  ;;  %v13106_v13 = vpop.permute.xlu1 %4475  ;;  %v3806_v18 = vsel %vm574_vm1, %v17893_v47, %v17892_v25  ;;  %v8025_v60 = vld [vmem:[%s8135_s17 + $0x70] sm:$0xff]   ;;  %v3809_v17 = vsel %vm574_vm1, %v17898_v49, %v17897_v42  ;;  %v17899_v38 = vld [vmem:[#allocation265_spill] sm:$0xff] }
 0x5c9   : > { %17883 = vst [vmem:[#allocation238_spill] sm:$0xff] %v13104_v37  ;;  %17884 = vst [vmem:[#allocation112_spill] sm:$0xff] %v13106_v13  ;;  %4678 = vrot.lane.b32.xlu0 %v17886_v12, %s8051_s27  ;;  %v8024_v37 = vld [vmem:[%s8135_s17 + $0x78] sm:$0xff]   ;;  %v13145_v14 = vunpack.c.l.bf16 %v8025_v60  ;;  %v3850_v51 = vsel %vm2227_vm8, %v3806_v18, %v17899_v38  ;;  %v13154_v27 = vpack.i.bf16 %v4446_v36, %v4446_v36  ;;  %v17903_v4 = vld [vmem:[#allocation299_spill] sm:$0xff] }
 0x5ca   : > { %v5633_v13 = vunpack.c.l.bf16 %v8024_v37  ;;  %4596 = vrot.lane.b32.xlu1 %v17726_v52, %s8049_s23  ;;  %17890 = vst [vmem:[#allocation100_spill] sm:$0xff] %v13127_v11  ;;  %v13135_v52 = vsel %vm398_vm3, %v5630_v8, -1e+30  ;;  %17894 = vst [vmem:[#allocation105_spill] sm:$0xff] %v13140_v45  ;;  %v17900_v8 = vld [vmem:[#allocation401_spill] sm:$0xff]  ;;  %v13158_v25 = vunpack.c.h.bf16 %v8024_v37  ;;  %v3852_v49 = vsel %vm2227_vm8, %v3809_v17, %v17903_v4  ;;  %v17905_v38 = vld [vmem:[#allocation220_spill] sm:$0xff] }
 0x5cb   : > { %v13129_v3 = vpop.permute.xlu0 %4617  ;;  %17891 = vst [vmem:[#allocation138_spill] sm:$0xff] %v13135_v52  ;;  %17896 = vst [vmem:[#allocation71_spill] sm:$0xff] %v13145_v14  ;;  %v17904_v18 = vld [vmem:[#allocation261_spill] sm:$0xff]  ;;  %v17906_v42 = vld [vmem:[#allocation266_spill] sm:$0xff] }
 0x5cc   : > { %v13142_v59 = vpop.permute.xlu1 %4477  ;;  %17901 = vst [vmem:[#allocation226_spill] sm:$0xff] %v13158_v25  ;;  %v13162_v60 = vsel %vm398_vm3, %v5633_v13, -1e+30  ;;  %v3812_v36 = vsel %vm574_vm1, %v17905_v38, %v17904_v18  ;;  %v17908_v37 = vld [vmem:[#allocation233_spill] sm:$0xff]  ;;  %v17909_v11 = vld [vmem:[#allocation231_spill] sm:$0xff]  ;;  %v17910_v13 = vld [vmem:[#allocation284_spill] sm:$0xff] }
 0x5cd   : > { %17895 = vst [vmem:[#allocation193_spill] sm:$0xff] %v13142_v59  ;;  %4682 = vrot.lane.b32.xlu0 %v17900_v8, %s8051_s27  ;;  %17902 = vst [vmem:[#allocation117_spill] sm:$0xff] %v13162_v60  ;;  %v17907_v8 = vld [vmem:[#allocation223_spill] sm:$0xff]  ;;  %v3824_v7 = vsel %vm574_vm1, %v17909_v11, %v17908_v37  ;;  %v17911_v12 = vld [vmem:[#allocation286_spill] sm:$0xff] }
 0x5ce   : > { %4680 = vrot.lane.b32.xlu1 %v12264_v28, %s8051_s27  ;;  %v3818_v47 = vsel %vm574_vm1, %v17907_v8, %v17906_v42  ;;  %v3830_v45 = vsel %vm574_vm1, %v17911_v12, %v17910_v13  ;;  %v17912_v17 = vld [vmem:[#allocation277_spill] sm:$0xff]  ;;  %v17914_v52 = vld [vmem:[#allocation252_spill] sm:$0xff]  ;;  %v17915_v18 = vld [vmem:[#allocation258_spill] sm:$0xff]  ;;  %v13195_v12 = vpop.f32.mrf.mxu1 }
 0x5cf   : > { %v13180_v4 = vpop.permute.xlu0 %4662  ;;  %v17913_v28 = vld [vmem:[#allocation209_spill] sm:$0xff]  ;;  %v3821_v38 = vsel %vm574_vm1, %v17915_v18, %v17914_v52  ;;  %v17917_v8 = vld [vmem:[#allocation219_spill] sm:$0xff]  ;;  %17920 = vst [vmem:[#allocation157_spill] sm:$0xff] %v13195_v12  ;;  %v17921_v25 = vld [vmem:[#allocation290_spill] sm:$0xff] }
 0x5d0   : > { %v3815_v14 = vsel %vm574_vm1, %v17913_v28, %v17912_v17  ;;  %v3827_v42 = vsel %vm574_vm1, %v17917_v8, %v17916_v55  ;;  %v17918_v11 = vld [vmem:[#allocation135_spill] sm:$0xff]  ;;  %v13197_v13 = vpop.permute.xlu1 %4531  ;;  %v3854_v28 = vsel %vm2227_vm8, %v3812_v36, %v17921_v25  ;;  %v17922_v17 = vld [vmem:[#allocation293_spill] sm:$0xff]  ;;  %v17927_v36 = vld [vmem:[#allocation288_spill] sm:$0xff]  ;;  %v13246_v12 = vpop.f32.mrf.mxu1 }
 0x5d1   : > { %v13193_v37 = vsel %vm2292_vm9, %v3850_v51, %v17918_v11  ;;  %v3858_v52 = vsel %vm2227_vm8, %v3818_v47, %v17922_v17  ;;  %v17923_v18 = vld [vmem:[#allocation339_spill] sm:$0xff]  ;;  %7932 = vrot.lane.b32.xlu0 %v13154_v27, %s8047_s21  ;;  %v3856_v47 = vsel %vm2227_vm8, %v3815_v14, %v17927_v36  ;;  %v17928_v17 = vld [vmem:[#allocation341_spill] sm:$0xff]  ;;  %v13235_v36 = vld [vmem:[%s8135_s17 + $0x90] sm:$0xff]  }
 0x5d2   : > { %17919 = vst [vmem:[#allocation272_spill] sm:$0xff] %v13193_v37  ;;  %v13205_v59 = vsel %vm2292_vm9, %v3852_v49, %v17923_v18  ;;  %v4826_v55 = vsel %vm2357_vm10, %v13193_v37, %v12916_v62  ;;  %v17925_v51 = vld [vmem:[#allocation319_spill] sm:$0xff]  ;;  %4637 = vrot.lane.b32.xlu1 %v17928_v17, %s8050_s26  ;;  %v13225_v18 = vld [vmem:[%s8135_s17 + $0x80] sm:$0xff]   ;;  %17932 = vst [vmem:[#allocation121_spill] sm:$0xff] %v13235_v36 }
 0x5d3   : > { %17924 = vst [vmem:[#allocation316_spill] sm:$0xff] %v13205_v59  ;;  %v3862_v8 = vsel %vm2227_vm8, %v3824_v7, %v17925_v51  ;;  %v17926_v11 = vld [vmem:[#allocation271_spill] sm:$0xff]  ;;  %v4830_v49 = vsel %vm2357_vm10, %v13205_v59, %v12943_v61  ;;  %17929 = vst [vmem:[#allocation207_spill] sm:$0xff] %v13225_v18  ;;  %v17930_v7 = vld [vmem:[#allocation309_spill] sm:$0xff]  ;;  %v13232_v14 = vpop.permute.xlu0 %4479 }
 0x5d4   : > { %v3866_v25 = vsel %vm2227_vm8, %v3830_v45, %v17926_v11  ;;  %v3860_v51 = vsel %vm2227_vm8, %v3821_v38, %v17930_v7  ;;  %v17931_v45 = vld [vmem:[#allocation336_spill] sm:$0xff]  ;;  %v17933_v59 = vld [vmem:[#allocation342_spill] sm:$0xff]  ;;  %v17934_v62 = vld [vmem:[#allocation137_spill] sm:$0xff] }
 0x5d5   : > { %v3864_v11 = vsel %vm2227_vm8, %v3827_v42, %v17931_v45  ;;  %v13240_v37 = vsel %vm2292_vm9, %v3854_v28, %v17933_v59  ;;  %v13244_v60 = vsel %vm2292_vm9, %v3858_v52, %v17934_v62  ;;  %v17935_v38 = vld [vmem:[#allocation366_spill] sm:$0xff]  ;;  %v13250_v42 = vpop.permute.xlu1 %4578  ;;  %v17937_v61 = vld [vmem:[#allocation359_spill] sm:$0xff]  ;;  %v17939_v52 = vld [vmem:[#allocation365_spill] sm:$0xff]  ;;  %4551 = vrot.lane.b32.xlu0 %v17668_v9, %s8048_s22 }
 0x5d6   : > { %v4889_v7 = vsel %vm2422_vm11, %v4826_v55, %v17935_v38  ;;  %v17936_v45 = vld [vmem:[#allocation142_spill] sm:$0xff]  ;;  %v13258_v36 = vsel %vm2292_vm9, %v3866_v25, %v17937_v61  ;;  %v17938_v59 = vld [vmem:[#allocation351_spill] sm:$0xff]  ;;  %v4892_v62 = vsel %vm2422_vm11, %v4830_v49, %v17939_v52  ;;  %v7984_v55 = vld [vmem:[%s15810_s5 + $0x30] ss:$0 sps:$4 sm:$0x33]   ;;  %v13277_v25 = vsel %vm2292_vm9, %v3864_v11, %v17618_v41 }
 0x5d7   : > { %v13254_v18 = vsel %vm2292_vm9, %v3862_v8, %v17936_v45  ;;  %v13262_v28 = vsel %vm2292_vm9, %v3856_v47, %v17938_v59  ;;  %v17940_v8 = vld [vmem:[#allocation154_spill] sm:$0xff]  ;;  %v4694_v47 = vsel %vm574_vm1, %v12733_v56, %v12786_v19  ;;  %v4700_v49 = vsel %vm574_vm1, %v12740_v2, %v12795_v54  ;;  %v17942_v41 = vld [vmem:[#allocation376_spill] sm:$0xff]  ;;  %7876 = vmatprep.subr.msk.bf16.mxu1 %vm665_vm0, %v7984_v55  ;;  %v13298_v2 = vpop.f32.mrf.mxu1 }
 0x5d8   : > { %v13273_v45 = vsel %vm2292_vm9, %v3860_v51, %v17940_v8  ;;  %v17941_v61 = vld [vmem:[#allocation446_spill] sm:$0xff]  ;;  %v4706_v51 = vsel %vm574_vm1, %v12747_v0, %v12803_v58  ;;  %v4750_v59 = vsel %vm2227_vm8, %v4694_v47, %v12861_v46  ;;  %v4940_v11 = vsel %vm2487_vm12, %v4889_v7, %v17942_v41  ;;  %v13294_v8 = vpop.permute.xlu0 %4481  ;;  %v17943_v58 = vld [vmem:[#allocation383_spill] sm:$0xff] }
 0x5d9   : > { %4407 = vrot.lane.b32.xlu1 %v17941_v61, %s8046_s18  ;;  %v5411_v56 = vsel %vm665_vm0, %v7984_v55, 0  ;;  %v4712_v19 = vsel %vm574_vm1, %v12755_v31, %v12811_v40  ;;  %v4697_v0 = vsel %vm574_vm1, %v12712_v22, %v12813_v6  ;;  %v4718_v54 = vsel %vm574_vm1, %v12763_v32, %v12820_v1  ;;  %v13311_v7 = vpop.permute.xlu1 %4619  ;;  %4555 = vrot.lane.b32.xlu0 %v17668_v9, %s8048_s22  ;;  %v7985_v32 = vld [vmem:[%s15810_s5 + $0x28] sm:$0xff]   ;;  %v13347_v47 = vpop.f32.mrf.mxu1  ;;  %v17983_v41 = vld [vmem:[#allocation234_spill] sm:$0xff] }
 0x5da   : > { %v4943_v46 = vsel %vm2487_vm12, %v4892_v62, %v17943_v58  ;;  %7792 = vmatpush3.bf16.msra.mxu1 %v5411_v56  ;;  %v4754_v55 = vsel %vm2227_vm8, %v4700_v49, %v12868_v29  ;;  %v4758_v31 = vsel %vm2227_vm8, %v4706_v51, %v12877_v48  ;;  %v4834_v22 = vsel %vm2357_vm10, %v13240_v37, %v12966_v16  ;;  %v17944_v6 = vld [vmem:[#allocation423_spill] sm:$0xff]  ;;  %v17947_v49 = vld [vmem:[#allocation354_spill] sm:$0xff] }
 0x5db   : > { %v4703_v1 = vsel %vm574_vm1, %v12720_v30, %v12823_v5  ;;  %v4709_v40 = vsel %vm574_vm1, %v12730_v57, %v12832_v15  ;;  %v4991_v29 = vsel %vm2552_vm14, %v4940_v11, %v17944_v6  ;;  %v17945_v16 = vrot.slane %v17700_v10, 1  ;;  %v17946_v30 = vld [vmem:[#allocation425_spill] sm:$0xff]  ;;  %7793 = vmatprep.subr.bf16.mxu1 %v7985_v32  ;;  %v17971_v6 = vld [vmem:[#allocation147_spill] sm:$0xff] }
 0x5dc   : > { %v4715_v62 = vsel %vm574_vm1, %v12738_v23, %v12839_v53  ;;  %v4994_v15 = vsel %vm2552_vm14, %v4943_v46, %v17946_v30  ;;  %v13345_v57 = vpop.permute.xlu0 %4533  ;;  %v4792_v23 = vsel %vm2292_vm9, %v4754_v55, %v17773_v34  ;;  %v4796_v53 = vsel %vm2292_vm9, %v4758_v31, %v17789_v33  ;;  %v17948_v11 = vld [vmem:[#allocation393_spill] sm:$0xff]  ;;  %v17949_v33 = vld [vmem:[#allocation396_spill] sm:$0xff]  ;;  %v17953_v55 = vld [vmem:[#allocation367_spill] sm:$0xff] }
 0x5dd   : > { %v4788_v48 = vsel %vm2292_vm9, %v4750_v59, %v17945_v16  ;;  %4405 = vrot.lane.b32.xlu1 %v17928_v17, %s8046_s18  ;;  %v4895_v17 = vsel %vm2422_vm11, %v4834_v22, %v17947_v49  ;;  %v4762_v51 = vsel %vm2227_vm8, %v4712_v19, %v12885_v24  ;;  %v4752_v59 = vsel %vm2227_vm8, %v4697_v0, %v12887_v35  ;;  %v17951_v19 = vld [vmem:[#allocation335_spill] sm:$0xff]  ;;  %v17952_v0 = vld [vmem:[#allocation318_spill] sm:$0xff]  ;;  %v13394_v22 = vpop.f32.mrf.mxu1 }
 0x5de   : > { %v4828_v5 = vsel %vm2357_vm10, %v4788_v48, %v12924_v63  ;;  %v13357_v63 = vpop.permute.xlu1 %4664  ;;  %7794 = vmatpush3.bf16.msra.mxu1 %v7985_v32  ;;  %7942 = vrot.lane.b32.xlu0 %v17737_v44, %s8049_s23  ;;  %v4766_v34 = vsel %vm2227_vm8, %v4718_v54, %v12892_v39  ;;  %v13375_v46 = vsel %vm2617_vm13, %v4994_v15, %v17949_v33  ;;  %v17957_v48 = vld [vmem:[#allocation323_spill] sm:$0xff]  ;;  %v17958_v15 = vld [vmem:[#allocation372_spill] sm:$0xff] }
 0x5df   : > { %v4891_v10 = vsel %vm2422_vm11, %v4828_v5, %v12932_v21  ;;  %v13365_v21 = vsel %vm2617_vm13, %v4991_v29, %v17948_v11  ;;  %v4842_v35 = vsel %vm2357_vm10, %v13244_v60, %v13015_v43  ;;  %v4760_v39 = vsel %vm2227_vm8, %v4709_v40, %v17951_v19  ;;  %17954 = vst [vmem:[#allocation346_spill] sm:$0xff] %v13394_v22  ;;  %v17955_v43 = vld [vmem:[#allocation227_spill] sm:$0xff]  ;;  %v17956_v29 = vld [vmem:[#allocation136_spill] sm:$0xff]  ;;  %v17984_v22 = vld [vmem:[#allocation386_spill] sm:$0xff] }
 0x5e0   : > { %v4942_v56 = vsel %vm2487_vm12, %v4891_v10, %v12941_v26  ;;  %v17950_v26 = vld [vmem:[#allocation259_spill] sm:$0xff]  ;;  %v4946_v31 = vsel %vm2487_vm12, %v4895_v17, %v17953_v55  ;;  %v4764_v32 = vsel %vm2227_vm8, %v4715_v62, %v17955_v43  ;;  %v13400_v16 = vsel %vm2292_vm9, %v4762_v51, %v17956_v29  ;;  %v17969_v33 = vld [vmem:[#allocation224_spill] sm:$0xff] }
 0x5e1   : > { %v4993_v24 = vsel %vm2552_vm14, %v4942_v56, %v12949_v20  ;;  %4409 = vrot.lane.b32.xlu1 %v17941_v61, %s8046_s18  ;;  %v4756_v44 = vsel %vm2227_vm8, %v4703_v1, %v17950_v26  ;;  %v13392_v20 = vpop.permute.xlu0 %4580  ;;  %v5095_v40 = vshll.u32 %v13365_v21, 16  ;;  %v4790_v5 = vsel %vm2292_vm9, %v4752_v59, %v17957_v48  ;;  %v17959_v17 = vld [vmem:[#allocation355_spill] sm:$0xff]  ;;  %v17962_v59 = vld [vmem:[#allocation150_spill] sm:$0xff] }
 0x5e2   : > { %v5044_v54 = vsel %vm2617_vm13, %v4993_v24, %v17952_v0  ;;  %v13402_v1 = vpop.permute.xlu1 %4483  ;;  %v4901_v10 = vsel %vm2422_vm11, %v4842_v35, %v17958_v15  ;;  %4557 = vrot.lane.b32.xlu0 %v17668_v9, %s8048_s22  ;;  %v13413_v62 = vsel %vm2292_vm9, %v4766_v34, %v17959_v17  ;;  %v5105_v51 = vshll.u32 %v13375_v46, 16  ;;  %v17960_v24 = vld [vmem:[#allocation388_spill] sm:$0xff]  ;;  %v17961_v19 = vld [vmem:[#allocation295_spill] sm:$0xff] }
 0x5e3   : > { %v5099_v56 = vshll.u32 %v5044_v54, 16  ;;  %v4997_v26 = vsel %vm2552_vm14, %v4946_v31, %v17960_v24  ;;  %v13420_v0 = vsel %vm2292_vm9, %v4756_v44, %v17961_v19  ;;  %v13424_v35 = vsel %vm2292_vm9, %v4760_v39, %v17962_v59  ;;  %v17963_v43 = vld [vmem:[#allocation255_spill] sm:$0xff]  ;;  %v7986_v39 = vld [vmem:[%s15810_s5 + $0x20] sm:$0xff]   ;;  %v17967_v19 = vld [vmem:[#allocation141_spill] sm:$0xff] }
 0x5e4   : > { %v4836_v34 = vsel %vm2357_vm10, %v4792_v23, %v17963_v43  ;;  %v4850_v54 = vsel %vm2357_vm10, %v13254_v18, %v13232_v14  ;;  %v17964_v31 = vld [vmem:[#allocation311_spill] sm:$0xff]  ;;  %v5093_v48 = vshrl.u32 %v13365_v21, 16  ;;  %v13446_v23 = vpop.f32.mrf.mxu1  ;;  %v17968_v59 = vld [vmem:[#allocation374_spill] sm:$0xff]  ;;  %v4832_v11 = vsel %vm2357_vm10, %v4790_v5, %v17969_v33  ;;  %7795 = vmatprep.subr.bf16.mxu1 %v7986_v39  ;;  %v17975_v5 = vld [vmem:[#allocation360_spill] sm:$0xff] }
 0x5e5   : > { %7937 = vrot.lane.b32.xlu1 %v13154_v27, %s8047_s21  ;;  %v13433_v29 = vpop.permute.xlu0 %4621  ;;  %v13437_v44 = vsel %vm2292_vm9, %v4764_v32, %v17964_v31  ;;  %v7987_v27 = vld [vmem:[%s15810_s5 + $0x18] sm:$0xff]   ;;  %17965 = vst [vmem:[#allocation246_spill] sm:$0xff] %v13446_v23  ;;  %v17966_v17 = vld [vmem:[#allocation111_spill] sm:$0xff]  ;;  %v4838_v32 = vsel %vm2357_vm10, %v13262_v28, %v17967_v19  ;;  %v4952_v21 = vsel %vm2487_vm12, %v4901_v10, %v17968_v59  ;;  %v5097_v31 = vrot.slane %v5095_v40, 1  ;;  %v17973_v10 = vld [vmem:[#allocation104_spill] sm:$0xff] }
 0x5e6   : > { %v4897_v14 = vsel %vm2422_vm11, %v4836_v34, %v17966_v17  ;;  %v13455_v43 = vpop.permute.xlu1 %4485  ;;  %v17970_v30 = vld [vmem:[#allocation451_spill] sm:$0xff]  ;;  %v17972_v17 = vld [vmem:[#allocation321_spill] sm:$0xff]  ;;  %v5107_v19 = vrot.slane %v5105_v51, 1  ;;  %v5101_v58 = vrot.slane %v5099_v56, 1  ;;  %v5103_v33 = vshrl.u32 %v13375_v46, 16  ;;  %7796 = vmatpush3.bf16.msra.mxu1 %v7986_v39  ;;  %v13485_v46 = vpop.f32.mrf.mxu1 }
 0x5e7   : > { %v13461_v24 = vsel %vm2617_vm13, %v4997_v26, %v17970_v30  ;;  %v4948_v34 = vsel %vm2487_vm12, %v4897_v14, %v17971_v6  ;;  %4684 = vrot.lane.b32.xlu0 %v17972_v17, %s8051_s27  ;;  %v17974_v40 = vld [vmem:[#allocation347_spill] sm:$0xff]  ;;  %v4898_v6 = vsel %vm2422_vm11, %v4838_v32, %v17975_v5  ;;  %v17976_v26 = vld [vmem:[#allocation125_spill] sm:$0xff]  ;;  %v17977_v14 = vld [vmem:[#allocation456_spill] sm:$0xff]  ;;  %7797 = vmatprep.subr.bf16.mxu1 %v7987_v27 }
 0x5e8   : > { %v4999_v59 = vsel %vm2552_vm14, %v4948_v34, %v17973_v10  ;;  %v4907_v55 = vsel %vm2422_vm11, %v4850_v54, %v17974_v40  ;;  %v5003_v56 = vsel %vm2552_vm14, %v4952_v21, %v17977_v14  ;;  %v17978_v30 = vld [vmem:[#allocation232_spill] sm:$0xff]  ;;  %17979 = vst [vmem:[#allocation118_spill] sm:$0xff] %v13485_v46  ;;  %v17980_v54 = vld [vmem:[#allocation358_spill] sm:$0xff]  ;;  %v5098_v21 = vor.u32 %v5097_v31, %v5093_v48 }
 0x5e9   : > { %4553 = vrot.lane.b32.xlu1 %v17668_v9, %s8048_s22  ;;  %v5050_v51 = vsel %vm2617_vm13, %v4999_v59, %v17976_v26  ;;  %v4844_v34 = vsel %vm2357_vm10, %v4796_v53, %v17978_v30  ;;  %v4667_v10 = vpop.permute.xlu0 %4666  ;;  %v7988_v9 = vld [vmem:[%s15810_s5 + $0x10] sm:$0xff]   ;;  %v4894_v39 = vsel %vm2422_vm11, %v4832_v11, %v17980_v54  ;;  %v17981_v32 = vld [vmem:[#allocation134_spill] sm:$0xff]  ;;  %v5115_v14 = vshll.u32 %v13461_v24, 16 }
 0x5ea   : > { %v4903_v59 = vsel %vm2422_vm11, %v4844_v34, %v17981_v32  ;;  %v13491_v26 = vpop.permute.xlu1 %4535  ;;  %v17982_v30 = vld [vmem:[#allocation92_spill] sm:$0xff]  ;;  %v4958_v46 = vsel %vm2487_vm12, %v4907_v55, %v17984_v22  ;;  %v13502_v11 = vor.u32 %v5107_v19, %v5103_v33  ;;  %v17985_v34 = vld [vmem:[#allocation421_spill] sm:$0xff]  ;;  %v5119_v48 = vshll.u32 %v5050_v51, 16  ;;  %7798 = vmatpush3.bf16.msra.mxu1 %v7987_v27 }
 0x5eb   : > { %v4945_v53 = vsel %vm2487_vm12, %v4894_v39, %v17982_v30  ;;  %v4954_v23 = vsel %vm2487_vm12, %v4903_v59, %v17983_v41  ;;  %4641 = vrot.lane.b32.xlu0 %v17941_v61, %s8050_s26  ;;  %v4949_v54 = vsel %vm2487_vm12, %v4898_v6, %v17985_v34  ;;  %v17986_v31 = vld [vmem:[#allocation320_spill] sm:$0xff]  ;;  %v17987_v41 = vld [vmem:[#allocation298_spill] sm:$0xff]  ;;  %7799 = vmatprep.subr.bf16.mxu1 %v7988_v9  ;;  %v13522_v59 = vpop.f32.mrf.mxu1  ;;  %v18000_v34 = vld [vmem:[#allocation413_spill] sm:$0xff] }
 0x5ec   : > { %v13508_v32 = vsel %vm2617_vm13, %v5003_v56, %v17986_v31  ;;  %v5005_v39 = vsel %vm2552_vm14, %v4954_v23, %v13129_v3  ;;  %v4996_v55 = vsel %vm2552_vm14, %v4945_v53, %v17987_v41  ;;  %v17988_v19 = vld [vmem:[#allocation112_spill] sm:$0xff]  ;;  %v5102_v56 = vsel %vm16452_vm6, %v5098_v21, %v5101_v58  ;;  %v17989_v3 = vld [vmem:[#allocation417_spill] sm:$0xff]  ;;  %v17992_v31 = vld [vmem:[#allocation371_spill] sm:$0xff] }
 0x5ed   : > { %4639 = vrot.lane.b32.xlu1 %v17941_v61, %s8050_s26  ;;  %v4846_v33 = vsel %vm2357_vm10, %v13273_v45, %v17988_v19  ;;  %v5056_v6 = vsel %vm2617_vm13, %v5005_v39, %v13180_v4  ;;  %v4488_v51 = vpop.permute.xlu0 %4487  ;;  %v5009_v23 = vsel %vm2552_vm14, %v4958_v46, %v17989_v3  ;;  %v5113_v53 = vshrl.u32 %v13461_v24, 16  ;;  %v17990_v19 = vld [vmem:[#allocation264_spill] sm:$0xff]  ;;  %v17991_v39 = vld [vmem:[#allocation449_spill] sm:$0xff] }
 0x5ee   : > { %v4858_v27 = vsel %vm2357_vm10, %v13258_v36, %v4488_v51  ;;  %v13528_v30 = vpop.permute.xlu1 %4582  ;;  %v5117_v41 = vrot.slane %v5115_v14, 1  ;;  %v13533_v4 = vsel %vm2617_vm13, %v4996_v55, %v17990_v19  ;;  %v5000_v58 = vsel %vm2552_vm14, %v4949_v54, %v17991_v39  ;;  %7800 = vmatpush3.bf16.msra.mxu1 %v7988_v9  ;;  %v13565_v9 = vpop.f32.mrf.mxu1 }
 0x5ef   : > { %v4852_v21 = vsel %vm2357_vm10, %v13400_v16, %v13294_v8  ;;  %4645 = vrot.lane.b32.xlu0 %v17941_v61, %s8050_s26  ;;  %v5135_v46 = vshll.u32 %v13508_v32, 16  ;;  %v5121_v51 = vrot.slane %v5119_v48, 1  ;;  %v4904_v24 = vsel %vm2422_vm11, %v4846_v33, %v17992_v31  ;;  %v7989_v8 = vld [vmem:[%s15810_s5 + $0x8] sm:$0xff]   ;;  %v17993_v16 = vld [vmem:[#allocation429_spill] sm:$0xff] }
 0x5f0   : > { %v5139_v14 = vshll.u32 %v5056_v6, 16  ;;  %v4909_v55 = vsel %vm2422_vm11, %v4852_v21, %v13345_v57  ;;  %v13554_v54 = vsel %vm2617_vm13, %v5009_v23, %v17993_v16  ;;  %v4854_v33 = vsel %vm2357_vm10, %v13277_v25, %v13402_v1  ;;  %v17994_v57 = vld [vmem:[#allocation362_spill] sm:$0xff]  ;;  %v17995_v21 = vld [vmem:[#allocation459_spill] sm:$0xff]  ;;  %7801 = vmatprep.subr.bf16.mxu1 %v7989_v8 }
 0x5f1   : > { %4643 = vrot.lane.b32.xlu1 %v17941_v61, %s8050_s26  ;;  %v4960_v48 = vsel %vm2487_vm12, %v4909_v55, %v13392_v20  ;;  %v4913_v6 = vsel %vm2422_vm11, %v4858_v27, %v17994_v57  ;;  %v13563_v61 = vpop.permute.xlu0 %4489  ;;  %v5109_v19 = vshll.u32 %v13533_v4, 16  ;;  %v13570_v23 = vsel %vm2617_vm13, %v5000_v58, %v17995_v21  ;;  %v7990_v1 = vld [vmem:[%s15810_s5] sm:$0xff]   ;;  %v17996_v27 = vld [vmem:[#allocation229_spill] sm:$0xff]  ;;  %v17997_v4 = vld [vmem:[#allocation444_spill] sm:$0xff] }
 0x5f2   : > { %v5011_v20 = vsel %vm2552_vm14, %v4960_v48, %v13433_v29  ;;  %v13574_v55 = vpop.permute.xlu1 %4623  ;;  %v5118_v16 = vor.u32 %v5117_v41, %v5113_v53  ;;  %v4840_v39 = vsel %vm2357_vm10, %v13420_v0, %v17996_v27  ;;  %v4955_v3 = vsel %vm2487_vm12, %v4904_v24, %v17997_v4  ;;  %v17998_v48 = vld [vmem:[#allocation269_spill] sm:$0xff]  ;;  %v17999_v41 = vld [vmem:[#allocation384_spill] sm:$0xff]  ;;  %7802 = vmatpush3.bf16.msra.mxu1 %v7989_v8  ;;  %v18002_v27 = vld [vmem:[#allocation307_spill] sm:$0xff] }
 0x5f3   : > { %v5062_v58 = vsel %vm2617_vm13, %v5011_v20, %v4667_v10  ;;  %5253 = vrot.lane.b32.xlu0 %v5102_v56, %s8060_s14  ;;  %v5137_v29 = vrot.slane %v5135_v46, 1  ;;  %v4900_v53 = vsel %vm2422_vm11, %v4840_v39, %v17998_v48  ;;  %v4910_v21 = vsel %vm2422_vm11, %v4854_v33, %v17999_v41  ;;  %v18001_v10 = vld [vmem:[#allocation122_spill] sm:$0xff]  ;;  %7803 = vmatprep.subr.bf16.mxu1 %v7990_v1  ;;  %v13599_v33 = vpop.f32.mrf.mxu1  ;;  %v18004_v4 = vld [vmem:[#allocation193_spill] sm:$0xff] }
 0x5f4   : > { %v4964_v22 = vsel %vm2487_vm12, %v4913_v6, %v18000_v34  ;;  %v5155_v0 = vshll.u32 %v13554_v54, 16  ;;  %v4951_v24 = vsel %vm2487_vm12, %v4900_v53, %v18001_v10  ;;  %v5141_v56 = vrot.slane %v5139_v14, 1  ;;  %v18003_v48 = vld [vmem:[#allocation394_spill] sm:$0xff]  ;;  %v18006_v10 = vld [vmem:[#allocation389_spill] sm:$0xff] }
 0x5f5   : > { %4604 = vrot.lane.b32.xlu1 %v17887_v50, %s8049_s23  ;;  %v4538_v46 = vpop.permute.xlu0 %4537  ;;  %v5122_v20 = vsel %vm16452_vm6, %v5118_v16, %v5121_v51  ;;  %v5133_v39 = vshrl.u32 %v13508_v32, 16  ;;  %v5002_v6 = vsel %vm2552_vm14, %v4951_v24, %v18002_v27  ;;  %v5006_v50 = vsel %vm2552_vm14, %v4955_v3, %v18003_v48  ;;  %v18005_v16 = vld [vmem:[#allocation380_spill] sm:$0xff]  ;;  %v18007_v27 = vld [vmem:[#allocation114_spill] sm:$0xff] }
 0x5f6   : > { %v4848_v8 = vsel %vm2357_vm10, %v13424_v35, %v18004_v4  ;;  %v5159_v53 = vshll.u32 %v5062_v58, 16  ;;  %v4669_v14 = vpop.permute.xlu1 %4668  ;;  %v4961_v32 = vsel %vm2487_vm12, %v4910_v21, %v18005_v16  ;;  %v5015_v34 = vsel %vm2552_vm14, %v4964_v22, %v18006_v10  ;;  %7804 = vmatpush3.bf16.msra.mxu1 %v7990_v1  ;;  %v18008_v21 = vld [vmem:[#allocation422_spill] sm:$0xff] }
 0x5f7   : > { %v4906_v51 = vsel %vm2422_vm11, %v4848_v8, %v13197_v13  ;;  %5257 = vrot.lane.b32.xlu0 %v5122_v20, %s8060_s14  ;;  %v5138_v24 = vor.u32 %v5137_v29, %v5133_v39  ;;  %v5053_v3 = vsel %vm2617_vm13, %v5002_v6, %v18007_v27  ;;  %v5157_v4 = vrot.slane %v5155_v0, 1  ;;  %v13628_v6 = vpop.f32.mrf.mxu1  ;;  %v18009_v0 = vld [vmem:[#allocation418_spill] sm:$0xff] }
 0x5f8   : > { %v4957_v35 = vsel %vm2487_vm12, %v4906_v51, %v13250_v42  ;;  %v5125_v13 = vshll.u32 %v13570_v23, 16  ;;  %v5057_v58 = vsel %vm2617_vm13, %v5006_v50, %v18008_v21  ;;  %v5153_v39 = vshrl.u32 %v13554_v54, 16  ;;  %v18010_v51 = vld [vmem:[#allocation453_spill] sm:$0xff] }
 0x5f9   : > { %4688 = vrot.lane.b32.xlu1 %v17972_v17, %s8051_s27  ;;  %v5008_v22 = vsel %vm2552_vm14, %v4957_v35, %v13311_v7  ;;  %v4585_v29 = vpop.permute.xlu0 %4584  ;;  %v5142_v20 = vsel %vm16452_vm6, %v5138_v24, %v5141_v56  ;;  %v5012_v8 = vsel %vm2552_vm14, %v4961_v32, %v18009_v0  ;;  %v5161_v1 = vrot.slane %v5159_v53, 1  ;;  %v18011_v35 = vld [vmem:[#allocation202_spill] sm:$0xff] }
 0x5fa   : > { %v5059_v42 = vsel %vm2617_vm13, %v5008_v22, %v13357_v63  ;;  %v5066_v50 = vsel %vm2617_vm13, %v5015_v34, %v18010_v51  ;;  %v4492_v27 = vpop.permute.xlu1 %4491  ;;  %v5111_v21 = vrot.slane %v5109_v19, 1  ;;  %v5129_v7 = vshll.u32 %v5053_v3, 16  ;;  %v18012_v32 = vld [vmem:[#allocation186_spill] sm:$0xff]  ;;  %v18013_v19 = vld [vmem:[#allocation395_spill] sm:$0xff] }
 0x5fb   : > { %v4862_v56 = vsel %vm2357_vm10, %v18011_v35, %v4492_v27  ;;  %5261 = vrot.lane.b32.xlu0 %v5142_v20, %s8060_s14  ;;  %v5123_v54 = vshrl.u32 %v13570_v23, 16  ;;  %v4856_v63 = vsel %vm2357_vm10, %v13437_v44, %v13455_v43  ;;  %v5158_v53 = vor.u32 %v5157_v4, %v5153_v39  ;;  %v13651_v35 = vpop.f32.mrf.mxu1  ;;  %v18014_v4 = vld [vmem:[#allocation419_spill] sm:$0xff] }
 0x5fc   : > { %v5127_v24 = vrot.slane %v5125_v13, 1  ;;  %v5145_v34 = vshll.u32 %v5057_v58, 16  ;;  %v5149_v22 = vshll.u32 %v5059_v42, 16  ;;  %v13647_v3 = vsel %vm2617_vm13, %v5012_v8, %v18013_v19  ;;  %v18026_v19 = vld [vmem:[#allocation155_spill] sm:$0xff] }
 0x5fd   : > { %7947 = vrot.lane.b32.xlu1 %v18012_v32, %s8051_s27  ;;  %v4912_v20 = vsel %vm2422_vm11, %v4856_v63, %v13491_v26  ;;  %v4626_v27 = vpop.permute.xlu0 %4625  ;;  %v5175_v23 = vshll.u32 %v5066_v50, 16  ;;  %v4860_v43 = vsel %vm2357_vm10, %v13413_v62, %v13563_v61  ;;  %v4916_v13 = vsel %vm2422_vm11, %v4862_v56, %v18014_v4 }
 0x5fe   : > { %v4963_v44 = vsel %vm2487_vm12, %v4912_v20, %v13528_v30  ;;  %v13660_v39 = vpop.permute.xlu1 %4493  ;;  %v5162_v42 = vsel %vm16452_vm6, %v5158_v53, %v5161_v1  ;;  %v5131_v8 = vrot.slane %v5129_v7, 1  ;;  %v4915_v63 = vsel %vm2422_vm11, %v4860_v43, %v4538_v46  ;;  %v18015_v1 = vld [vmem:[#allocation415_spill] sm:$0xff] }
 0x5ff   : > { %v5014_v26 = vsel %vm2552_vm14, %v4963_v44, %v13574_v55  ;;  %5265 = vrot.lane.b32.xlu0 %v5162_v42, %s8060_s14  ;;  %v5112_v30 = vsel %vm16452_vm6, %v13502_v11, %v5111_v21  ;;  %v4966_v61 = vsel %vm2487_vm12, %v4915_v63, %v4585_v29  ;;  %v5128_v56 = vor.u32 %v5127_v24, %v5123_v54  ;;  %v18016_v44 = vld [vmem:[#allocation226_spill] sm:$0xff]  ;;  %v13677_v11 = vpop.f32.mrf.mxu1 }
 0x600   : > { %v5065_v62 = vsel %vm2617_vm13, %v5014_v26, %v4669_v14  ;;  %v5147_v32 = vrot.slane %v5145_v34, 1  ;;  %v4967_v7 = vsel %vm2487_vm12, %v4916_v13, %v18015_v1  ;;  %v5017_v55 = vsel %vm2552_vm14, %v4966_v61, %v4626_v27  ;;  %v18017_v27 = vld [vmem:[#allocation121_spill] sm:$0xff]  ;;  %v18024_v61 = vld [vmem:[#allocation199_spill] sm:$0xff] }
 0x601   : > { %5255 = vrot.lane.b32.xlu1 %v5112_v30, %s8060_s14  ;;  %v4671_v53 = vpop.permute.xlu0 %4670  ;;  %v5177_v46 = vrot.slane %v5175_v23, 1  ;;  %v5165_v20 = vshll.u32 %v13647_v3, 16  ;;  %v5151_v14 = vrot.slane %v5149_v22, 1  ;;  %v5143_v54 = vshrl.u32 %v5057_v58, 16  ;;  %v18022_v22 = vld [vmem:[#allocation391_spill] sm:$0xff] }
 0x602   : > { %v5068_v21 = vsel %vm2617_vm13, %v5017_v55, %v4671_v53  ;;  %v4540_v29 = vpop.permute.xlu1 %4539  ;;  %v5169_v24 = vshll.u32 %v5065_v62, 16  ;;  %v5132_v4 = vsel %vm16452_vm6, %v5128_v56, %v5131_v8  ;;  %v5173_v13 = vshrl.u32 %v5066_v50, 16  ;;  %v18023_v62 = vld [vmem:[#allocation332_spill] sm:$0xff]  ;;  %v8028_v53 = vld [vmem:[%s8135_s17 + $0xa8] sm:$0xff]  }
 0x603   : > { %v5179_v34 = vshll.u32 %v5068_v21, 16  ;;  %v13682_v42 = vunpack.c.h.bf16 %v18017_v27  ;;  %v18019_v23 = vunpack.c.l.bf16 %v18017_v27  ;;  %v5018_v30 = vsel %vm2552_vm14, %v4967_v7, %v18022_v22  ;;  %v13697_v27 = vpop.f32.mrf.mxu1  ;;  %v18027_v22 = vld [vmem:[#allocation455_spill] sm:$0xff] }
 0x604   : > { %v5148_v58 = vor.u32 %v5147_v32, %v5143_v54  ;;  %v4721_v8 = vsel %vm574_vm1, %v18024_v61, %v18023_v62  ;;  %v5178_v1 = vor.u32 %v5177_v46, %v5173_v13  ;;  %v5167_v55 = vrot.slane %v5165_v20, 1  ;;  %v18038_v61 = vld [vmem:[#allocation117_spill] sm:$0xff]  ;;  %v18042_v13 = vld [vmem:[#allocation370_spill] sm:$0xff] }
 0x605   : > { %18018 = vst [vmem:[#allocation292_spill] sm:$0xff] %v13682_v42  ;;  %v13688_v63 = vsel %vm398_vm3, %v18019_v23, -1e+30  ;;  %5259 = vrot.lane.b32.xlu1 %v5132_v4, %s8060_s14  ;;  %v5181_v50 = vrot.slane %v5179_v34, 1  ;;  %v4496_v56 = vpop.permute.xlu0 %4495  ;;  %v5645_v21 = vunpack.c.l.bf16 %v8028_v53  ;;  %v18025_v23 = vld [vmem:[#allocation364_spill] sm:$0xff]  ;;  %v5171_v54 = vrot.slane %v5169_v24, 1 }
 0x606   : > { %18021 = vst [vmem:[#allocation331_spill] sm:$0xff] %v13688_v63  ;;  %v4768_v43 = vsel %vm2227_vm8, %v4721_v8, %v18025_v23  ;;  %v4866_v7 = vsel %vm2357_vm10, %v18026_v19, %v4496_v56  ;;  %v4587_v4 = vpop.permute.xlu1 %4586  ;;  %v5152_v32 = vsel %vm16452_vm6, %v5148_v58, %v5151_v14  ;;  %v5069_v34 = vsel %vm2617_vm13, %v5018_v30, %v18027_v22  ;;  %v18030_v23 = vld [vmem:[#allocation207_spill] sm:$0xff]  ;;  %v18034_v24 = vld [vmem:[#allocation369_spill] sm:$0xff] }
 0x607   : > { %v5182_v46 = vsel %vm16452_vm6, %v5178_v1, %v5181_v50  ;;  %v5163_v20 = vshrl.u32 %v13647_v3, 16  ;;  %v18031_v0 = vunpack.c.h.bf16 %v18030_v23  ;;  %v13720_v3 = vunpack.c.h.bf16 %v8028_v53  ;;  %v13731_v1 = vpop.f32.mrf.mxu1 }
 0x608   : > { %5269 = vrot.lane.b32.xlu0 %v5182_v46, %s8060_s14  ;;  %v4919_v30 = vsel %vm2422_vm11, %v4866_v7, %v18034_v24  ;;  %v5818_v56 = vrot.slane %v13688_v63, 1  ;;  %v5185_v46 = vshll.u32 %v5069_v34, 16  ;;  %v18037_v23 = vrot.slane %v18016_v44, 1 }
 0x609   : > { %v13715_v19 = vsel %vm398_vm3, %v18031_v0, -1e+30  ;;  %5263 = vrot.lane.b32.xlu1 %v5152_v32, %s8060_s14  ;;  %18033 = vst [vmem:[#allocation340_spill] sm:$0xff] %v13720_v3  ;;  %v13724_v58 = vpop.permute.xlu0 %4497  ;;  %v5168_v50 = vor.u32 %v5167_v55, %v5163_v20  ;;  %v13729_v0 = vsel %vm398_vm3, %v5645_v21, -1e+30  ;;  %v18036_v32 = vld [vmem:[#allocation330_spill] sm:$0xff]  ;;  %v4970_v44 = vsel %vm2487_vm12, %v4919_v30, %v18042_v13  ;;  %v13765_v13 = vpop.f32.mrf.mxu1 }
 0x60a   : > { %18032 = vst [vmem:[#allocation149_spill] sm:$0xff] %v13715_v19  ;;  %18035 = vst [vmem:[#allocation140_spill] sm:$0xff] %v13729_v0  ;;  %v4806_v22 = vsel %vm2292_vm9, %v4768_v43, %v18036_v32  ;;  %v4628_v53 = vpop.permute.xlu1 %4627  ;;  %v18039_v7 = vrot.slane %v18038_v61, 1  ;;  %v8029_v55 = vld [vmem:[%s8135_s17 + $0x88] sm:$0xff]   ;;  %v8030_v43 = vld [vmem:[%s8135_s17 + $0x98] sm:$0xff]  }
 0x60b   : > { %v13743_v20 = vunpack.c.l.bf16 %v8029_v55  ;;  %v4864_v21 = vsel %vm2357_vm10, %v4806_v22, %v13660_v39  ;;  %v5172_v62 = vsel %vm16452_vm6, %v5168_v50, %v5171_v54  ;;  %v5642_v32 = vunpack.c.h.bf16 %v8030_v43  ;;  %v18054_v61 = vld [vmem:[#allocation215_spill] sm:$0xff] }
 0x60c   : > { %v13740_v24 = vsel %vm16453_vm5, %v18039_v7, %v18037_v23  ;;  %v4918_v14 = vsel %vm2422_vm11, %v4864_v21, %v4540_v29  ;;  %v5828_v7 = vrot.slane %v13729_v0, 1  ;;  %v16422_v55 = vrot.slane %v13720_v3, 1  ;;  %v8032_v3 = vld [vmem:[%s8135_s17 + $0xb0] sm:$0xff]   ;;  %v18062_v0 = vld [vmem:[#allocation205_spill] sm:$0xff] }
 0x60d   : > { %18040 = vst [vmem:[#allocation172_spill] sm:$0xff] %v13740_v24  ;;  %18041 = vst [vmem:[#allocation158_spill] sm:$0xff] %v13743_v20  ;;  %5267 = vrot.lane.b32.xlu1 %v5172_v62, %s8060_s14  ;;  %v4969_v39 = vsel %vm2487_vm12, %v4918_v14, %v4587_v4  ;;  %v4542_v54 = vpop.permute.xlu0 %4541  ;;  %v18043_v29 = vrot.slane %v13682_v42, 1  ;;  %v5187_v21 = vrot.slane %v5185_v46, 1  ;;  %v18045_v14 = vld [vmem:[#allocation153_spill] sm:$0xff]  ;;  %v18052_v4 = vld [vmem:[#allocation382_spill] sm:$0xff]  ;;  %v5648_v19 = vunpack.c.h.bf16 %v8032_v3 }
 0x60e   : > { %v5020_v62 = vsel %vm2552_vm14, %v4969_v39, %v4628_v53  ;;  %v4673_v30 = vpop.permute.xlu1 %4672  ;;  %v5021_v23 = vsel %vm2552_vm14, %v4970_v44, %v18045_v14  ;;  %v5183_v53 = vshrl.u32 %v5069_v34, 16  ;;  %v8031_v39 = vld [vmem:[%s8135_s17 + $0xa0] sm:$0xff]   ;;  %v13786_v44 = vsel %vm16453_vm5, %v5828_v7, %v16422_v55  ;;  %v18053_v7 = vld [vmem:[#allocation236_spill] sm:$0xff] }
 0x60f   : > { %v13763_v22 = vsel %vm16453_vm5, %v5818_v56, %v18043_v29  ;;  %v5071_v50 = vsel %vm2617_vm13, %v5020_v62, %v4673_v30  ;;  %v13776_v56 = vsel %vm398_vm3, %v5642_v32, -1e+30  ;;  %v13781_v43 = vunpack.c.l.bf16 %v8031_v39  ;;  %18048 = vst [vmem:[#allocation165_spill] sm:$0xff] %v13786_v44  ;;  %v18049_v62 = vld [vmem:[#allocation334_spill] sm:$0xff]  ;;  %v13791_v32 = vpop.f32.mrf.mxu1  ;;  %v18086_v42 = vld [vmem:[#allocation328_spill] sm:$0xff] }
 0x610   : > { %18044 = vst [vmem:[#allocation324_spill] sm:$0xff] %v13763_v22  ;;  %18046 = vst [vmem:[#allocation159_spill] sm:$0xff] %v13776_v56  ;;  %v5189_v29 = vshll.u32 %v5071_v50, 16  ;;  %v18050_v30 = vld [vmem:[#allocation278_spill] sm:$0xff]  ;;  %v5072_v46 = vsel %vm2617_vm13, %v5021_v23, %v18052_v4  ;;  %v5188_v63 = vor.u32 %v5187_v21, %v5183_v53  ;;  %v7920_v55 = vunpack.i.h.bf16 %v18053_v7  ;;  %v18055_v53 = vld [vmem:[#allocation345_spill] sm:$0xff] }
 0x611   : > { %18047 = vst [vmem:[#allocation130_spill] sm:$0xff] %v13781_v43  ;;  %v4724_v14 = vsel %vm574_vm1, %v18050_v30, %v18049_v62  ;;  %v4589_v8 = vpop.permute.xlu0 %4588  ;;  %v18051_v50 = vld [vmem:[#allocation294_spill] sm:$0xff]  ;;  %v7919_v24 = vunpack.i.l.bf16 %v18053_v7  ;;  %v13820_v23 = vpop.f32.mrf.mxu1  ;;  %v18060_v7 = vld [vmem:[#allocation212_spill] sm:$0xff]  ;;  %v18065_v56 = vld [vmem:[#allocation253_spill] sm:$0xff] }
 0x612   : > { %v4770_v34 = vsel %vm2227_vm8, %v4724_v14, %v18051_v50  ;;  %v5191_v39 = vrot.slane %v5189_v29, 1  ;;  %v4500_v22 = vpop.permute.xlu1 %4499  ;;  %v6617_v30 = vld [vmem:[%s15812_s7] sm:$0x3]  ;;  %v5195_v50 = vshll.u32 %v5072_v46, 16  ;;  %v18057_v29 = vld [vmem:[#allocation452_spill] sm:$0xff] }
 0x613   : > { %v4870_v62 = vsel %vm2357_vm10, %v18054_v61, %v4500_v22  ;;  %7877 = vmatprep.subr.msk.bf16.mxu0 %vm665_vm0, %v6617_v30  ;;  %v6674_v3 = vsel %vm665_vm0, %v6617_v30, 0  ;;  %v4808_v61 = vsel %vm2292_vm9, %v4770_v34, %v18055_v53  ;;  %v18061_v44 = vld [vmem:[#allocation222_spill] sm:$0xff]  ;;  %v18104_v20 = vld [vmem:[#allocation376_spill] sm:$0xff]  ;;  %vm18203_vm0 = vcmask 392192  }
 0x614   : > { %v5192_v21 = vsel %vm16452_vm6, %v5188_v63, %v5191_v39  ;;  %7838 = vmatpush3.bf16.msra.mxu0 %v6674_v3  ;;  %v8033_v63 = vld [vmem:[%s8135_s17 + $0xb8] sm:$0xff]   ;;  %v4868_v30 = vsel %vm2357_vm10, %v4808_v61, %v13724_v58  ;;  %v4922_v14 = vsel %vm2422_vm11, %v4870_v62, %v18057_v29  ;;  %v3803_v58 = vsel %vm574_vm1, %v18062_v0, %v18061_v44  ;;  %v18070_v44 = vld [vmem:[#allocation352_spill] sm:$0xff]  ;;  %vm18213_vm5 = vmmov %vm18203_vm0 }
 0x615   : > { %v4630_v22 = vpop.permute.xlu0 %4629  ;;  %5271 = vrot.lane.b32.xlu1 %v5192_v21, %s8060_s14  ;;  %v13818_v39 = vunpack.c.l.bf16 %v8033_v63  ;;  %v13830_v21 = vsel %vm398_vm3, %v5648_v19, -1e+30  ;;  %v18059_v3 = vld [vmem:[#allocation213_spill] sm:$0xff]  ;;  %v3797_v63 = vsel %vm574_vm1, %v18060_v7, %v7919_v24  ;;  %v4921_v4 = vsel %vm2422_vm11, %v4868_v30, %v4542_v54  ;;  %vm18205_vm3 = vmmov %vm18203_vm0 }
 0x616   : > { %v13826_v34 = vpop.permute.xlu1 %4501  ;;  %18058 = vst [vmem:[#allocation133_spill] sm:$0xff] %v13830_v21  ;;  %v3800_v53 = vsel %vm574_vm1, %v18059_v3, %v7920_v55  ;;  %v18063_v61 = vld [vmem:[#allocation245_spill] sm:$0xff]  ;;  %v4972_v19 = vsel %vm2487_vm12, %v4921_v4, %v4589_v8  ;;  %v3848_v55 = vsel %vm2227_vm8, %v3803_v58, %v18065_v56  ;;  %v5197_v30 = vrot.slane %v5195_v50, 1  ;;  %v18067_v50 = vld [vmem:[#allocation327_spill] sm:$0xff] }
 0x617   : > { %18056 = vst [vmem:[#allocation146_spill] sm:$0xff] %v13818_v39  ;;  %v3846_v62 = vsel %vm2227_vm8, %v3800_v53, %v18063_v61  ;;  %v18064_v29 = vld [vmem:[#allocation301_spill] sm:$0xff]  ;;  %v5023_v54 = vsel %vm2552_vm14, %v4972_v19, %v4630_v22  ;;  %v13853_v61 = vpop.f32.mrf.mxu1  ;;  %v18069_v19 = vld [vmem:[#allocation272_spill] sm:$0xff]  ;;  %v3880_v0 = vsel %vm2292_vm9, %v3848_v55, %v18070_v44  ;;  %v18076_v44 = vld [vmem:[#allocation314_spill] sm:$0xff] }
 0x618   : > { %v3844_v26 = vsel %vm2227_vm8, %v3797_v63, %v18064_v29  ;;  %v18066_v3 = vld [vmem:[#allocation385_spill] sm:$0xff]  ;;  %v3878_v56 = vsel %vm2292_vm9, %v3846_v62, %v17972_v17  ;;  %v5193_v63 = vshrl.u32 %v5072_v46, 16  ;;  %v18068_v29 = vld [vmem:[#allocation308_spill] sm:$0xff]  ;;  %v18083_v39 = vld [vmem:[#allocation343_spill] sm:$0xff] }
 0x619   : > { %v4973_v24 = vsel %vm2487_vm12, %v4922_v14, %v18066_v3  ;;  %v4675_v7 = vpop.permute.xlu0 %4674  ;;  %v3876_v14 = vsel %vm2292_vm9, %v3844_v26, %v17972_v17  ;;  %v3910_v58 = vsel %vm2357_vm10, %v3878_v56, %v18067_v50  ;;  %v3914_v3 = vsel %vm2357_vm10, %v18069_v19, %v18068_v29  ;;  %v18072_v53 = vld [vmem:[#allocation313_spill] sm:$0xff]  ;;  %v18073_v26 = vld [vmem:[#allocation300_spill] sm:$0xff] }
 0x61a   : > { %v5074_v8 = vsel %vm2617_vm13, %v5023_v54, %v4675_v7  ;;  %v4544_v4 = vpop.permute.xlu1 %4543  ;;  %v18071_v54 = vld [vmem:[#allocation392_spill] sm:$0xff]  ;;  %v3918_v62 = vsel %vm2357_vm10, %v13240_v37, %v18072_v53  ;;  %v3908_v46 = vsel %vm2357_vm10, %v3876_v14, %v18073_v26  ;;  %v5198_v56 = vor.u32 %v5197_v30, %v5193_v63  ;;  %v18074_v50 = vld [vmem:[#allocation325_spill] sm:$0xff]  ;;  %v18078_v53 = vld [vmem:[#allocation107_spill] sm:$0xff] }
 0x61b   : > { %v5199_v22 = vshll.u32 %v5074_v8, 16  ;;  %v5024_v7 = vsel %vm2552_vm14, %v4973_v24, %v18071_v54  ;;  %v3922_v29 = vsel %vm2357_vm10, %v13244_v60, %v18074_v50  ;;  %v18075_v19 = vld [vmem:[#allocation329_spill] sm:$0xff]  ;;  %v3926_v24 = vsel %vm2357_vm10, %v13254_v18, %v18076_v44  ;;  %v13884_v54 = vpop.f32.mrf.mxu1  ;;  %v18079_v26 = vld [vmem:[#allocation338_spill] sm:$0xff]  ;;  %v18080_v30 = vld [vmem:[#allocation316_spill] sm:$0xff] }
 0x61c   : > { %v3912_v55 = vsel %vm2357_vm10, %v3880_v0, %v18075_v19  ;;  %v18077_v37 = vld [vmem:[#allocation305_spill] sm:$0xff]  ;;  %v3916_v63 = vsel %vm2357_vm10, %v18080_v30, %v18079_v26  ;;  %v13895_v60 = vld [vmem:[%s15809_s4] ss:$0 sm:$0xff]  ;;  %v18085_v30 = vld [vmem:[#allocation315_spill] sm:$0xff] }
 0x61d   : > { %v5201_v8 = vrot.slane %v5199_v22, 1  ;;  %v13874_v21 = vpop.permute.xlu0 %4503  ;;  %v4727_v14 = vsel %vm574_vm1, %v18078_v53, %v18077_v37  ;;  %v18081_v0 = vld [vmem:[#allocation273_spill] sm:$0xff]  ;;  %v3930_v37 = vsel %vm2357_vm10, %v13258_v36, %v18083_v39  ;;  %v18084_v53 = vld [vmem:[#allocation350_spill] sm:$0xff]  ;;  %v3924_v43 = vsel %vm2357_vm10, %v13273_v45, %v18085_v30 }
 0x61e   : > { %v4591_v22 = vpop.permute.xlu1 %4590  ;;  %v4772_v50 = vsel %vm2227_vm8, %v4727_v14, %v18081_v0  ;;  %v18082_v18 = vld [vmem:[#allocation397_spill] sm:$0xff]  ;;  %v3920_v26 = vsel %vm2357_vm10, %v13262_v28, %v18084_v53  ;;  %v3928_v14 = vsel %vm2357_vm10, %v13277_v25, %v18086_v42  ;;  %v3946_v36 = vsel %vm2422_vm11, %v3914_v3, %v17935_v38  ;;  %v18089_v0 = vld [vmem:[#allocation239_spill] sm:$0xff] }
 0x61f   : > { %v5075_v19 = vsel %vm2617_vm13, %v5024_v7, %v18082_v18  ;;  %v5202_v44 = vsel %vm16452_vm6, %v5198_v56, %v5201_v8  ;;  %v18087_v7 = vld [vmem:[#allocation349_spill] sm:$0xff]  ;;  %v3950_v39 = vsel %vm2422_vm11, %v3918_v62, %v17947_v49  ;;  %v13929_v25 = vadd.f32 %v18089_v0, %v13895_v60  ;;  %v18090_v42 = vld [vmem:[#allocation131_spill] sm:$0xff] }
 0x620   : > { %5273 = vrot.lane.b32.xlu0 %v5202_v44, %s8060_s14  ;;  %v3942_v8 = vsel %vm2422_vm11, %v3910_v58, %v18087_v7  ;;  %v18088_v28 = vld [vmem:[#allocation357_spill] sm:$0xff]  ;;  %v13933_v18 = vadd.f32 %v13895_v60, %v18090_v42  ;;  %v13935_v58 = vpop.f32.mrf.mxu1  ;;  %v18091_v38 = vld [vmem:[#allocation243_spill] sm:$0xff]  ;;  %v5205_v62 = vshll.u32 %v5075_v19, 16  ;;  %v13945_v30 = vsel %vm2422_vm11, %v3926_v24, %v17974_v40 }
 0x621   : > { %v13923_v56 = vsel %vm2422_vm11, %v3908_v46, %v18088_v28  ;;  %v13925_v45 = vpop.permute.xlu0 %4507  ;;  %v4810_v3 = vsel %vm2292_vm9, %v4772_v50, %v18091_v38  ;;  %v3954_v46 = vsel %vm2422_vm11, %v3922_v29, %v17958_v15  ;;  %v18092_v44 = vld [vmem:[#allocation361_spill] sm:$0xff]  ;;  %v13951_v28 = vsel %vm2422_vm11, %v3916_v63, %v17939_v52  ;;  %v18093_v15 = vld [vmem:[#allocation238_spill] sm:$0xff] }
 0x622   : > { %v4632_v49 = vpop.permute.xlu1 %4631  ;;  %v3944_v53 = vsel %vm2422_vm11, %v3912_v55, %v18092_v44  ;;  %v4872_v7 = vsel %vm2357_vm10, %v4810_v3, %v13826_v34  ;;  %v13955_v50 = vsel %vm2422_vm11, %v3930_v37, %v17994_v57  ;;  %v13959_v29 = vadd.f32 %v18093_v15, %v13895_v60  ;;  %v18094_v52 = vld [vmem:[#allocation105_spill] sm:$0xff]  ;;  %v13979_v0 = vpop.f32.mrf.mxu1 }
 0x623   : > { %v4924_v55 = vsel %vm2422_vm11, %v4872_v7, %v4544_v4  ;;  %v13964_v40 = vsel %vm2422_vm11, %v3920_v26, %v17975_v5  ;;  %v13968_v34 = vsel %vm2422_vm11, %v3924_v43, %v17992_v31  ;;  %v13972_v24 = vadd.f32 %v13895_v60, %v18094_v52  ;;  %v18095_v43 = vld [vmem:[#allocation157_spill] sm:$0xff]  ;;  %v18102_v4 = vld [vmem:[#allocation118_spill] sm:$0xff] }
 0x624   : > { %v4975_v57 = vsel %vm2487_vm12, %v4924_v55, %v4591_v22  ;;  %v5207_v42 = vrot.slane %v5205_v62, 1  ;;  %v13984_v31 = vsel %vm2422_vm11, %v3928_v14, %v17999_v41  ;;  %v13988_v38 = vadd.f32 %v18095_v43, %v13895_v60  ;;  %v18096_v14 = vld [vmem:[#allocation377_spill] sm:$0xff]  ;;  %v18097_v55 = vld [vmem:[#allocation346_spill] sm:$0xff] }
 0x625   : > { %v13975_v63 = vpop.permute.xlu0 %4547  ;;  %v5026_v5 = vsel %vm2552_vm14, %v4975_v57, %v4632_v49  ;;  %v13992_v22 = vadd.f32 %v13895_v60, %v13246_v12  ;;  %v13998_v49 = vadd.f32 %v13298_v2, %v13895_v60  ;;  %v5203_v7 = vshrl.u32 %v5075_v19, 16  ;;  %v18099_v2 = vld [vmem:[#allocation373_spill] sm:$0xff]  ;;  %v18100_v19 = vld [vmem:[#allocation404_spill] sm:$0xff] }
 0x626   : > { %v4677_v26 = vpop.permute.xlu1 %4676  ;;  %v14003_v15 = vsel %vm2487_vm12, %v3942_v8, %v18096_v14  ;;  %v14007_v12 = vadd.f32 %v13895_v60, %v13347_v47  ;;  %v14011_v52 = vadd.f32 %v18097_v55, %v13895_v60  ;;  %v4874_v43 = vsel %vm2357_vm10, %v18100_v19, %v13874_v21  ;;  %v18101_v55 = vld [vmem:[#allocation246_spill] sm:$0xff]  ;;  %v18105_v19 = vld [vmem:[#allocation367_spill] sm:$0xff]  ;;  %v18106_v47 = vld [vmem:[#allocation368_spill] sm:$0xff] }
 0x627   : > { %v5077_v3 = vsel %vm2617_vm13, %v5026_v5, %v4677_v26  ;;  %v7924_v5 = vunpack.i.l.bf16 %v18099_v2  ;;  %v14016_v26 = vpop.f32.mrf.mxu1  ;;  %v5208_v14 = vor.u32 %v5207_v42, %v5203_v7  ;;  %v14027_v44 = vadd.f32 %v13895_v60, %v18101_v55  ;;  %v18110_v21 = vld [vmem:[#allocation375_spill] sm:$0xff] }
 0x628   : > { %v5209_v62 = vshll.u32 %v5077_v3, 16  ;;  %18098 = vst [vmem:[#allocation166_spill] sm:$0xff] %v14011_v52  ;;  %v14031_v41 = vadd.f32 %v18102_v4, %v13895_v60  ;;  %v14035_v51 = vsel %vm2487_vm12, %v3946_v36, %v18104_v20  ;;  %v14040_v42 = vadd.f32 %v13895_v60, %v13522_v59  ;;  %v18118_v7 = vld [vmem:[#allocation211_spill] sm:$0xff] }
 0x629   : > { %v14013_v57 = vpop.permute.xlu0 %4545  ;;  %v14046_v55 = vsel %vm2487_vm12, %v3950_v39, %v18105_v19  ;;  %v4925_v20 = vsel %vm2422_vm11, %v4874_v43, %v18106_v47  ;;  %v14065_v39 = vsel %vm2487_vm12, %v13923_v56, %v7924_v5  ;;  %v14067_v19 = vpop.f32.mrf.mxu1  ;;  %v14077_v37 = vsel %vm2487_vm12, %v3944_v53, %v18110_v21  ;;  %v18111_v47 = vld [vmem:[#allocation454_spill] sm:$0xff]  ;;  %v18113_v53 = vld [vmem:[#allocation383_spill] sm:$0xff] }
 0x62a   : > { %v5211_v8 = vrot.slane %v5209_v62, 1  ;;  %v14021_v3 = vpop.permute.xlu1 %4401  ;;  %18103 = vst [vmem:[#allocation132_spill] sm:$0xff] %v14031_v41  ;;  %v14082_v56 = vadd.f32 %v13628_v6, %v13895_v60  ;;  %v14086_v5 = vadd.f32 %v13895_v60, %v13651_v35  ;;  %v14098_v21 = vsel %vm2487_vm12, %v13951_v28, %v18113_v53  ;;  %v18117_v53 = vld [vmem:[#allocation96_spill] sm:$0xff] }
 0x62b   : > { %v14102_v6 = vadd.f32 %v13677_v11, %v13895_v60  ;;  %v14106_v35 = vadd.f32 %v13895_v60, %v13697_v27  ;;  %v7789_v28 = vpop.f32.mrf.mxu1  ;;  %v4730_v11 = vsel %vm574_vm1, %v18118_v7, %v18117_v53  ;;  %v18119_v27 = vld [vmem:[#allocation421_spill] sm:$0xff]  ;;  %v18123_v53 = vld [vmem:[#allocation444_spill] sm:$0xff]  ;;  %v14172_v7 = vsel %vm2487_vm12, %v13984_v31, %v18005_v16 }
 0x62c   : > { %v5212_v62 = vsel %vm16452_vm6, %v5208_v14, %v5211_v8  ;;  %v14057_v8 = vadd.f32 %v13565_v9, %v13895_v60  ;;  %v14061_v14 = vadd.f32 %v13895_v60, %v13599_v33  ;;  %v14125_v52 = vsel %vm2487_vm12, %v13964_v40, %v18119_v27  ;;  %v18132_v16 = vld [vmem:[#allocation228_spill] sm:$0xff] }
 0x62d   : > { %v14051_v36 = vpop.permute.xlu0 %4549  ;;  %5275 = vrot.lane.b32.xlu1 %v5212_v62, %s8060_s14  ;;  %v18109_v62 = vld [vmem:[#allocation374_spill] sm:$0xff]  ;;  %18114 = vst [vmem:[#allocation276_spill] sm:$0xff] %v14102_v6  ;;  %18115 = vst [vmem:[#allocation268_spill] sm:$0xff] %v14106_v35  ;;  %v14140_v41 = vsel %vm2487_vm12, %v13968_v34, %v18123_v53  ;;  %v14144_v40 = vadd.f32 %v13895_v60, %v13765_v13  ;;  %v14158_v34 = vadd.f32 %v13853_v61, %v13895_v60  ;;  %v18126_v53 = vld [vmem:[#allocation431_spill] sm:$0xff] }
 0x62e   : > { %18107 = vst [vmem:[#allocation257_spill] sm:$0xff] %v14057_v8  ;;  %18108 = vst [vmem:[#allocation247_spill] sm:$0xff] %v14061_v14  ;;  %v4506_v43 = vpop.permute.xlu1 %4505  ;;  %v14072_v59 = vsel %vm2487_vm12, %v3954_v46, %v18109_v62  ;;  %v4976_v46 = vsel %vm2487_vm12, %v4925_v20, %v18111_v47  ;;  %v18112_v62 = vld [vmem:[#allocation386_spill] sm:$0xff]  ;;  %v18116_v47 = vld [vmem:[#allocation413_spill] sm:$0xff]  ;;  %v14129_v20 = vadd.f32 %v13731_v1, %v13895_v60 }
 0x62f   : > { %v14093_v9 = vsel %vm2487_vm12, %v13945_v30, %v18112_v62  ;;  %v14115_v62 = vsel %vm2487_vm12, %v13955_v50, %v18116_v47  ;;  %v18121_v30 = vld [vmem:[#allocation242_spill] sm:$0xff]  ;;  %v18122_v47 = vld [vmem:[#allocation379_spill] sm:$0xff]  ;;  %18124 = vst [vmem:[#allocation297_spill] sm:$0xff] %v14144_v40  ;;  %v14162_v13 = vadd.f32 %v13895_v60, %v13884_v54  ;;  %v14176_v61 = vadd.f32 %v13935_v58, %v13895_v60  ;;  %v18135_v58 = vld [vmem:[#allocation388_spill] sm:$0xff] }
 0x630   : > { %18120 = vst [vmem:[#allocation302_spill] sm:$0xff] %v14129_v20  ;;  %v4774_v50 = vsel %vm2227_vm8, %v4730_v11, %v18121_v30  ;;  %v5027_v8 = vsel %vm2552_vm14, %v4976_v46, %v18122_v47  ;;  %v14150_v46 = vadd.f32 %v13791_v32, %v13895_v60  ;;  %v14154_v11 = vadd.f32 %v13895_v60, %v13820_v23  ;;  %v3067_v47 = vpop.f32.mrf.mxu1  ;;  %v18127_v30 = vld [vmem:[#allocation274_spill] sm:$0xff]  ;;  %v18136_v23 = vld [vmem:[#allocation447_spill] sm:$0xff] }
 0x631   : > { %v14108_v33 = vpop.permute.xlu0 %4635  ;;  %v5078_v1 = vsel %vm2617_vm13, %v5027_v8, %v18126_v53  ;;  %v4812_v32 = vsel %vm2292_vm9, %v4774_v50, %v18127_v30  ;;  %18128 = vst [vmem:[#allocation317_spill] sm:$0xff] %v14176_v61  ;;  %v18129_v8 = vld [vmem:[#allocation378_spill] sm:$0xff]  ;;  %v14187_v30 = vadd.f32 %v13895_v60, %v13979_v0  ;;  %v14216_v0 = vadd.f32 %v14016_v26, %v13895_v60  ;;  %v18141_v61 = vld [vmem:[#allocation353_spill] sm:$0xff] }
 0x632   : > { %v14120_v4 = vpop.permute.xlu1 %4509  ;;  %18125 = vst [vmem:[#allocation322_spill] sm:$0xff] %v14150_v46  ;;  %v4876_v54 = vsel %vm2357_vm10, %v4812_v32, %v4506_v43  ;;  %v14183_v50 = vsel %vm2552_vm14, %v14003_v15, %v18129_v8  ;;  %v18131_v53 = vld [vmem:[#allocation230_spill] sm:$0xff]  ;;  %v18133_v43 = vld [vmem:[#allocation275_spill] sm:$0xff]  ;;  %v5215_v20 = vshll.u32 %v5078_v1, 16  ;;  %v7790_v40 = vpop.f32.mrf.mxu1  ;;  %v4004_v46 = vsel %vm2552_vm14, %v14065_v39, %v18136_v23 }
 0x633   : > { %18130 = vst [vmem:[#allocation283_spill] sm:$0xff] %v14187_v30  ;;  %v4733_v31 = vsel %vm574_vm1, %v18132_v16, %v18131_v53  ;;  %v18134_v15 = vld [vmem:[#allocation423_spill] sm:$0xff]  ;;  %v4927_v53 = vsel %vm2422_vm11, %v4876_v54, %v14013_v57  ;;  %18137 = vst [vmem:[#allocation241_spill] sm:$0xff] %v14216_v0  ;;  %v18138_v57 = vld [vmem:[#allocation450_spill] sm:$0xff]  ;;  %v14231_v26 = vadd.f32 %v13895_v60, %v14067_v19 }
 0x634   : > { %v4776_v32 = vsel %vm2227_vm8, %v4733_v31, %v18133_v43  ;;  %v4010_v8 = vsel %vm2552_vm14, %v14035_v51, %v18134_v15  ;;  %v4014_v31 = vsel %vm2552_vm14, %v14046_v55, %v18135_v58  ;;  %v18139_v55 = vld [vmem:[#allocation456_spill] sm:$0xff]  ;;  %v18140_v43 = vld [vmem:[#allocation102_spill] sm:$0xff]  ;;  %v18252_v15 = vld [vmem:[#allocation363_spill] sm:$0xff] }
 0x635   : > { %v4634_v27 = vpop.permute.xlu0 %4633  ;;  %v4814_v54 = vsel %vm2292_vm9, %v4776_v32, %v18138_v57  ;;  %v4018_v58 = vsel %vm2552_vm14, %v14072_v59, %v18139_v55  ;;  %v4736_v39 = vsel %vm574_vm1, %v18141_v61, %v18140_v43  ;;  %v3070_v32 = vpop.f32.mrf.mxu1  ;;  %v14239_v61 = vadd.f32 %v7789_v28, %v13895_v60  ;;  %v18147_v28 = vld [vmem:[#allocation333_spill] sm:$0xff]  ;;  %v18236_v19 = vld [vmem:[#allocation192_spill] sm:$0xff] }
 0x636   : > { %v4595_v14 = vpop.permute.xlu1 %4594  ;;  %v4878_v23 = vsel %vm2357_vm10, %v4814_v54, %v13925_v45  ;;  %v4778_v59 = vsel %vm2227_vm8, %v4736_v39, %v14021_v3  ;;  %v5213_v43 = vshrl.u32 %v5078_v1, 16  ;;  %v18143_v54 = vld [vmem:[#allocation387_spill] sm:$0xff]  ;;  %v14250_v3 = vadd.f32 %v7790_v40, %v13895_v60 }
 0x637   : > { %18142 = vst [vmem:[#allocation306_spill] sm:$0xff] %v14239_v61  ;;  %v4008_v55 = vsel %vm2552_vm14, %v14077_v37, %v18143_v54  ;;  %v18212_v54 = vld [vmem:[#allocation160_spill] sm:$0xff]  ;;  %v18311_v61 = vld [vmem:[#allocation21_spill] sm:$0xff] }
 0x638   : > { %18145 = vst [vmem:[#allocation97_spill] sm:$0xff] %v14250_v3 }
 0x639   : > { %v14196_v6 = vpop.permute.xlu0 %4403 }
 0x63a   : > { %v4593_v16 = vpop.permute.xlu1 %4592 }
 0x63b   : > { %v4978_v51 = vsel %vm2487_vm12, %v4927_v53, %v4593_v16  ;;  %v5217_v16 = vrot.slane %v5215_v20, 1 }
 0x63c   : > { %v5029_v35 = vsel %vm2552_vm14, %v4978_v51, %v4634_v27  ;;  %v4929_v27 = vsel %vm2422_vm11, %v4878_v23, %v13975_v63  ;;  %v14247_v63 = vadd.f32 %v13895_v60, %v3067_v47 }
 0x63d   : > { %v4679_v53 = vpop.permute.xlu0 %4678  ;;  %v4980_v45 = vsel %vm2487_vm12, %v4929_v27, %v4595_v14  ;;  %v4816_v14 = vsel %vm2292_vm9, %v4778_v59, %v18147_v28  ;;  %v5218_v23 = vor.u32 %v5217_v16, %v5213_v43  ;;  %v18148_v27 = vld [vmem:[#allocation417_spill] sm:$0xff]  ;;  %v4020_v28 = vsel %vm2552_vm14, %v14140_v41, %v18003_v48  ;;  %v18154_v48 = vld [vmem:[#allocation451_spill] sm:$0xff]  ;;  %v18219_v43 = vld [vmem:[#allocation460_spill] sm:$0xff] }
 0x63e   : > { %v5080_v51 = vsel %vm2617_vm13, %v5029_v35, %v4679_v53  ;;  %v4597_v57 = vpop.permute.xlu1 %4596  ;;  %18144 = vst [vmem:[#allocation270_spill] sm:$0xff] %v14247_v63  ;;  %v14253_v35 = vadd.f32 %v13895_v60, %v3070_v32  ;;  %v4022_v37 = vsel %vm2552_vm14, %v14093_v9, %v18148_v27  ;;  %v4880_v47 = vsel %vm2357_vm10, %v4816_v14, %v14120_v4  ;;  %v18150_v9 = vld [vmem:[#allocation449_spill] sm:$0xff]  ;;  %v18157_v32 = vld [vmem:[#allocation420_spill] sm:$0xff]  ;;  %v18253_v53 = vld [vmem:[#allocation254_spill] sm:$0xff] }
 0x63f   : > { %v5219_v20 = vshll.u32 %v5080_v51, 16  ;;  %v5031_v40 = vsel %vm2552_vm14, %v4980_v45, %v14108_v33  ;;  %v18149_v51 = vld [vmem:[#allocation425_spill] sm:$0xff]  ;;  %v4026_v4 = vsel %vm2552_vm14, %v14115_v62, %v18006_v10  ;;  %v4016_v33 = vsel %vm2552_vm14, %v14125_v52, %v18150_v9  ;;  %v18151_v10 = vld [vmem:[#allocation418_spill] sm:$0xff]  ;;  %v18152_v62 = vld [vmem:[#allocation427_spill] sm:$0xff] }
 0x640   : > { %18146 = vst [vmem:[#allocation94_spill] sm:$0xff] %v14253_v35  ;;  %v4012_v59 = vsel %vm2552_vm14, %v14098_v21, %v18149_v51  ;;  %v4931_v14 = vsel %vm2422_vm11, %v4880_v47, %v14051_v36  ;;  %v4024_v52 = vsel %vm2552_vm14, %v14172_v7, %v18151_v10  ;;  %v18153_v27 = vld [vmem:[#allocation393_spill] sm:$0xff]  ;;  %v4046_v41 = vsel %vm2617_vm13, %v4014_v31, %v18154_v48  ;;  %v18155_v36 = vld [vmem:[#allocation139_spill] sm:$0xff]  ;;  %v18156_v7 = vld [vmem:[#allocation320_spill] sm:$0xff] }
 0x641   : > { %v5221_v39 = vrot.slane %v5219_v20, 1  ;;  %v4683_v1 = vpop.permute.xlu0 %4682  ;;  %v4036_v47 = vsel %vm2617_vm13, %v4004_v46, %v18155_v36  ;;  %v4050_v10 = vsel %vm2617_vm13, %v4018_v58, %v18156_v7  ;;  %v18162_v36 = vld [vmem:[#allocation422_spill] sm:$0xff]  ;;  %v18313_v63 = vld [vmem:[#allocation27_spill] sm:$0xff]  ;;  %v18314_v35 = vld [vmem:[#allocation28_spill] sm:$0xff] }
 0x642   : > { %v4681_v60 = vpop.permute.xlu1 %4680  ;;  %v18165_v7 = vld [vmem:[#allocation194_spill] sm:$0xff] }
 0x643   : > { %v5082_v16 = vsel %vm2617_vm13, %v5031_v40, %v4681_v60  ;;  %v5222_v20 = vsel %vm16452_vm6, %v5218_v23, %v5221_v39  ;;  %v4038_v23 = vsel %vm2617_vm13, %v14183_v50, %v18152_v62  ;;  %v4042_v40 = vsel %vm2617_vm13, %v4010_v8, %v18153_v27  ;;  %v18158_v62 = vld [vmem:[#allocation429_spill] sm:$0xff] }
 0x644   : > { %v5225_v45 = vshll.u32 %v5082_v16, 16  ;;  %5277 = vrot.lane.b32.xlu0 %v5222_v20, %s8060_s14  ;;  %v4982_v60 = vsel %vm2487_vm12, %v4931_v14, %v4597_v57  ;;  %v4040_v50 = vsel %vm2617_vm13, %v4008_v55, %v18157_v32  ;;  %v4054_v8 = vsel %vm2617_vm13, %v4022_v37, %v18158_v62  ;;  %v18159_v14 = vld [vmem:[#allocation396_spill] sm:$0xff]  ;;  %v18160_v27 = vld [vmem:[#allocation453_spill] sm:$0xff]  ;;  %v18163_v32 = vld [vmem:[#allocation395_spill] sm:$0xff] }
 0x645   : > { %v14286_v39 = vpop.permute.xlu0 %7932  ;;  %v4044_v31 = vsel %vm2617_vm13, %v4012_v59, %v18159_v14  ;;  %v4058_v46 = vsel %vm2617_vm13, %v4026_v4, %v18160_v27  ;;  %v4052_v55 = vsel %vm2617_vm13, %v4020_v28, %v18162_v36  ;;  %v4056_v37 = vsel %vm2617_vm13, %v4024_v52, %v18163_v32  ;;  %v18166_v4 = vld [vmem:[#allocation424_spill] sm:$0xff]  ;;  %v18168_v28 = vld [vmem:[#allocation399_spill] sm:$0xff] }
 0x646   : > { %v4638_v51 = vpop.permute.xlu1 %4637  ;;  %v5227_v20 = vrot.slane %v5225_v45, 1  ;;  %v5223_v45 = vshrl.u32 %v5082_v16, 16  ;;  %v4074_v16 = vsel %vm2869_vm15, %v4042_v40, %v18165_v7  ;;  %v4078_v62 = vsel %vm2869_vm15, %v4046_v41, %v18166_v4  ;;  %v18169_v52 = vld [vmem:[#allocation408_spill] sm:$0xff]  ;;  %v18172_v7 = vld [vmem:[#allocation403_spill] sm:$0xff] }
 0x647   : > { %v5033_v9 = vsel %vm2552_vm14, %v4982_v60, %v4638_v51  ;;  %v18161_v51 = vld [vmem:[#allocation459_spill] sm:$0xff]  ;;  %v4072_v36 = vsel %vm2869_vm15, %v4040_v50, %v18169_v52  ;;  %v4090_v41 = vsel %vm2869_vm15, %v4058_v46, %v18172_v7 }
 0x648   : > { %v5084_v57 = vsel %vm2617_vm13, %v5033_v9, %v4683_v1  ;;  %v4048_v58 = vsel %vm2617_vm13, %v4016_v33, %v18161_v51  ;;  %v18164_v1 = vld [vmem:[#allocation390_spill] sm:$0xff]  ;;  %v18167_v33 = vld [vmem:[#allocation433_spill] sm:$0xff]  ;;  %v4082_v51 = vsel %vm2869_vm15, %v4050_v10, %v18168_v28  ;;  %v18175_v50 = vld [vmem:[#allocation435_spill] sm:$0xff] }
 0x649   : > { %v5229_v48 = vshll.u32 %v5084_v57, 16  ;;  %v14313_v60 = vpop.permute.xlu0 %4551  ;;  %v4070_v9 = vsel %vm2869_vm15, %v4038_v23, %v18164_v1  ;;  %v5228_v57 = vor.u32 %v5227_v20, %v5223_v45  ;;  %v4068_v27 = vsel %vm2869_vm15, %v4036_v47, %v18167_v33  ;;  %v18170_v23 = vld [vmem:[#allocation381_spill] sm:$0xff]  ;;  %v18173_v20 = vld [vmem:[#allocation398_spill] sm:$0xff] }
 0x64a   : > { %v4086_v32 = vsel %vm2869_vm15, %v4054_v8, %v18170_v23  ;;  %v18171_v1 = vld [vmem:[#allocation457_spill] sm:$0xff]  ;;  %v4080_v45 = vsel %vm2869_vm15, %v4048_v58, %v18173_v20  ;;  %v18174_v10 = vld [vmem:[#allocation426_spill] sm:$0xff]  ;;  %v4088_v33 = vsel %vm2869_vm15, %v4056_v37, %v18175_v50  ;;  %v18178_v58 = vld [vmem:[#allocation428_spill] sm:$0xff] }
 0x64b   : > { %v14323_v59 = vpop.permute.xlu1 %4407  ;;  %v5231_v14 = vrot.slane %v5229_v48, 1  ;;  %v4076_v40 = vsel %vm2869_vm15, %v4044_v31, %v18171_v1  ;;  %v4084_v4 = vsel %vm2869_vm15, %v4052_v55, %v18174_v10  ;;  %v18176_v8 = vld [vmem:[#allocation414_spill] sm:$0xff]  ;;  %v4111_v23 = vsel %vm4099_vm4, %v4078_v62, %v18178_v58  ;;  %v18180_v55 = vld [vmem:[#allocation148_spill] sm:$0xff]  ;;  %vm18207_vm15 = vmmov %vm18203_vm0 }
 0x64c   : > { %v4103_v28 = vsel %vm4099_vm4, %v4070_v9, %v18176_v8  ;;  %v18177_v31 = vld [vmem:[#allocation458_spill] sm:$0xff]  ;;  %v4115_v1 = vsel %vm4099_vm4, %v4082_v51, %v18180_v55  ;;  %v18184_v10 = vld [vmem:[#allocation164_spill] sm:$0xff]  ;;  %v18189_v55 = vld [vmem:[#allocation441_spill] sm:$0xff] }
 0x64d   : > { %v14343_v48 = vpop.permute.xlu0 %4555  ;;  %v5232_v47 = vsel %vm16452_vm6, %v5228_v57, %v5231_v14  ;;  %v4107_v52 = vsel %vm4099_vm4, %v4074_v16, %v18177_v31  ;;  %v18179_v57 = vld [vmem:[#allocation437_spill] sm:$0xff]  ;;  %v18181_v37 = vld [vmem:[#allocation402_spill] sm:$0xff]  ;;  %v18183_v16 = vld [vmem:[#allocation439_spill] sm:$0xff]  ;;  %v4123_v50 = vsel %vm4099_vm4, %v4090_v41, %v18184_v10 }
 0x64e   : > { %5279 = vrot.lane.b32.xlu1 %v5232_v47, %s8060_s14  ;;  %v4101_v14 = vsel %vm4099_vm4, %v4068_v27, %v18179_v57  ;;  %v4105_v7 = vsel %vm4099_vm4, %v4072_v36, %v18181_v37  ;;  %v18182_v9 = vld [vmem:[#allocation430_spill] sm:$0xff]  ;;  %v4109_v47 = vsel %vm4099_vm4, %v4076_v40, %v18183_v16  ;;  %v18185_v8 = vld [vmem:[#allocation400_spill] sm:$0xff]  ;;  %v18193_v10 = vld [vmem:[#allocation443_spill] sm:$0xff] }
 0x64f   : > { %v14355_v46 = vpop.permute.xlu1 %4405  ;;  %v4119_v20 = vsel %vm4099_vm4, %v4086_v32, %v18182_v9  ;;  %v4113_v62 = vsel %vm4099_vm4, %v4080_v45, %v18185_v8  ;;  %v18186_v31 = vld [vmem:[#allocation98_spill] sm:$0xff]  ;;  %v18187_v58 = vld [vmem:[#allocation416_spill] sm:$0xff]  ;;  %v4140_v32 = vsel %vm4132_vm7, %v4107_v52, %v18189_v55  ;;  %vm18211_vm6 = vmmov %vm18203_vm0 }
 0x650   : > { %v4117_v27 = vsel %vm4099_vm4, %v4084_v4, %v18186_v31  ;;  %v4121_v51 = vsel %vm4099_vm4, %v4088_v33, %v18187_v58  ;;  %v18188_v57 = vld [vmem:[#allocation432_spill] sm:$0xff]  ;;  %v18191_v9 = vld [vmem:[#allocation434_spill] sm:$0xff]  ;;  %v4138_v33 = vsel %vm4132_vm7, %v4105_v7, %v18193_v10  ;;  %v18194_v31 = vld [vmem:[#allocation405_spill] sm:$0xff] }
 0x651   : > { %v4136_v36 = vsel %vm4132_vm7, %v4103_v28, %v18188_v57  ;;  %v14381_v37 = vpop.permute.xlu0 %7942  ;;  %v18190_v40 = vld [vmem:[#allocation196_spill] sm:$0xff]  ;;  %v4134_v45 = vsel %vm4132_vm7, %v4101_v14, %v18191_v9  ;;  %v4152_v28 = vsel %vm4132_vm7, %v4119_v20, %v18194_v31  ;;  %v18199_v9 = vld [vmem:[#allocation201_spill] sm:$0xff]  ;;  %v7934_v20 = vunpack.i.l.bf16 %v14286_v39  ;;  %v18201_v31 = vld [vmem:[#allocation407_spill] sm:$0xff] }
 0x652   : > { %v4144_v41 = vsel %vm4132_vm7, %v4111_v23, %v18190_v40  ;;  %v18192_v16 = vld [vmem:[#allocation412_spill] sm:$0xff]  ;;  %v18197_v23 = vld [vmem:[#allocation291_spill] sm:$0xff]  ;;  %vm18209_vm4 = vmmov %vm18203_vm0 }
 0x653   : > { %v4148_v4 = vsel %vm4132_vm7, %v4115_v1, %v18192_v16  ;;  %v4410_v8 = vpop.permute.xlu1 %4409  ;;  %v18195_v58 = vld [vmem:[#allocation204_spill] sm:$0xff]  ;;  %v18198_v40 = vld [vmem:[#allocation119_spill] sm:$0xff]  ;;  %v4146_v1 = vsel %vm4132_vm7, %v4113_v62, %v18199_v9  ;;  %v18200_v16 = vld [vmem:[#allocation445_spill] sm:$0xff] }
 0x654   : > { %v4142_v52 = vsel %vm4132_vm7, %v4109_v47, %v18195_v58  ;;  %v18196_v57 = vld [vmem:[#allocation436_spill] sm:$0xff]  ;;  %v4739_v14 = vsel %vm574_vm1, %v18198_v40, %v18197_v23  ;;  %v4150_v7 = vsel %vm4132_vm7, %v4117_v27, %v18200_v16  ;;  %v4154_v47 = vsel %vm4132_vm7, %v4121_v51, %v18201_v31  ;;  %v18202_v58 = vld [vmem:[#allocation175_spill] sm:$0xff]  ;;  %v18206_v40 = vld [vmem:[#allocation406_spill] sm:$0xff] }
 0x655   : > { %v4156_v55 = vsel %vm4132_vm7, %v4123_v50, %v18196_v57  ;;  %v4780_v10 = vsel %vm2227_vm8, %v4739_v14, %v14196_v6  ;;  %v4169_v50 = vsel %vm18203_vm0, %v4136_v36, %v18202_v58  ;;  %v18204_v57 = vld [vmem:[#allocation3_spill] sm:$0xff]  ;;  %v4177_v62 = vsel %vm18207_vm15, %v4144_v41, %v18206_v40  ;;  %v14415_v9 = vpop.permute.xlu0 %4557  ;;  %v18210_v6 = vld [vmem:[#allocation438_spill] sm:$0xff]  ;;  %v18214_v31 = vld [vmem:[#allocation448_spill] sm:$0xff] }
 0x656   : > { %v4173_v23 = vsel %vm18205_vm3, %v4140_v32, %v18204_v57  ;;  %v18208_v27 = vld [vmem:[#allocation191_spill] sm:$0xff]  ;;  %v4181_v14 = vsel %vm18211_vm6, %v4148_v4, %v18210_v6  ;;  %v4171_v51 = vsel %vm18213_vm5, %v4138_v33, %v18212_v54  ;;  %vm18215_vm7 = vmmov %vm18203_vm0  ;;  %v18216_v32 = vld [vmem:[#allocation156_spill] sm:$0xff] }
 0x657   : > { %v4167_v16 = vsel %vm18209_vm4, %v4134_v45, %v18208_v27  ;;  %v4185_v36 = vsel %vm18215_vm7, %v4152_v28, %v18214_v31  ;;  %v14425_v58 = vpop.permute.xlu1 %7937  ;;  %v4175_v57 = vsel %vm18203_vm0, %v4142_v52, %v18216_v32  ;;  %v18217_v41 = vld [vmem:[#allocation190_spill] sm:$0xff]  ;;  %vm18218_vm3 = vmmov %vm18203_vm0  ;;  %v18222_v6 = vld [vmem:[#allocation171_spill] sm:$0xff]  ;;  %vm18227_vm4 = vcmask 424960  }
 0x658   : > { %v4189_v40 = vsel %vm18218_vm3, %v4156_v55, %v18217_v41  ;;  %vm18220_vm15 = vmmov %vm18203_vm0  ;;  %v18221_v27 = vld [vmem:[#allocation410_spill] sm:$0xff]  ;;  %v18224_v33 = vld [vmem:[#allocation208_spill] sm:$0xff] }
 0x659   : > { %v4179_v45 = vsel %vm18220_vm15, %v4146_v1, %v18219_v43  ;;  %v4818_v4 = vsel %vm2292_vm9, %v4780_v10, %v18221_v27  ;;  %vm18223_vm6 = vmmov %vm18203_vm0  ;;  %v18226_v31 = vld [vmem:[#allocation409_spill] sm:$0xff]  ;;  %v18228_v32 = vld [vmem:[#allocation218_spill] sm:$0xff] }
 0x65a   : > { %v4183_v54 = vsel %vm18223_vm6, %v4150_v7, %v18222_v6  ;;  %vm18225_vm5 = vmmov %vm18203_vm0  ;;  %v4202_v21 = vsel %vm18227_vm4, %v4169_v50, %v18226_v31  ;;  %v4882_v52 = vsel %vm2357_vm10, %v4818_v4, %v7934_v20  ;;  %v18230_v41 = vld [vmem:[#allocation440_spill] sm:$0xff]  ;;  %v18234_v27 = vld [vmem:[#allocation195_spill] sm:$0xff]  ;;  %v4685_v6 = vpop.permute.xlu0 %4684 }
 0x65b   : > { %v4187_v28 = vsel %vm18225_vm5, %v4154_v47, %v18224_v33  ;;  %vm18229_vm7 = vmmov %vm18227_vm4  ;;  %v18232_v1 = vld [vmem:[#allocation188_spill] sm:$0xff]  ;;  %v18238_v33 = vld [vmem:[#allocation214_spill] sm:$0xff] }
 0x65c   : > { %v4206_v55 = vsel %vm18229_vm7, %v4173_v23, %v18228_v32  ;;  %vm18231_vm0 = vmmov %vm18227_vm4  ;;  %v18240_v20 = vld [vmem:[#allocation411_spill] sm:$0xff]  ;;  %v18242_v23 = vld [vmem:[#allocation225_spill] sm:$0xff]  ;;  %v4554_v32 = vpop.permute.xlu1 %4553 }
 0x65d   : > { %v4210_v43 = vsel %vm18231_vm0, %v4177_v62, %v18230_v41  ;;  %vm18233_vm3 = vmmov %vm18231_vm0  ;;  %v7929_v31 = vunpack.i.l.bf16 %v18242_v23  ;;  %v18243_v62 = vld [vmem:[#allocation106_spill] sm:$0xff] }
 0x65e   : > { %v4200_v10 = vsel %vm18233_vm3, %v4167_v16, %v18232_v1  ;;  %vm18235_vm15 = vmmov %vm18231_vm0  ;;  %v18245_v16 = vld [vmem:[#allocation442_spill] sm:$0xff] }
 0x65f   : > { %v4214_v7 = vsel %vm18235_vm15, %v4181_v14, %v18234_v27  ;;  %vm18237_vm6 = vmmov %vm18231_vm0  ;;  %v4212_v1 = vsel %vm18231_vm0, %v4179_v45, %v18245_v16  ;;  %v7930_v14 = vunpack.i.h.bf16 %v18242_v23  ;;  %v18248_v27 = vld [vmem:[#allocation95_spill] sm:$0xff] }
 0x660   : > { %v4204_v47 = vsel %vm18237_vm6, %v4171_v51, %v18236_v19  ;;  %vm18239_vm5 = vmmov %vm18231_vm0  ;;  %v4933_v19 = vsel %vm2422_vm11, %v4882_v52, %v14313_v60  ;;  %v18246_v51 = vld [vmem:[#allocation289_spill] sm:$0xff]  ;;  %vm18251_vm6 = vcmask 457728   ;;  %v18256_v23 = vld [vmem:[#allocation123_spill] sm:$0xff]  ;;  %v4642_v52 = vpop.permute.xlu0 %4641 }
 0x661   : > { %v4218_v50 = vsel %vm18239_vm5, %v4185_v36, %v18238_v33  ;;  %vm18241_vm4 = vmmov %vm18231_vm0  ;;  %v18250_v33 = vld [vmem:[#allocation235_spill] sm:$0xff] }
 0x662   : > { %v4208_v4 = vsel %vm18241_vm4, %v4175_v57, %v18240_v20  ;;  %vm18244_vm7 = vmmov %vm18231_vm0  ;;  %v4235_v20 = vsel %vm18251_vm6, %v4202_v21, %v18250_v33  ;;  %v18260_v21 = vld [vmem:[#allocation108_spill] sm:$0xff]  ;;  %v18262_v33 = vld [vmem:[#allocation161_spill] sm:$0xff] }
 0x663   : > { %v4222_v41 = vsel %vm18244_vm7, %v4189_v40, %v18243_v62  ;;  %vm18247_vm3 = vmmov %vm18231_vm0  ;;  %v4742_v40 = vsel %vm574_vm1, %v18253_v53, %v18252_v15  ;;  %v18254_v62 = vld [vmem:[#allocation116_spill] sm:$0xff]  ;;  %v4745_v15 = vsel %vm574_vm1, %v18262_v33, %v7929_v31  ;;  %v4640_v53 = vpop.permute.xlu1 %4639 }
 0x664   : > { %v4216_v36 = vsel %vm18247_vm3, %v4183_v54, %v18246_v51  ;;  %vm18249_vm15 = vmmov %vm18231_vm0  ;;  %v4782_v60 = vsel %vm2227_vm8, %v4742_v40, %v14355_v46  ;;  %v7939_v54 = vunpack.i.l.bf16 %v14425_v58  ;;  %v4784_v40 = vsel %vm2227_vm8, %v4745_v15, %v14323_v59  ;;  %v18268_v33 = vld [vmem:[#allocation124_spill] sm:$0xff] }
 0x665   : > { %v4220_v57 = vsel %vm18249_vm15, %v4187_v28, %v18248_v27  ;;  %vm18255_vm5 = vmmov %vm18251_vm6  ;;  %v18258_v28 = vld [vmem:[#allocation143_spill] sm:$0xff]  ;;  %v7935_v15 = vunpack.i.h.bf16 %v14286_v39 }
 0x666   : > { %v4239_v45 = vsel %vm18255_vm5, %v4206_v55, %v18254_v62  ;;  %vm18257_vm4 = vmmov %vm18255_vm5  ;;  %v18263_v55 = vunpack.i.h.bf16 %v18099_v2  ;;  %v18264_v62 = vld [vmem:[#allocation120_spill] sm:$0xff]  ;;  %v7940_v2 = vunpack.i.h.bf16 %v14425_v58  ;;  %v18276_v58 = vld [vmem:[#allocation189_spill] sm:$0xff] }
 0x667   : > { %v4243_v16 = vsel %vm18257_vm4, %v4210_v43, %v18256_v23  ;;  %vm18259_vm7 = vmmov %vm18257_vm4  ;;  %v18266_v23 = vld [vmem:[#allocation296_spill] sm:$0xff] }
 0x668   : > { %v4233_v51 = vsel %vm18259_vm7, %v4200_v10, %v18258_v28  ;;  %vm18261_vm0 = vmmov %vm18257_vm4  ;;  %v4984_v43 = vsel %vm2487_vm12, %v4933_v19, %v18263_v55  ;;  %v4748_v10 = vsel %vm574_vm1, %v18266_v23, %v7930_v14  ;;  %v18270_v55 = vld [vmem:[#allocation127_spill] sm:$0xff]  ;;  %v4644_v23 = vpop.permute.xlu1 %4643 }
 0x669   : > { %v4247_v27 = vsel %vm18261_vm0, %v4214_v7, %v18260_v21  ;;  %vm18265_vm3 = vmmov %vm18261_vm0  ;;  %v5035_v28 = vsel %vm2552_vm14, %v4984_v43, %v4640_v53  ;;  %v18267_v7 = vld [vmem:[#allocation401_spill] sm:$0xff]  ;;  %v4786_v31 = vsel %vm2227_vm8, %v4748_v10, %v4410_v8  ;;  %v4646_v53 = vpop.permute.xlu0 %4645  ;;  %v18272_v43 = vld [vmem:[#allocation110_spill] sm:$0xff] }
 0x66a   : > { %v4237_v46 = vsel %vm18265_vm3, %v4204_v47, %v18264_v62  ;;  %v4820_v21 = vsel %vm2292_vm9, %v4782_v60, %v18267_v7  ;;  %v5086_v19 = vsel %vm2617_vm13, %v5035_v28, %v4685_v6  ;;  %vm18269_vm15 = vmmov %vm18261_vm0  ;;  %v18274_v62 = vld [vmem:[#allocation126_spill] sm:$0xff]  ;;  %v18279_v28 = vld [vmem:[#allocation115_spill] sm:$0xff] }
 0x66b   : > { %v4251_v47 = vsel %vm18269_vm15, %v4218_v50, %v18268_v33  ;;  %vm18271_vm6 = vmmov %vm18261_vm0  ;;  %v4884_v14 = vsel %vm2357_vm10, %v4820_v21, %v7939_v54  ;;  %v4822_v50 = vsel %vm2292_vm9, %v4784_v40, %v17972_v17  ;;  %v18278_v10 = vld [vmem:[#allocation70_spill] sm:$0xff]  ;;  %v5235_v54 = vshll.u32 %v5086_v19, 16  ;;  %v18281_v17 = vld [vmem:[#allocation287_spill] sm:$0xff] }
 0x66c   : > { %v4241_v59 = vsel %vm18271_vm6, %v4208_v4, %v18270_v55  ;;  %vm18273_vm5 = vmmov %vm18261_vm0  ;;  %v7945_v4 = vunpack.i.h.bf16 %v14381_v37  ;;  %v4824_v39 = vsel %vm2292_vm9, %v4786_v31, %v18278_v10  ;;  %v4935_v7 = vsel %vm2422_vm11, %v4884_v14, %v4554_v32  ;;  %v18283_v32 = vld [vmem:[#allocation237_spill] sm:$0xff]  ;;  %v18284_v14 = vld [vmem:[#allocation326_spill] sm:$0xff] }
 0x66d   : > { %v4255_v60 = vsel %vm18273_vm5, %v4222_v41, %v18272_v43  ;;  %vm18275_vm4 = vmmov %vm18261_vm0  ;;  %v4253_v41 = vsel %vm18265_vm3, %v4220_v57, %v18279_v28  ;;  %vm5377_vm15 = vcmask 818176   ;;  %v4266_v40 = vsel %vm4264_vm2, %v4233_v51, %v18281_v17  ;;  %v5254_v55 = vpop.permute.xlu0 %5253  ;;  %v18282_v43 = vld [vmem:[#allocation203_spill] sm:$0xff]  ;;  %v4605_v51 = vpop.permute.xlu1 %4604 }
 0x66e   : > { %v4245_v8 = vsel %vm18275_vm4, %v4212_v1, %v18274_v62  ;;  %vm18277_vm7 = vmmov %vm18261_vm0  ;;  %vm5285_vm0 = vcmask 523264   ;;  %v4888_v1 = vsel %vm2357_vm10, %v4824_v39, %v7940_v2  ;;  %v4886_v33 = vsel %vm2357_vm10, %v4822_v50, %v7935_v15  ;;  %v18290_v17 = vld [vmem:[#allocation263_spill] sm:$0xff] }
 0x66f   : > { %v4249_v6 = vsel %vm18277_vm7, %v4216_v36, %v18276_v58  ;;  %v18280_v36 = vld [vmem:[#allocation152_spill] sm:$0xff]  ;;  %v7944_v31 = vunpack.i.l.bf16 %v14381_v37  ;;  %v14532_v57 = vsel %vm4264_vm2, %v4239_v45, %v18282_v43  ;;  %v14536_v2 = vsel %vm4264_vm2, %v4243_v16, %v18283_v32  ;;  %v18285_v58 = vld [vmem:[#allocation101_spill] sm:$0xff] }
 0x670   : > { %v14524_v21 = vsel %vm4264_vm2, %v4235_v20, %v18280_v36  ;;  %v14540_v20 = vsel %vm4264_vm2, %v4247_v27, %v18284_v14  ;;  %v5287_v62 = vsel %vm5285_vm0, %v4266_v40, %v5254_v55  ;;  %v4270_v15 = vsel %vm4264_vm2, %v4237_v46, %v18285_v58  ;;  %v18286_v16 = vld [vmem:[#allocation248_spill] sm:$0xff]  ;;  %v18287_v27 = vld [vmem:[#allocation281_spill] sm:$0xff] }
 0x671   : > { %v4986_v37 = vsel %vm2487_vm12, %v4935_v7, %v7945_v4  ;;  %v5237_v50 = vrot.slane %v5235_v54, 1  ;;  %v4939_v45 = vsel %vm2422_vm11, %v4888_v1, %v14415_v9  ;;  %7805 = vmatprep.mubr.msk.bf16.mxu1 %vm5377_vm15, %v5287_v62  ;;  %v14551_v10 = vsel %vm4264_vm2, %v4251_v47, %v18286_v16  ;;  %v18288_v36 = vld [vmem:[#allocation93_spill] sm:$0xff]  ;;  %v5258_v47 = vpop.permute.xlu0 %5257  ;;  %v4689_v55 = vpop.permute.xlu1 %4688 }
 0x672   : > { %v4274_v39 = vsel %vm4264_vm2, %v4241_v59, %v18287_v27  ;;  %v4937_v28 = vsel %vm2422_vm11, %v4886_v33, %v14343_v48  ;;  %v4990_v46 = vsel %vm2487_vm12, %v4939_v45, %v4605_v51  ;;  %v14560_v4 = vsel %vm4264_vm2, %v4255_v60, %v18288_v36  ;;  %v18289_v54 = vld [vmem:[#allocation221_spill] sm:$0xff]  ;;  %v18294_v51 = vld [vmem:[#allocation23_spill] sm:$0xff] }
 0x673   : > { %v4278_v9 = vsel %vm4264_vm2, %v4245_v8, %v18289_v54  ;;  %v5233_v7 = vshrl.u32 %v5086_v19, 16  ;;  %v4988_v1 = vsel %vm2487_vm12, %v4937_v28, %v7944_v31  ;;  %v14567_v40 = vsel %vm4264_vm2, %v4249_v6, %v18290_v17  ;;  %v18291_v59 = vld [vmem:[#allocation113_spill] sm:$0xff]  ;;  %v18292_v6 = vld [vmem:[#allocation260_spill] sm:$0xff]  ;;  %v18297_v45 = vld [vmem:[#allocation31_spill] sm:$0xff] }
 0x674   : > { %v14571_v48 = vsel %vm4264_vm2, %v4253_v41, %v18291_v59  ;;  %v5037_v33 = vsel %vm2552_vm14, %v4986_v37, %v4642_v52  ;;  %v5039_v60 = vsel %vm2552_vm14, %v4988_v1, %v4644_v23  ;;  %v5041_v8 = vsel %vm2552_vm14, %v4990_v46, %v4646_v53  ;;  %v18301_v53 = vld [vmem:[#allocation33_spill] sm:$0xff]  ;;  %v18304_v1 = vld [vmem:[#allocation30_spill] sm:$0xff] }
 0x675   : > { %v5238_v43 = vor.u32 %v5237_v50, %v5233_v7  ;;  %v5291_v19 = vsel %vm5285_vm0, %v4270_v15, %v5258_v47  ;;  %v5090_v31 = vsel %vm2617_vm13, %v5039_v60, %v4689_v55  ;;  %v18293_v62 = vrot.slane %v18292_v6, 1  ;;  %v5262_v37 = vpop.permute.xlu0 %5261  ;;  %v18300_v50 = vld [vmem:[#allocation36_spill] sm:$0xff]  ;;  %v7948_v7 = vpop.permute.xlu1 %7947  ;;  %v18305_v17 = vld [vmem:[#allocation26_spill] sm:$0xff] }
 0x676   : > { %v5243_v32 = vshrl.u32 %v5090_v31, 16  ;;  %v5245_v14 = vshll.u32 %v5090_v31, 16  ;;  %v18295_v58 = vrot.slane %v18294_v51, 1  ;;  %vm18296_vm2 = vcmask 1046528  }
 0x677   : > { %v18298_v52 = vmov %v18293_v62  ;;  %vm18299_vm9 = vmmov %vm18296_vm2  ;;  %v18302_v16 = vrot.slane %v18301_v53, 1  ;;  %v5950_v46 = vrot.slane %v18292_v6, 2  ;;  %v14597_v54 = vsel %vm5285_vm0, %v4274_v39, %v5262_v37 }
 0x678   : > { %v5775_v41 = vsel %vm18296_vm2, %v18295_v58, %v18293_v62  ;;  %v5777_v23 = vsel %vm18299_vm9, %v18298_v52, %v18297_v45  ;;  %vm18303_vm11 = vmmov %vm18296_vm2  ;;  %v5247_v36 = vrot.slane %v5245_v14, 1  ;;  %v6119_v47 = vmax.f32 %v18304_v1, %v18292_v6  ;;  %v18309_v52 = vld [vmem:[#allocation32_spill] sm:$0xff] }
 0x679   : > { %v14591_v15 = vsel %vm18303_vm11, %v18302_v16, %v18300_v50  ;;  %v5897_v27 = vmax.f32 %v18294_v51, %v5775_v41  ;;  %v5898_v28 = vmax.f32 %v18292_v6, %v5777_v23  ;;  %v18306_v59 = vmax.f32 %v18305_v17, %v18294_v51  ;;  %vm18329_vm3 = vmmov %vm18296_vm2 }
 0x67a   : > { %v7950_v55 = vunpack.i.h.bf16 %v7948_v7  ;;  %v7949_v31 = vunpack.i.l.bf16 %v7948_v7  ;;  %v18307_v62 = vrot.slane %v18294_v51, 2  ;;  %vm18308_vm14 = vcmask 1045504   ;;  %v18312_v7 = vld [vmem:[#allocation312_spill] sm:$0xff]  ;;  %vm18337_vm11 = vmmov %vm18296_vm2 }
 0x67b   : > { %v6177_v60 = vmax.f32 %v18306_v59, %v5775_v41  ;;  %vm18310_vm6 = vmmov %vm18308_vm14  ;;  %v5248_v50 = vor.u32 %v5247_v36, %v5243_v32  ;;  %v6178_v16 = vmax.f32 %v6119_v47, %v5777_v23  ;;  %v5266_v59 = vpop.permute.xlu0 %5265  ;;  %v6230_v3 = vmax.f32 %v18312_v7, %v18311_v61  ;;  %v18316_v36 = vld [vmem:[#allocation25_spill] sm:$0xff]  ;;  %v18317_v61 = vld [vmem:[#allocation267_spill] sm:$0xff] }
 0x67c   : > { %v5951_v58 = vsel %vm18308_vm14, %v18307_v62, %v5950_v46  ;;  %v5953_v14 = vsel %vm18310_vm6, %v5950_v46, %v18309_v52  ;;  %v5088_v1 = vsel %vm2617_vm13, %v5037_v33, %v7949_v31  ;;  %v5092_v17 = vsel %vm2617_vm13, %v5041_v8, %v7950_v55  ;;  %v18319_v7 = vld [vmem:[#allocation37_spill] sm:$0xff]  ;;  %vm18321_vm5 = vmmov %vm18310_vm6 }
 0x67d   : > { %v14609_v39 = vmax.f32 %v5897_v27, %v5951_v58  ;;  %v14611_v37 = vmax.f32 %v5898_v28, %v5953_v14  ;;  %v6231_v62 = vmax.f32 %v18314_v35, %v18313_v63  ;;  %v5239_v0 = vshll.u32 %v5088_v1, 16  ;;  %v5256_v27 = vpop.permute.xlu1 %5255  ;;  %v18315_v28 = vld [vmem:[#allocation34_spill] sm:$0xff]  ;;  %vm18336_vm9 = vmmov %vm18321_vm5 }
 0x67e   : > { %v5249_v30 = vshll.u32 %v5092_v17, 16  ;;  %v14620_v32 = vsel %vm5285_vm0, %v4278_v9, %v5266_v59  ;;  %v5289_v33 = vsel %vm5285_vm0, %v14524_v21, %v5256_v27  ;;  %v6232_v47 = vmax.f32 %v18317_v61, %v18316_v36  ;;  %v18318_v17 = vld [vmem:[#allocation29_spill] sm:$0xff]  ;;  %v18325_v61 = vld [vmem:[#allocation35_spill] sm:$0xff]  ;;  %vm18338_vm14 = vmmov %vm18296_vm2 }
 0x67f   : > { %v6121_v46 = vmax.f32 %v14609_v39, %v18315_v28  ;;  %v6122_v8 = vmax.f32 %v14611_v37, %v18301_v53  ;;  %v6233_v55 = vmax.f32 %v6177_v60, %v5951_v58  ;;  %7806 = vmatmul.mubr.msk.bf16.vlgmr.msra.gmra.mxu1 %vm5377_vm15, %v5289_v33  ;;  %v5241_v35 = vrot.slane %v5239_v0, 1  ;;  %vm18340_vm6 = vmmov %vm18321_vm5 }
 0x680   : > { %v5251_v63 = vrot.slane %v5249_v30, 1  ;;  %v6234_v9 = vmax.f32 %v6178_v16, %v5953_v14  ;;  %v6278_v31 = vmax.f32 %v6230_v3, %v18294_v51  ;;  %7809 = vmatprep.mubr.msk.bf16.mxu1 %vm5377_vm15, %v5291_v19  ;;  %v6279_v1 = vmax.f32 %v6231_v62, %v18292_v6  ;;  %v18324_v62 = vld [vmem:[#allocation145_spill] sm:$0xff] }
 0x681   : > { %v6280_v21 = vmax.f32 %v6232_v47, %v18318_v17  ;;  %v6281_v59 = vmax.f32 %v6233_v55, %v18315_v28  ;;  %v18320_v27 = vrot.slane %v18301_v53, 2  ;;  %v5260_v33 = vpop.permute.xlu1 %5259  ;;  %vm18322_vm4 = vsmask.f32 7424 }
 0x682   : > { %v5252_v30 = vsel %vm18322_vm4, %v5248_v50, %v5251_v63  ;;  %vm18323_vm7 = vmmov %vm18322_vm4  ;;  %v6282_v3 = vmax.f32 %v6234_v9, %v18301_v53  ;;  %v6337_v19 = vmax.f32 %v6278_v31, %v5775_v41  ;;  %v5293_v6 = vsel %vm5285_vm0, %v14532_v57, %v5260_v33  ;;  %v18327_v41 = vld [vmem:[#allocation39_spill] sm:$0xff] }
 0x683   : > { %v14640_v60 = vsel %vm18321_vm5, %v18320_v27, %v18319_v7  ;;  %v5242_v0 = vsel %vm18323_vm7, %v5238_v43, %v5241_v35  ;;  %5283 = vrot.lane.b32.xlu1 %v5252_v30, %s8060_s14  ;;  %v6338_v51 = vmax.f32 %v6279_v1, %v5777_v23  ;;  %v6339_v16 = vmax.f32 %v6280_v21, %v18297_v45  ;;  %v18330_v23 = vld [vmem:[#allocation44_spill] sm:$0xff]  ;;  %vm18341_vm5 = vmmov %vm18296_vm2 }
 0x684   : > { %5281 = vrot.lane.b32.xlu0 %v5242_v0, %s8060_s14  ;;  %v5960_v36 = vrot.slane %v18324_v62, 2  ;;  %v6340_v47 = vmax.f32 %v6281_v59, %v18325_v61  ;;  %v6341_v50 = vmax.f32 %v6282_v3, %v14591_v15  ;;  %v6393_v43 = vmax.f32 %v6337_v19, %v5951_v58  ;;  %v5270_v58 = vpop.permute.xlu0 %5269  ;;  %v18332_v59 = vld [vmem:[#allocation38_spill] sm:$0xff]  ;;  %vm18344_vm4 = vmmov %vm18296_vm2 }
 0x685   : > { %v18326_v55 = vrot.slane %v18324_v62, 1  ;;  %v18328_v63 = vrot.slane %v18327_v41, 1  ;;  %v6394_v35 = vmax.f32 %v6338_v51, %v5953_v14  ;;  %v6395_v9 = vmax.f32 %v6339_v16, %v18309_v52  ;;  %v5264_v17 = vpop.permute.xlu1 %5263  ;;  %vm18354_vm7 = vmmov %vm18296_vm2 }
 0x686   : > { %v5901_v1 = vmax.f32 %v18301_v53, %v14591_v15  ;;  %v6489_v21 = vrot.slane %v6393_v43, 1  ;;  %v6396_v27 = vmax.f32 %v6340_v47, %v18332_v59  ;;  %v6397_v33 = vmax.f32 %v6341_v50, %v14640_v60  ;;  %v18339_v43 = vld [vmem:[#allocation46_spill] sm:$0xff] }
 0x687   : > { %v14658_v57 = vsel %vm18329_vm3, %v18328_v63, %v18326_v55  ;;  %v18331_v45 = vmov %v18326_v55  ;;  %v14675_v52 = vsel %vm5285_vm0, %v14567_v40, %v5270_v58  ;;  %v5297_v30 = vsel %vm5285_vm0, %v14536_v2, %v5264_v17  ;;  %7810 = vmatmul.mubr.msk.bf16.gmra.mxu1 %vm5377_vm15, %v5293_v6  ;;  %vm18359_vm3 = vmmov %vm18340_vm6 }
 0x688   : > { %v14665_v31 = vsel %vm18296_vm2, %v18331_v45, %v18330_v23  ;;  %v5903_v14 = vmax.f32 %v18327_v41, %v14658_v57  ;;  %v18333_v0 = vmax.f32 %v13972_v24, 0.0  ;;  %v18334_v3 = vmax.f32 %v13933_v18, 0.0  ;;  %7813 = vmatprep.mubr.msk.bf16.mxu1 %vm5377_vm15, %v14597_v54  ;;  %v18342_v45 = vld [vmem:[#allocation43_spill] sm:$0xff]  ;;  %vm18362_vm2 = vmmov %vm18359_vm3 }
 0x689   : > { %v6490_v19 = vrot.slane %v6394_v35, 1  ;;  %v6492_v51 = vrot.slane %v6395_v9, 1  ;;  %v6494_v16 = vrot.slane %v6396_v27, 1  ;;  %v6495_v47 = vrot.slane %v6397_v33, 1  ;;  %v5268_v63 = vpop.permute.xlu1 %5267 }
 0x68a   : > { %6903 = vrot.lane.b32.xlu1 %v18333_v0, %s8048_s22  ;;  %6901 = vrot.lane.b32.xlu0 %v18334_v3, %s8048_s22  ;;  %v5904_v40 = vmax.f32 %v18324_v62, %v14665_v31  ;;  %v18335_v50 = vrot.slane %v18327_v41, 2  ;;  %v5963_v6 = vsel %vm18340_vm6, %v5960_v36, %v18339_v43  ;;  %v6077_v55 = vmax.f32 %v5901_v1, %v14640_v60  ;;  %v18347_v0 = vld [vmem:[#allocation128_spill] sm:$0xff]  ;;  %vm18381_vm6 = vmmov %vm18344_vm4 }
 0x68b   : > { %v6491_v18 = vsel %vm18337_vm11, %v6489_v21, %v6490_v19  ;;  %v6493_v24 = vsel %vm18338_vm14, %v6490_v19, %v6492_v51  ;;  %v6496_v9 = vsel %vm18341_vm5, %v6494_v16, %v6495_v47  ;;  %v18343_v58 = vrot.slane %v18342_v45, 1  ;;  %v18348_v19 = vld [vmem:[#allocation109_spill] sm:$0xff]  ;;  %v18349_v16 = vld [vmem:[#allocation40_spill] sm:$0xff]  ;;  %vm18378_vm11 = vmmov %vm18344_vm4 }
 0x68c   : > { %v14691_v2 = vsel %vm18336_vm9, %v18335_v50, %v5960_v36  ;;  %v6601_v35 = vpack.c.bf16 %v6493_v24, %v6491_v18  ;;  %v14707_v54 = vsel %vm5285_vm0, %v14540_v20, %v5268_v63  ;;  %v18345_v21 = vmax.f32 %v13959_v29, 0.0  ;;  %v18351_v50 = vld [vmem:[#allocation41_spill] sm:$0xff]  ;;  %v18352_v24 = vld [vmem:[#allocation48_spill] sm:$0xff]  ;;  %vm18373_vm9 = vmmov %vm18344_vm4 }
 0x68d   : > { %v6498_v17 = vsel %vm18344_vm4, %v6495_v47, %v18343_v58  ;;  %v6079_v27 = vmax.f32 %v5903_v14, %v14691_v2  ;;  %v18346_v36 = vmax.f32 %v13929_v25, 0.0  ;;  %v6080_v33 = vmax.f32 %v5904_v40, %v5963_v6  ;;  %vm18380_vm14 = vmmov %vm18344_vm4 }
 0x68e   : > { %6907 = vrot.lane.b32.xlu1 %v18345_v21, %s8048_s22  ;;  %v6602_v1 = vpack.c.bf16 %v6498_v17, %v6496_v9  ;;  %v5965_v3 = vrot.slane %v18347_v0, 2  ;;  %7839 = vmatprep.mubr.msk.bf16.mxu0 %vm574_vm1, %v6601_v35  ;;  %v6125_v14 = vmax.f32 %v6077_v55, %v18324_v62  ;;  %v6180_v29 = vmax.f32 %v6121_v46, %v18325_v61  ;;  %v18357_v55 = vld [vmem:[#allocation42_spill] sm:$0xff]  ;;  %v18363_v21 = vld [vmem:[#allocation91_spill] sm:$0xff]  ;;  %vm18383_vm5 = vmmov %vm18362_vm2 }
 0x68f   : > { %6905 = vrot.lane.b32.xlu0 %v18346_v36, %s8048_s22  ;;  %v6127_v51 = vmax.f32 %v6079_v27, %v18348_v19  ;;  %v6181_v25 = vmax.f32 %v6122_v8, %v14591_v15  ;;  %v6128_v20 = vmax.f32 %v6080_v33, %v18347_v0  ;;  %v18350_v47 = vmax.f32 %v18349_v16, %v18327_v41  ;;  %vm18385_vm4 = vmmov %vm18362_vm2 }
 0x690   : > { %7840 = vmatmul.mubr.msk.bf16.vlgmr.msra.gmra.mxu0 %vm574_vm1, %v6602_v1  ;;  %v6238_v18 = vmax.f32 %v18351_v50, %v18319_v7  ;;  %v18353_v39 = vrot.slane %v18347_v0, 1  ;;  %v6184_v53 = vmax.f32 %v6125_v14, %v14665_v31  ;;  %v6236_v15 = vmax.f32 %v6180_v29, %v18332_v59  ;;  %7814 = vmatmul.mubr.msk.bf16.gmra.mxu1 %vm5377_vm15, %v5297_v30  ;;  %v18365_v14 = vld [vmem:[#allocation47_spill] sm:$0xff] }
 0x691   : > { %v6183_v40 = vmax.f32 %v18350_v47, %v14658_v57  ;;  %v6237_v37 = vmax.f32 %v6181_v25, %v14640_v60  ;;  %v18355_v8 = vmax.f32 %v14007_v12, 0.0  ;;  %v18356_v7 = vmax.f32 %v13992_v22, 0.0  ;;  %v18360_v60 = vld [vmem:[#allocation99_spill] sm:$0xff]  ;;  %v18361_v22 = vld [vmem:[#allocation49_spill] sm:$0xff]  ;;  %7817 = vmatprep.mubr.msk.bf16.mxu1 %vm5377_vm15, %v14620_v32  ;;  %v5272_v32 = vpop.permute.xlu1 %5271 }
 0x692   : > { %v5792_v28 = vsel %vm18354_vm7, %v18353_v39, %v18352_v24  ;;  %v6286_v63 = vmax.f32 %v6238_v18, %v18357_v55  ;;  %v18358_v35 = vrot.slane %v18348_v19, 2  ;;  %v5970_v9 = vrot.slane %v18360_v60, 2  ;;  %vm18391_vm7 = vmmov %vm18381_vm6 }
 0x693   : > { %v5907_v46 = vmax.f32 %v18347_v0, %v5792_v28  ;;  %6911 = vrot.lane.b32.xlu1 %v18355_v8, %s8048_s22  ;;  %6909 = vrot.lane.b32.xlu0 %v18356_v7, %s8048_s22  ;;  %v6239_v61 = vmax.f32 %v6183_v40, %v14691_v2  ;;  %v6240_v45 = vmax.f32 %v6184_v53, %v5963_v6  ;;  %v18367_v25 = vmax.f32 %v13988_v38, 0.0 }
 0x694   : > { %v14754_v59 = vsel %vm18359_vm3, %v18358_v35, %v5965_v3  ;;  %v6284_v12 = vmax.f32 %v6236_v15, %v18327_v41  ;;  %v6285_v58 = vmax.f32 %v6237_v37, %v18324_v62  ;;  %v14762_v17 = vsel %vm18362_vm2, %v5965_v3, %v18361_v22  ;;  %vm18393_vm3 = vmmov %vm18381_vm6 }
 0x695   : > { %v6345_v27 = vmax.f32 %v6286_v63, %v18330_v23  ;;  %v18364_v36 = vmax.f32 %v18348_v19, %v18363_v21  ;;  %v6083_v30 = vmax.f32 %v5907_v46, %v14762_v17  ;;  %v6186_v41 = vmax.f32 %v6127_v51, %v18363_v21  ;;  %v18368_v51 = vld [vmem:[#allocation285_spill] sm:$0xff]  ;;  %vm18401_vm2 = vmmov %vm18393_vm3 }
 0x696   : > { %v6343_v62 = vmax.f32 %v6284_v12, %v14658_v57  ;;  %v6344_v33 = vmax.f32 %v6285_v58, %v14665_v31  ;;  %v6187_v3 = vmax.f32 %v6128_v20, %v5792_v28  ;;  %v6241_v29 = vmax.f32 %v18365_v14, %v18339_v43  ;;  %v18369_v31 = vld [vmem:[#allocation90_spill] sm:$0xff]  ;;  %v18370_v46 = vld [vmem:[#allocation45_spill] sm:$0xff] }
 0x697   : > { %v6082_v1 = vmax.f32 %v18364_v36, %v14754_v59  ;;  %v18366_v23 = vmax.f32 %v13998_v49, 0.0  ;;  %6913 = vrot.lane.b32.xlu0 %v18367_v25, %s8048_s22  ;;  %v6401_v16 = vmax.f32 %v6345_v27, %v18339_v43  ;;  %v6131_v57 = vmax.f32 %v6083_v30, %v18360_v60 }
 0x698   : > { %v5975_v20 = vrot.slane %v18369_v31, 2  ;;  %v5305_v40 = vsel %vm5285_vm0, %v14551_v10, %v5272_v32  ;;  %v6399_v50 = vmax.f32 %v6343_v62, %v14691_v2  ;;  %v6400_v18 = vmax.f32 %v6344_v33, %v5963_v6  ;;  %7818 = vmatmul.mubr.msk.bf16.gmra.mxu1 %vm5377_vm15, %v14707_v54  ;;  %v18384_v62 = vld [vmem:[#allocation57_spill] sm:$0xff] }
 0x699   : > { %6915 = vrot.lane.b32.xlu1 %v18366_v23, %s8048_s22  ;;  %v6130_v47 = vmax.f32 %v6082_v1, %v18368_v51  ;;  %v6242_v49 = vmax.f32 %v6186_v41, %v14754_v59  ;;  %v6502_v39 = vrot.slane %v6401_v16, 1  ;;  %v6243_v38 = vmax.f32 %v6187_v3, %v14762_v17  ;;  %7821 = vmatprep.mubr.msk.bf16.mxu1 %vm5377_vm15, %v14675_v52  ;;  %v18386_v3 = vld [vmem:[#allocation132_spill] sm:$0xff] }
 0x69a   : > { %v6287_v53 = vmax.f32 %v6239_v61, %v18348_v19  ;;  %v6288_v43 = vmax.f32 %v6240_v45, %v18347_v0  ;;  %v6499_v15 = vrot.slane %v6399_v50, 1  ;;  %v6500_v37 = vrot.slane %v6400_v18, 1  ;;  %v18376_v61 = vld [vmem:[#allocation52_spill] sm:$0xff]  ;;  %v18379_v45 = vld [vmem:[#allocation71_spill] sm:$0xff]  ;;  %v18390_v50 = vld [vmem:[#allocation50_spill] sm:$0xff] }
 0x69b   : > { %v6289_v8 = vmax.f32 %v6241_v29, %v18370_v46  ;;  %v18371_v7 = vrot.slane %v18360_v60, 1  ;;  %v18372_v10 = vrot.slane %v18368_v51, 1  ;;  %v18374_v6 = vmax.f32 %v14040_v42, 0.0 }
 0x69c   : > { %v18375_v55 = vmax.f32 %v14027_v44, 0.0  ;;  %v6346_v0 = vmax.f32 %v6287_v53, %v18363_v21  ;;  %v6347_v19 = vmax.f32 %v6288_v43, %v5792_v28  ;;  %v5980_v12 = vrot.slane %v18379_v45, 2 }
 0x69d   : > { %v5795_v2 = vsel %vm18373_vm9, %v18372_v10, %v18371_v7  ;;  %6919 = vrot.lane.b32.xlu1 %v18374_v6, %s8048_s22  ;;  %v18377_v63 = vmov %v18371_v7  ;;  %v6501_v42 = vsel %vm18380_vm14, %v6499_v15, %v6500_v37  ;;  %v6503_v58 = vsel %vm18381_vm6, %v6500_v37, %v6502_v39  ;;  %v18392_v39 = vld [vmem:[#allocation129_spill] sm:$0xff]  ;;  %v5274_v37 = vpop.permute.xlu0 %5273  ;;  %v18394_v10 = vld [vmem:[#allocation51_spill] sm:$0xff]  ;;  %vm18403_vm9 = vmmov %vm18385_vm4 }
 0x69e   : > { %6917 = vrot.lane.b32.xlu0 %v18375_v55, %s8048_s22  ;;  %v5797_v35 = vsel %vm18378_vm11, %v18377_v63, %v18376_v61  ;;  %v6348_v44 = vmax.f32 %v6289_v8, %v18352_v24  ;;  %v5909_v27 = vmax.f32 %v18368_v51, %v5795_v2  ;;  %v6603_v28 = vpack.c.bf16 %v6503_v58, %v6501_v42  ;;  %v18396_v55 = vld [vmem:[#allocation247_spill] sm:$0xff]  ;;  %vm18405_vm11 = vmmov %vm18385_vm4 }
 0x69f   : > { %v6402_v21 = vmax.f32 %v6346_v0, %v14754_v59  ;;  %v6403_v36 = vmax.f32 %v6347_v19, %v14762_v17  ;;  %v5910_v1 = vmax.f32 %v18360_v60, %v5797_v35  ;;  %v18382_v30 = vrot.slane %v18368_v51, 2  ;;  %v18388_v59 = vld [vmem:[#allocation166_spill] sm:$0xff]  ;;  %v18399_v42 = vld [vmem:[#allocation55_spill] sm:$0xff]  ;;  %vm18414_vm14 = vmmov %vm18401_vm2 }
 0x6a0   : > { %v6404_v54 = vmax.f32 %v6348_v44, %v18361_v22  ;;  %v5973_v24 = vsel %vm18385_vm4, %v5970_v9, %v18384_v62  ;;  %v6189_v33 = vmax.f32 %v6130_v47, %v5795_v2  ;;  %v18387_v52 = vmax.f32 %v18386_v3, 0.0  ;;  %7843 = vmatprep.mubr.msk.bf16.mxu0 %vm574_vm1, %v6603_v28  ;;  %v18398_v19 = vld [vmem:[#allocation226_spill] sm:$0xff]  ;;  %7822 = vmatmul.mubr.msk.bf16.gmra.mxu1 %vm5377_vm15, %v5305_v40  ;;  %v18410_v3 = vld [vmem:[#allocation257_spill] sm:$0xff]  ;;  %vm18415_vm6 = vmmov %vm18401_vm2 }
 0x6a1   : > { %v5971_v41 = vsel %vm18383_vm5, %v18382_v30, %v5970_v9  ;;  %v18389_v14 = vmax.f32 %v18388_v59, 0.0  ;;  %v6504_v17 = vrot.slane %v6402_v21, 1  ;;  %v6505_v29 = vrot.slane %v6403_v36, 1  ;;  %vm18419_vm5 = vmmov %vm18401_vm2 }
 0x6a2   : > { %6923 = vrot.lane.b32.xlu1 %v18387_v52, %s8048_s22  ;;  %v6085_v32 = vmax.f32 %v5909_v27, %v5971_v41  ;;  %v6086_v23 = vmax.f32 %v5910_v1, %v5973_v24  ;;  %v6507_v25 = vrot.slane %v6404_v54, 1  ;;  %v6190_v16 = vmax.f32 %v6131_v57, %v5797_v35  ;;  %v18406_v27 = vld [vmem:[#allocation158_spill] sm:$0xff]  ;;  %v18407_v1 = vld [vmem:[#allocation100_spill] sm:$0xff]  ;;  %vm18427_vm4 = vmmov %vm18401_vm2 }
 0x6a3   : > { %6921 = vrot.lane.b32.xlu0 %v18389_v14, %s8048_s22  ;;  %v6244_v9 = vmax.f32 %v18390_v50, %v18361_v22  ;;  %v6245_v47 = vmax.f32 %v6189_v33, %v5971_v41  ;;  %v6506_v18 = vsel %vm18391_vm7, %v6504_v17, %v6505_v29  ;;  %v6290_v15 = vmax.f32 %v6242_v49, %v18368_v51  ;;  %v18412_v14 = vld [vmem:[#allocation54_spill] sm:$0xff]  ;;  %vm18429_vm7 = vmmov %vm18403_vm9 }
 0x6a4   : > { %v6133_v53 = vmax.f32 %v6085_v32, %v18392_v39  ;;  %v6134_v43 = vmax.f32 %v6086_v23, %v18369_v31  ;;  %v6508_v46 = vsel %vm18393_vm3, %v6505_v29, %v6507_v25  ;;  %v6246_v8 = vmax.f32 %v6190_v16, %v5973_v24  ;;  %v18413_v23 = vld [vmem:[#allocation138_spill] sm:$0xff]  ;;  %vm18431_vm3 = vmmov %vm18429_vm7 }
 0x6a5   : > { %v6291_v7 = vmax.f32 %v6243_v38, %v18360_v60  ;;  %v6292_v57 = vmax.f32 %v6244_v9, %v18394_v10  ;;  %v5307_v22 = vsel %vm5285_vm0, %v14571_v48, %v5274_v37  ;;  %v18395_v6 = vmax.f32 %v14086_v5, 0.0  ;;  %v18420_v10 = vld [vmem:[#allocation297_spill] sm:$0xff] }
 0x6a6   : > { %v18397_v0 = vmax.f32 %v18396_v55, 0.0  ;;  %v6604_v51 = vpack.c.bf16 %v6508_v46, %v6506_v18  ;;  %v6349_v49 = vmax.f32 %v6290_v15, %v5795_v2  ;;  %v5985_v63 = vrot.slane %v18398_v19, 2  ;;  %7825 = vmatprep.mubr.msk.bf16.mxu1 %vm5377_vm15, %v5307_v22  ;;  %v18416_v15 = vld [vmem:[#allocation53_spill] sm:$0xff] }
 0x6a7   : > { %6927 = vrot.lane.b32.xlu1 %v18395_v6, %s8048_s22  ;;  %v6350_v60 = vmax.f32 %v6291_v7, %v5797_v35  ;;  %v6351_v38 = vmax.f32 %v6292_v57, %v18376_v61  ;;  %v18400_v48 = vrot.slane %v18369_v31, 1  ;;  %v18402_v5 = vrot.slane %v18392_v39, 2  ;;  %v18404_v61 = vld [vmem:[#allocation56_spill] sm:$0xff] }
 0x6a8   : > { %6925 = vrot.lane.b32.xlu0 %v18397_v0, %s8048_s22  ;;  %7844 = vmatmul.mubr.msk.bf16.gmra.mxu0 %vm574_vm1, %v6604_v51  ;;  %v6405_v40 = vmax.f32 %v6349_v49, %v5971_v41  ;;  %v5978_v35 = vsel %vm18405_vm11, %v5975_v20, %v18404_v61  ;;  %v5990_v28 = vrot.slane %v18406_v27, 2  ;;  %v18408_v54 = vmax.f32 %v18392_v39, %v18407_v1  ;;  %v18424_v6 = vld [vmem:[#allocation292_spill] sm:$0xff]  ;;  %v18425_v51 = vld [vmem:[#allocation59_spill] sm:$0xff]  ;;  %vm18442_vm11 = vmmov %vm18401_vm2 }
 0x6a9   : > { %v5802_v58 = vsel %vm18401_vm2, %v18400_v48, %v18399_v42  ;;  %v14865_v44 = vsel %vm18403_vm9, %v18402_v5, %v5975_v20  ;;  %v6406_v21 = vmax.f32 %v6350_v60, %v5973_v24  ;;  %v6407_v36 = vmax.f32 %v6351_v38, %v18384_v62  ;;  %vm18438_vm9 = vmmov %vm18401_vm2 }
 0x6aa   : > { %v5913_v2 = vmax.f32 %v18369_v31, %v5802_v58  ;;  %v6088_v30 = vmax.f32 %v18408_v54, %v14865_v44  ;;  %v6192_v33 = vmax.f32 %v6133_v53, %v18407_v1  ;;  %v18409_v41 = vmax.f32 %v14082_v56, 0.0 }
 0x6ab   : > { %v18411_v52 = vmax.f32 %v18410_v3, 0.0  ;;  %v6509_v20 = vrot.slane %v6405_v40, 1  ;;  %v6193_v24 = vmax.f32 %v6134_v43, %v5802_v58  ;;  %v6247_v17 = vmax.f32 %v18412_v14, %v18384_v62 }
 0x6ac   : > { %6931 = vrot.lane.b32.xlu1 %v18409_v41, %s8048_s22  ;;  %v6089_v59 = vmax.f32 %v5913_v2, %v5978_v35  ;;  %v6510_v29 = vrot.slane %v6406_v21, 1  ;;  %v6512_v32 = vrot.slane %v6407_v36, 1  ;;  %v6136_v25 = vmax.f32 %v6088_v30, %v18413_v23  ;;  %v18430_v2 = vld [vmem:[#allocation61_spill] sm:$0xff]  ;;  %v18432_v41 = vld [vmem:[#allocation302_spill] sm:$0xff] }
 0x6ad   : > { %6929 = vrot.lane.b32.xlu0 %v18411_v52, %s8048_s22  ;;  %v6248_v16 = vmax.f32 %v6192_v33, %v14865_v44  ;;  %v6249_v56 = vmax.f32 %v6193_v24, %v5978_v35  ;;  %v6293_v9 = vmax.f32 %v6245_v47, %v18392_v39  ;;  %v6294_v18 = vmax.f32 %v6246_v8, %v18369_v31  ;;  %v18422_v47 = vld [vmem:[#allocation268_spill] sm:$0xff]  ;;  %v5276_v33 = vpop.permute.xlu1 %5275 }
 0x6ae   : > { %v6137_v50 = vmax.f32 %v6089_v59, %v18379_v45  ;;  %v6511_v53 = vsel %vm18414_vm14, %v6509_v20, %v6510_v29  ;;  %v6513_v43 = vsel %vm18415_vm6, %v6510_v29, %v6512_v32  ;;  %v6295_v37 = vmax.f32 %v6247_v17, %v18416_v15  ;;  %v18436_v24 = vld [vmem:[#allocation60_spill] sm:$0xff]  ;;  %v18437_v29 = vld [vmem:[#allocation117_spill] sm:$0xff]  ;;  %v18439_v15 = vld [vmem:[#allocation58_spill] sm:$0xff] }
 0x6af   : > { %v18417_v62 = vrot.slane %v18379_v45, 1  ;;  %v18418_v46 = vrot.slane %v18413_v23, 1  ;;  %v18421_v57 = vmax.f32 %v18420_v10, 0.0  ;;  %v18423_v39 = vmax.f32 %v18422_v47, 0.0  ;;  %vm18447_vm14 = vmmov %vm18431_vm3 }
 0x6b0   : > { %v6605_v31 = vpack.c.bf16 %v6513_v43, %v6511_v53  ;;  %v6352_v8 = vmax.f32 %v6293_v9, %v18407_v1  ;;  %v6353_v22 = vmax.f32 %v6294_v18, %v5802_v58  ;;  %v5995_v55 = vrot.slane %v18424_v6, 2  ;;  %vm18449_vm6 = vmmov %vm18431_vm3 }
 0x6b1   : > { %v5805_v7 = vsel %vm18419_vm5, %v18418_v46, %v18417_v62  ;;  %6935 = vrot.lane.b32.xlu1 %v18421_v57, %s8048_s22  ;;  %6933 = vrot.lane.b32.xlu0 %v18423_v39, %s8048_s22  ;;  %v6354_v0 = vmax.f32 %v6295_v37, %v18399_v42  ;;  %v18426_v49 = vmov %v18417_v62  ;;  %v18428_v48 = vrot.slane %v18413_v23, 2  ;;  %vm18460_vm5 = vmmov %vm18401_vm2 }
 0x6b2   : > { %v5807_v60 = vsel %vm18427_vm4, %v18426_v49, %v18425_v51  ;;  %v5915_v38 = vmax.f32 %v18413_v23, %v5805_v7  ;;  %7847 = vmatprep.mubr.msk.bf16.mxu0 %vm574_vm1, %v6605_v31  ;;  %v6408_v58 = vmax.f32 %v6352_v8, %v14865_v44  ;;  %v6409_v40 = vmax.f32 %v6353_v22, %v5978_v35  ;;  %v18434_v44 = vld [vmem:[#allocation276_spill] sm:$0xff]  ;;  %v18448_v22 = vld [vmem:[#allocation65_spill] sm:$0xff]  ;;  %vm18463_vm4 = vmmov %vm18401_vm2 }
 0x6b3   : > { %v5981_v5 = vsel %vm18429_vm7, %v18428_v48, %v5980_v12  ;;  %v5916_v42 = vmax.f32 %v18379_v45, %v5807_v60  ;;  %v5983_v21 = vsel %vm18431_vm3, %v5980_v12, %v18430_v2  ;;  %v6410_v36 = vmax.f32 %v6354_v0, %v18404_v61  ;;  %v18450_v0 = vld [vmem:[#allocation172_spill] sm:$0xff]  ;;  %vm18464_vm7 = vmmov %vm18401_vm2 }
 0x6b4   : > { %v6091_v1 = vmax.f32 %v5915_v38, %v5981_v5  ;;  %v6195_v54 = vmax.f32 %v6136_v25, %v5805_v7  ;;  %v6196_v30 = vmax.f32 %v6137_v50, %v5807_v60  ;;  %v18433_v3 = vmax.f32 %v18432_v41, 0.0  ;;  %vm18465_vm3 = vmmov %vm18401_vm2 }
 0x6b5   : > { %v18435_v35 = vmax.f32 %v18434_v44, 0.0  ;;  %v6514_v52 = vrot.slane %v6408_v58, 1  ;;  %v6515_v20 = vrot.slane %v6409_v40, 1  ;;  %v6092_v59 = vmax.f32 %v5916_v42, %v5983_v21  ;;  %v18452_v42 = vld [vmem:[#allocation62_spill] sm:$0xff] }
 0x6b6   : > { %6939 = vrot.lane.b32.xlu1 %v18433_v3, %s8048_s22  ;;  %v6250_v12 = vmax.f32 %v18436_v24, %v18404_v61  ;;  %v5309_v14 = vsel %vm5285_vm0, %v14560_v4, %v5276_v33  ;;  %v6517_v17 = vrot.slane %v6410_v36, 1  ;;  %v6139_v32 = vmax.f32 %v6091_v1, %v18437_v29  ;;  %v18440_v4 = vld [vmem:[#allocation64_spill] sm:$0xff] }
 0x6b7   : > { %6937 = vrot.lane.b32.xlu0 %v18435_v35, %s8048_s22  ;;  %v6251_v25 = vmax.f32 %v6195_v54, %v5981_v5  ;;  %7826 = vmatmul.mubr.msk.bf16.gmra.mxu1 %vm5377_vm15, %v5309_v14  ;;  %v6516_v50 = vsel %vm18401_vm2, %v6514_v52, %v6515_v20  ;;  %v6140_v9 = vmax.f32 %v6092_v59, %v18398_v19  ;;  %v18441_v62 = vrot.slane %v18398_v19, 1  ;;  %v18461_v14 = vld [vmem:[#allocation68_spill] sm:$0xff]  ;;  %vm18471_vm2 = vmmov %vm18449_vm6 }
 0x6b8   : > { %v6252_v18 = vmax.f32 %v6196_v30, %v5983_v21  ;;  %v6296_v53 = vmax.f32 %v6248_v16, %v18413_v23  ;;  %v6518_v43 = vsel %vm18438_vm9, %v6515_v20, %v6517_v17  ;;  %v6297_v61 = vmax.f32 %v6249_v56, %v18379_v45  ;;  %v18445_v45 = vld [vmem:[#allocation130_spill] sm:$0xff]  ;;  %v18456_v30 = vld [vmem:[#allocation149_spill] sm:$0xff]  ;;  %v18457_v20 = vld [vmem:[#allocation63_spill] sm:$0xff] }
 0x6b9   : > { %v6298_v37 = vmax.f32 %v6250_v12, %v18439_v15  ;;  %v5812_v46 = vsel %vm18442_vm11, %v18441_v62, %v18440_v4  ;;  %v18443_v10 = vmax.f32 %v14162_v13, 0.0  ;;  %v18444_v57 = vmax.f32 %v14154_v11, 0.0  ;;  %vm18473_vm9 = vmmov %vm18471_vm2 }
 0x6ba   : > { %v6606_v23 = vpack.c.bf16 %v6518_v43, %v6516_v50  ;;  %v6355_v16 = vmax.f32 %v6296_v53, %v5805_v7  ;;  %v5919_v47 = vmax.f32 %v18398_v19, %v5812_v46  ;;  %v6000_v56 = vrot.slane %v18445_v45, 2  ;;  %vm18480_vm11 = vmmov %vm18465_vm3 }
 0x6bb   : > { %6943 = vrot.lane.b32.xlu1 %v18443_v10, %s8048_s22  ;;  %6941 = vrot.lane.b32.xlu0 %v18444_v57, %s8048_s22  ;;  %v6356_v39 = vmax.f32 %v6297_v61, %v5807_v60  ;;  %v6357_v31 = vmax.f32 %v6298_v37, %v18425_v51  ;;  %v18446_v8 = vrot.slane %v18437_v29, 2  ;;  %v5988_v11 = vsel %vm18449_vm6, %v5985_v63, %v18448_v22  ;;  %v18469_v37 = vld [vmem:[#allocation340_spill] sm:$0xff]  ;;  %vm18485_vm6 = vmmov %vm18465_vm3 }
 0x6bc   : > { %7848 = vmatmul.mubr.msk.bf16.gmra.mxu0 %vm574_vm1, %v6606_v23  ;;  %v6411_v7 = vmax.f32 %v6355_v16, %v5981_v5  ;;  %v18451_v49 = vmax.f32 %v18437_v29, %v18450_v0  ;;  %v6095_v38 = vmax.f32 %v5919_v47, %v5988_v11  ;;  %v6198_v51 = vmax.f32 %v6139_v32, %v18450_v0  ;;  %v18454_v5 = vld [vmem:[#allocation322_spill] sm:$0xff]  ;;  %v18472_v16 = vld [vmem:[#allocation72_spill] sm:$0xff] }
 0x6bd   : > { %v5986_v13 = vsel %vm18447_vm14, %v18446_v8, %v5985_v63  ;;  %v6412_v48 = vmax.f32 %v6356_v39, %v5983_v21  ;;  %v6413_v58 = vmax.f32 %v6357_v31, %v18430_v2  ;;  %v6199_v40 = vmax.f32 %v6140_v9, %v5812_v46  ;;  %vm18481_vm14 = vmmov %vm18465_vm3 }
 0x6be   : > { %v6094_v60 = vmax.f32 %v18451_v49, %v5986_v13  ;;  %v6253_v36 = vmax.f32 %v18452_v42, %v18430_v2  ;;  %v18453_v63 = vmax.f32 %v14158_v34, 0.0  ;;  %v18455_v1 = vmax.f32 %v18454_v5, 0.0 }
 0x6bf   : > { %v6519_v54 = vrot.slane %v6411_v7, 1  ;;  %v6143_v41 = vmax.f32 %v6095_v38, %v18406_v27  ;;  %v6254_v21 = vmax.f32 %v6198_v51, %v5986_v13  ;;  %v6520_v3 = vrot.slane %v6412_v48, 1  ;;  %v18477_v51 = vld [vmem:[#allocation317_spill] sm:$0xff] }
 0x6c0   : > { %6947 = vrot.lane.b32.xlu1 %v18453_v63, %s8048_s22  ;;  %6945 = vrot.lane.b32.xlu0 %v18455_v1, %s8048_s22  ;;  %v6142_v33 = vmax.f32 %v6094_v60, %v18456_v30  ;;  %v6522_v44 = vrot.slane %v6413_v58, 1  ;;  %v6255_v35 = vmax.f32 %v6199_v40, %v5988_v11  ;;  %v6299_v52 = vmax.f32 %v6251_v25, %v18437_v29  ;;  %v18475_v60 = vld [vmem:[#allocation241_spill] sm:$0xff]  ;;  %v18479_v58 = vld [vmem:[#allocation331_spill] sm:$0xff] }
 0x6c1   : > { %v6300_v2 = vmax.f32 %v6252_v18, %v18398_v19  ;;  %v6301_v34 = vmax.f32 %v6253_v36, %v18457_v20  ;;  %v18458_v59 = vrot.slane %v18406_v27, 1  ;;  %v18459_v24 = vrot.slane %v18456_v30, 1  ;;  %v18467_v18 = vld [vmem:[#allocation283_spill] sm:$0xff] }
 0x6c2   : > { %v6521_v50 = vsel %vm18464_vm7, %v6519_v54, %v6520_v3  ;;  %v6523_v9 = vsel %vm18465_vm3, %v6520_v3, %v6522_v44  ;;  %v6358_v29 = vmax.f32 %v6299_v52, %v18450_v0  ;;  %v18466_v25 = vmax.f32 %v14231_v26, 0.0  ;;  %v18474_v0 = vld [vmem:[#allocation67_spill] sm:$0xff]  ;;  %v18483_v3 = vld [vmem:[#allocation74_spill] sm:$0xff]  ;;  %vm18504_vm7 = vmmov %vm18465_vm3 }
 0x6c3   : > { %v5815_v12 = vsel %vm18460_vm5, %v18459_v24, %v18458_v59  ;;  %v18462_v17 = vmov %v18458_v59  ;;  %v18468_v53 = vmax.f32 %v18467_v18, 0.0  ;;  %v6607_v43 = vpack.c.bf16 %v6523_v9, %v6521_v50  ;;  %vm18491_vm5 = vmmov %vm18471_vm2  ;;  %v18494_v9 = vld [vmem:[#allocation146_spill] sm:$0xff]  ;;  %v18495_v18 = vld [vmem:[#allocation324_spill] sm:$0xff] }
 0x6c4   : > { %v5817_v32 = vsel %vm18463_vm4, %v18462_v17, %v18461_v14  ;;  %v5921_v19 = vmax.f32 %v18456_v30, %v5815_v12  ;;  %6951 = vrot.lane.b32.xlu1 %v18466_v25, %s8048_s22  ;;  %v6359_v61 = vmax.f32 %v6300_v2, %v5812_v46  ;;  %v6360_v15 = vmax.f32 %v6301_v34, %v18440_v4  ;;  %vm18493_vm4 = vmmov %vm18471_vm2 }
 0x6c5   : > { %6949 = vrot.lane.b32.xlu0 %v18468_v53, %s8048_s22  ;;  %v6005_v62 = vrot.slane %v18469_v37, 2  ;;  %v6414_v10 = vmax.f32 %v6358_v29, %v5986_v13  ;;  %v5922_v57 = vmax.f32 %v18406_v27, %v5817_v32  ;;  %v18470_v23 = vrot.slane %v18456_v30, 2  ;;  %7851 = vmatprep.mubr.msk.bf16.mxu0 %vm574_vm1, %v6607_v43 }
 0x6c6   : > { %v5993_v47 = vsel %vm18473_vm9, %v5990_v28, %v18472_v16  ;;  %v6415_v46 = vmax.f32 %v6359_v61, %v5988_v11  ;;  %v6416_v4 = vmax.f32 %v6360_v15, %v18448_v22  ;;  %v6201_v31 = vmax.f32 %v6142_v33, %v5815_v12  ;;  %v18482_v33 = vld [vmem:[#allocation66_spill] sm:$0xff] }
 0x6c7   : > { %v5991_v26 = vsel %vm18471_vm2, %v18470_v23, %v5990_v28  ;;  %v6524_v8 = vrot.slane %v6414_v10, 1  ;;  %v6098_v13 = vmax.f32 %v5922_v57, %v5993_v47  ;;  %v6202_v7 = vmax.f32 %v6143_v41, %v5817_v32  ;;  %v18497_v57 = vld [vmem:[#allocation69_spill] sm:$0xff]  ;;  %vm18508_vm2 = vmmov %vm18465_vm3 }
 0x6c8   : > { %v6097_v39 = vmax.f32 %v5921_v19, %v5991_v26  ;;  %v6256_v49 = vmax.f32 %v18474_v0, %v18448_v22  ;;  %v18476_v38 = vmax.f32 %v18475_v60, 0.0  ;;  %v18478_v28 = vmax.f32 %v18477_v51, 0.0  ;;  %v18502_v0 = vld [vmem:[#allocation306_spill] sm:$0xff]  ;;  %vm18511_vm9 = vmmov %vm18508_vm2 }
 0x6c9   : > { %v6525_v48 = vrot.slane %v6415_v46, 1  ;;  %v6527_v11 = vrot.slane %v6416_v4, 1  ;;  %v6257_v42 = vmax.f32 %v6201_v31, %v5991_v26  ;;  %v6146_v36 = vmax.f32 %v6098_v13, %v18424_v6  ;;  %v18500_v13 = vld [vmem:[#allocation97_spill] sm:$0xff] }
 0x6ca   : > { %6955 = vrot.lane.b32.xlu1 %v18476_v38, %s8048_s22  ;;  %6953 = vrot.lane.b32.xlu0 %v18478_v28, %s8048_s22  ;;  %v6145_v40 = vmax.f32 %v6097_v39, %v18479_v58  ;;  %v6258_v63 = vmax.f32 %v6202_v7, %v5993_v47  ;;  %v6302_v5 = vmax.f32 %v6254_v21, %v18456_v30  ;;  %v18484_v44 = vrot.slane %v18424_v6, 1  ;;  %v18486_v30 = vld [vmem:[#allocation94_spill] sm:$0xff]  ;;  %v18498_v39 = vld [vmem:[#allocation159_spill] sm:$0xff] }
 0x6cb   : > { %v6303_v22 = vmax.f32 %v6255_v35, %v18406_v27  ;;  %v6526_v1 = vsel %vm18480_vm11, %v6524_v8, %v6525_v48  ;;  %v6528_v54 = vsel %vm18481_vm14, %v6525_v48, %v6527_v11  ;;  %v6304_v41 = vmax.f32 %v6256_v49, %v18482_v33  ;;  %v18488_v27 = vld [vmem:[#allocation270_spill] sm:$0xff]  ;;  %v18505_v11 = vld [vmem:[#allocation73_spill] sm:$0xff]  ;;  %vm18513_vm11 = vmmov %vm18493_vm4 }
 0x6cc   : > { %v5822_v52 = vsel %vm18485_vm6, %v18484_v44, %v18483_v3  ;;  %v6608_v2 = vpack.c.bf16 %v6528_v54, %v6526_v1  ;;  %v6361_v20 = vmax.f32 %v6302_v5, %v5815_v12  ;;  %v18487_v21 = vmax.f32 %v18486_v30, 0.0  ;;  %v18492_v12 = vld [vmem:[#allocation75_spill] sm:$0xff]  ;;  %v18509_v54 = vld [vmem:[#allocation78_spill] sm:$0xff]  ;;  %vm18515_vm14 = vmmov %vm18493_vm4 }
 0x6cd   : > { %v6362_v34 = vmax.f32 %v6303_v22, %v5817_v32  ;;  %v5925_v59 = vmax.f32 %v18424_v6, %v5822_v52  ;;  %v18489_v35 = vmax.f32 %v18488_v27, 0.0  ;;  %v6363_v24 = vmax.f32 %v6304_v41, %v18461_v14  ;;  %vm18518_vm6 = vmmov %vm18508_vm2 }
 0x6ce   : > { %6959 = vrot.lane.b32.xlu1 %v18487_v21, %s8048_s22  ;;  %v18490_v17 = vrot.slane %v18479_v58, 2  ;;  %v5998_v32 = vsel %vm18493_vm4, %v5995_v55, %v18492_v12  ;;  %v6010_v29 = vrot.slane %v18494_v9, 2  ;;  %7852 = vmatmul.mubr.msk.bf16.gmra.mxu0 %vm574_vm1, %v6608_v2  ;;  %v6417_v19 = vmax.f32 %v6361_v20, %v5991_v26  ;;  %vm18523_vm4 = vmmov %vm18508_vm2 }
 0x6cf   : > { %6957 = vrot.lane.b32.xlu0 %v18489_v35, %s8048_s22  ;;  %v6418_v25 = vmax.f32 %v6362_v34, %v5993_v47  ;;  %v18496_v14 = vmax.f32 %v18479_v58, %v18495_v18  ;;  %v6101_v43 = vmax.f32 %v5925_v59, %v5998_v32  ;;  %v6419_v61 = vmax.f32 %v6363_v24, %v18472_v16  ;;  %v18499_v47 = vld [vmem:[#allocation348_spill] sm:$0xff] }
 0x6d0   : > { %v5996_v50 = vsel %vm18491_vm5, %v18490_v17, %v5995_v55  ;;  %v6204_v15 = vmax.f32 %v6145_v40, %v18495_v18  ;;  %v6205_v10 = vmax.f32 %v6146_v36, %v5822_v52  ;;  %v6259_v23 = vmax.f32 %v18497_v57, %v18472_v16  ;;  %v5278_v55 = vpop.permute.xlu0 %5277  ;;  %v18514_v59 = vld [vmem:[#allocation80_spill] sm:$0xff]  ;;  %v5280_v57 = vpop.permute.xlu1 %5279  ;;  %vm18519_vm5 = vmmov %vm18508_vm2 }
 0x6d1   : > { %v6100_v53 = vmax.f32 %v18496_v14, %v5996_v50  ;;  %v6529_v46 = vrot.slane %v6417_v19, 1  ;;  %v6530_v4 = vrot.slane %v6418_v25, 1  ;;  %v6149_v26 = vmax.f32 %v6101_v43, %v18445_v45 }
 0x6d2   : > { %v5311_v8 = vsel %vm5285_vm0, %v18499_v47, %v5278_v55  ;;  %v18501_v7 = vmax.f32 %v18500_v13, 0.0  ;;  %v18503_v49 = vmax.f32 %v18502_v0, 0.0  ;;  %v6532_v60 = vrot.slane %v6419_v61, 1  ;;  %v18524_v47 = vld [vmem:[#allocation356_spill] sm:$0xff] }
 0x6d3   : > { %v6148_v31 = vmax.f32 %v6100_v53, %v18498_v39  ;;  %v6260_v16 = vmax.f32 %v6204_v15, %v5996_v50  ;;  %v6261_v38 = vmax.f32 %v6205_v10, %v5998_v32  ;;  %7829 = vmatprep.mubr.msk.bf16.mxu1 %vm5377_vm15, %v5311_v8  ;;  %v6531_v51 = vsel %vm18504_vm7, %v6529_v46, %v6530_v4  ;;  %v18517_v15 = vld [vmem:[#allocation140_spill] sm:$0xff]  ;;  %v18520_v46 = vld [vmem:[#allocation77_spill] sm:$0xff]  ;;  %vm18526_vm7 = vmmov %vm18513_vm11 }
 0x6d4   : > { %6963 = vrot.lane.b32.xlu1 %v18501_v7, %s8048_s22  ;;  %6961 = vrot.lane.b32.xlu0 %v18503_v49, %s8048_s22  ;;  %v6305_v28 = vmax.f32 %v6257_v42, %v18479_v58  ;;  %v6306_v48 = vmax.f32 %v6258_v63, %v18424_v6  ;;  %v6307_v40 = vmax.f32 %v6259_v23, %v18505_v11  ;;  %v18506_v5 = vrot.slane %v18445_v45, 1 }
 0x6d5   : > { %v6533_v36 = vsel %vm18465_vm3, %v6530_v4, %v6532_v60  ;;  %v18507_v22 = vrot.slane %v18498_v39, 1  ;;  %v18512_v58 = vrot.slane %v18498_v39, 2  ;;  %v6003_v30 = vsel %vm18515_vm14, %v6000_v56, %v18514_v59  ;;  %v18521_v4 = vld [vmem:[#allocation82_spill] sm:$0xff]  ;;  %vm18528_vm3 = vmmov %vm18526_vm7 }
 0x6d6   : > { %v18510_v33 = vmov %v18506_v5  ;;  %v6609_v42 = vpack.c.bf16 %v6533_v36, %v6531_v51  ;;  %v6364_v63 = vmax.f32 %v6305_v28, %v18495_v18  ;;  %v6365_v44 = vmax.f32 %v6306_v48, %v5822_v52  ;;  %v18529_v48 = vld [vmem:[#allocation165_spill] sm:$0xff]  ;;  %vm18540_vm14 = vmmov %vm18508_vm2 }
 0x6d7   : > { %v5825_v1 = vsel %vm18508_vm2, %v18507_v22, %v18506_v5  ;;  %v5827_v41 = vsel %vm18511_vm9, %v18510_v33, %v18509_v54  ;;  %v6001_v6 = vsel %vm18513_vm11, %v18512_v58, %v6000_v56  ;;  %v6366_v2 = vmax.f32 %v6307_v40, %v18483_v3  ;;  %v18516_v3 = vld [vmem:[#allocation76_spill] sm:$0xff]  ;;  %vm18536_vm9 = vmmov %vm18508_vm2 }
 0x6d8   : > { %v5927_v20 = vmax.f32 %v18498_v39, %v5825_v1  ;;  %v5928_v34 = vmax.f32 %v18445_v45, %v5827_v41  ;;  %v6207_v21 = vmax.f32 %v6148_v31, %v5825_v1  ;;  %7855 = vmatprep.mubr.msk.bf16.mxu0 %vm574_vm1, %v6609_v42  ;;  %v6420_v27 = vmax.f32 %v6364_v63, %v5996_v50  ;;  %vm18537_vm11 = vmmov %vm18508_vm2 }
 0x6d9   : > { %v6421_v35 = vmax.f32 %v6365_v44, %v5998_v32  ;;  %v6422_v24 = vmax.f32 %v6366_v2, %v18492_v12  ;;  %v6208_v17 = vmax.f32 %v6149_v26, %v5827_v41  ;;  %v6262_v25 = vmax.f32 %v18516_v3, %v18492_v12 }
 0x6da   : > { %v6103_v52 = vmax.f32 %v5927_v20, %v6001_v6  ;;  %v6104_v19 = vmax.f32 %v5928_v34, %v6003_v30  ;;  %v6263_v18 = vmax.f32 %v6207_v21, %v6001_v6  ;;  %v6534_v14 = vrot.slane %v6420_v27, 1  ;;  %v18533_v21 = vld [vmem:[#allocation81_spill] sm:$0xff] }
 0x6db   : > { %v6535_v53 = vrot.slane %v6421_v35, 1  ;;  %v6537_v43 = vrot.slane %v6422_v24, 1  ;;  %v6264_v61 = vmax.f32 %v6208_v17, %v6003_v30  ;;  %v6308_v50 = vmax.f32 %v6260_v16, %v18498_v39  ;;  %v18527_v16 = vld [vmem:[#allocation83_spill] sm:$0xff] }
 0x6dc   : > { %v6151_v56 = vmax.f32 %v6103_v52, %v18517_v15  ;;  %v6152_v10 = vmax.f32 %v6104_v19, %v18469_v37  ;;  %v6309_v32 = vmax.f32 %v6261_v38, %v18445_v45  ;;  %v6310_v12 = vmax.f32 %v6262_v25, %v18520_v46  ;;  %v18538_v19 = vld [vmem:[#allocation86_spill] sm:$0xff] }
 0x6dd   : > { %v6536_v23 = vsel %vm18518_vm6, %v6534_v14, %v6535_v53  ;;  %v6538_v55 = vsel %vm18519_vm5, %v6535_v53, %v6537_v43  ;;  %v18522_v31 = vrot.slane %v18469_v37, 1  ;;  %v5313_v8 = vsel %vm5285_vm0, %v18524_v47, %v5280_v57  ;;  %vm18542_vm6 = vmmov %vm18528_vm3 }
 0x6de   : > { %v6610_v13 = vpack.c.bf16 %v6538_v55, %v6536_v23  ;;  %v6367_v7 = vmax.f32 %v6308_v50, %v5825_v1  ;;  %v6368_v39 = vmax.f32 %v6309_v32, %v5827_v41  ;;  %7830 = vmatmul.mubr.msk.bf16.gmra.mxu1 %vm5377_vm15, %v5313_v8  ;;  %v6369_v45 = vmax.f32 %v6310_v12, %v18509_v54  ;;  %v18531_v54 = vld [vmem:[#allocation79_spill] sm:$0xff]  ;;  %vm18544_vm5 = vmmov %vm18528_vm3 }
 0x6df   : > { %v5832_v26 = vsel %vm18523_vm4, %v18522_v31, %v18521_v4  ;;  %v18525_v49 = vrot.slane %v18517_v15, 2  ;;  %v6008_v38 = vsel %vm18528_vm3, %v6005_v62, %v18527_v16  ;;  %v18530_v11 = vmax.f32 %v18517_v15, %v18529_v48  ;;  %v18545_v31 = vld [vmem:[#allocation84_spill] sm:$0xff]  ;;  %vm18550_vm4 = vmmov %vm18508_vm2 }
 0x6e0   : > { %v5931_v0 = vmax.f32 %v18469_v37, %v5832_v26  ;;  %7856 = vmatmul.mubr.msk.bf16.gmra.mxu0 %vm574_vm1, %v6610_v13  ;;  %v6423_v51 = vmax.f32 %v6367_v7, %v6001_v6  ;;  %v6424_v28 = vmax.f32 %v6368_v39, %v6003_v30  ;;  %v6210_v36 = vmax.f32 %v6151_v56, %v18529_v48  ;;  %v18546_v7 = vld [vmem:[#allocation4_spill] sm:$0xff]  ;;  %vm18552_vm3 = vmmov %vm18508_vm2 }
 0x6e1   : > { %v6006_v60 = vsel %vm18526_vm7, %v18525_v49, %v6005_v62  ;;  %v6425_v5 = vmax.f32 %v6369_v45, %v18514_v59  ;;  %v6211_v1 = vmax.f32 %v6152_v10, %v5832_v26  ;;  %v6265_v33 = vmax.f32 %v18531_v54, %v18514_v59  ;;  %v18532_v62 = vld [vmem:[#allocation133_spill] sm:$0xff]  ;;  %v18543_v10 = vld [vmem:[#allocation87_spill] sm:$0xff]  ;;  %vm18551_vm7 = vmmov %vm18508_vm2 }
 0x6e2   : > { %v6106_v40 = vmax.f32 %v18530_v11, %v6006_v60  ;;  %v6107_v22 = vmax.f32 %v5931_v0, %v6008_v38  ;;  %v6539_v41 = vrot.slane %v6423_v51, 1  ;;  %v6540_v58 = vrot.slane %v6424_v28, 1  ;;  %v18547_v49 = vld [vmem:[#allocation85_spill] sm:$0xff] }
 0x6e3   : > { %v6266_v63 = vmax.f32 %v6210_v36, %v6006_v60  ;;  %v6542_v6 = vrot.slane %v6425_v5, 1  ;;  %v6267_v2 = vmax.f32 %v6211_v1, %v6008_v38  ;;  %v6311_v20 = vmax.f32 %v6263_v18, %v18517_v15 }
 0x6e4   : > { %v6154_v42 = vmax.f32 %v6106_v40, %v18532_v62  ;;  %v6155_v44 = vmax.f32 %v6107_v22, %v18494_v9  ;;  %v6541_v34 = vsel %vm18508_vm2, %v6539_v41, %v6540_v58  ;;  %v6312_v30 = vmax.f32 %v6264_v61, %v18469_v37  ;;  %v18553_v40 = vld [vmem:[#allocation9_spill] sm:$0xff]  ;;  %vm18555_vm2 = vmmov %vm18544_vm5 }
 0x6e5   : > { %v6313_v27 = vmax.f32 %v6265_v33, %v18533_v21  ;;  %v18534_v35 = vrot.slane %v18494_v9, 1  ;;  %v18535_v59 = vrot.slane %v18532_v62, 1  ;;  %v6543_v17 = vsel %vm18537_vm11, %v6540_v58, %v6542_v6  ;;  %v18556_v41 = vld [vmem:[#allocation89_spill] sm:$0xff]  ;;  %vm18566_vm11 = vmmov %vm18552_vm3 }
 0x6e6   : > { %v6370_v52 = vmax.f32 %v6311_v20, %v18529_v48  ;;  %v6611_v37 = vpack.c.bf16 %v6543_v17, %v6541_v34  ;;  %v6371_v14 = vmax.f32 %v6312_v30, %v5832_v26  ;;  %v18541_v15 = vrot.slane %v18532_v62, 2  ;;  %v18558_v30 = vld [vmem:[#allocation7_spill] sm:$0xff] }
 0x6e7   : > { %v5835_v24 = vsel %vm18536_vm9, %v18535_v59, %v18534_v35  ;;  %v18539_v3 = vmov %v18534_v35  ;;  %v6372_v53 = vmax.f32 %v6313_v27, %v18521_v4  ;;  %v6013_v50 = vsel %vm18544_vm5, %v6010_v29, %v18543_v10  ;;  %v18559_v27 = vld [vmem:[#allocation11_spill] sm:$0xff]  ;;  %vm18565_vm9 = vmmov %vm18552_vm3 }
 0x6e8   : > { %v5837_v25 = vsel %vm18540_vm14, %v18539_v3, %v18538_v19  ;;  %v5933_v18 = vmax.f32 %v18532_v62, %v5835_v24  ;;  %v6426_v61 = vmax.f32 %v6370_v52, %v6006_v60  ;;  %v6011_v56 = vsel %vm18542_vm6, %v18541_v15, %v6010_v29  ;;  %7859 = vmatprep.mubr.msk.bf16.mxu0 %vm574_vm1, %v6611_v37  ;;  %vm18567_vm14 = vmmov %vm18552_vm3 }
 0x6e9   : > { %v5934_v43 = vmax.f32 %v18494_v9, %v5837_v25  ;;  %v6213_v32 = vmax.f32 %v6154_v42, %v5835_v24  ;;  %v6427_v57 = vmax.f32 %v6371_v14, %v6008_v38  ;;  %v6428_v23 = vmax.f32 %v6372_v53, %v18527_v16  ;;  %v18548_v38 = vld [vmem:[#allocation8_spill] sm:$0xff]  ;;  %v18561_v14 = vld [vmem:[#allocation262_spill] sm:$0xff]  ;;  %vm18570_vm6 = vmmov %vm18552_vm3 }
 0x6ea   : > { %v6109_v55 = vmax.f32 %v5933_v18, %v6011_v56  ;;  %v6544_v12 = vrot.slane %v6426_v61, 1  ;;  %v6214_v4 = vmax.f32 %v6155_v44, %v5837_v25  ;;  %v6268_v26 = vmax.f32 %v18545_v31, %v18527_v16  ;;  %vm18575_vm5 = vmmov %vm18552_vm3 }
 0x6eb   : > { %v6110_v46 = vmax.f32 %v5934_v43, %v6013_v50  ;;  %v6269_v47 = vmax.f32 %v6213_v32, %v6011_v56  ;;  %v6545_v8 = vrot.slane %v6427_v57, 1  ;;  %v6547_v13 = vrot.slane %v6428_v23, 1  ;;  %v18563_v43 = vld [vmem:[#allocation13_spill] sm:$0xff]  ;;  %v18568_v32 = vld [vmem:[#allocation16_spill] sm:$0xff] }
 0x6ec   : > { %v6314_v29 = vmax.f32 %v6266_v63, %v18532_v62  ;;  %v6270_v45 = vmax.f32 %v6214_v4, %v6013_v50  ;;  %v6315_v0 = vmax.f32 %v6267_v2, %v18494_v9  ;;  %v6316_v60 = vmax.f32 %v6268_v26, %v18547_v49  ;;  %v18557_v62 = vld [vmem:[#allocation6_spill] sm:$0xff]  ;;  %v18571_v26 = vld [vmem:[#allocation88_spill] sm:$0xff] }
 0x6ed   : > { %v6158_v39 = vmax.f32 %v6110_v46, %v18546_v7  ;;  %v18549_v51 = vrot.slane %v18546_v7, 1  ;;  %v6546_v48 = vsel %vm18551_vm7, %v6544_v12, %v6545_v8  ;;  %v6548_v16 = vsel %vm18552_vm3, %v6545_v8, %v6547_v13  ;;  %v18573_v13 = vld [vmem:[#allocation15_spill] sm:$0xff]  ;;  %vm18581_vm7 = vmmov %vm18555_vm2 }
 0x6ee   : > { %v6373_v11 = vmax.f32 %v6314_v29, %v5835_v24  ;;  %v18554_v36 = vrot.slane %v18546_v7, 2  ;;  %v6612_v22 = vpack.c.bf16 %v6548_v16, %v6546_v48  ;;  %v6374_v1 = vmax.f32 %v6315_v0, %v5837_v25  ;;  %v18560_v25 = vld [vmem:[#allocation12_spill] sm:$0xff] }
 0x6ef   : > { %v5842_v28 = vsel %vm18550_vm4, %v18549_v51, %v18548_v38  ;;  %v6375_v9 = vmax.f32 %v6316_v60, %v18538_v19  ;;  %v6271_v58 = vmax.f32 %v18556_v41, %v18543_v10  ;;  %v6317_v42 = vmax.f32 %v6269_v47, %v18557_v62  ;;  %vm18578_vm4 = vmmov %vm18555_vm2 }
 0x6f0   : > { %v6018_v5 = vsel %vm18555_vm2, %v18554_v36, %v18553_v40  ;;  %v6217_v54 = vmax.f32 %v6158_v39, %v5842_v28  ;;  %v6429_v33 = vmax.f32 %v6373_v11, %v6011_v56  ;;  %v6318_v63 = vmax.f32 %v6270_v45, %v18546_v7  ;;  %7860 = vmatmul.mubr.msk.bf16.gmra.mxu0 %vm574_vm1, %v6612_v22  ;;  %vm18586_vm2 = vmmov %vm18552_vm3 }
 0x6f1   : > { %v6430_v6 = vmax.f32 %v6374_v1, %v6013_v50  ;;  %v6431_v44 = vmax.f32 %v6375_v9, %v18543_v10  ;;  %v5937_v20 = vmax.f32 %v18546_v7, %v5842_v28  ;;  %v6319_v21 = vmax.f32 %v6271_v58, %v18558_v30  ;;  %v18582_v9 = vld [vmem:[#allocation19_spill] sm:$0xff]  ;;  %v18583_v58 = vld [vmem:[#allocation14_spill] sm:$0xff] }
 0x6f2   : > { %v6273_v2 = vmax.f32 %v6217_v54, %v6018_v5  ;;  %v6549_v34 = vrot.slane %v6429_v33, 1  ;;  %v6376_v35 = vmax.f32 %v6317_v42, %v18559_v27  ;;  %v6377_v59 = vmax.f32 %v6318_v63, %v5842_v28  ;;  %v18579_v28 = vld [vmem:[#allocation151_spill] sm:$0xff] }
 0x6f3   : > { %v6550_v24 = vrot.slane %v6430_v6, 1  ;;  %v6552_v17 = vrot.slane %v6431_v44, 1  ;;  %v6113_v52 = vmax.f32 %v5937_v20, %v6018_v5  ;;  %v6157_v19 = vmax.f32 %v6109_v55, %v18557_v62 }
 0x6f4   : > { %v6378_v3 = vmax.f32 %v6319_v21, %v18548_v38  ;;  %v6432_v18 = vmax.f32 %v6376_v35, %v18560_v25  ;;  %v6433_v37 = vmax.f32 %v6377_v59, %v6018_v5  ;;  %v18562_v53 = vrot.slane %v18561_v14, 1 }
 0x6f5   : > { %v18564_v61 = vrot.slane %v18563_v43, 1  ;;  %v6551_v56 = vsel %vm18566_vm11, %v6549_v34, %v6550_v24  ;;  %v6553_v10 = vsel %vm18567_vm14, %v6550_v24, %v6552_v17  ;;  %v6161_v50 = vmax.f32 %v6113_v52, %v18561_v14  ;;  %v18584_v34 = vld [vmem:[#allocation5_spill] sm:$0xff]  ;;  %v18585_v24 = vld [vmem:[#allocation10_spill] sm:$0xff]  ;;  %vm18588_vm11 = vmmov %vm18586_vm2 }
 0x6f6   : > { %v18569_v57 = vmov %v18562_v53  ;;  %v6613_v55 = vpack.c.bf16 %v6553_v10, %v6551_v56  ;;  %v6434_v46 = vmax.f32 %v6378_v3, %v18553_v40  ;;  %v6554_v12 = vrot.slane %v6432_v18, 1  ;;  %vm18589_vm14 = vmmov %vm18586_vm2 }
 0x6f7   : > { %v6168_v15 = vsel %vm18565_vm9, %v18564_v61, %v18562_v53  ;;  %v6170_v23 = vsel %vm18570_vm6, %v18569_v57, %v18568_v32  ;;  %v6555_v4 = vrot.slane %v6433_v37, 1  ;;  %v6216_v31 = vmax.f32 %v6157_v19, %v18559_v27  ;;  %vm18587_vm9 = vmmov %vm18586_vm2  ;;  %v5282_v57 = vpop.permute.xlu0 %5281 }
 0x6f8   : > { %v18572_v47 = vmax.f32 %v18571_v26, %v18558_v30  ;;  %v18574_v7 = vmax.f32 %v18573_v13, %v18563_v43  ;;  %v6220_v29 = vmax.f32 %v6161_v50, %v6170_v23  ;;  %7863 = vmatprep.mubr.msk.bf16.mxu0 %vm574_vm1, %v6613_v55  ;;  %v6557_v0 = vrot.slane %v6434_v46, 1  ;;  %v18591_v46 = vld [vmem:[#allocation144_spill] sm:$0xff]  ;;  %v18592_v26 = vld [vmem:[#allocation162_spill] sm:$0xff] }
 0x6f9   : > { %v6556_v45 = vsel %vm18575_vm5, %v6554_v12, %v6555_v4  ;;  %v18576_v49 = vrot.slane %v18561_v14, 2  ;;  %v18577_v60 = vrot.slane %v18563_v43, 2  ;;  %v6272_v16 = vmax.f32 %v6216_v31, %v18560_v25 }
 0x6fa   : > { %v6218_v8 = vmax.f32 %v18572_v47, %v18548_v38  ;;  %v6219_v39 = vmax.f32 %v18574_v7, %v6168_v15  ;;  %v6558_v22 = vsel %vm18552_vm3, %v6555_v4, %v6557_v0  ;;  %v6321_v1 = vmax.f32 %v6273_v2, %v18561_v14  ;;  %v18595_v0 = vld [vmem:[#allocation168_spill] sm:$0xff] }
 0x6fb   : > { %v6224_v51 = vsel %vm18578_vm4, %v18577_v60, %v18576_v49  ;;  %v18580_v48 = vmov %v18576_v49  ;;  %v6277_v54 = vmax.f32 %v18582_v9, %v18579_v28  ;;  %v6614_v33 = vpack.c.bf16 %v6558_v22, %v6556_v45 }
 0x6fc   : > { %v6226_v38 = vsel %vm18581_vm7, %v18580_v48, %v18579_v28  ;;  %v6274_v11 = vmax.f32 %v6218_v8, %v18553_v40  ;;  %v6275_v36 = vmax.f32 %v6219_v39, %v6224_v51  ;;  %v6320_v41 = vmax.f32 %v6272_v16, %v18563_v43  ;;  %v6902_v31 = vpop.permute.xlu0 %6901  ;;  %v18593_v8 = vld [vmem:[#allocation163_spill] sm:$0xff] }
 0x6fd   : > { %v6276_v5 = vmax.f32 %v6220_v29, %v6226_v38  ;;  %v6380_v6 = vmax.f32 %v6321_v1, %v6170_v23  ;;  %v6325_v44 = vmax.f32 %v6277_v54, -1e+30  ;;  %7864 = vmatmul.mubr.msk.bf16.gmra.mxu0 %vm574_vm1, %v6614_v33  ;;  %v18590_v23 = vld [vmem:[#allocation310_spill] sm:$0xff]  ;;  %v5315_v12 = vsel %vm5285_vm0, %v18591_v46, %v5282_v57  ;;  %v18594_v29 = vld [vmem:[#allocation167_spill] sm:$0xff]  ;;  %v18612_v46 = vld [vmem:[#allocation249_spill] sm:$0xff] }
 0x6fe   : > { %v6322_v62 = vmax.f32 %v6274_v11, %v18583_v58  ;;  %v6323_v42 = vmax.f32 %v6275_v36, -1e+30  ;;  %v6379_v40 = vmax.f32 %v6320_v41, %v6168_v15  ;;  %7833 = vmatprep.mubr.msk.bf16.mxu1 %vm5377_vm15, %v5315_v12  ;;  %v15268_v13 = vsel %vm2227_vm8, %v18593_v8, %v6902_v31  ;;  %v18599_v1 = vld [vmem:[#allocation174_spill] sm:$0xff]  ;;  %v18600_v41 = vld [vmem:[#allocation176_spill] sm:$0xff] }
 0x6ff   : > { %v6324_v63 = vmax.f32 %v6276_v5, -1e+30  ;;  %v6436_v2 = vmax.f32 %v6380_v6, %v6226_v38  ;;  %v6384_v27 = vmax.f32 %v6325_v44, %v18584_v34  ;;  %v18597_v38 = vld [vmem:[#allocation170_spill] sm:$0xff]  ;;  %v18598_v5 = vld [vmem:[#allocation173_spill] sm:$0xff] }
 0x700   : > { %v6381_v20 = vmax.f32 %v6322_v62, %v18568_v32  ;;  %v6382_v30 = vmax.f32 %v6323_v42, %v18584_v34  ;;  %v6435_v35 = vmax.f32 %v6379_v40, %v6224_v51  ;;  %v5284_v32 = vpop.permute.xlu1 %5283  ;;  %v18601_v62 = vld [vmem:[#allocation177_spill] sm:$0xff]  ;;  %v18602_v44 = vld [vmem:[#allocation178_spill] sm:$0xff] }
 0x701   : > { %v6383_v21 = vmax.f32 %v6324_v63, %v18584_v34  ;;  %v6560_v52 = vrot.slane %v6436_v2, 1  ;;  %v6440_v3 = vmax.f32 %v6384_v27, %v18585_v24  ;;  %v5317_v55 = vsel %vm5285_vm0, %v18590_v23, %v5284_v32  ;;  %v6906_v39 = vpop.permute.xlu0 %6905  ;;  %v18611_v32 = vld [vmem:[#allocation217_spill] sm:$0xff] }
 0x702   : > { %v6437_v59 = vmax.f32 %v6381_v20, %v18579_v28  ;;  %v6438_v17 = vmax.f32 %v6382_v30, %v18585_v24  ;;  %v6559_v25 = vrot.slane %v6435_v35, 1  ;;  %7834 = vmatmul.mubr.msk.bf16.gmra.mxu1 %vm5377_vm15, %v5317_v55  ;;  %v15276_v49 = vsel %vm2227_vm8, %v18595_v0, %v6906_v39  ;;  %v18596_v28 = vld [vmem:[#allocation169_spill] sm:$0xff]  ;;  %v18603_v20 = vld [vmem:[#allocation179_spill] sm:$0xff] }
 0x703   : > { %v6439_v19 = vmax.f32 %v6383_v21, %v18585_v24  ;;  %v6567_v53 = vrot.slane %v6440_v3, 1  ;;  %v18604_v21 = vld [vmem:[#allocation180_spill] sm:$0xff]  ;;  %v18605_v35 = vld [vmem:[#allocation181_spill] sm:$0xff]  ;;  %v18607_v3 = vld [vmem:[#allocation182_spill] sm:$0xff] }
 0x704   : > { %v6562_v18 = vrot.slane %v6437_v59, 1  ;;  %v6564_v37 = vrot.slane %v6438_v17, 1  ;;  %v6561_v43 = vsel %vm18586_vm2, %v6559_v25, %v6560_v52  ;;  %v6904_v4 = vpop.permute.xlu1 %6903 }
 0x705   : > { %v6565_v14 = vrot.slane %v6439_v19, 1  ;;  %v15264_v47 = vsel %vm2227_vm8, %v18592_v26, %v6904_v4  ;;  %v6910_v51 = vpop.permute.xlu0 %6909  ;;  %v18613_v4 = vld [vmem:[#allocation250_spill] sm:$0xff] }
 0x706   : > { %v6563_v61 = vsel %vm18587_vm9, %v6560_v52, %v6562_v18  ;;  %v15284_v16 = vsel %vm2227_vm8, %v18597_v38, %v6910_v51  ;;  %v18606_v52 = vld [vmem:[#allocation197_spill] sm:$0xff] }
 0x707   : > { %v6615_v15 = vpack.c.bf16 %v6563_v61, %v6561_v43  ;;  %v6566_v56 = vsel %vm18588_vm11, %v6564_v37, %v6565_v14  ;;  %v6568_v10 = vsel %vm18589_vm14, %v6565_v14, %v6567_v53  ;;  %v18608_v14 = vld [vmem:[#allocation198_spill] sm:$0xff]  ;;  %v18609_v43 = vld [vmem:[#allocation200_spill] sm:$0xff] }
 0x708   : > { %v6616_v50 = vpack.c.bf16 %v6568_v10, %v6566_v56  ;;  %v6908_v7 = vpop.permute.xlu1 %6907  ;;  %v18610_v10 = vld [vmem:[#allocation216_spill] sm:$0xff] }
 0x709   : > { %7867 = vmatprep.mubr.msk.bf16.mxu0 %vm574_vm1, %v6615_v15  ;;  %v15272_v45 = vsel %vm2227_vm8, %v18594_v29, %v6908_v7  ;;  %v6914_v36 = vpop.permute.xlu0 %6913  ;;  %v18614_v7 = vld [vmem:[#allocation279_spill] sm:$0xff] }
 0x70a   : > { %7868 = vmatmul.mubr.msk.bf16.gmra.mxu0 %vm574_vm1, %v6616_v50  ;;  %v15292_v9 = vsel %vm2227_vm8, %v18599_v1, %v6914_v36  ;;  %v18615_v29 = vld [vmem:[#allocation251_spill] sm:$0xff] }
 0x70c   : > { %v6912_v60 = vpop.permute.xlu1 %6911 }
 0x70d   : > { %v15280_v48 = vsel %vm2227_vm8, %v18596_v28, %v6912_v60  ;;  %v18616_v28 = vld [vmem:[#allocation280_spill] sm:$0xff] }
 0x710   : > { %v6916_v11 = vpop.permute.xlu1 %6915  ;;  %v6918_v33 = vpop.permute.xlu0 %6917 }
 0x711   : > { %v15288_v22 = vsel %vm2227_vm8, %v18598_v5, %v6916_v11  ;;  %v15300_v42 = vsel %vm2227_vm8, %v18601_v62, %v6918_v33  ;;  %v18617_v11 = vld [vmem:[#allocation282_spill] sm:$0xff] }
 0x714   : > { %v6920_v54 = vpop.permute.xlu1 %6919 }
 0x715   : > { %v15296_v58 = vsel %vm2227_vm8, %v18600_v41, %v6920_v54  ;;  %v6922_v6 = vpop.permute.xlu0 %6921  ;;  %v18618_v54 = vld [vmem:[#allocation303_spill] sm:$0xff]  ;;  %v18619_v41 = vld [vmem:[#allocation304_spill] sm:$0xff] }
 0x716   : > { %v15308_v34 = vsel %vm2227_vm8, %v18603_v20, %v6922_v6 }
 0x718   : > { %v6924_v63 = vpop.permute.xlu1 %6923 }
 0x719   : > { %v15304_v40 = vsel %vm2227_vm8, %v18602_v44, %v6924_v63  ;;  %v18620_v44 = vld [vmem:[#allocation183_spill] sm:$0xff] }
 0x71a   : > { %v6926_v2 = vpop.permute.xlu0 %6925 }
 0x71b   : > { %v15316_v59 = vsel %vm2227_vm8, %v18605_v35, %v6926_v2  ;;  %v15385_v35 = vld [vmem:[%s15811_s6] ss:$0 sm:$0xff] }
 0x71c   : > { %v6928_v30 = vpop.permute.xlu1 %6927 }
 0x71d   : > { %v15312_v27 = vsel %vm2227_vm8, %v18604_v21, %v6928_v30  ;;  %v18622_v30 = vld [vmem:[#allocation184_spill] sm:$0xff] }
 0x71f   : > { %v6930_v17 = vpop.permute.xlu0 %6929 }
 0x720   : > { %v6932_v24 = vpop.permute.xlu1 %6931  ;;  %v15324_v25 = vsel %vm2227_vm8, %v18607_v3, %v6930_v17 }
 0x721   : > { %v15320_v19 = vsel %vm2227_vm8, %v18606_v52, %v6932_v24 }
 0x723   : > { %v6934_v37 = vpop.permute.xlu0 %6933 }
 0x724   : > { %v6936_v18 = vpop.permute.xlu1 %6935  ;;  %v15332_v61 = vsel %vm2227_vm8, %v18609_v43, %v6934_v37 }
 0x725   : > { %v15328_v53 = vsel %vm2227_vm8, %v18608_v14, %v6936_v18 }
 0x728   : > { %v6940_v15 = vpop.permute.xlu1 %6939 }
 0x729   : > { %v6938_v56 = vpop.permute.xlu0 %6937  ;;  %v15336_v50 = vsel %vm2227_vm8, %v18610_v10, %v6940_v15 }
 0x72a   : > { %v15340_v57 = vsel %vm2227_vm8, %v18611_v32, %v6938_v56 }
 0x72d   : > { %v6944_v23 = vpop.permute.xlu1 %6943  ;;  %v6942_v55 = vpop.permute.xlu0 %6941 }
 0x72e   : > { %v15344_v12 = vsel %vm2227_vm8, %v18612_v46, %v6944_v23  ;;  %v15348_v31 = vsel %vm2227_vm8, %v18613_v4, %v6942_v55 }
 0x732   : > { %v6948_v26 = vpop.permute.xlu1 %6947  ;;  %v6946_v8 = vpop.permute.xlu0 %6945 }
 0x733   : > { %v15352_v39 = vsel %vm2227_vm8, %v18614_v7, %v6948_v26  ;;  %v15356_v0 = vsel %vm2227_vm8, %v18615_v29, %v6946_v8 }
 0x736   : > { %v6952_v60 = vpop.permute.xlu1 %6951 }
 0x737   : > { %v6950_v51 = vpop.permute.xlu0 %6949  ;;  %v15360_v38 = vsel %vm2227_vm8, %v18616_v28, %v6952_v60 }
 0x738   : > { %v15364_v36 = vsel %vm2227_vm8, %v18617_v11, %v6950_v51 }
 0x73c   : > { %v6956_v5 = vpop.permute.xlu1 %6955  ;;  %v6954_v1 = vpop.permute.xlu0 %6953 }
 0x73d   : > { %v15368_v33 = vsel %vm2227_vm8, %v18618_v54, %v6956_v5  ;;  %v15372_v62 = vsel %vm2227_vm8, %v18619_v41, %v6954_v1 }
 0x73f   : > { %v7807_v21 = vpop.f32.mrf.mxu1 }
 0x740   : > { %v6960_v63 = vpop.permute.xlu1 %6959  ;;  %v5456_v3 = vadd.f32 %v7807_v21, %v15385_v35 }
 0x741   : > { %v6958_v6 = vpop.permute.xlu0 %6957  ;;  %v15376_v20 = vsel %vm2227_vm8, %v18620_v44, %v6960_v63  ;;  %v5447_v24 = vpop.f32.mrf.mxu1 }
 0x742   : > { %18621 = vst [vmem:[#allocation103_spill] sm:$0xff] %v15376_v20  ;;  %v15380_v2 = vsel %vm2227_vm8, %v18622_v30, %v6958_v6  ;;  %v5448_v17 = vadd.f32 %v15385_v35, %v5447_v24  ;;  %v5576_v15 = vmax.f32 %v5456_v3, 0.0 }
 0x743   : > { %18623 = vst [vmem:[#allocation337_spill] sm:$0xff] %v15380_v2  ;;  %v7808_v52 = vpop.f32.mrf.mxu1 }
 0x744   : > { %v5574_v18 = vmax.f32 %v5448_v17, 0.0  ;;  %v5459_v56 = vadd.f32 %v7808_v52, %v15385_v35 }
 0x745   : > { %v5450_v37 = vpop.f32.mrf.mxu1 }
 0x746   : > { %v5451_v14 = vadd.f32 %v15385_v35, %v5450_v37  ;;  %7029 = vrot.lane.b32.xlu0 %v5574_v18, %s8050_s26  ;;  %v5577_v46 = vmax.f32 %v5459_v56, 0.0 }
 0x747   : > { %v7811_v43 = vpop.f32.mrf.mxu1 }
 0x748   : > { %v5575_v10 = vmax.f32 %v5451_v14, 0.0  ;;  %v5472_v4 = vadd.f32 %v7811_v43, %v15385_v35 }
 0x749   : > { %v5463_v32 = vpop.f32.mrf.mxu1 }
 0x74a   : > { %v5464_v23 = vadd.f32 %v15385_v35, %v5463_v32  ;;  %7031 = vrot.lane.b32.xlu1 %v5575_v10, %s8050_s26  ;;  %7033 = vrot.lane.b32.xlu0 %v5576_v15, %s8050_s26  ;;  %v5580_v60 = vmax.f32 %v5472_v4, 0.0 }
 0x74b   : > { %v7812_v55 = vpop.f32.mrf.mxu1 }
 0x74c   : > { %v5578_v26 = vmax.f32 %v5464_v23, 0.0  ;;  %v5475_v51 = vadd.f32 %v7812_v55, %v15385_v35 }
 0x74d   : > { %v5466_v8 = vpop.f32.mrf.mxu1 }
 0x74e   : > { %v5467_v7 = vadd.f32 %v15385_v35, %v5466_v8  ;;  %7035 = vrot.lane.b32.xlu1 %v5577_v46, %s8050_s26  ;;  %7037 = vrot.lane.b32.xlu0 %v5578_v26, %s8050_s26  ;;  %v5581_v54 = vmax.f32 %v5475_v51, 0.0 }
 0x750   : > { %v7815_v29 = vpop.f32.mrf.mxu1  ;;  %v5579_v28 = vmax.f32 %v5467_v7, 0.0 }
 0x751   : > { %v5488_v41 = vadd.f32 %v7815_v29, %v15385_v35 }
 0x752   : > { %v5479_v11 = vpop.f32.mrf.mxu1  ;;  %7039 = vrot.lane.b32.xlu1 %v5579_v28, %s8050_s26  ;;  %7041 = vrot.lane.b32.xlu0 %v5580_v60, %s8050_s26 }
 0x753   : > { %v5480_v5 = vadd.f32 %v15385_v35, %v5479_v11  ;;  %v5584_v21 = vmax.f32 %v5488_v41, 0.0 }
 0x754   : > { %v7816_v1 = vpop.f32.mrf.mxu1 }
 0x755   : > { %v5582_v63 = vmax.f32 %v5480_v5, 0.0  ;;  %v5491_v24 = vadd.f32 %v7816_v1, %v15385_v35 }
 0x756   : > { %v5482_v6 = vpop.f32.mrf.mxu1  ;;  %7043 = vrot.lane.b32.xlu1 %v5581_v54, %s8050_s26 }
 0x757   : > { %v5483_v44 = vadd.f32 %v15385_v35, %v5482_v6  ;;  %7045 = vrot.lane.b32.xlu0 %v5582_v63, %s8050_s26  ;;  %v5585_v37 = vmax.f32 %v5491_v24, 0.0 }
 0x758   : > { %v7819_v30 = vpop.f32.mrf.mxu1 }
 0x759   : > { %v5583_v17 = vmax.f32 %v5483_v44, 0.0  ;;  %v5504_v14 = vadd.f32 %v7819_v30, %v15385_v35 }
 0x75a   : > { %v5495_v52 = vpop.f32.mrf.mxu1 }
 0x75b   : > { %v5496_v3 = vadd.f32 %v15385_v35, %v5495_v52  ;;  %7047 = vrot.lane.b32.xlu1 %v5583_v17, %s8050_s26  ;;  %7049 = vrot.lane.b32.xlu0 %v5584_v21, %s8050_s26  ;;  %v5588_v32 = vmax.f32 %v5504_v14, 0.0 }
 0x75c   : > { %v7820_v18 = vpop.f32.mrf.mxu1 }
 0x75d   : > { %v5586_v43 = vmax.f32 %v5496_v3, 0.0  ;;  %v5507_v23 = vadd.f32 %v7820_v18, %v15385_v35 }
 0x75e   : > { %v5498_v15 = vpop.f32.mrf.mxu1 }
 0x75f   : > { %v5499_v56 = vadd.f32 %v15385_v35, %v5498_v15  ;;  %7051 = vrot.lane.b32.xlu1 %v5585_v37, %s8050_s26  ;;  %7053 = vrot.lane.b32.xlu0 %v5586_v43, %s8050_s26  ;;  %v5589_v8 = vmax.f32 %v5507_v23, 0.0  ;;  %v7841_v37 = vpop.f32.mrf.mxu0 }
 0x760   : > { %v7823_v10 = vpop.f32.mrf.mxu1 }
 0x761   : > { %v5587_v55 = vmax.f32 %v5499_v56, 0.0  ;;  %v5520_v7 = vadd.f32 %v7823_v10, %v15385_v35  ;;  %v6710_v14 = vpop.f32.mrf.mxu0 }
 0x762   : > { %v5511_v46 = vpop.f32.mrf.mxu1 }
 0x763   : > { %v5512_v4 = vadd.f32 %v15385_v35, %v5511_v46  ;;  %7055 = vrot.lane.b32.xlu1 %v5587_v55, %s8050_s26  ;;  %7057 = vrot.lane.b32.xlu0 %v5588_v32, %s8050_s26  ;;  %v5592_v28 = vmax.f32 %v5520_v7, 0.0  ;;  %v7842_v43 = vpop.f32.mrf.mxu0 }
 0x764   : > { %v7824_v26 = vpop.f32.mrf.mxu1 }
 0x765   : > { %v5590_v29 = vmax.f32 %v5512_v4, 0.0  ;;  %v5523_v11 = vadd.f32 %v7824_v26, %v15385_v35  ;;  %v6713_v15 = vpop.f32.mrf.mxu0 }
 0x766   : > { %v5514_v60 = vpop.f32.mrf.mxu1 }
 0x767   : > { %v5515_v51 = vadd.f32 %v15385_v35, %v5514_v60  ;;  %7059 = vrot.lane.b32.xlu1 %v5589_v8, %s8050_s26  ;;  %7061 = vrot.lane.b32.xlu0 %v5590_v29, %s8050_s26  ;;  %v5593_v1 = vmax.f32 %v5523_v11, 0.0 }
 0x768   : > { %v7845_v10 = vpop.f32.mrf.mxu0 }
 0x769   : > { %v5591_v5 = vmax.f32 %v5515_v51, 0.0 }
 0x76a   : > { %v6726_v46 = vpop.f32.mrf.mxu0 }
 0x76b   : > { %7063 = vrot.lane.b32.xlu1 %v5591_v5, %s8050_s26  ;;  %7065 = vrot.lane.b32.xlu0 %v5592_v28, %s8050_s26 }
 0x76c   : > { %v7846_v29 = vpop.f32.mrf.mxu0 }
 0x76e   : > { %v6729_v11 = vpop.f32.mrf.mxu0 }
 0x76f   : > { %7067 = vrot.lane.b32.xlu1 %v5593_v1, %s8050_s26 }
 0x777   : > { %v7827_v54 = vpop.f32.mrf.mxu1 }
 0x778   : > { %v5536_v44 = vadd.f32 %v7827_v54, %v15385_v35 }
 0x779   : > { %v5527_v41 = vpop.f32.mrf.mxu1 }
 0x77a   : > { %v5528_v63 = vadd.f32 %v15385_v35, %v5527_v41  ;;  %v5596_v17 = vmax.f32 %v5536_v44, 0.0 }
 0x77b   : > { %v7828_v6 = vpop.f32.mrf.mxu1 }
 0x77c   : > { %v5594_v30 = vmax.f32 %v5528_v63, 0.0  ;;  %v5539_v52 = vadd.f32 %v7828_v6, %v15385_v35  ;;  %v7849_v1 = vpop.f32.mrf.mxu0 }
 0x77d   : > { %v5530_v21 = vpop.f32.mrf.mxu1 }
 0x77e   : > { %v5531_v24 = vadd.f32 %v15385_v35, %v5530_v21  ;;  %7069 = vrot.lane.b32.xlu0 %v5594_v30, %s8050_s26  ;;  %v5597_v18 = vmax.f32 %v5539_v52, 0.0  ;;  %v6742_v54 = vpop.f32.mrf.mxu0 }
 0x780   : > { %v5595_v3 = vmax.f32 %v5531_v24, 0.0  ;;  %v7850_v41 = vpop.f32.mrf.mxu0 }
 0x782   : > { %7071 = vrot.lane.b32.xlu1 %v5595_v3, %s8050_s26  ;;  %7073 = vrot.lane.b32.xlu0 %v5596_v17, %s8050_s26  ;;  %v6745_v63 = vpop.f32.mrf.mxu0 }
 0x786   : > { %7075 = vrot.lane.b32.xlu1 %v5597_v18, %s8050_s26 }
 0x78e   : > { %v15443_v6 = vpop.f32.mrf.mxu0 }
 0x790   : > { %v6758_v44 = vpop.f32.mrf.mxu0 }
 0x792   : > { %v15445_v30 = vpop.f32.mrf.mxu0 }
 0x794   : > { %v6761_v17 = vpop.f32.mrf.mxu0 }
 0x79e   : > { %v7831_v56 = vpop.f32.mrf.mxu1 }
 0x79f   : > { %v5552_v4 = vadd.f32 %v7831_v56, %v15385_v35 }
 0x7a0   : > { %v5543_v32 = vpop.f32.mrf.mxu1 }
 0x7a1   : > { %v5544_v23 = vadd.f32 %v15385_v35, %v5543_v32  ;;  %v5600_v60 = vmax.f32 %v5552_v4, 0.0  ;;  %v15452_v32 = vld [vmem:[%s15813_s8] ss:$0 sm:$0xff] }
 0x7a2   : > { %v7832_v55 = vpop.f32.mrf.mxu1 }
 0x7a3   : > { %v5598_v26 = vmax.f32 %v5544_v23, 0.0  ;;  %v5555_v51 = vadd.f32 %v7832_v55, %v15385_v35  ;;  %v15454_v55 = vpop.f32.mrf.mxu0 }
 0x7a4   : > { %v5546_v8 = vpop.f32.mrf.mxu1 }
 0x7a5   : > { %v5547_v7 = vadd.f32 %v15385_v35, %v5546_v8  ;;  %7077 = vrot.lane.b32.xlu0 %v5598_v26, %s8050_s26  ;;  %v5601_v5 = vmax.f32 %v5555_v51, 0.0  ;;  %v6774_v51 = vpop.f32.mrf.mxu0 }
 0x7a7   : > { %v5599_v28 = vmax.f32 %v5547_v7, 0.0  ;;  %v6711_v7 = vadd.f32 %v15452_v32, %v6710_v14  ;;  %v6722_v14 = vadd.f32 %v7842_v43, %v15452_v32 }
 0x7a9   : > { %7079 = vrot.lane.b32.xlu1 %v5599_v28, %s8050_s26  ;;  %7081 = vrot.lane.b32.xlu0 %v5600_v60, %s8050_s26  ;;  %v6719_v28 = vadd.f32 %v7841_v37, %v15452_v32  ;;  %v6840_v37 = vmax.f32 %v6722_v14, 0.0 }
 0x7ad   : > { %7083 = vrot.lane.b32.xlu1 %v5601_v5, %s8050_s26 }
 0x7c2   : > { %v7835_v21 = vpop.f32.mrf.mxu1 }
 0x7c3   : > { %v5568_v18 = vadd.f32 %v7835_v21, %v15385_v35  ;;  %v6837_v21 = vmax.f32 %v6711_v7, 0.0  ;;  %v6743_v7 = vadd.f32 %v15452_v32, %v6742_v54 }
 0x7c4   : > { %v5559_v24 = vpop.f32.mrf.mxu1 }
 0x7c5   : > { %v5560_v52 = vadd.f32 %v15385_v35, %v5559_v24  ;;  %v5604_v26 = vmax.f32 %v5568_v18, 0.0  ;;  %v6714_v24 = vadd.f32 %v15452_v32, %v6713_v15  ;;  %v6727_v18 = vadd.f32 %v15452_v32, %v6726_v46 }
 0x7c6   : > { %v7836_v3 = vpop.f32.mrf.mxu1  ;;  %v6735_v15 = vadd.f32 %v7845_v10, %v15452_v32 }
 0x7c7   : > { %v5602_v56 = vmax.f32 %v5560_v52, 0.0  ;;  %v5571_v8 = vadd.f32 %v7836_v3, %v15385_v35  ;;  %v15464_v52 = vpop.f32.mrf.mxu0  ;;  %v6838_v3 = vmax.f32 %v6714_v24, 0.0  ;;  %v6754_v24 = vadd.f32 %v7850_v41, %v15452_v32 }
 0x7c8   : > { %v5562_v23 = vpop.f32.mrf.mxu1  ;;  %v6843_v43 = vmax.f32 %v6735_v15, 0.0  ;;  %v15491_v15 = vpop.permute.xlu0 %6961 }
 0x7c9   : > { %v5563_v4 = vadd.f32 %v15385_v35, %v5562_v23  ;;  %7085 = vrot.lane.b32.xlu0 %v5602_v56, %s8050_s26  ;;  %v5605_v5 = vmax.f32 %v5571_v8, 0.0  ;;  %v6839_v35 = vmax.f32 %v6719_v28, 0.0  ;;  %v6777_v56 = vpop.f32.mrf.mxu0  ;;  %v6841_v23 = vmax.f32 %v6727_v18, 0.0  ;;  %18624 = vst [vmem:[#allocation344_spill] sm:$0xff] %v15491_v15 }
 0x7ca   : > { %v6738_v8 = vadd.f32 %v7846_v29, %v15452_v32  ;;  %v6751_v28 = vadd.f32 %v7849_v1, %v15452_v32  ;;  %v6848_v1 = vmax.f32 %v6754_v24, 0.0  ;;  %v6762_v18 = vadd.f32 %v15452_v32, %v6761_v17 }
 0x7cb   : > { %v5603_v60 = vmax.f32 %v5563_v4, 0.0  ;;  %v6730_v4 = vadd.f32 %v15452_v32, %v6729_v11  ;;  %v6845_v11 = vmax.f32 %v6743_v7, 0.0 }
 0x7cc   : > { %v6844_v10 = vmax.f32 %v6738_v8, 0.0  ;;  %v6847_v29 = vmax.f32 %v6751_v28, 0.0  ;;  %v15498_v8 = vpop.permute.xlu1 %6963 }
 0x7cd   : > { %7087 = vrot.lane.b32.xlu1 %v5603_v60, %s8050_s26  ;;  %7089 = vrot.lane.b32.xlu0 %v5604_v26, %s8050_s26  ;;  %v7861_v26 = vpop.f32.mrf.mxu0  ;;  %v6842_v46 = vmax.f32 %v6730_v4, 0.0  ;;  %v6775_v4 = vadd.f32 %v15452_v32, %v6774_v51  ;;  %18625 = vst [vmem:[#allocation17_spill] sm:$0xff] %v15498_v8 }
 0x7cf   : > { %v6790_v60 = vpop.f32.mrf.mxu0  ;;  %v6853_v7 = vmax.f32 %v6775_v4, 0.0 }
 0x7d0   : > { %v15507_v28 = vpop.permute.xlu1 %7031  ;;  %v6791_v24 = vadd.f32 %v15452_v32, %v6790_v60 }
 0x7d1   : > { %7091 = vrot.lane.b32.xlu1 %v5605_v5, %s8050_s26  ;;  %7157 = vrot.lane.b32.xlu0 %v6837_v21, %s8052_s28  ;;  %v6746_v5 = vadd.f32 %v15452_v32, %v6745_v63  ;;  %v7862_v21 = vpop.f32.mrf.mxu0  ;;  %v6767_v63 = vadd.f32 %v15443_v6, %v15452_v32  ;;  %v15500_v6 = vpop.permute.xlu0 %7029  ;;  %s7600_s26 = sshll.u32 %s18641_s10, 8 }
 0x7d2   : > { %v6802_v60 = vadd.f32 %v7862_v21, %v15452_v32  ;;  %s15607_s20 = scalar_lea.vmem %s15814_s9, %s7600_s26 }
 0x7d3   : > { %v6846_v54 = vmax.f32 %v6746_v5, 0.0  ;;  %v6793_v14 = vpop.f32.mrf.mxu0  ;;  %v6851_v41 = vmax.f32 %v6767_v63, 0.0  ;;  %v6786_v5 = vadd.f32 %v15464_v52, %v15452_v32 }
 0x7d4   : > { %v6794_v63 = vadd.f32 %v15452_v32, %v6793_v14  ;;  %v6860_v14 = vmax.f32 %v6802_v60, 0.0 }
 0x7d5   : > { %7159 = vrot.lane.b32.xlu1 %v6838_v3, %s8052_s28  ;;  %7161 = vrot.lane.b32.xlu0 %v6839_v35, %s8052_s28  ;;  %v6759_v35 = vadd.f32 %v15452_v32, %v6758_v44  ;;  %v6770_v44 = vadd.f32 %v15445_v30, %v15452_v32  ;;  %v15511_v51 = vpop.permute.xlu0 %7033 }
 0x7d7   : > { %v6849_v3 = vmax.f32 %v6759_v35, 0.0  ;;  %v6852_v17 = vmax.f32 %v6770_v44, 0.0  ;;  %v6799_v35 = vadd.f32 %v7861_v26, %v15452_v32 }
 0x7d9   : > { %7163 = vrot.lane.b32.xlu1 %v6840_v37, %s8052_s28  ;;  %7165 = vrot.lane.b32.xlu0 %v6841_v23, %s8052_s28  ;;  %v7865_v37 = vpop.f32.mrf.mxu0  ;;  %v6850_v23 = vmax.f32 %v6762_v18, 0.0  ;;  %v15522_v18 = vpop.permute.xlu0 %7037  ;;  %v6859_v52 = vmax.f32 %v6799_v35, 0.0 }
 0x7dd   : > { %7167 = vrot.lane.b32.xlu1 %v6842_v46, %s8052_s28  ;;  %7169 = vrot.lane.b32.xlu0 %v6843_v43, %s8052_s28  ;;  %v6806_v43 = vpop.f32.mrf.mxu0  ;;  %v6783_v46 = vadd.f32 %v15454_v55, %v15452_v32  ;;  %v15532_v26 = vpop.permute.xlu0 %7041 }
 0x7de   : > { %v6807_v44 = vadd.f32 %v15452_v32, %v6806_v43 }
 0x7df   : > { %v7866_v30 = vpop.f32.mrf.mxu0 }
 0x7e1   : > { %7171 = vrot.lane.b32.xlu1 %v6844_v10, %s8052_s28  ;;  %7173 = vrot.lane.b32.xlu0 %v6845_v11, %s8052_s28  ;;  %v6778_v10 = vadd.f32 %v15452_v32, %v6777_v56  ;;  %v6855_v11 = vmax.f32 %v6783_v46, 0.0  ;;  %v6809_v55 = vpop.f32.mrf.mxu0  ;;  %v15518_v56 = vpop.permute.xlu1 %7035  ;;  %v6861_v46 = vmax.f32 %v6807_v44, 0.0 }
 0x7e5   : > { %7175 = vrot.lane.b32.xlu1 %v6846_v54, %s8052_s28  ;;  %7177 = vrot.lane.b32.xlu0 %v6847_v29, %s8052_s28  ;;  %v6854_v29 = vmax.f32 %v6778_v10, 0.0  ;;  %v6856_v54 = vmax.f32 %v6786_v5, 0.0  ;;  %v15528_v4 = vpop.permute.xlu1 %7039 }
 0x7e9   : > { %7179 = vrot.lane.b32.xlu1 %v6848_v1, %s8052_s28  ;;  %7181 = vrot.lane.b32.xlu0 %v6849_v3, %s8052_s28  ;;  %v6857_v1 = vmax.f32 %v6791_v24, 0.0  ;;  %v7869_v3 = vpop.f32.mrf.mxu0  ;;  %v15538_v21 = vpop.permute.xlu1 %7043 }
 0x7ed   : > { %7183 = vrot.lane.b32.xlu1 %v6850_v23, %s8052_s28  ;;  %7185 = vrot.lane.b32.xlu0 %v6851_v41, %s8052_s28  ;;  %v6858_v41 = vmax.f32 %v6794_v63, 0.0  ;;  %v6822_v23 = vpop.f32.mrf.mxu0  ;;  %v15548_v63 = vpop.permute.xlu1 %7047 }
 0x7ef   : > { %v7870_v10 = vpop.f32.mrf.mxu0 }
 0x7f0   : > { %v6834_v60 = vadd.f32 %v7870_v10, %v15452_v32 }
 0x7f1   : > { %7187 = vrot.lane.b32.xlu1 %v6852_v17, %s8052_s28  ;;  %7189 = vrot.lane.b32.xlu0 %v6853_v7, %s8052_s28  ;;  %v6815_v17 = vadd.f32 %v7865_v37, %v15452_v32  ;;  %v6810_v7 = vadd.f32 %v15452_v32, %v6809_v55  ;;  %v6825_v24 = vpop.f32.mrf.mxu0  ;;  %v6831_v55 = vadd.f32 %v7869_v3, %v15452_v32  ;;  %v15557_v3 = vpop.permute.xlu1 %7051 }
 0x7f2   : > { %v6868_v44 = vmax.f32 %v6834_v60, 0.0 }
 0x7f3   : > { %v6863_v43 = vmax.f32 %v6815_v17, 0.0  ;;  %v6862_v5 = vmax.f32 %v6810_v7, 0.0 }
 0x7f5   : > { %7191 = vrot.lane.b32.xlu1 %v6854_v29, %s8052_s28  ;;  %7193 = vrot.lane.b32.xlu0 %v6855_v11, %s8052_s28  ;;  %v6818_v11 = vadd.f32 %v7866_v30, %v15452_v32  ;;  %v6823_v29 = vadd.f32 %v15452_v32, %v6822_v23 }
 0x7f7   : > { %v6864_v37 = vmax.f32 %v6818_v11, 0.0  ;;  %v6865_v35 = vmax.f32 %v6823_v29, 0.0 }
 0x7f9   : > { %7195 = vrot.lane.b32.xlu1 %v6856_v54, %s8052_s28  ;;  %7197 = vrot.lane.b32.xlu0 %v6857_v1, %s8052_s28  ;;  %v15542_v54 = vpop.permute.xlu0 %7045  ;;  %v6826_v1 = vadd.f32 %v15452_v32, %v6825_v24 }
 0x7fd   : > { %7199 = vrot.lane.b32.xlu1 %v6858_v41, %s8052_s28  ;;  %7201 = vrot.lane.b32.xlu0 %v6859_v52, %s8052_s28  ;;  %v15552_v30 = vpop.permute.xlu0 %7049  ;;  %v6867_v52 = vmax.f32 %v6831_v55, 0.0  ;;  %v6866_v41 = vmax.f32 %v6826_v1, 0.0 }
 0x801   : > { %7203 = vrot.lane.b32.xlu1 %v6860_v14, %s8052_s28  ;;  %7205 = vrot.lane.b32.xlu0 %v6861_v46, %s8052_s28  ;;  %v15559_v23 = vpop.permute.xlu0 %7053  ;;  %v15562_v14 = vpop.permute.xlu1 %7055 }
 0x805   : > { %7207 = vrot.lane.b32.xlu1 %v6862_v5, %s8052_s28  ;;  %7209 = vrot.lane.b32.xlu0 %v6863_v43, %s8052_s28  ;;  %v15564_v17 = vpop.permute.xlu0 %7057  ;;  %v15566_v46 = vpop.permute.xlu1 %7059 }
 0x809   : > { %7211 = vrot.lane.b32.xlu1 %v6864_v37, %s8052_s28  ;;  %7213 = vrot.lane.b32.xlu0 %v6865_v35, %s8052_s28  ;;  %v15568_v32 = vpop.permute.xlu0 %7061  ;;  %v15570_v7 = vpop.permute.xlu1 %7063 }
 0x80d   : > { %7215 = vrot.lane.b32.xlu1 %v6866_v41, %s8052_s28  ;;  %7217 = vrot.lane.b32.xlu0 %v6867_v52, %s8052_s28  ;;  %v15572_v10 = vpop.permute.xlu0 %7065  ;;  %v15574_v43 = vpop.permute.xlu1 %7067 }
 0x811   : > { %7219 = vrot.lane.b32.xlu1 %v6868_v44, %s8052_s28  ;;  %v15576_v11 = vpop.permute.xlu0 %7069  ;;  %v15578_v5 = vpop.permute.xlu1 %7071  ;;  %v7285_v44 = vsel %vm2357_vm10, %v15268_v13, %v15500_v6  ;;  %v7286_v13 = vsel %vm2357_vm10, %v15264_v47, %v15507_v28  ;;  %v7287_v6 = vsel %vm2357_vm10, %v15276_v49, %v15511_v51  ;;  %v7288_v47 = vsel %vm2357_vm10, %v15272_v45, %v15518_v56 }
 0x812   : > { %v7289_v49 = vsel %vm2357_vm10, %v15284_v16, %v15522_v18  ;;  %v7290_v45 = vsel %vm2357_vm10, %v15280_v48, %v15528_v4  ;;  %v7291_v16 = vsel %vm2357_vm10, %v15292_v9, %v15532_v26  ;;  %v7292_v48 = vsel %vm2357_vm10, %v15288_v22, %v15538_v21 }
 0x813   : > { %v7293_v9 = vsel %vm2357_vm10, %v15300_v42, %v15542_v54  ;;  %v7294_v22 = vsel %vm2357_vm10, %v15296_v58, %v15548_v63  ;;  %v7295_v42 = vsel %vm2357_vm10, %v15308_v34, %v15552_v30  ;;  %v7296_v58 = vsel %vm2357_vm10, %v15304_v40, %v15557_v3 }
 0x814   : > { %v7297_v34 = vsel %vm2357_vm10, %v15316_v59, %v15559_v23  ;;  %v7298_v40 = vsel %vm2357_vm10, %v15312_v27, %v15562_v14  ;;  %v7299_v59 = vsel %vm2357_vm10, %v15324_v25, %v15564_v17  ;;  %v7300_v27 = vsel %vm2357_vm10, %v15320_v19, %v15566_v46 }
 0x815   : > { %v15580_v29 = vpop.permute.xlu0 %7073  ;;  %v15582_v24 = vpop.permute.xlu1 %7075  ;;  %v7301_v25 = vsel %vm2357_vm10, %v15332_v61, %v15568_v32  ;;  %v7302_v19 = vsel %vm2357_vm10, %v15328_v53, %v15570_v7  ;;  %v7303_v61 = vsel %vm2357_vm10, %v15340_v57, %v15572_v10  ;;  %v7304_v53 = vsel %vm2357_vm10, %v15336_v50, %v15574_v43 }
 0x816   : > { %v7305_v57 = vsel %vm2357_vm10, %v15348_v31, %v15576_v11  ;;  %v7306_v50 = vsel %vm2357_vm10, %v15344_v12, %v15578_v5  ;;  %v7307_v31 = vsel %vm2357_vm10, %v15356_v0, %v15580_v29  ;;  %v7308_v12 = vsel %vm2357_vm10, %v15352_v39, %v15582_v24 }
 0x819   : > { %v15584_v37 = vpop.permute.xlu0 %7077 }
 0x81a   : > { %v7309_v0 = vsel %vm2357_vm10, %v15364_v36, %v15584_v37 }
 0x81b   : > { %v15586_v55 = vpop.permute.xlu1 %7079 }
 0x81c   : > { %v7310_v39 = vsel %vm2357_vm10, %v15360_v38, %v15586_v55 }
 0x81d   : > { %v15588_v35 = vpop.permute.xlu0 %7081 }
 0x81e   : > { %v7311_v36 = vsel %vm2357_vm10, %v15372_v62, %v15588_v35  ;;  %v18631_v62 = vld [vmem:[#allocation337_spill] sm:$0xff] }
 0x81f   : > { %v15590_v1 = vpop.permute.xlu1 %7083 }
 0x820   : > { %v7312_v38 = vsel %vm2357_vm10, %v15368_v33, %v15590_v1 }
 0x83b   : > { %v15592_v52 = vpop.permute.xlu0 %7085 }
 0x83c   : > { %18626 = vst [vmem:[#allocation18_spill] sm:$0xff] %v15592_v52 }
 0x83f   : > { %v15594_v60 = vpop.permute.xlu1 %7087  ;;  %v15596_v41 = vpop.permute.xlu0 %7089 }
 0x840   : > { %18627 = vst [vmem:[#allocation22_spill] sm:$0xff] %v15594_v60  ;;  %18628 = vst [vmem:[#allocation20_spill] sm:$0xff] %v15596_v41 }
 0x843   : > { %v15602_v8 = vpop.permute.xlu1 %7091  ;;  %v7158_v20 = vpop.permute.xlu0 %7157  ;;  %v18630_v55 = vld [vmem:[#allocation18_spill] sm:$0xff] }
 0x844   : > { %18629 = vst [vmem:[#allocation24_spill] sm:$0xff] %v15602_v8  ;;  %v7317_v60 = vsel %vm2487_vm12, %v7285_v44, %v7158_v20  ;;  %v7313_v35 = vsel %vm2357_vm10, %v18631_v62, %v18630_v55 }
 0x845   : > { %v7349_v41 = vsel %vm2617_vm13, %v7317_v60, 0.0 }
 0x846   : > { %7381 = vst [vmem:[%s15607_s20] sm:$0xff] %v7349_v41 }
 0x847   : > { %v7160_v8 = vpop.permute.xlu1 %7159  ;;  %v7162_v15 = vpop.permute.xlu0 %7161  ;;  %v18634_v1 = vld [vmem:[#allocation22_spill] sm:$0xff] }
 0x848   : > { %v7318_v2 = vsel %vm2487_vm12, %v7286_v13, %v7160_v8  ;;  %v7319_v52 = vsel %vm2487_vm12, %v7287_v6, %v7162_v15 }
 0x849   : > { %v7350_v20 = vsel %vm2617_vm13, %v7318_v2, 0.0  ;;  %v7351_v60 = vsel %vm2617_vm13, %v7319_v52, 0.0 }
 0x84a   : > { %7382 = vst [vmem:[%s15607_s20 + $0x8] sm:$0xff] %v7350_v20  ;;  %7383 = vst [vmem:[%s15607_s20 + $0x10] sm:$0xff] %v7351_v60 }
 0x84b   : > { %v7164_v28 = vpop.permute.xlu1 %7163  ;;  %v7166_v51 = vpop.permute.xlu0 %7165 }
 0x84c   : > { %v7320_v15 = vsel %vm2487_vm12, %v7288_v47, %v7164_v28  ;;  %v7321_v2 = vsel %vm2487_vm12, %v7289_v49, %v7166_v51 }
 0x84d   : > { %v7352_v8 = vsel %vm2617_vm13, %v7320_v15, 0.0  ;;  %v7353_v52 = vsel %vm2617_vm13, %v7321_v2, 0.0 }
 0x84e   : > { %7384 = vst [vmem:[%s15607_s20 + $0x18] sm:$0xff] %v7352_v8  ;;  %7385 = vst [vmem:[%s15607_s20 + $0x20] sm:$0xff] %v7353_v52 }
 0x84f   : > { %v7168_v56 = vpop.permute.xlu1 %7167  ;;  %v7170_v18 = vpop.permute.xlu0 %7169 }
 0x850   : > { %v7322_v41 = vsel %vm2487_vm12, %v7290_v45, %v7168_v56  ;;  %v7323_v44 = vsel %vm2487_vm12, %v7291_v16, %v7170_v18 }
 0x851   : > { %v7354_v13 = vsel %vm2617_vm13, %v7322_v41, 0.0  ;;  %v7355_v6 = vsel %vm2617_vm13, %v7323_v44, 0.0 }
 0x852   : > { %7386 = vst [vmem:[%s15607_s20 + $0x28] sm:$0xff] %v7354_v13  ;;  %7387 = vst [vmem:[%s15607_s20 + $0x30] sm:$0xff] %v7355_v6 }
 0x853   : > { %v7172_v4 = vpop.permute.xlu1 %7171  ;;  %v7174_v26 = vpop.permute.xlu0 %7173 }
 0x854   : > { %v7324_v20 = vsel %vm2487_vm12, %v7292_v48, %v7172_v4  ;;  %v7325_v60 = vsel %vm2487_vm12, %v7293_v9, %v7174_v26 }
 0x855   : > { %v7356_v47 = vsel %vm2617_vm13, %v7324_v20, 0.0  ;;  %v7357_v49 = vsel %vm2617_vm13, %v7325_v60, 0.0 }
 0x856   : > { %7388 = vst [vmem:[%s15607_s20 + $0x38] sm:$0xff] %v7356_v47  ;;  %7389 = vst [vmem:[%s15607_s20 + $0x40] sm:$0xff] %v7357_v49 }
 0x857   : > { %v7176_v21 = vpop.permute.xlu1 %7175  ;;  %v7178_v54 = vpop.permute.xlu0 %7177 }
 0x858   : > { %v7326_v28 = vsel %vm2487_vm12, %v7294_v22, %v7176_v21  ;;  %v7327_v51 = vsel %vm2487_vm12, %v7295_v42, %v7178_v54 }
 0x859   : > { %v7358_v15 = vsel %vm2617_vm13, %v7326_v28, 0.0  ;;  %v7359_v2 = vsel %vm2617_vm13, %v7327_v51, 0.0 }
 0x85a   : > { %7390 = vst [vmem:[%s15607_s20 + $0x48] sm:$0xff] %v7358_v15  ;;  %7391 = vst [vmem:[%s15607_s20 + $0x50] sm:$0xff] %v7359_v2 }
 0x85b   : > { %v7180_v63 = vpop.permute.xlu1 %7179  ;;  %v7182_v30 = vpop.permute.xlu0 %7181 }
 0x85c   : > { %v7328_v8 = vsel %vm2487_vm12, %v7296_v58, %v7180_v63  ;;  %v7329_v52 = vsel %vm2487_vm12, %v7297_v34, %v7182_v30 }
 0x85d   : > { %v7360_v45 = vsel %vm2617_vm13, %v7328_v8, 0.0  ;;  %v7361_v16 = vsel %vm2617_vm13, %v7329_v52, 0.0 }
 0x85e   : > { %7392 = vst [vmem:[%s15607_s20 + $0x58] sm:$0xff] %v7360_v45  ;;  %7393 = vst [vmem:[%s15607_s20 + $0x60] sm:$0xff] %v7361_v16 }
 0x85f   : > { %v7184_v3 = vpop.permute.xlu1 %7183  ;;  %v7186_v23 = vpop.permute.xlu0 %7185 }
 0x860   : > { %v7330_v56 = vsel %vm2487_vm12, %v7298_v40, %v7184_v3  ;;  %v7331_v18 = vsel %vm2487_vm12, %v7299_v59, %v7186_v23 }
 0x861   : > { %v7362_v41 = vsel %vm2617_vm13, %v7330_v56, 0.0  ;;  %v7363_v44 = vsel %vm2617_vm13, %v7331_v18, 0.0  ;;  %v18632_v56 = vld [vmem:[#allocation344_spill] sm:$0xff]  ;;  %v18633_v18 = vld [vmem:[#allocation187_spill] sm:$0xff] }
 0x862   : > { %7394 = vst [vmem:[%s15607_s20 + $0x68] sm:$0xff] %v7362_v41  ;;  %7395 = vst [vmem:[%s15607_s20 + $0x70] sm:$0xff] %v7363_v44  ;;  %v7283_v33 = vsel %vm2227_vm8, %v18633_v18, %v18632_v56  ;;  %v18635_v41 = vld [vmem:[#allocation103_spill] sm:$0xff] }
 0x863   : > { %v7188_v14 = vpop.permute.xlu1 %7187  ;;  %v7190_v17 = vpop.permute.xlu0 %7189  ;;  %v7314_v44 = vsel %vm2357_vm10, %v18635_v41, %v18634_v1 }
 0x864   : > { %v7332_v13 = vsel %vm2487_vm12, %v7300_v27, %v7188_v14  ;;  %v7333_v6 = vsel %vm2487_vm12, %v7301_v25, %v7190_v17  ;;  %v18636_v27 = vld [vmem:[#allocation20_spill] sm:$0xff] }
 0x865   : > { %v7364_v48 = vsel %vm2617_vm13, %v7332_v13, 0.0  ;;  %v7365_v9 = vsel %vm2617_vm13, %v7333_v6, 0.0  ;;  %v7315_v25 = vsel %vm2357_vm10, %v7283_v33, %v18636_v27 }
 0x866   : > { %7396 = vst [vmem:[%s15607_s20 + $0x78] sm:$0xff] %v7364_v48  ;;  %7397 = vst [vmem:[%s15607_s20 + $0x80] sm:$0xff] %v7365_v9 }
 0x867   : > { %v7192_v46 = vpop.permute.xlu1 %7191  ;;  %v7194_v32 = vpop.permute.xlu0 %7193 }
 0x868   : > { %v7334_v4 = vsel %vm2487_vm12, %v7302_v19, %v7192_v46  ;;  %v7335_v26 = vsel %vm2487_vm12, %v7303_v61, %v7194_v32  ;;  %v18637_v19 = vld [vmem:[#allocation17_spill] sm:$0xff]  ;;  %v18639_v32 = vld [vmem:[#allocation24_spill] sm:$0xff] }
 0x869   : > { %v7366_v20 = vsel %vm2617_vm13, %v7334_v4, 0.0  ;;  %v7367_v60 = vsel %vm2617_vm13, %v7335_v26, 0.0  ;;  %v18638_v61 = vld [vmem:[#allocation185_spill] sm:$0xff] }
 0x86a   : > { %7398 = vst [vmem:[%s15607_s20 + $0x88] sm:$0xff] %v7366_v20  ;;  %7399 = vst [vmem:[%s15607_s20 + $0x90] sm:$0xff] %v7367_v60  ;;  %v7284_v46 = vsel %vm2227_vm8, %v18638_v61, %v18637_v19 }
 0x86b   : > { %v7196_v7 = vpop.permute.xlu1 %7195  ;;  %v7198_v10 = vpop.permute.xlu0 %7197  ;;  %v7316_v4 = vsel %vm2357_vm10, %v7284_v46, %v18639_v32 }
 0x86c   : > { %v7336_v47 = vsel %vm2487_vm12, %v7304_v53, %v7196_v7  ;;  %v7337_v49 = vsel %vm2487_vm12, %v7305_v57, %v7198_v10 }
 0x86d   : > { %v7368_v22 = vsel %vm2617_vm13, %v7336_v47, 0.0  ;;  %v7369_v42 = vsel %vm2617_vm13, %v7337_v49, 0.0 }
 0x86e   : > { %7400 = vst [vmem:[%s15607_s20 + $0x98] sm:$0xff] %v7368_v22  ;;  %7401 = vst [vmem:[%s15607_s20 + $0xa0] sm:$0xff] %v7369_v42 }
 0x86f   : > { %v7200_v43 = vpop.permute.xlu1 %7199  ;;  %v7202_v11 = vpop.permute.xlu0 %7201 }
 0x870   : > { %v7338_v21 = vsel %vm2487_vm12, %v7306_v50, %v7200_v43  ;;  %v7339_v54 = vsel %vm2487_vm12, %v7307_v31, %v7202_v11 }
 0x871   : > { %v7370_v28 = vsel %vm2617_vm13, %v7338_v21, 0.0  ;;  %v7371_v51 = vsel %vm2617_vm13, %v7339_v54, 0.0 }
 0x872   : > { %7402 = vst [vmem:[%s15607_s20 + $0xa8] sm:$0xff] %v7370_v28  ;;  %7403 = vst [vmem:[%s15607_s20 + $0xb0] sm:$0xff] %v7371_v51 }
 0x873   : > { %v7204_v5 = vpop.permute.xlu1 %7203  ;;  %v7206_v29 = vpop.permute.xlu0 %7205 }
 0x874   : > { %v7340_v15 = vsel %vm2487_vm12, %v7308_v12, %v7204_v5  ;;  %v7341_v2 = vsel %vm2487_vm12, %v7309_v0, %v7206_v29 }
 0x875   : > { %v7372_v58 = vsel %vm2617_vm13, %v7340_v15, 0.0  ;;  %v7373_v34 = vsel %vm2617_vm13, %v7341_v2, 0.0 }
 0x876   : > { %7404 = vst [vmem:[%s15607_s20 + $0xb8] sm:$0xff] %v7372_v58  ;;  %7405 = vst [vmem:[%s15607_s20 + $0xc0] sm:$0xff] %v7373_v34 }
 0x877   : > { %v7208_v24 = vpop.permute.xlu1 %7207  ;;  %v7210_v37 = vpop.permute.xlu0 %7209 }
 0x878   : > { %v7342_v63 = vsel %vm2487_vm12, %v7310_v39, %v7208_v24  ;;  %v7343_v30 = vsel %vm2487_vm12, %v7311_v36, %v7210_v37 }
 0x879   : > { %v7374_v8 = vsel %vm2617_vm13, %v7342_v63, 0.0  ;;  %v7375_v52 = vsel %vm2617_vm13, %v7343_v30, 0.0 }
 0x87a   : > { %7406 = vst [vmem:[%s15607_s20 + $0xc8] sm:$0xff] %v7374_v8  ;;  %7407 = vst [vmem:[%s15607_s20 + $0xd0] sm:$0xff] %v7375_v52 }
 0x87b   : > { %v7212_v45 = vpop.permute.xlu1 %7211  ;;  %v7214_v16 = vpop.permute.xlu0 %7213 }
 0x87c   : > { %v7344_v40 = vsel %vm2487_vm12, %v7312_v38, %v7212_v45  ;;  %v7345_v59 = vsel %vm2487_vm12, %v7313_v35, %v7214_v16 }
 0x87d   : > { %v7376_v3 = vsel %vm2617_vm13, %v7344_v40, 0.0  ;;  %v7377_v23 = vsel %vm2617_vm13, %v7345_v59, 0.0 }
 0x87e   : > { %7408 = vst [vmem:[%s15607_s20 + $0xd8] sm:$0xff] %v7376_v3  ;;  %7409 = vst [vmem:[%s15607_s20 + $0xe0] sm:$0xff] %v7377_v23 }
 0x87f   : > { %v7216_v14 = vpop.permute.xlu1 %7215  ;;  %v7218_v17 = vpop.permute.xlu0 %7217 }
 0x880   : > { %v7346_v13 = vsel %vm2487_vm12, %v7314_v44, %v7216_v14  ;;  %v7347_v6 = vsel %vm2487_vm12, %v7315_v25, %v7218_v17 }
 0x881   : > { %v7378_v48 = vsel %vm2617_vm13, %v7346_v13, 0.0  ;;  %v7379_v9 = vsel %vm2617_vm13, %v7347_v6, 0.0 }
 0x882   : > { %7410 = vst [vmem:[%s15607_s20 + $0xe8] sm:$0xff] %v7378_v48  ;;  %7411 = vst [vmem:[%s15607_s20 + $0xf0] sm:$0xff] %v7379_v9 }
 0x883   : > { %v7220_v26 = vpop.permute.xlu1 %7219 }
 0x884   : > { %v7348_v20 = vsel %vm2487_vm12, %v7316_v4, %v7220_v26 }
 0x885   : > { %v7380_v60 = vsel %vm2617_vm13, %v7348_v20, 0.0 }
 0x886   : > { %7412 = vst [vmem:[%s15607_s20 + $0xf8] sm:$0xff] %v7380_v60 }
 0x887 PF: > { %s19_s30 = sadd.s32 1, %s8040_s30  }
 0x888   : > { %p16_p4 = scmp.ge.s32.totalorder %s19_s30, 4  }
 0x88a   :  { %18 = sbr.rel (!%p16_p4) target bundleno = 1 (0x1), region = 86 }

</bundles_post_ra>
